<compile_context>
chip_gen: v7x
topology: tpu7x:2x2x1
jax: 0.10.0
libtpu: 0.0.40
codegen_flags: <defaults>
</compile_context>

<pallas_src>
import functools

import jax
import jax.numpy as jnp
from jax.experimental import pallas as pl
from jax.experimental.pallas import tpu as pltpu

NUM_HIDDENS = 256
NUM_RESIDUAL_HIDDENS = 32
NUM_RESIDUAL_LAYERS = 2
IN_CHANNELS = 3  # standard VQ-VAE image input

_MAX_TM = 512      # max rows per grid step (keeps steps few and fat)
_RH_PAD = 128      # residual-hidden padded to a lane-dense width
_FINAL_OPAD = 32   # per-phase padding of the 3-channel final ConvT (4*32 = 128)


def _round_up(x, m):
    return ((x + m - 1) // m) * m


# ----------------------------------------------------------------------------
# Pallas kernels
# ----------------------------------------------------------------------------
def _conv_mm_kernel(a_ref, w_ref, b_ref, o_ref, *, relu):
    """(tm,K) @ (K,N) + bias, optional ReLU.  bf16 inputs, fp32 accumulate."""
    acc = jnp.dot(a_ref[...], w_ref[...], preferred_element_type=jnp.float32)
    acc = acc + b_ref[...]
    if relu:
        acc = jnp.maximum(acc, 0.0)
    o_ref[...] = acc.astype(o_ref.dtype)


def _res_layer_kernel(a_ref, w3_ref, w1_ref, o_ref, *, hidden, relu_out):
    """Fused VQ-VAE residual layer on 3x3 im2col patches of x:
         out = x + conv1x1(relu(conv3x3(relu(x))))   [+ optional trailing ReLU]
    The skip connection x is the centre tap (tap index 4) of the patches, so no
    separate residual stream is DMA'd.  Convs are bias-free (matches PyTorch).
    """
    a = a_ref[...]                                           # (tm, 9*hidden) bf16
    x_skip = a[:, 4 * hidden:5 * hidden].astype(jnp.float32)  # lane-aligned slice
    t = jnp.dot(jnp.maximum(a, 0), w3_ref[...],
                preferred_element_type=jnp.float32)          # 3x3 conv on relu(x)
    t = jnp.maximum(t, 0.0).astype(jnp.bfloat16)
    acc = jnp.dot(t, w1_ref[...],
                  preferred_element_type=jnp.float32) + x_skip
    if relu_out:
        acc = jnp.maximum(acc, 0.0)
    o_ref[...] = acc.astype(o_ref.dtype)


# ----------------------------------------------------------------------------
# pallas_call wrappers
# ----------------------------------------------------------------------------
def _m_tiling(M):
    tm = min(_round_up(M, 8), _MAX_TM)
    return tm, _round_up(M, tm)


def matmul_bias(a, w, bias_row, relu, out_dtype):
    """(M,K) @ (K,N) + bias(1,N), optional ReLU — weights/bias stay resident."""
    M, K = a.shape
    N = w.shape[1]
    tm, Mp = _m_tiling(M)
    if Mp != M:  # rare fallback; at the shapes used here Mp == M (no HBM copy)
        a = jnp.pad(a, ((0, Mp - M), (0, 0)))
    out = pl.pallas_call(
        functools.partial(_conv_mm_kernel, relu=relu),
        out_shape=jax.ShapeDtypeStruct((Mp, N), out_dtype),
        grid_spec=pltpu.PrefetchScalarGridSpec(
            num_scalar_prefetch=0,
            grid=(Mp // tm,),
            in_specs=[
                pl.BlockSpec((tm, K), lambda i: (i, 0)),   # im2col tile
                pl.BlockSpec((K, N), lambda i: (0, 0)),    # resident weights
                pl.BlockSpec((1, N), lambda i: (0, 0)),    # resident bias row
            ],
            out_specs=pl.BlockSpec((tm, N), lambda i: (i, 0)),
        ),
        compiler_params=pltpu.CompilerParams(dimension_semantics=("parallel",)),
    )(a, w, bias_row)
    return out[:M] if Mp != M else out


def res_layer_matmul(patches, w3, w1, hidden, relu_out, out_dtype):
    """One fused residual layer: two resident weights, one patch stream."""
    M, K = patches.shape
    RH = w3.shape[1]
    N = w1.shape[1]
    tm, Mp = _m_tiling(M)
    if Mp != M:
        patches = jnp.pad(patches, ((0, Mp - M), (0, 0)))
    out = pl.pallas_call(
        functools.partial(_res_layer_kernel, hidden=hidden, relu_out=relu_out),
        out_shape=jax.ShapeDtypeStruct((Mp, N), out_dtype),
        grid_spec=pltpu.PrefetchScalarGridSpec(
            num_scalar_prefetch=0,
            grid=(Mp // tm,),
            in_specs=[
                pl.BlockSpec((tm, K), lambda i: (i, 0)),
                pl.BlockSpec((K, RH), lambda i: (0, 0)),
                pl.BlockSpec((RH, N), lambda i: (0, 0)),
            ],
            out_specs=pl.BlockSpec((tm, N), lambda i: (i, 0)),
        ),
        compiler_params=pltpu.CompilerParams(dimension_semantics=("parallel",)),
    )(patches, w3, w1)
    return out[:M] if Mp != M else out


# ----------------------------------------------------------------------------
# Conv layers (im2col glue in XLA; MXU hot path in Pallas)
# ----------------------------------------------------------------------------
# TODO(synk): for large spatial inputs, replace plain-JAX im2col with an
# in-kernel kh*kw tap-accumulation grid axis so the activation is read once.
def _im2col(x, kh, kw, stride, pad):
    """x: NHWC -> (B*Ho*Wo, kh*kw*C) patches ordered (tap_i, tap_j, c)."""
    B, H, W, C = x.shape
    xp = jnp.pad(x, ((0, 0), (pad, pad), (pad, pad), (0, 0)))
    Hp, Wp = H + 2 * pad, W + 2 * pad
    Ho = (Hp - kh) // stride + 1
    Wo = (Wp - kw) // stride + 1
    cols = []
    for i in range(kh):
        for j in range(kw):
            cols.append(
                xp[:, i:i + (Ho - 1) * stride + 1:stride,
                      j:j + (Wo - 1) * stride + 1:stride, :]
            )
    patches = jnp.concatenate(cols, axis=-1)  # (B, Ho, Wo, kh*kw*C)
    return patches.reshape(B * Ho * Wo, kh * kw * C), Ho, Wo


def conv2d(x, wmat, bias_row, kh, kw, stride, pad, relu=False, out_dtype=None):
    """x: NHWC bf16, wmat: preprocessed (kh*kw*I, O) bf16, bias_row: (1, O) f32."""
    B = x.shape[0]
    patches, Ho, Wo = _im2col(x, kh, kw, stride, pad)
    out = matmul_bias(patches, wmat, bias_row, relu,
                      out_dtype if out_dtype is not None else x.dtype)
    return out.reshape(B, Ho, Wo, wmat.shape[1])


def conv_transpose_s2(x, wmat, bias_row, out_channels, relu, out_dtype):
    """ConvTranspose2d(k=4, s=2, p=1) via sub-pixel phase decomposition:
    3x3/s1/p1 im2col on the *undilated* input, one matmul against the
    phase-stacked weight, then a (dy, dx) interleave reshape."""
    B, H, W, _ = x.shape
    patches, _, _ = _im2col(x, 3, 3, 1, 1)              # Ho == H, Wo == W
    o_pad = wmat.shape[1] // 4
    out = matmul_bias(patches, wmat, bias_row, relu, out_dtype)
    out = out.reshape(B, H, W, 2, 2, o_pad)             # (..., dy, dx, o)
    out = jnp.transpose(out, (0, 1, 3, 2, 4, 5)).reshape(B, 2 * H, 2 * W, o_pad)
    return out[..., :out_channels]


def residual_stack(x, layers):
    B, H, W, C = x.shape
    n = len(layers)
    for li, (w3, w1) in enumerate(layers):
        patches, _, _ = _im2col(x, 3, 3, 1, 1)
        out = res_layer_matmul(patches, w3, w1, hidden=C,
                               relu_out=(li == n - 1),   # stack-final F.relu fused
                               out_dtype=x.dtype)
        x = out.reshape(B, H, W, w1.shape[1])
    return x


# ----------------------------------------------------------------------------
# Forward pass
# ----------------------------------------------------------------------------
def encoder_forward(pp, x):
    x = conv2d(x, pp["e1_w"], pp["e1_b"], 4, 4, 2, 1, relu=True)
    x = conv2d(x, pp["e2_w"], pp["e2_b"], 4, 4, 2, 1, relu=True)
    x = conv2d(x, pp["e3_w"], pp["e3_b"], 3, 3, 1, 1, relu=False)
    x = residual_stack(x, pp["e_res"])
    return x


def decoder_forward(pp, z):
    x = conv2d(z, pp["d1_w"], pp["d1_b"], 3, 3, 1, 1, relu=False)
    x = residual_stack(x, pp["d_res"])
    x = conv_transpose_s2(x, pp["dt1_w"], pp["dt1_b"], NUM_HIDDENS // 2,
                          relu=True, out_dtype=jnp.bfloat16)
    x = conv_transpose_s2(x, pp["dt2_w"], pp["dt2_b"], IN_CHANNELS,
                          relu=False, out_dtype=jnp.float32)
    return x


def autoencoder_forward(pp, x_nchw):
    x = jnp.transpose(x_nchw, (0, 2, 3, 1)).astype(jnp.bfloat16)  # NCHW -> NHWC
    z = encoder_forward(pp, x)
    y = decoder_forward(pp, z)
    return jnp.transpose(y, (0, 3, 1, 2))                          # NHWC -> NCHW


# ----------------------------------------------------------------------------
# One-time parameter preprocessing (hoisted out of the forward pass)
# ----------------------------------------------------------------------------
def _convt_phase_weight(w_iohw, bias, o_pad):
    """Rewrite ConvTranspose2d(k=4, s=2, p=1) as one 3x3 conv over the undilated
    input whose output channels hold the 2x2 sub-pixel phases, layout
    (dy, dx, o) with o zero-padded to o_pad."""
    I, O, kh, kw = w_iohw.shape
    assert (kh, kw) == (4, 4), "phase decomposition assumes k=4, s=2, p=1"
    w = jnp.transpose(w_iohw, (2, 3, 0, 1))              # (4, 4, I, O)
    if o_pad > O:
        w = jnp.pad(w, ((0, 0), (0, 0), (0, 0), (0, o_pad - O)))
        bias = jnp.pad(bias, (0, o_pad - O))
    zero = jnp.zeros((I, o_pad), w.dtype)
    # Output phase d, 3-wide window offset u -> kernel tap k = d - 2*u + 3.
    kidx = {0: (3, 1, None), 1: (None, 2, 0)}
    phases = []
    for dy in range(2):
        for dx in range(2):
            rows = []
            for u in range(3):
                cols = []
                for v in range(3):
                    ky, kx = kidx[dy][u], kidx[dx][v]
                    cols.append(zero if (ky is None or kx is None) else w[ky, kx])
                rows.append(jnp.stack(cols, axis=0))      # (3, I, o_pad)
            phases.append(jnp.stack(rows, axis=0))        # (3, 3, I, o_pad)
    w_all = jnp.concatenate(phases, axis=-1)              # (3, 3, I, 4*o_pad)
    wmat = w_all.reshape(9 * I, 4 * o_pad).astype(jnp.bfloat16)
    bias_all = jnp.tile(bias, 4).reshape(1, 4 * o_pad).astype(jnp.float32)
    return wmat, bias_all


def preprocess_params(p, rh_pad=_RH_PAD, final_o_pad=_FINAL_OPAD):
    """Convert PyTorch-layout weights into the bf16, lane-dense matrices the
    Pallas kernels consume.  Run once; the forward pass does no weight glue."""
    bf = jnp.bfloat16

    def conv_w(w_oihw):
        O, I, kh, kw = w_oihw.shape
        return jnp.transpose(w_oihw, (2, 3, 1, 0)).reshape(kh * kw * I, O).astype(bf)

    def bias_row(b):
        return b.reshape(1, -1).astype(jnp.float32)

    def res_pair(w3_oihw, w1_oihw):
        O3, I3, _, _ = w3_oihw.shape
        m3 = jnp.transpose(w3_oihw, (2, 3, 1, 0)).reshape(9 * I3, O3)
        m3 = jnp.pad(m3, ((0, 0), (0, rh_pad - O3))).astype(bf)   # N: 32 -> 128
        O1, I1, _, _ = w1_oihw.shape
        m1 = jnp.transpose(w1_oihw, (2, 3, 1, 0)).reshape(I1, O1)
        m1 = jnp.pad(m1, ((0, rh_pad - I1), (0, 0))).astype(bf)   # K: 32 -> 128
        return m3, m1

    pp = {
        "e1_w": conv_w(p["e_conv1_w"]), "e1_b": bias_row(p["e_conv1_b"]),
        "e2_w": conv_w(p["e_conv2_w"]), "e2_b": bias_row(p["e_conv2_b"]),
        "e3_w": conv_w(p["e_conv3_w"]), "e3_b": bias_row(p["e_conv3_b"]),
        "e_res": [res_pair(w3, w1) for w3, w1 in p["e_res"]],
        "d1_w": conv_w(p["d_conv1_w"]), "d1_b": bias_row(p["d_conv1_b"]),
        "d_res": [res_pair(w3, w1) for w3, w1 in p["d_res"]],
    }
    pp["dt1_w"], pp["dt1_b"] = _convt_phase_weight(
        p["d_convt1_w"], p["d_convt1_b"], o_pad=p["d_convt1_w"].shape[1])
    pp["dt2_w"], pp["dt2_b"] = _convt_phase_weight(
        p["d_convt2_w"], p["d_convt2_b"], o_pad=final_o_pad)
    return pp


# ----------------------------------------------------------------------------
# Deterministic parameter initialization (PyTorch layouts, module __init__ shapes)
# ----------------------------------------------------------------------------
def init_params(key, H=NUM_HIDDENS, rh=NUM_RESIDUAL_HIDDENS,
                nrl=NUM_RESIDUAL_LAYERS, in_ch=IN_CHANNELS):
    ks = iter(jax.random.split(key, 64))

    def w(shape, scale=0.05):
        return (scale * jax.random.normal(next(ks), shape)).astype(jnp.float32)

    def b(n):
        return (0.01 * jax.random.normal(next(ks), (n,))).astype(jnp.float32)

    def res_layers():
        return [(w((rh, H, 3, 3)), w((H, rh, 1, 1))) for _ in range(nrl)]

    return {
        # Encoder
        "e_conv1_w": w((H // 2, in_ch, 4, 4)), "e_conv1_b": b(H // 2),
        "e_conv2_w": w((H, H // 2, 4, 4)),     "e_conv2_b": b(H),
        "e_conv3_w": w((H, H, 3, 3)),          "e_conv3_b": b(H),
        "e_res": res_layers(),
        # Decoder (input_dim = num_hiddens)
        "d_conv1_w": w((H, H, 3, 3)),          "d_conv1_b": b(H),
        "d_res": res_layers(),
        "d_convt1_w": w((H, H // 2, 4, 4)),    "d_convt1_b": b(H // 2),   # IOHW
        "d_convt2_w": w((H // 2, in_ch, 4, 4)), "d_convt2_b": b(in_ch),   # IOHW
    }


if __name__ == "__main__":
    key = jax.random.PRNGKey(0)
    k_param, k_x = jax.random.split(key)
    params = init_params(k_param)
    pp = preprocess_params(params)   # one-time weight layout conversion

    # PyTorch-style NCHW input: batch=2, channels=3, spatial=16x16
    x = jax.random.normal(k_x, (2, IN_CHANNELS, 16, 16), dtype=jnp.float32)

    fwd = jax.jit(autoencoder_forward)
    y = fwd(pp, x)
    y = jax.block_until_ready(y)

    assert y.shape == (2, IN_CHANNELS, 16, 16), y.shape
    assert y.dtype == jnp.float32
    assert bool(jnp.all(jnp.isfinite(y)))
    print("KERNEL_OK")
</pallas_src>

<mosaic_0001>
module attributes {stable_mosaic.version = 11 : i64} {
  func.func @_conv_mm_kernel(%arg0: i32, %arg1: memref<128x48xbf16, #tpu.memory_space<vmem>>, %arg2: memref<48x128xbf16, #tpu.memory_space<vmem>>, %arg3: memref<1x128xf32, #tpu.memory_space<vmem>>, %arg4: memref<128x128xbf16, #tpu.memory_space<vmem>>) attributes {dimension_semantics = [#tpu.dimension_semantics<parallel>], iteration_bounds = array<i64: 1>, scalar_prefetch = 0 : i64, scratch_operands = 0 : i64, tpu.core_type = #tpu.core_type<tc>, window_params = [{transform_indices = @transform_0, window_bounds = array<i64: 128, 48>}, {pipeline_mode = #tpu.pipeline_mode<synchronous>, transform_indices = @transform_1, window_bounds = array<i64: 48, 128>}, {pipeline_mode = #tpu.pipeline_mode<synchronous>, transform_indices = @transform_2, window_bounds = array<i64: 1, 128>}, {transform_indices = @transform_3, window_bounds = array<i64: 128, 128>}]} {
    %c0 = arith.constant 0 : index
    %c0_0 = arith.constant 0 : index
    %0 = vector.load %arg1[%c0, %c0_0] : memref<128x48xbf16, #tpu.memory_space<vmem>>, vector<128x48xbf16>
    %c0_1 = arith.constant 0 : index
    %c0_2 = arith.constant 0 : index
    %1 = vector.load %arg2[%c0_1, %c0_2] : memref<48x128xbf16, #tpu.memory_space<vmem>>, vector<48x128xbf16>
    %cst = arith.constant dense<0.000000e+00> : vector<128x128xf32>
    %2 = tpu.matmul %0, %1, %cst {dimension_numbers = #tpu.dot_dimension_numbers<[1], [0], [0], [1], [0, 0, 1, 1], [], []>} : vector<128x48xbf16>, vector<48x128xbf16>, vector<128x128xf32> -> vector<128x128xf32>
    %c0_3 = arith.constant 0 : index
    %c0_4 = arith.constant 0 : index
    %3 = vector.load %arg3[%c0_3, %c0_4] : memref<1x128xf32, #tpu.memory_space<vmem>>, vector<1x128xf32>
    %4 = vector.broadcast %3 : vector<1x128xf32> to vector<128x128xf32>
    %5 = arith.addf %2, %4 : vector<128x128xf32>
    %cst_5 = arith.constant 0.000000e+00 : f32
    %6 = vector.broadcast %cst_5 : f32 to vector<128x128xf32>
    %7 = arith.maximumf %5, %6 : vector<128x128xf32>
    %8 = arith.truncf %7 : vector<128x128xf32> to vector<128x128xbf16>
    %c0_6 = arith.constant 0 : index
    %c0_7 = arith.constant 0 : index
    %9 = vector.load %arg4[%c0_6, %c0_7] : memref<128x128xbf16, #tpu.memory_space<vmem>>, vector<128x128xbf16>
    tpu.vector_store %arg4[%c0_6, %c0_7], %8 {strides = array<i32>} : memref<128x128xbf16, #tpu.memory_space<vmem>>, vector<128x128xbf16>,
    return
  }
  func.func @transform_0(%arg0: i32) -> (i32, i32) {
    %c0_i32 = arith.constant 0 : i32
    %c0_i32_0 = arith.constant 0 : i32
    return %arg0, %c0_i32 : i32, i32
  }
  func.func @transform_1(%arg0: i32) -> (i32, i32) {
    %c0_i32 = arith.constant 0 : i32
    %c0_i32_0 = arith.constant 0 : i32
    %c0_i32_1 = arith.constant 0 : i32
    return %c0_i32, %c0_i32_0 : i32, i32
  }
  func.func @transform_2(%arg0: i32) -> (i32, i32) {
    %c0_i32 = arith.constant 0 : i32
    %c0_i32_0 = arith.constant 0 : i32
    %c0_i32_1 = arith.constant 0 : i32
    return %c0_i32, %c0_i32_0 : i32, i32
  }
  func.func @transform_3(%arg0: i32) -> (i32, i32) {
    %c0_i32 = arith.constant 0 : i32
    %c0_i32_0 = arith.constant 0 : i32
    return %arg0, %c0_i32 : i32, i32
  }
}

module attributes {stable_mosaic.version = 11 : i64} {
  func.func @_conv_mm_kernel(%arg0: i32, %arg1: memref<32x2048xbf16, #tpu.memory_space<vmem>>, %arg2: memref<2048x256xbf16, #tpu.memory_space<vmem>>, %arg3: memref<1x256xf32, #tpu.memory_space<vmem>>, %arg4: memref<32x256xbf16, #tpu.memory_space<vmem>>) attributes {dimension_semantics = [#tpu.dimension_semantics<parallel>], iteration_bounds = array<i64: 1>, scalar_prefetch = 0 : i64, scratch_operands = 0 : i64, tpu.core_type = #tpu.core_type<tc>, window_params = [{transform_indices = @transform_0, window_bounds = array<i64: 32, 2048>}, {pipeline_mode = #tpu.pipeline_mode<synchronous>, transform_indices = @transform_1, window_bounds = array<i64: 2048, 256>}, {pipeline_mode = #tpu.pipeline_mode<synchronous>, transform_indices = @transform_2, window_bounds = array<i64: 1, 256>}, {transform_indices = @transform_3, window_bounds = array<i64: 32, 256>}]} {
    %c0 = arith.constant 0 : index
    %c0_0 = arith.constant 0 : index
    %0 = vector.load %arg1[%c0, %c0_0] : memref<32x2048xbf16, #tpu.memory_space<vmem>>, vector<32x2048xbf16>
    %c0_1 = arith.constant 0 : index
    %c0_2 = arith.constant 0 : index
    %1 = vector.load %arg2[%c0_1, %c0_2] : memref<2048x256xbf16, #tpu.memory_space<vmem>>, vector<2048x256xbf16>
    %cst = arith.constant dense<0.000000e+00> : vector<32x256xf32>
    %2 = tpu.matmul %0, %1, %cst {dimension_numbers = #tpu.dot_dimension_numbers<[1], [0], [0], [1], [0, 0, 1, 1], [], []>} : vector<32x2048xbf16>, vector<2048x256xbf16>, vector<32x256xf32> -> vector<32x256xf32>
    %c0_3 = arith.constant 0 : index
    %c0_4 = arith.constant 0 : index
    %3 = vector.load %arg3[%c0_3, %c0_4] : memref<1x256xf32, #tpu.memory_space<vmem>>, vector<1x256xf32>
    %4 = vector.broadcast %3 : vector<1x256xf32> to vector<32x256xf32>
    %5 = arith.addf %2, %4 : vector<32x256xf32>
    %cst_5 = arith.constant 0.000000e+00 : f32
    %6 = vector.broadcast %cst_5 : f32 to vector<32x256xf32>
    %7 = arith.maximumf %5, %6 : vector<32x256xf32>
    %8 = arith.truncf %7 : vector<32x256xf32> to vector<32x256xbf16>
    %c0_6 = arith.constant 0 : index
    %c0_7 = arith.constant 0 : index
    %9 = vector.load %arg4[%c0_6, %c0_7] : memref<32x256xbf16, #tpu.memory_space<vmem>>, vector<32x256xbf16>
    tpu.vector_store %arg4[%c0_6, %c0_7], %8 {strides = array<i32>} : memref<32x256xbf16, #tpu.memory_space<vmem>>, vector<32x256xbf16>,
    return
  }
  func.func @transform_0(%arg0: i32) -> (i32, i32) {
    %c0_i32 = arith.constant 0 : i32
    %c0_i32_0 = arith.constant 0 : i32
    return %arg0, %c0_i32 : i32, i32
  }
  func.func @transform_1(%arg0: i32) -> (i32, i32) {
    %c0_i32 = arith.constant 0 : i32
    %c0_i32_0 = arith.constant 0 : i32
    %c0_i32_1 = arith.constant 0 : i32
    return %c0_i32, %c0_i32_0 : i32, i32
  }
  func.func @transform_2(%arg0: i32) -> (i32, i32) {
    %c0_i32 = arith.constant 0 : i32
    %c0_i32_0 = arith.constant 0 : i32
    %c0_i32_1 = arith.constant 0 : i32
    return %c0_i32, %c0_i32_0 : i32, i32
  }
  func.func @transform_3(%arg0: i32) -> (i32, i32) {
    %c0_i32 = arith.constant 0 : i32
    %c0_i32_0 = arith.constant 0 : i32
    return %arg0, %c0_i32 : i32, i32
  }
}

module attributes {stable_mosaic.version = 11 : i64} {
  func.func @_res_layer_kernel(%arg0: i32, %arg1: memref<32x2304xbf16, #tpu.memory_space<vmem>>, %arg2: memref<2304x128xbf16, #tpu.memory_space<vmem>>, %arg3: memref<128x256xbf16, #tpu.memory_space<vmem>>, %arg4: memref<32x256xbf16, #tpu.memory_space<vmem>>) attributes {dimension_semantics = [#tpu.dimension_semantics<parallel>], iteration_bounds = array<i64: 1>, scalar_prefetch = 0 : i64, scratch_operands = 0 : i64, tpu.core_type = #tpu.core_type<tc>, window_params = [{transform_indices = @transform_0, window_bounds = array<i64: 32, 2304>}, {pipeline_mode = #tpu.pipeline_mode<synchronous>, transform_indices = @transform_1, window_bounds = array<i64: 2304, 128>}, {pipeline_mode = #tpu.pipeline_mode<synchronous>, transform_indices = @transform_2, window_bounds = array<i64: 128, 256>}, {transform_indices = @transform_3, window_bounds = array<i64: 32, 256>}]} {
    %c0 = arith.constant 0 : index
    %c0_0 = arith.constant 0 : index
    %0 = vector.load %arg1[%c0, %c0_0] : memref<32x2304xbf16, #tpu.memory_space<vmem>>, vector<32x2304xbf16>
    %1 = vector.extract_strided_slice %0 {offsets = [0, 1024], sizes = [32, 256], strides = [1, 1]} : vector<32x2304xbf16> to vector<32x256xbf16>
    %2 = arith.extf %1 : vector<32x256xbf16> to vector<32x256xf32>
    %cst = arith.constant 0.000000e+00 : bf16
    %3 = vector.broadcast %cst : bf16 to vector<32x2304xbf16>
    %4 = arith.maximumf %0, %3 : vector<32x2304xbf16>
    %c0_1 = arith.constant 0 : index
    %c0_2 = arith.constant 0 : index
    %5 = vector.load %arg2[%c0_1, %c0_2] : memref<2304x128xbf16, #tpu.memory_space<vmem>>, vector<2304x128xbf16>
    %cst_3 = arith.constant dense<0.000000e+00> : vector<32x128xf32>
    %6 = tpu.matmul %4, %5, %cst_3 {dimension_numbers = #tpu.dot_dimension_numbers<[1], [0], [0], [1], [0, 0, 1, 1], [], []>} : vector<32x2304xbf16>, vector<2304x128xbf16>, vector<32x128xf32> -> vector<32x128xf32>
    %cst_4 = arith.constant 0.000000e+00 : f32
    %7 = vector.broadcast %cst_4 : f32 to vector<32x128xf32>
    %8 = arith.maximumf %6, %7 : vector<32x128xf32>
    %9 = arith.truncf %8 : vector<32x128xf32> to vector<32x128xbf16>
    %c0_5 = arith.constant 0 : index
    %c0_6 = arith.constant 0 : index
    %10 = vector.load %arg3[%c0_5, %c0_6] : memref<128x256xbf16, #tpu.memory_space<vmem>>, vector<128x256xbf16>
    %cst_7 = arith.constant dense<0.000000e+00> : vector<32x256xf32>
    %11 = tpu.matmul %9, %10, %cst_7 {dimension_numbers = #tpu.dot_dimension_numbers<[1], [0], [0], [1], [0, 0, 1, 1], [], []>} : vector<32x128xbf16>, vector<128x256xbf16>, vector<32x256xf32> -> vector<32x256xf32>
    %12 = arith.addf %11, %2 : vector<32x256xf32>
    %13 = arith.truncf %12 : vector<32x256xf32> to vector<32x256xbf16>
    %c0_8 = arith.constant 0 : index
    %c0_9 = arith.constant 0 : index
    %14 = vector.load %arg4[%c0_8, %c0_9] : memref<32x256xbf16, #tpu.memory_space<vmem>>, vector<32x256xbf16>
    tpu.vector_store %arg4[%c0_8, %c0_9], %13 {strides = array<i32>} : memref<32x256xbf16, #tpu.memory_space<vmem>>, vector<32x256xbf16>,
    return
  }
  func.func @transform_0(%arg0: i32) -> (i32, i32) {
    %c0_i32 = arith.constant 0 : i32
    %c0_i32_0 = arith.constant 0 : i32
    return %arg0, %c0_i32 : i32, i32
  }
  func.func @transform_1(%arg0: i32) -> (i32, i32) {
    %c0_i32 = arith.constant 0 : i32
    %c0_i32_0 = arith.constant 0 : i32
    %c0_i32_1 = arith.constant 0 : i32
    return %c0_i32, %c0_i32_0 : i32, i32
  }
  func.func @transform_2(%arg0: i32) -> (i32, i32) {
    %c0_i32 = arith.constant 0 : i32
    %c0_i32_0 = arith.constant 0 : i32
    %c0_i32_1 = arith.constant 0 : i32
    return %c0_i32, %c0_i32_0 : i32, i32
  }
  func.func @transform_3(%arg0: i32) -> (i32, i32) {
    %c0_i32 = arith.constant 0 : i32
    %c0_i32_0 = arith.constant 0 : i32
    return %arg0, %c0_i32 : i32, i32
  }
}

module attributes {stable_mosaic.version = 11 : i64} {
  func.func @_conv_mm_kernel(%arg0: i32, %arg1: memref<32x2304xbf16, #tpu.memory_space<vmem>>, %arg2: memref<2304x256xbf16, #tpu.memory_space<vmem>>, %arg3: memref<1x256xf32, #tpu.memory_space<vmem>>, %arg4: memref<32x256xbf16, #tpu.memory_space<vmem>>) attributes {dimension_semantics = [#tpu.dimension_semantics<parallel>], iteration_bounds = array<i64: 1>, scalar_prefetch = 0 : i64, scratch_operands = 0 : i64, tpu.core_type = #tpu.core_type<tc>, window_params = [{transform_indices = @transform_0, window_bounds = array<i64: 32, 2304>}, {pipeline_mode = #tpu.pipeline_mode<synchronous>, transform_indices = @transform_1, window_bounds = array<i64: 2304, 256>}, {pipeline_mode = #tpu.pipeline_mode<synchronous>, transform_indices = @transform_2, window_bounds = array<i64: 1, 256>}, {transform_indices = @transform_3, window_bounds = array<i64: 32, 256>}]} {
    %c0 = arith.constant 0 : index
    %c0_0 = arith.constant 0 : index
    %0 = vector.load %arg1[%c0, %c0_0] : memref<32x2304xbf16, #tpu.memory_space<vmem>>, vector<32x2304xbf16>
    %c0_1 = arith.constant 0 : index
    %c0_2 = arith.constant 0 : index
    %1 = vector.load %arg2[%c0_1, %c0_2] : memref<2304x256xbf16, #tpu.memory_space<vmem>>, vector<2304x256xbf16>
    %cst = arith.constant dense<0.000000e+00> : vector<32x256xf32>
    %2 = tpu.matmul %0, %1, %cst {dimension_numbers = #tpu.dot_dimension_numbers<[1], [0], [0], [1], [0, 0, 1, 1], [], []>} : vector<32x2304xbf16>, vector<2304x256xbf16>, vector<32x256xf32> -> vector<32x256xf32>
    %c0_3 = arith.constant 0 : index
    %c0_4 = arith.constant 0 : index
    %3 = vector.load %arg3[%c0_3, %c0_4] : memref<1x256xf32, #tpu.memory_space<vmem>>, vector<1x256xf32>
    %4 = vector.broadcast %3 : vector<1x256xf32> to vector<32x256xf32>
    %5 = arith.addf %2, %4 : vector<32x256xf32>
    %6 = arith.truncf %5 : vector<32x256xf32> to vector<32x256xbf16>
    %c0_5 = arith.constant 0 : index
    %c0_6 = arith.constant 0 : index
    %7 = vector.load %arg4[%c0_5, %c0_6] : memref<32x256xbf16, #tpu.memory_space<vmem>>, vector<32x256xbf16>
    tpu.vector_store %arg4[%c0_5, %c0_6], %6 {strides = array<i32>} : memref<32x256xbf16, #tpu.memory_space<vmem>>, vector<32x256xbf16>,
    return
  }
  func.func @transform_0(%arg0: i32) -> (i32, i32) {
    %c0_i32 = arith.constant 0 : i32
    %c0_i32_0 = arith.constant 0 : i32
    return %arg0, %c0_i32 : i32, i32
  }
  func.func @transform_1(%arg0: i32) -> (i32, i32) {
    %c0_i32 = arith.constant 0 : i32
    %c0_i32_0 = arith.constant 0 : i32
    %c0_i32_1 = arith.constant 0 : i32
    return %c0_i32, %c0_i32_0 : i32, i32
  }
  func.func @transform_2(%arg0: i32) -> (i32, i32) {
    %c0_i32 = arith.constant 0 : i32
    %c0_i32_0 = arith.constant 0 : i32
    %c0_i32_1 = arith.constant 0 : i32
    return %c0_i32, %c0_i32_0 : i32, i32
  }
  func.func @transform_3(%arg0: i32) -> (i32, i32) {
    %c0_i32 = arith.constant 0 : i32
    %c0_i32_0 = arith.constant 0 : i32
    return %arg0, %c0_i32 : i32, i32
  }
}

module attributes {stable_mosaic.version = 11 : i64} {
  func.func @_res_layer_kernel(%arg0: i32, %arg1: memref<32x2304xbf16, #tpu.memory_space<vmem>>, %arg2: memref<2304x128xbf16, #tpu.memory_space<vmem>>, %arg3: memref<128x256xbf16, #tpu.memory_space<vmem>>, %arg4: memref<32x256xbf16, #tpu.memory_space<vmem>>) attributes {dimension_semantics = [#tpu.dimension_semantics<parallel>], iteration_bounds = array<i64: 1>, scalar_prefetch = 0 : i64, scratch_operands = 0 : i64, tpu.core_type = #tpu.core_type<tc>, window_params = [{transform_indices = @transform_0, window_bounds = array<i64: 32, 2304>}, {pipeline_mode = #tpu.pipeline_mode<synchronous>, transform_indices = @transform_1, window_bounds = array<i64: 2304, 128>}, {pipeline_mode = #tpu.pipeline_mode<synchronous>, transform_indices = @transform_2, window_bounds = array<i64: 128, 256>}, {transform_indices = @transform_3, window_bounds = array<i64: 32, 256>}]} {
    %c0 = arith.constant 0 : index
    %c0_0 = arith.constant 0 : index
    %0 = vector.load %arg1[%c0, %c0_0] : memref<32x2304xbf16, #tpu.memory_space<vmem>>, vector<32x2304xbf16>
    %1 = vector.extract_strided_slice %0 {offsets = [0, 1024], sizes = [32, 256], strides = [1, 1]} : vector<32x2304xbf16> to vector<32x256xbf16>
    %2 = arith.extf %1 : vector<32x256xbf16> to vector<32x256xf32>
    %cst = arith.constant 0.000000e+00 : bf16
    %3 = vector.broadcast %cst : bf16 to vector<32x2304xbf16>
    %4 = arith.maximumf %0, %3 : vector<32x2304xbf16>
    %c0_1 = arith.constant 0 : index
    %c0_2 = arith.constant 0 : index
    %5 = vector.load %arg2[%c0_1, %c0_2] : memref<2304x128xbf16, #tpu.memory_space<vmem>>, vector<2304x128xbf16>
    %cst_3 = arith.constant dense<0.000000e+00> : vector<32x128xf32>
    %6 = tpu.matmul %4, %5, %cst_3 {dimension_numbers = #tpu.dot_dimension_numbers<[1], [0], [0], [1], [0, 0, 1, 1], [], []>} : vector<32x2304xbf16>, vector<2304x128xbf16>, vector<32x128xf32> -> vector<32x128xf32>
    %cst_4 = arith.constant 0.000000e+00 : f32
    %7 = vector.broadcast %cst_4 : f32 to vector<32x128xf32>
    %8 = arith.maximumf %6, %7 : vector<32x128xf32>
    %9 = arith.truncf %8 : vector<32x128xf32> to vector<32x128xbf16>
    %c0_5 = arith.constant 0 : index
    %c0_6 = arith.constant 0 : index
    %10 = vector.load %arg3[%c0_5, %c0_6] : memref<128x256xbf16, #tpu.memory_space<vmem>>, vector<128x256xbf16>
    %cst_7 = arith.constant dense<0.000000e+00> : vector<32x256xf32>
    %11 = tpu.matmul %9, %10, %cst_7 {dimension_numbers = #tpu.dot_dimension_numbers<[1], [0], [0], [1], [0, 0, 1, 1], [], []>} : vector<32x128xbf16>, vector<128x256xbf16>, vector<32x256xf32> -> vector<32x256xf32>
    %12 = arith.addf %11, %2 : vector<32x256xf32>
    %cst_8 = arith.constant 0.000000e+00 : f32
    %13 = vector.broadcast %cst_8 : f32 to vector<32x256xf32>
    %14 = arith.maximumf %12, %13 : vector<32x256xf32>
    %15 = arith.truncf %14 : vector<32x256xf32> to vector<32x256xbf16>
    %c0_9 = arith.constant 0 : index
    %c0_10 = arith.constant 0 : index
    %16 = vector.load %arg4[%c0_9, %c0_10] : memref<32x256xbf16, #tpu.memory_space<vmem>>, vector<32x256xbf16>
    tpu.vector_store %arg4[%c0_9, %c0_10], %15 {strides = array<i32>} : memref<32x256xbf16, #tpu.memory_space<vmem>>, vector<32x256xbf16>,
    return
  }
  func.func @transform_0(%arg0: i32) -> (i32, i32) {
    %c0_i32 = arith.constant 0 : i32
    %c0_i32_0 = arith.constant 0 : i32
    return %arg0, %c0_i32 : i32, i32
  }
  func.func @transform_1(%arg0: i32) -> (i32, i32) {
    %c0_i32 = arith.constant 0 : i32
    %c0_i32_0 = arith.constant 0 : i32
    %c0_i32_1 = arith.constant 0 : i32
    return %c0_i32, %c0_i32_0 : i32, i32
  }
  func.func @transform_2(%arg0: i32) -> (i32, i32) {
    %c0_i32 = arith.constant 0 : i32
    %c0_i32_0 = arith.constant 0 : i32
    %c0_i32_1 = arith.constant 0 : i32
    return %c0_i32, %c0_i32_0 : i32, i32
  }
  func.func @transform_3(%arg0: i32) -> (i32, i32) {
    %c0_i32 = arith.constant 0 : i32
    %c0_i32_0 = arith.constant 0 : i32
    return %arg0, %c0_i32 : i32, i32
  }
}

module attributes {stable_mosaic.version = 11 : i64} {
  func.func @_conv_mm_kernel(%arg0: i32, %arg1: memref<32x2304xbf16, #tpu.memory_space<vmem>>, %arg2: memref<2304x512xbf16, #tpu.memory_space<vmem>>, %arg3: memref<1x512xf32, #tpu.memory_space<vmem>>, %arg4: memref<32x512xbf16, #tpu.memory_space<vmem>>) attributes {dimension_semantics = [#tpu.dimension_semantics<parallel>], iteration_bounds = array<i64: 1>, scalar_prefetch = 0 : i64, scratch_operands = 0 : i64, tpu.core_type = #tpu.core_type<tc>, window_params = [{transform_indices = @transform_0, window_bounds = array<i64: 32, 2304>}, {pipeline_mode = #tpu.pipeline_mode<synchronous>, transform_indices = @transform_1, window_bounds = array<i64: 2304, 512>}, {pipeline_mode = #tpu.pipeline_mode<synchronous>, transform_indices = @transform_2, window_bounds = array<i64: 1, 512>}, {transform_indices = @transform_3, window_bounds = array<i64: 32, 512>}]} {
    %c0 = arith.constant 0 : index
    %c0_0 = arith.constant 0 : index
    %0 = vector.load %arg1[%c0, %c0_0] : memref<32x2304xbf16, #tpu.memory_space<vmem>>, vector<32x2304xbf16>
    %c0_1 = arith.constant 0 : index
    %c0_2 = arith.constant 0 : index
    %1 = vector.load %arg2[%c0_1, %c0_2] : memref<2304x512xbf16, #tpu.memory_space<vmem>>, vector<2304x512xbf16>
    %cst = arith.constant dense<0.000000e+00> : vector<32x512xf32>
    %2 = tpu.matmul %0, %1, %cst {dimension_numbers = #tpu.dot_dimension_numbers<[1], [0], [0], [1], [0, 0, 1, 1], [], []>} : vector<32x2304xbf16>, vector<2304x512xbf16>, vector<32x512xf32> -> vector<32x512xf32>
    %c0_3 = arith.constant 0 : index
    %c0_4 = arith.constant 0 : index
    %3 = vector.load %arg3[%c0_3, %c0_4] : memref<1x512xf32, #tpu.memory_space<vmem>>, vector<1x512xf32>
    %4 = vector.broadcast %3 : vector<1x512xf32> to vector<32x512xf32>
    %5 = arith.addf %2, %4 : vector<32x512xf32>
    %cst_5 = arith.constant 0.000000e+00 : f32
    %6 = vector.broadcast %cst_5 : f32 to vector<32x512xf32>
    %7 = arith.maximumf %5, %6 : vector<32x512xf32>
    %8 = arith.truncf %7 : vector<32x512xf32> to vector<32x512xbf16>
    %c0_6 = arith.constant 0 : index
    %c0_7 = arith.constant 0 : index
    %9 = vector.load %arg4[%c0_6, %c0_7] : memref<32x512xbf16, #tpu.memory_space<vmem>>, vector<32x512xbf16>
    tpu.vector_store %arg4[%c0_6, %c0_7], %8 {strides = array<i32>} : memref<32x512xbf16, #tpu.memory_space<vmem>>, vector<32x512xbf16>,
    return
  }
  func.func @transform_0(%arg0: i32) -> (i32, i32) {
    %c0_i32 = arith.constant 0 : i32
    %c0_i32_0 = arith.constant 0 : i32
    return %arg0, %c0_i32 : i32, i32
  }
  func.func @transform_1(%arg0: i32) -> (i32, i32) {
    %c0_i32 = arith.constant 0 : i32
    %c0_i32_0 = arith.constant 0 : i32
    %c0_i32_1 = arith.constant 0 : i32
    return %c0_i32, %c0_i32_0 : i32, i32
  }
  func.func @transform_2(%arg0: i32) -> (i32, i32) {
    %c0_i32 = arith.constant 0 : i32
    %c0_i32_0 = arith.constant 0 : i32
    %c0_i32_1 = arith.constant 0 : i32
    return %c0_i32, %c0_i32_0 : i32, i32
  }
  func.func @transform_3(%arg0: i32) -> (i32, i32) {
    %c0_i32 = arith.constant 0 : i32
    %c0_i32_0 = arith.constant 0 : i32
    return %arg0, %c0_i32 : i32, i32
  }
}

module attributes {stable_mosaic.version = 11 : i64} {
  func.func @_conv_mm_kernel(%arg0: i32, %arg1: memref<128x1152xbf16, #tpu.memory_space<vmem>>, %arg2: memref<1152x128xbf16, #tpu.memory_space<vmem>>, %arg3: memref<1x128xf32, #tpu.memory_space<vmem>>, %arg4: memref<128x128xf32, #tpu.memory_space<vmem>>) attributes {dimension_semantics = [#tpu.dimension_semantics<parallel>], iteration_bounds = array<i64: 1>, scalar_prefetch = 0 : i64, scratch_operands = 0 : i64, tpu.core_type = #tpu.core_type<tc>, window_params = [{transform_indices = @transform_0, window_bounds = array<i64: 128, 1152>}, {pipeline_mode = #tpu.pipeline_mode<synchronous>, transform_indices = @transform_1, window_bounds = array<i64: 1152, 128>}, {pipeline_mode = #tpu.pipeline_mode<synchronous>, transform_indices = @transform_2, window_bounds = array<i64: 1, 128>}, {transform_indices = @transform_3, window_bounds = array<i64: 128, 128>}]} {
    %c0 = arith.constant 0 : index
    %c0_0 = arith.constant 0 : index
    %0 = vector.load %arg1[%c0, %c0_0] : memref<128x1152xbf16, #tpu.memory_space<vmem>>, vector<128x1152xbf16>
    %c0_1 = arith.constant 0 : index
    %c0_2 = arith.constant 0 : index
    %1 = vector.load %arg2[%c0_1, %c0_2] : memref<1152x128xbf16, #tpu.memory_space<vmem>>, vector<1152x128xbf16>
    %cst = arith.constant dense<0.000000e+00> : vector<128x128xf32>
    %2 = tpu.matmul %0, %1, %cst {dimension_numbers = #tpu.dot_dimension_numbers<[1], [0], [0], [1], [0, 0, 1, 1], [], []>} : vector<128x1152xbf16>, vector<1152x128xbf16>, vector<128x128xf32> -> vector<128x128xf32>
    %c0_3 = arith.constant 0 : index
    %c0_4 = arith.constant 0 : index
    %3 = vector.load %arg3[%c0_3, %c0_4] : memref<1x128xf32, #tpu.memory_space<vmem>>, vector<1x128xf32>
    %4 = vector.broadcast %3 : vector<1x128xf32> to vector<128x128xf32>
    %5 = arith.addf %2, %4 : vector<128x128xf32>
    %c0_5 = arith.constant 0 : index
    %c0_6 = arith.constant 0 : index
    %6 = vector.load %arg4[%c0_5, %c0_6] : memref<128x128xf32, #tpu.memory_space<vmem>>, vector<128x128xf32>
    tpu.vector_store %arg4[%c0_5, %c0_6], %5 {strides = array<i32>} : memref<128x128xf32, #tpu.memory_space<vmem>>, vector<128x128xf32>,
    return
  }
  func.func @transform_0(%arg0: i32) -> (i32, i32) {
    %c0_i32 = arith.constant 0 : i32
    %c0_i32_0 = arith.constant 0 : i32
    return %arg0, %c0_i32 : i32, i32
  }
  func.func @transform_1(%arg0: i32) -> (i32, i32) {
    %c0_i32 = arith.constant 0 : i32
    %c0_i32_0 = arith.constant 0 : i32
    %c0_i32_1 = arith.constant 0 : i32
    return %c0_i32, %c0_i32_0 : i32, i32
  }
  func.func @transform_2(%arg0: i32) -> (i32, i32) {
    %c0_i32 = arith.constant 0 : i32
    %c0_i32_0 = arith.constant 0 : i32
    %c0_i32_1 = arith.constant 0 : i32
    return %c0_i32, %c0_i32_0 : i32, i32
  }
  func.func @transform_3(%arg0: i32) -> (i32, i32) {
    %c0_i32 = arith.constant 0 : i32
    %c0_i32_0 = arith.constant 0 : i32
    return %arg0, %c0_i32 : i32, i32
  }
}

</mosaic_0001>

<bundles_post_ra>
// kernel: autoencoder_forward.10
= control target key start
LH: loop header
LB: loop body
LE: loop exit
PB: predicated region body
PF: predicated region fallthrough
CT: control target
= control target key end

     0   :  { %vm102_vm0 = vcmask 392192   ;;  %s561_s1 = inlined_call_operand.vmem [shape: bf16[48,128], index: 1, kind: input, shape index: {}]   ;;  %s562_s0 = inlined_call_operand.vmem [shape: bf16[128,48], index: 0, kind: input, shape index: {}]   ;;  %s563_s2 = inlined_call_operand.vmem [shape: f32[1,128], index: 2, kind: input, shape index: {}]   ;;  %s564_s3 = inlined_call_operand.vmem [shape: bf16[128,128], index: 3, kind: output, shape index: {}]  }
   0x1   :  { %v462_v0 = vld [vmem:[%s561_s1] sm:$0xff]   ;;  %v463_v1 = vld [vmem:[%s561_s1 + $0x8] sm:$0xff]   ;;  %v464_v2 = vld [vmem:[%s561_s1 + $0x10] sm:$0xff]  }
   0x2   :  { %434 = vmatprep.subr.bf16.mxu0 %v462_v0  ;;  %456 = vmatprep.subr.bf16.mxu1 %v462_v0  ;;  %v465_v3 = vld [vmem:[%s562_s0] sm:$0xff]   ;;  %v467_v5 = vld [vmem:[%s562_s0 + $0x8] sm:$0xff]   ;;  %v469_v7 = vld [vmem:[%s562_s0 + $0x10] sm:$0xff]  }
   0x3   :  { %435 = vmatpush3.bf16.msra.mxu0 %v462_v0  ;;  %459 = vmatpush3.bf16.msra.mxu1 %v462_v0  ;;  %v466_v4 = vld [vmem:[%s562_s0 + $0x20] sm:$0xff]   ;;  %v468_v6 = vld [vmem:[%s562_s0 + $0x28] sm:$0xff]   ;;  %v470_v8 = vld [vmem:[%s562_s0 + $0x30] sm:$0xff]  }
   0x4   :  { %436 = vmatprep.subr.bf16.mxu0 %v463_v1  ;;  %457 = vmatprep.subr.bf16.mxu1 %v463_v1  ;;  %v471_v9 = vld [vmem:[%s562_s0 + $0x18] sm:$0xff]   ;;  %v324_v11 = vld [vmem:[%s563_s2] ss:$0 sm:$0xff] }
   0x5   :  { %440 = vmatprep.mubr.msk.bf16.mxu0 %vm102_vm0, %v465_v3  ;;  %448 = vmatprep.mubr.msk.bf16.mxu1 %vm102_vm0, %v466_v4  ;;  %v472_v10 = vld [vmem:[%s562_s0 + $0x38] sm:$0xff]  }
   0x7   :  { %437 = vmatpush3.bf16.msra.mxu0 %v463_v1  ;;  %460 = vmatpush3.bf16.msra.mxu1 %v463_v1 }
   0x8   :  { %438 = vmatprep.subr.bf16.mxu0 %v464_v2  ;;  %458 = vmatprep.subr.bf16.mxu1 %v464_v2 }
   0xb   :  { %439 = vmatpush3.bf16.msra.mxu0 %v464_v2  ;;  %461 = vmatpush3.bf16.msra.mxu1 %v464_v2 }
   0xe   :  { %441 = vmatmul.mubr.msk.bf16.vlgmr.msra.gmra.mrb[0].mxu0 %vm102_vm0, %v467_v5  ;;  %449 = vmatmul.mubr.msk.bf16.vlgmr.msra.gmra.mrb[0].mxu1 %vm102_vm0, %v468_v6 }
   0xf   :  { %444 = vmatprep.mubr.msk.bf16.mxu0 %vm102_vm0, %v469_v7  ;;  %452 = vmatprep.mubr.msk.bf16.mxu1 %vm102_vm0, %v470_v8 }
  0x16   :  { %445 = vmatmul.mubr.msk.bf16.gmra.mrb[4].mxu0 %vm102_vm0, %v471_v9  ;;  %453 = vmatmul.mubr.msk.bf16.gmra.mrb[4].mxu1 %vm102_vm0, %v472_v10 }
  0xe1   :  { %v442_v12 = vpop.f32.mrb[0].mxu0  ;;  %v450_v13 = vpop.f32.mrb[0].mxu1 }
  0xe2   :  { %v170_v14 = vadd.f32 %v442_v12, %v324_v11  ;;  %v202_v15 = vadd.f32 %v450_v13, %v324_v11  ;;  %v161_v16 = vpop.f32.mrb[1].mxu0  ;;  %v193_v17 = vpop.f32.mrb[1].mxu1 }
  0xe3   :  { %v162_v18 = vadd.f32 %v324_v11, %v161_v16  ;;  %v194_v19 = vadd.f32 %v324_v11, %v193_v17  ;;  %v443_v20 = vpop.f32.mrb[2].mxu0  ;;  %v451_v21 = vpop.f32.mrb[2].mxu1 }
  0xe4   :  { %v173_v22 = vadd.f32 %v443_v20, %v324_v11  ;;  %v205_v23 = vadd.f32 %v451_v21, %v324_v11  ;;  %v164_v24 = vpop.f32.mrb[3].mxu0  ;;  %v196_v25 = vpop.f32.mrb[3].mxu1  ;;  %v226_v28 = vmax.f32 %v170_v14, 0.0  ;;  %v234_v29 = vmax.f32 %v202_v15, 0.0 }
  0xe5   :  { %v165_v26 = vadd.f32 %v324_v11, %v164_v24  ;;  %v197_v27 = vadd.f32 %v324_v11, %v196_v25  ;;  %v224_v32 = vmax.f32 %v162_v18, 0.0  ;;  %v232_v33 = vmax.f32 %v194_v19, 0.0 }
  0xe6   :  { %v227_v30 = vmax.f32 %v173_v22, 0.0  ;;  %v235_v31 = vmax.f32 %v205_v23, 0.0 }
  0xe7   :  { %v225_v34 = vmax.f32 %v165_v26, 0.0  ;;  %v233_v35 = vmax.f32 %v197_v27, 0.0 }
  0xe8   :  { %v384_v36 = vpack.c.bf16 %v227_v30, %v226_v28  ;;  %v404_v37 = vpack.c.bf16 %v235_v31, %v234_v29 }
  0xe9   :  { %v379_v38 = vpack.c.bf16 %v225_v34, %v224_v32  ;;  %v399_v39 = vpack.c.bf16 %v233_v35, %v232_v33  ;;  %v446_v40 = vpop.f32.mrb[4].mxu0  ;;  %v454_v41 = vpop.f32.mrb[4].mxu1 }
  0xea   :  { %416 = vst [vmem:[%s564_s3 + $0x8] sm:$0xff] %v384_v36   ;;  %420 = vst [vmem:[%s564_s3 + $0x28] sm:$0xff] %v404_v37   ;;  %v186_v42 = vadd.f32 %v446_v40, %v324_v11  ;;  %v218_v43 = vadd.f32 %v454_v41, %v324_v11  ;;  %v177_v44 = vpop.f32.mrb[5].mxu0  ;;  %v209_v45 = vpop.f32.mrb[5].mxu1 }
  0xeb   :  { %380 = vst [vmem:[%s564_s3] sm:$0xff] %v379_v38   ;;  %419 = vst [vmem:[%s564_s3 + $0x20] sm:$0xff] %v399_v39   ;;  %v178_v46 = vadd.f32 %v324_v11, %v177_v44  ;;  %v210_v47 = vadd.f32 %v324_v11, %v209_v45  ;;  %v447_v48 = vpop.f32.mrb[6].mxu0  ;;  %v455_v49 = vpop.f32.mrb[6].mxu1 }
  0xec   :  { %v189_v50 = vadd.f32 %v447_v48, %v324_v11  ;;  %v221_v51 = vadd.f32 %v455_v49, %v324_v11  ;;  %v180_v52 = vpop.f32.mrb[7].mxu0  ;;  %v212_v53 = vpop.f32.mrb[7].mxu1  ;;  %v230_v56 = vmax.f32 %v186_v42, 0.0  ;;  %v238_v57 = vmax.f32 %v218_v43, 0.0 }
  0xed   :  { %v181_v54 = vadd.f32 %v324_v11, %v180_v52  ;;  %v213_v55 = vadd.f32 %v324_v11, %v212_v53  ;;  %v228_v60 = vmax.f32 %v178_v46, 0.0  ;;  %v236_v61 = vmax.f32 %v210_v47, 0.0 }
  0xee   :  { %v231_v58 = vmax.f32 %v189_v50, 0.0  ;;  %v239_v59 = vmax.f32 %v221_v51, 0.0 }
  0xef   :  { %v229_v62 = vmax.f32 %v181_v54, 0.0  ;;  %v237_v63 = vmax.f32 %v213_v55, 0.0 }
  0xf0   :  { %v394_v0 = vpack.c.bf16 %v231_v58, %v230_v56  ;;  %v414_v1 = vpack.c.bf16 %v239_v59, %v238_v57 }
  0xf1   :  { %v389_v2 = vpack.c.bf16 %v229_v62, %v228_v60  ;;  %v409_v3 = vpack.c.bf16 %v237_v63, %v236_v61 }
  0xf2   :  { %418 = vst [vmem:[%s564_s3 + $0x18] sm:$0xff] %v394_v0   ;;  %422 = vst [vmem:[%s564_s3 + $0x38] sm:$0xff] %v414_v1  }
  0xf3   :  { %417 = vst [vmem:[%s564_s3 + $0x10] sm:$0xff] %v389_v2   ;;  %421 = vst [vmem:[%s564_s3 + $0x30] sm:$0xff] %v409_v3  }

// kernel: autoencoder_forward.11
= control target key start
LH: loop header
LB: loop body
LE: loop exit
PB: predicated region body
PF: predicated region fallthrough
CT: control target
= control target key end

     0   :  { %s3909_s1 = inlined_call_operand.vmem [shape: bf16[2048,256], index: 1, kind: input, shape index: {}]   ;;  %s3910_s0 = inlined_call_operand.vmem [shape: bf16[32,2048], index: 0, kind: input, shape index: {}]   ;;  %s3911_s2 = inlined_call_operand.vmem [shape: f32[1,256], index: 2, kind: input, shape index: {}]   ;;  %s3912_s3 = inlined_call_operand.vmem [shape: bf16[32,256], index: 3, kind: output, shape index: {}]  }
   0x1   :  { %v2578_v0 = vld [vmem:[%s3909_s1 + $0x4] ss:$8 sps:$4 sm:$0xff]   ;;  %v2582_v2 = vld [vmem:[%s3909_s1] ss:$8 sps:$4 sm:$0xff]   ;;  %v2584_v4 = vld [vmem:[%s3909_s1 + $0x14] ss:$8 sps:$4 sm:$0xff]  }
   0x2   :  { %v2580_v1 = vld [vmem:[%s3909_s1 + $0x404] ss:$8 sps:$4 sm:$0xff]   ;;  %1754 = vmatprep.subr.bf16.mxu1 %v2578_v0  ;;  %v2583_v3 = vld [vmem:[%s3909_s1 + $0x400] ss:$8 sps:$4 sm:$0xff]   ;;  %v2586_v5 = vld [vmem:[%s3909_s1 + $0x414] ss:$8 sps:$4 sm:$0xff]  }
   0x3   :  { %1966 = vmatprep.subr.bf16.mxu0 %v2580_v1  ;;  %1755 = vmatpush1.bf16.msra.mxu1 %v2582_v2  ;;  %v2588_v6 = vld [vmem:[%s3909_s1 + $0x10] ss:$8 sps:$4 sm:$0xff]   ;;  %v2590_v8 = vld [vmem:[%s3909_s1 + $0x24] ss:$8 sps:$4 sm:$0xff]   ;;  %v2594_v10 = vld [vmem:[%s3909_s1 + $0x20] ss:$8 sps:$4 sm:$0xff]  }
   0x4   :  { %1967 = vmatpush1.bf16.msra.mxu0 %v2583_v3  ;;  %1756 = vmatprep.subr.bf16.mxu1 %v2584_v4  ;;  %v2589_v7 = vld [vmem:[%s3909_s1 + $0x410] ss:$8 sps:$4 sm:$0xff]   ;;  %v2592_v9 = vld [vmem:[%s3909_s1 + $0x424] ss:$8 sps:$4 sm:$0xff]   ;;  %v2595_v11 = vld [vmem:[%s3909_s1 + $0x420] ss:$8 sps:$4 sm:$0xff]  }
   0x5   :  { %1968 = vmatprep.subr.bf16.mxu0 %v2586_v5  ;;  %v2596_v12 = vld [vmem:[%s3909_s1 + $0x34] ss:$8 sps:$4 sm:$0xff]   ;;  %v2600_v14 = vld [vmem:[%s3909_s1 + $0x30] ss:$8 sps:$4 sm:$0xff]   ;;  %v2602_v16 = vld [vmem:[%s3909_s1 + $0x44] ss:$8 sps:$4 sm:$0xff]  }
   0x6   :  { %v2598_v13 = vld [vmem:[%s3909_s1 + $0x434] ss:$8 sps:$4 sm:$0xff]   ;;  %v2601_v15 = vld [vmem:[%s3909_s1 + $0x430] ss:$8 sps:$4 sm:$0xff]   ;;  %v2604_v17 = vld [vmem:[%s3909_s1 + $0x444] ss:$8 sps:$4 sm:$0xff]  }
   0x7   :  { %1757 = vmatpush1.bf16.msra.mxu1 %v2588_v6  ;;  %v2606_v18 = vld [vmem:[%s3909_s1 + $0x40] ss:$8 sps:$4 sm:$0xff]   ;;  %v2608_v20 = vld [vmem:[%s3909_s1 + $0x54] ss:$8 sps:$4 sm:$0xff]   ;;  %v2612_v22 = vld [vmem:[%s3909_s1 + $0x50] ss:$8 sps:$4 sm:$0xff]  }
   0x8   :  { %1969 = vmatpush1.bf16.msra.mxu0 %v2589_v7  ;;  %1758 = vmatprep.subr.bf16.mxu1 %v2590_v8  ;;  %v2607_v19 = vld [vmem:[%s3909_s1 + $0x440] ss:$8 sps:$4 sm:$0xff]   ;;  %v2610_v21 = vld [vmem:[%s3909_s1 + $0x454] ss:$8 sps:$4 sm:$0xff]   ;;  %v2613_v23 = vld [vmem:[%s3909_s1 + $0x450] ss:$8 sps:$4 sm:$0xff]  }
   0x9   :  { %1970 = vmatprep.subr.bf16.mxu0 %v2592_v9  ;;  %v2614_v24 = vld [vmem:[%s3909_s1 + $0x64] ss:$8 sps:$4 sm:$0xff]   ;;  %v2618_v26 = vld [vmem:[%s3909_s1 + $0x60] ss:$8 sps:$4 sm:$0xff]   ;;  %v2620_v28 = vld [vmem:[%s3909_s1 + $0x74] ss:$8 sps:$4 sm:$0xff]  }
   0xa   :  { %v2616_v25 = vld [vmem:[%s3909_s1 + $0x464] ss:$8 sps:$4 sm:$0xff]   ;;  %v2619_v27 = vld [vmem:[%s3909_s1 + $0x460] ss:$8 sps:$4 sm:$0xff]   ;;  %v2622_v29 = vld [vmem:[%s3909_s1 + $0x474] ss:$8 sps:$4 sm:$0xff]  }
   0xb   :  { %1759 = vmatpush1.bf16.msra.mxu1 %v2594_v10  ;;  %v2624_v30 = vld [vmem:[%s3909_s1 + $0x70] ss:$8 sps:$4 sm:$0xff]   ;;  %v2626_v32 = vld [vmem:[%s3909_s1 + $0x84] ss:$8 sps:$4 sm:$0xff]   ;;  %v2630_v34 = vld [vmem:[%s3909_s1 + $0x80] ss:$8 sps:$4 sm:$0xff]  }
   0xc   :  { %1971 = vmatpush1.bf16.msra.mxu0 %v2595_v11  ;;  %1760 = vmatprep.subr.bf16.mxu1 %v2596_v12  ;;  %v2625_v31 = vld [vmem:[%s3909_s1 + $0x470] ss:$8 sps:$4 sm:$0xff]   ;;  %v2628_v33 = vld [vmem:[%s3909_s1 + $0x484] ss:$8 sps:$4 sm:$0xff]   ;;  %v2631_v35 = vld [vmem:[%s3909_s1 + $0x480] ss:$8 sps:$4 sm:$0xff]  }
   0xd   :  { %1972 = vmatprep.subr.bf16.mxu0 %v2598_v13  ;;  %v2632_v36 = vld [vmem:[%s3909_s1 + $0x94] ss:$8 sps:$4 sm:$0xff]   ;;  %v2636_v38 = vld [vmem:[%s3909_s1 + $0x90] ss:$8 sps:$4 sm:$0xff]   ;;  %v2638_v40 = vld [vmem:[%s3909_s1 + $0xa4] ss:$8 sps:$4 sm:$0xff]  }
   0xe   :  { %v2634_v37 = vld [vmem:[%s3909_s1 + $0x494] ss:$8 sps:$4 sm:$0xff]   ;;  %v2637_v39 = vld [vmem:[%s3909_s1 + $0x490] ss:$8 sps:$4 sm:$0xff]   ;;  %v2640_v41 = vld [vmem:[%s3909_s1 + $0x4a4] ss:$8 sps:$4 sm:$0xff]  }
   0xf   :  { %1761 = vmatpush1.bf16.msra.mxu1 %v2600_v14  ;;  %v2642_v42 = vld [vmem:[%s3909_s1 + $0xa0] ss:$8 sps:$4 sm:$0xff]   ;;  %v2644_v44 = vld [vmem:[%s3909_s1 + $0xb4] ss:$8 sps:$4 sm:$0xff]   ;;  %v2648_v46 = vld [vmem:[%s3909_s1 + $0xb0] ss:$8 sps:$4 sm:$0xff]  }
  0x10   :  { %1973 = vmatpush1.bf16.msra.mxu0 %v2601_v15  ;;  %1762 = vmatprep.subr.bf16.mxu1 %v2602_v16  ;;  %v2643_v43 = vld [vmem:[%s3909_s1 + $0x4a0] ss:$8 sps:$4 sm:$0xff]   ;;  %v2646_v45 = vld [vmem:[%s3909_s1 + $0x4b4] ss:$8 sps:$4 sm:$0xff]   ;;  %v2649_v47 = vld [vmem:[%s3909_s1 + $0x4b0] ss:$8 sps:$4 sm:$0xff]  }
  0x11   :  { %1974 = vmatprep.subr.bf16.mxu0 %v2604_v17  ;;  %v14_v48 = vld [vmem:[%s3910_s0] sm:$0xff]  ;;  %v2656_v58 = vld [vmem:[%s3909_s1 + $0xd4] ss:$8 sps:$4 sm:$0xff]   ;;  %v2660_v60 = vld [vmem:[%s3909_s1 + $0xd0] ss:$8 sps:$4 sm:$0xff]  }
  0x12   :  { %v22_v49 = vld [vmem:[%s3910_s0 + $0x40] sm:$0xff]  ;;  %v2658_v59 = vld [vmem:[%s3909_s1 + $0x4d4] ss:$8 sps:$4 sm:$0xff]   ;;  %v2661_v61 = vld [vmem:[%s3909_s1 + $0x4d0] ss:$8 sps:$4 sm:$0xff]  }
  0x13   :  { %1763 = vmatpush1.bf16.msra.mxu1 %v2606_v18  ;;  %v2650_v50 = vld [vmem:[%s3909_s1 + $0xc4] ss:$8 sps:$4 sm:$0xff]   ;;  %v2219_v52 = vcombine.high %v14_v48, %v22_v49  ;;  %v2654_v56 = vld [vmem:[%s3909_s1 + $0xc0] ss:$8 sps:$4 sm:$0xff]   ;;  %v2668_v2 = vld [vmem:[%s3909_s1 + $0xf4] ss:$8 sps:$4 sm:$0xff]   ;;  %v2218_v8 = vcombine.low %v14_v48, %v22_v49 }
  0x14   :  { %1975 = vmatpush1.bf16.msra.mxu0 %v2607_v19  ;;  %1764 = vmatprep.subr.bf16.mxu1 %v2608_v20  ;;  %v2652_v51 = vld [vmem:[%s3909_s1 + $0x4c4] ss:$8 sps:$4 sm:$0xff]   ;;  %v2655_v57 = vld [vmem:[%s3909_s1 + $0x4c0] ss:$8 sps:$4 sm:$0xff]   ;;  %v2670_v3 = vld [vmem:[%s3909_s1 + $0x4f4] ss:$8 sps:$4 sm:$0xff]  }
  0x15   :  { %1976 = vmatprep.subr.bf16.mxu0 %v2610_v21  ;;  %v18_v53 = vld [vmem:[%s3910_s0 + $0x20] sm:$0xff]  ;;  %1786 = vmatprep.mubr.bf16.mxu1 %v2219_v52  ;;  %v2672_v4 = vld [vmem:[%s3909_s1 + $0xf0] ss:$8 sps:$4 sm:$0xff]   ;;  %v2682_v12 = vld [vmem:[%s3909_s1 + $0x114] ss:$8 sps:$4 sm:$0xff]  }
  0x16   :  { %v26_v54 = vld [vmem:[%s3910_s0 + $0x60] sm:$0xff]  ;;  %v2673_v5 = vld [vmem:[%s3909_s1 + $0x4f0] ss:$8 sps:$4 sm:$0xff]   ;;  %v2685_v13 = vld [vmem:[%s3909_s1 + $0x514] ss:$8 sps:$4 sm:$0xff]  }
  0x17   :  { %1765 = vmatpush1.bf16.msra.mxu1 %v2612_v22  ;;  %v2227_v55 = vcombine.high %v18_v53, %v26_v54  ;;  %v2662_v62 = vld [vmem:[%s3909_s1 + $0xe4] ss:$8 sps:$4 sm:$0xff]   ;;  %v2666_v0 = vld [vmem:[%s3909_s1 + $0xe0] ss:$8 sps:$4 sm:$0xff]   ;;  %v2226_v10 = vcombine.low %v18_v53, %v26_v54  ;;  %v2680_v14 = vld [vmem:[%s3909_s1 + $0x110] ss:$8 sps:$4 sm:$0xff]  }
  0x18   :  { %1977 = vmatpush1.bf16.msra.mxu0 %v2613_v23  ;;  %1766 = vmatprep.subr.bf16.mxu1 %v2614_v24  ;;  %v2664_v63 = vld [vmem:[%s3909_s1 + $0x4e4] ss:$8 sps:$4 sm:$0xff]   ;;  %v2667_v1 = vld [vmem:[%s3909_s1 + $0x4e0] ss:$8 sps:$4 sm:$0xff]   ;;  %v2683_v15 = vld [vmem:[%s3909_s1 + $0x510] ss:$8 sps:$4 sm:$0xff]  }
  0x19   :  { %1978 = vmatprep.subr.bf16.mxu0 %v2616_v25  ;;  %1998 = vmatprep.mubr.bf16.mxu0 %v2227_v55  ;;  %v2676_v6 = vld [vmem:[%s3909_s1 + $0x104] ss:$8 sps:$4 sm:$0xff]   ;;  %v2674_v9 = vld [vmem:[%s3909_s1 + $0x100] ss:$8 sps:$4 sm:$0xff]   ;;  %v2694_v20 = vld [vmem:[%s3909_s1 + $0x134] ss:$8 sps:$4 sm:$0xff]  }
  0x1a   :  { %v2679_v7 = vld [vmem:[%s3909_s1 + $0x504] ss:$8 sps:$4 sm:$0xff]   ;;  %v2677_v11 = vld [vmem:[%s3909_s1 + $0x500] ss:$8 sps:$4 sm:$0xff]   ;;  %v2697_v21 = vld [vmem:[%s3909_s1 + $0x534] ss:$8 sps:$4 sm:$0xff]  }
  0x1b   :  { %1767 = vmatpush1.bf16.msra.mxu1 %v2618_v26  ;;  %v2688_v16 = vld [vmem:[%s3909_s1 + $0x124] ss:$8 sps:$4 sm:$0xff]   ;;  %v2686_v18 = vld [vmem:[%s3909_s1 + $0x120] ss:$8 sps:$4 sm:$0xff]   ;;  %v2692_v22 = vld [vmem:[%s3909_s1 + $0x130] ss:$8 sps:$4 sm:$0xff]  }
  0x1c   :  { %1979 = vmatpush1.bf16.msra.mxu0 %v2619_v27  ;;  %1768 = vmatprep.subr.bf16.mxu1 %v2620_v28  ;;  %v2691_v17 = vld [vmem:[%s3909_s1 + $0x524] ss:$8 sps:$4 sm:$0xff]   ;;  %v2689_v19 = vld [vmem:[%s3909_s1 + $0x520] ss:$8 sps:$4 sm:$0xff]   ;;  %v2695_v23 = vld [vmem:[%s3909_s1 + $0x530] ss:$8 sps:$4 sm:$0xff]  }
  0x1d   :  { %1980 = vmatprep.subr.bf16.mxu0 %v2622_v29  ;;  %v2700_v24 = vld [vmem:[%s3909_s1 + $0x144] ss:$8 sps:$4 sm:$0xff]   ;;  %v2698_v26 = vld [vmem:[%s3909_s1 + $0x140] ss:$8 sps:$4 sm:$0xff]   ;;  %v2706_v28 = vld [vmem:[%s3909_s1 + $0x154] ss:$8 sps:$4 sm:$0xff]  }
  0x1e   :  { %v2703_v25 = vld [vmem:[%s3909_s1 + $0x544] ss:$8 sps:$4 sm:$0xff]   ;;  %v2701_v27 = vld [vmem:[%s3909_s1 + $0x540] ss:$8 sps:$4 sm:$0xff]   ;;  %v2709_v29 = vld [vmem:[%s3909_s1 + $0x554] ss:$8 sps:$4 sm:$0xff]  }
  0x1f   :  { %1769 = vmatpush1.bf16.msra.mxu1 %v2624_v30  ;;  %v30_v30 = vld [vmem:[%s3910_s0 + $0x80] sm:$0xff]  ;;  %v3303_v49 = vld [vmem:[%s3910_s0 + $0x28] sm:$0xff]  ;;  %v2719_v52 = vld [vmem:[%s3909_s1 + $0x570] ss:$8 sps:$4 sm:$0xff]  }
  0x20   :  { %1981 = vmatpush1.bf16.msra.mxu0 %v2625_v31  ;;  %1770 = vmatprep.subr.bf16.mxu1 %v2626_v32  ;;  %v38_v31 = vld [vmem:[%s3910_s0 + $0xc0] sm:$0xff]  ;;  %v2704_v32 = vld [vmem:[%s3909_s1 + $0x150] ss:$8 sps:$4 sm:$0xff]  }
  0x21   :  { %1982 = vmatprep.subr.bf16.mxu0 %v2628_v33  ;;  %v2235_v33 = vcombine.high %v30_v30, %v38_v31  ;;  %v2724_v54 = vld [vmem:[%s3909_s1 + $0x184] ss:$8 sps:$4 sm:$0xff]  }
  0x22   :  { %v2727_v55 = vld [vmem:[%s3909_s1 + $0x584] ss:$8 sps:$4 sm:$0xff]  }
  0x23   :  { %1771 = vmatpush1.bf16.msra.mxu1 %v2630_v34  ;;  %v2707_v34 = vld [vmem:[%s3909_s1 + $0x550] ss:$8 sps:$4 sm:$0xff]  }
  0x24   :  { %1983 = vmatpush1.bf16.msra.mxu0 %v2631_v35  ;;  %1772 = vmatprep.subr.bf16.mxu1 %v2632_v36  ;;  %v34_v35 = vld [vmem:[%s3910_s0 + $0xa0] sm:$0xff] }
  0x25   :  { %1984 = vmatprep.subr.bf16.mxu0 %v2634_v37  ;;  %v42_v36 = vld [vmem:[%s3910_s0 + $0xe0] sm:$0xff]  ;;  %v2234_v37 = vcombine.low %v30_v30, %v38_v31  ;;  %v2778_v30 = vld [vmem:[%s3909_s1 + $0x214] ss:$8 sps:$4 sm:$0xff]  }
  0x26   :  { %v2781_v31 = vld [vmem:[%s3909_s1 + $0x614] ss:$8 sps:$4 sm:$0xff]  }
  0x27   :  { %1773 = vmatpush1.bf16.msra.mxu1 %v2636_v38  ;;  %v2712_v38 = vld [vmem:[%s3909_s1 + $0x164] ss:$8 sps:$4 sm:$0xff]  }
  0x28   :  { %1985 = vmatpush1.bf16.msra.mxu0 %v2637_v39  ;;  %1774 = vmatprep.subr.bf16.mxu1 %v2638_v40  ;;  %v2243_v39 = vcombine.high %v34_v35, %v42_v36  ;;  %v2242_v40 = vcombine.low %v34_v35, %v42_v36  ;;  %v2776_v36 = vld [vmem:[%s3909_s1 + $0x210] ss:$8 sps:$4 sm:$0xff]  }
  0x29   :  { %1986 = vmatprep.subr.bf16.mxu0 %v2640_v41  ;;  %v2715_v41 = vld [vmem:[%s3909_s1 + $0x564] ss:$8 sps:$4 sm:$0xff]  }
  0x2b   :  { %1775 = vmatpush1.bf16.msra.mxu1 %v2642_v42  ;;  %v2710_v42 = vld [vmem:[%s3909_s1 + $0x160] ss:$8 sps:$4 sm:$0xff]  }
  0x2c   :  { %1987 = vmatpush1.bf16.msra.mxu0 %v2643_v43  ;;  %1776 = vmatprep.subr.bf16.mxu1 %v2644_v44  ;;  %v2713_v43 = vld [vmem:[%s3909_s1 + $0x560] ss:$8 sps:$4 sm:$0xff]  }
  0x2d   :  { %1988 = vmatprep.subr.bf16.mxu0 %v2646_v45  ;;  %v3285_v44 = vld [vmem:[%s3910_s0 + $0x8] sm:$0xff] }
  0x2e   :  { %v3290_v45 = vld [vmem:[%s3910_s0 + $0x48] sm:$0xff] }
  0x2f   :  { %1777 = vmatpush1.bf16.msra.mxu1 %v2648_v46  ;;  %v2718_v46 = vld [vmem:[%s3909_s1 + $0x174] ss:$8 sps:$4 sm:$0xff]   ;;  %v2221_v48 = vcombine.high %v3285_v44, %v3290_v45 }
  0x30   :  { %1989 = vmatpush1.bf16.msra.mxu0 %v2649_v47  ;;  %1778 = vmatprep.subr.bf16.mxu1 %v2650_v50  ;;  %v2721_v47 = vld [vmem:[%s3909_s1 + $0x574] ss:$8 sps:$4 sm:$0xff]   ;;  %v3308_v50 = vld [vmem:[%s3910_s0 + $0x68] sm:$0xff] }
  0x31   :  { %1990 = vmatprep.subr.bf16.mxu0 %v2652_v51  ;;  %v2716_v51 = vld [vmem:[%s3909_s1 + $0x170] ss:$8 sps:$4 sm:$0xff]   ;;  %v2229_v53 = vcombine.high %v3303_v49, %v3308_v50 }
  0x33   :  { %1779 = vmatpush1.bf16.msra.mxu1 %v2654_v56  ;;  %v2722_v56 = vld [vmem:[%s3909_s1 + $0x180] ss:$8 sps:$4 sm:$0xff]  }
  0x34   :  { %1991 = vmatpush1.bf16.msra.mxu0 %v2655_v57  ;;  %1780 = vmatprep.subr.bf16.mxu1 %v2656_v58  ;;  %v2725_v57 = vld [vmem:[%s3909_s1 + $0x580] ss:$8 sps:$4 sm:$0xff]   ;;  %v2730_v58 = vld [vmem:[%s3909_s1 + $0x194] ss:$8 sps:$4 sm:$0xff]  }
  0x35   :  { %1992 = vmatprep.subr.bf16.mxu0 %v2658_v59  ;;  %v2733_v59 = vld [vmem:[%s3909_s1 + $0x594] ss:$8 sps:$4 sm:$0xff]  }
  0x37   :  { %1781 = vmatpush1.bf16.msra.mxu1 %v2660_v60  ;;  %v2728_v60 = vld [vmem:[%s3909_s1 + $0x190] ss:$8 sps:$4 sm:$0xff]  }
  0x38   :  { %1993 = vmatpush1.bf16.msra.mxu0 %v2661_v61  ;;  %1782 = vmatprep.subr.bf16.mxu1 %v2662_v62  ;;  %v2731_v61 = vld [vmem:[%s3909_s1 + $0x590] ss:$8 sps:$4 sm:$0xff]   ;;  %v2736_v62 = vld [vmem:[%s3909_s1 + $0x1a4] ss:$8 sps:$4 sm:$0xff]  }
  0x39   :  { %1994 = vmatprep.subr.bf16.mxu0 %v2664_v63  ;;  %v2739_v63 = vld [vmem:[%s3909_s1 + $0x5a4] ss:$8 sps:$4 sm:$0xff]  }
  0x3b   :  { %1783 = vmatpush1.bf16.msra.mxu1 %v2666_v0  ;;  %v2734_v0 = vld [vmem:[%s3909_s1 + $0x1a0] ss:$8 sps:$4 sm:$0xff]  }
  0x3c   :  { %1995 = vmatpush1.bf16.msra.mxu0 %v2667_v1  ;;  %1784 = vmatprep.subr.bf16.mxu1 %v2668_v2  ;;  %v2737_v1 = vld [vmem:[%s3909_s1 + $0x5a0] ss:$8 sps:$4 sm:$0xff]   ;;  %v2742_v2 = vld [vmem:[%s3909_s1 + $0x1b4] ss:$8 sps:$4 sm:$0xff]  }
  0x3d   :  { %1996 = vmatprep.subr.bf16.mxu0 %v2670_v3  ;;  %v2745_v3 = vld [vmem:[%s3909_s1 + $0x5b4] ss:$8 sps:$4 sm:$0xff]  }
  0x3f   :  { %1785 = vmatpush1.bf16.msra.mxu1 %v2672_v4  ;;  %v2740_v4 = vld [vmem:[%s3909_s1 + $0x1b0] ss:$8 sps:$4 sm:$0xff]  }
  0x40   :  { %1997 = vmatpush1.bf16.msra.mxu0 %v2673_v5  ;;  %1807 = vmatprep.subr.bf16.mxu1 %v2676_v6  ;;  %v2743_v5 = vld [vmem:[%s3909_s1 + $0x5b0] ss:$8 sps:$4 sm:$0xff]   ;;  %v2748_v6 = vld [vmem:[%s3909_s1 + $0x1c4] ss:$8 sps:$4 sm:$0xff]  }
  0x41   :  { %2019 = vmatprep.subr.bf16.mxu0 %v2679_v7  ;;  %v2751_v7 = vld [vmem:[%s3909_s1 + $0x5c4] ss:$8 sps:$4 sm:$0xff]  }
  0x42   :  { %1787 = vmatmul.mubr.bf16.vlgmr.msra.gmra.mrb[0].mxu1 %v2218_v8  ;;  %v2746_v8 = vld [vmem:[%s3909_s1 + $0x1c0] ss:$8 sps:$4 sm:$0xff]  }
  0x43   :  { %1999 = vmatmul.mubr.bf16.vlgmr.msra.gmra.mrb[0].mxu0 %v2226_v10  ;;  %1808 = vmatpush1.bf16.msra.mxu1 %v2674_v9  ;;  %v2749_v9 = vld [vmem:[%s3909_s1 + $0x5c0] ss:$8 sps:$4 sm:$0xff]   ;;  %v2754_v10 = vld [vmem:[%s3909_s1 + $0x1d4] ss:$8 sps:$4 sm:$0xff]  }
  0x44   :  { %2020 = vmatpush1.bf16.msra.mxu0 %v2677_v11  ;;  %1809 = vmatprep.subr.bf16.mxu1 %v2682_v12  ;;  %v2757_v11 = vld [vmem:[%s3909_s1 + $0x5d4] ss:$8 sps:$4 sm:$0xff]   ;;  %v2752_v12 = vld [vmem:[%s3909_s1 + $0x1d0] ss:$8 sps:$4 sm:$0xff]  }
  0x45   :  { %2021 = vmatprep.subr.bf16.mxu0 %v2685_v13  ;;  %1796 = vmatprep.mubr.bf16.mxu1 %v2235_v33  ;;  %v2755_v13 = vld [vmem:[%s3909_s1 + $0x5d0] ss:$8 sps:$4 sm:$0xff]   ;;  %v43_v33 = vld [vmem:[%s3910_s0 + $0xe8] sm:$0xff] }
  0x46   :  { %2008 = vmatprep.mubr.bf16.mxu0 %v2243_v39  ;;  %v2787_v39 = vld [vmem:[%s3909_s1 + $0x624] ss:$8 sps:$4 sm:$0xff]  }
  0x47   :  { %1810 = vmatpush1.bf16.msra.mxu1 %v2680_v14  ;;  %v2760_v14 = vld [vmem:[%s3909_s1 + $0x1e4] ss:$8 sps:$4 sm:$0xff]  }
  0x48   :  { %2022 = vmatpush1.bf16.msra.mxu0 %v2683_v15  ;;  %1811 = vmatprep.subr.bf16.mxu1 %v2688_v16  ;;  %v2763_v15 = vld [vmem:[%s3909_s1 + $0x5e4] ss:$8 sps:$4 sm:$0xff]   ;;  %v2758_v16 = vld [vmem:[%s3909_s1 + $0x1e0] ss:$8 sps:$4 sm:$0xff]  }
  0x49   :  { %2023 = vmatprep.subr.bf16.mxu0 %v2691_v17  ;;  %v2761_v17 = vld [vmem:[%s3909_s1 + $0x5e0] ss:$8 sps:$4 sm:$0xff]  }
  0x4a   :  { %1797 = vmatmul.mubr.bf16.gmra.mrb[4].mxu1 %v2234_v37  ;;  %v2779_v37 = vld [vmem:[%s3909_s1 + $0x610] ss:$8 sps:$4 sm:$0xff]  }
  0x4b   :  { %1812 = vmatpush1.bf16.msra.mxu1 %v2686_v18  ;;  %2009 = vmatmul.mubr.bf16.gmra.mrb[4].mxu0 %v2242_v40  ;;  %v2766_v18 = vld [vmem:[%s3909_s1 + $0x1f4] ss:$8 sps:$4 sm:$0xff]   ;;  %v2782_v40 = vld [vmem:[%s3909_s1 + $0x220] ss:$8 sps:$4 sm:$0xff]  }
  0x4c   :  { %2024 = vmatpush1.bf16.msra.mxu0 %v2689_v19  ;;  %1813 = vmatprep.subr.bf16.mxu1 %v2694_v20  ;;  %v2769_v19 = vld [vmem:[%s3909_s1 + $0x5f4] ss:$8 sps:$4 sm:$0xff]   ;;  %v2764_v20 = vld [vmem:[%s3909_s1 + $0x1f0] ss:$8 sps:$4 sm:$0xff]  }
  0x4d   :  { %2025 = vmatprep.subr.bf16.mxu0 %v2697_v21  ;;  %1839 = vmatprep.mubr.bf16.mxu1 %v2221_v48  ;;  %v2767_v21 = vld [vmem:[%s3909_s1 + $0x5f0] ss:$8 sps:$4 sm:$0xff]   ;;  %v2790_v48 = vld [vmem:[%s3909_s1 + $0x234] ss:$8 sps:$4 sm:$0xff]  }
  0x4e   :  { %2051 = vmatprep.mubr.bf16.mxu0 %v2229_v53  ;;  %v2791_v53 = vld [vmem:[%s3909_s1 + $0x630] ss:$8 sps:$4 sm:$0xff]  }
  0x4f   :  { %1814 = vmatpush1.bf16.msra.mxu1 %v2692_v22  ;;  %v2772_v22 = vld [vmem:[%s3909_s1 + $0x204] ss:$8 sps:$4 sm:$0xff]  }
  0x50   :  { %2026 = vmatpush1.bf16.msra.mxu0 %v2695_v23  ;;  %1815 = vmatprep.subr.bf16.mxu1 %v2700_v24  ;;  %v2775_v23 = vld [vmem:[%s3909_s1 + $0x604] ss:$8 sps:$4 sm:$0xff]   ;;  %v2770_v24 = vld [vmem:[%s3909_s1 + $0x200] ss:$8 sps:$4 sm:$0xff]  }
  0x51   :  { %2027 = vmatprep.subr.bf16.mxu0 %v2703_v25  ;;  %v2773_v25 = vld [vmem:[%s3909_s1 + $0x600] ss:$8 sps:$4 sm:$0xff]  }
  0x53   :  { %1816 = vmatpush1.bf16.msra.mxu1 %v2698_v26  ;;  %v31_v26 = vld [vmem:[%s3910_s0 + $0x88] sm:$0xff] }
  0x54   :  { %2028 = vmatpush1.bf16.msra.mxu0 %v2701_v27  ;;  %1817 = vmatprep.subr.bf16.mxu1 %v2706_v28  ;;  %v2220_v27 = vcombine.low %v3285_v44, %v3290_v45  ;;  %v2228_v28 = vcombine.low %v3303_v49, %v3308_v50  ;;  %v3474_v45 = vld [vmem:[%s3910_s0 + $0x50] sm:$0xff] }
  0x55   :  { %2029 = vmatprep.subr.bf16.mxu0 %v2709_v29  ;;  %v39_v29 = vld [vmem:[%s3910_s0 + $0xc8] sm:$0xff]  ;;  %v2793_v49 = vld [vmem:[%s3909_s1 + $0x634] ss:$8 sps:$4 sm:$0xff]  }
  0x57   :  { %1818 = vmatpush1.bf16.msra.mxu1 %v2704_v32  ;;  %v35_v32 = vld [vmem:[%s3910_s0 + $0xa8] sm:$0xff] }
  0x58   :  { %2030 = vmatpush1.bf16.msra.mxu0 %v2707_v34  ;;  %1819 = vmatprep.subr.bf16.mxu1 %v2712_v38  ;;  %v2237_v34 = vcombine.high %v31_v26, %v39_v29  ;;  %v2245_v35 = vcombine.high %v35_v32, %v43_v33  ;;  %v2784_v38 = vld [vmem:[%s3909_s1 + $0x224] ss:$8 sps:$4 sm:$0xff]   ;;  %v2244_v44 = vcombine.low %v35_v32, %v43_v33  ;;  %v2854_v32 = vld [vmem:[%s3909_s1 + $0x2e0] ss:$8 sps:$4 sm:$0xff]  }
  0x59   :  { %2031 = vmatprep.subr.bf16.mxu0 %v2715_v41  ;;  %v2785_v41 = vld [vmem:[%s3909_s1 + $0x620] ss:$8 sps:$4 sm:$0xff]  }
  0x5a   :  { %v2857_v33 = vld [vmem:[%s3909_s1 + $0x6e0] ss:$8 sps:$4 sm:$0xff]  }
  0x5b   :  { %1820 = vmatpush1.bf16.msra.mxu1 %v2710_v42  ;;  %v3469_v42 = vld [vmem:[%s3910_s0 + $0x10] sm:$0xff] }
  0x5c   :  { %2032 = vmatpush1.bf16.msra.mxu0 %v2713_v43  ;;  %1821 = vmatprep.subr.bf16.mxu1 %v2718_v46  ;;  %v2236_v43 = vcombine.low %v31_v26, %v39_v29  ;;  %v3479_v46 = vld [vmem:[%s3910_s0 + $0x30] sm:$0xff]  ;;  %v2223_v50 = vcombine.high %v3469_v42, %v3474_v45 }
  0x5d   :  { %2033 = vmatprep.subr.bf16.mxu0 %v2721_v47  ;;  %v3484_v47 = vld [vmem:[%s3910_s0 + $0x70] sm:$0xff] }
  0x5e   :  { %v2850_v26 = vld [vmem:[%s3909_s1 + $0x2d4] ss:$8 sps:$4 sm:$0xff]   ;;  %v2851_v29 = vld [vmem:[%s3909_s1 + $0x6d0] ss:$8 sps:$4 sm:$0xff]  }
  0x5f   :  { %1822 = vmatpush1.bf16.msra.mxu1 %v2716_v51  ;;  %v2231_v51 = vcombine.high %v3479_v46, %v3484_v47 }
  0x60   :  { %2034 = vmatpush1.bf16.msra.mxu0 %v2719_v52  ;;  %1823 = vmatprep.subr.bf16.mxu1 %v2724_v54  ;;  %v2788_v52 = vld [vmem:[%s3909_s1 + $0x230] ss:$8 sps:$4 sm:$0xff]   ;;  %v2796_v54 = vld [vmem:[%s3909_s1 + $0x244] ss:$8 sps:$4 sm:$0xff]  }
  0x61   :  { %2035 = vmatprep.subr.bf16.mxu0 %v2727_v55  ;;  %v2799_v55 = vld [vmem:[%s3909_s1 + $0x644] ss:$8 sps:$4 sm:$0xff]  }
  0x63   :  { %1824 = vmatpush1.bf16.msra.mxu1 %v2722_v56  ;;  %v2794_v56 = vld [vmem:[%s3909_s1 + $0x240] ss:$8 sps:$4 sm:$0xff]  }
  0x64   :  { %2036 = vmatpush1.bf16.msra.mxu0 %v2725_v57  ;;  %1825 = vmatprep.subr.bf16.mxu1 %v2730_v58  ;;  %v2797_v57 = vld [vmem:[%s3909_s1 + $0x640] ss:$8 sps:$4 sm:$0xff]   ;;  %v2802_v58 = vld [vmem:[%s3909_s1 + $0x254] ss:$8 sps:$4 sm:$0xff]  }
  0x65   :  { %2037 = vmatprep.subr.bf16.mxu0 %v2733_v59  ;;  %v2805_v59 = vld [vmem:[%s3909_s1 + $0x654] ss:$8 sps:$4 sm:$0xff]  }
  0x67   :  { %1826 = vmatpush1.bf16.msra.mxu1 %v2728_v60  ;;  %v2800_v60 = vld [vmem:[%s3909_s1 + $0x250] ss:$8 sps:$4 sm:$0xff]  }
  0x68   :  { %2038 = vmatpush1.bf16.msra.mxu0 %v2731_v61  ;;  %1827 = vmatprep.subr.bf16.mxu1 %v2736_v62  ;;  %v2803_v61 = vld [vmem:[%s3909_s1 + $0x650] ss:$8 sps:$4 sm:$0xff]   ;;  %v2808_v62 = vld [vmem:[%s3909_s1 + $0x264] ss:$8 sps:$4 sm:$0xff]  }
  0x69   :  { %2039 = vmatprep.subr.bf16.mxu0 %v2739_v63  ;;  %v2811_v63 = vld [vmem:[%s3909_s1 + $0x664] ss:$8 sps:$4 sm:$0xff]  }
  0x6b   :  { %1828 = vmatpush1.bf16.msra.mxu1 %v2734_v0  ;;  %v2806_v0 = vld [vmem:[%s3909_s1 + $0x260] ss:$8 sps:$4 sm:$0xff]  }
  0x6c   :  { %2040 = vmatpush1.bf16.msra.mxu0 %v2737_v1  ;;  %1829 = vmatprep.subr.bf16.mxu1 %v2742_v2  ;;  %v2809_v1 = vld [vmem:[%s3909_s1 + $0x660] ss:$8 sps:$4 sm:$0xff]   ;;  %v2814_v2 = vld [vmem:[%s3909_s1 + $0x274] ss:$8 sps:$4 sm:$0xff]  }
  0x6d   :  { %2041 = vmatprep.subr.bf16.mxu0 %v2745_v3  ;;  %v2817_v3 = vld [vmem:[%s3909_s1 + $0x674] ss:$8 sps:$4 sm:$0xff]  }
  0x6f   :  { %1830 = vmatpush1.bf16.msra.mxu1 %v2740_v4  ;;  %v2812_v4 = vld [vmem:[%s3909_s1 + $0x270] ss:$8 sps:$4 sm:$0xff]  }
  0x70   :  { %2042 = vmatpush1.bf16.msra.mxu0 %v2743_v5  ;;  %1831 = vmatprep.subr.bf16.mxu1 %v2748_v6  ;;  %v2815_v5 = vld [vmem:[%s3909_s1 + $0x670] ss:$8 sps:$4 sm:$0xff]   ;;  %v2820_v6 = vld [vmem:[%s3909_s1 + $0x284] ss:$8 sps:$4 sm:$0xff]  }
  0x71   :  { %2043 = vmatprep.subr.bf16.mxu0 %v2751_v7  ;;  %v2823_v7 = vld [vmem:[%s3909_s1 + $0x684] ss:$8 sps:$4 sm:$0xff]  }
  0x73   :  { %1832 = vmatpush1.bf16.msra.mxu1 %v2746_v8  ;;  %v2818_v8 = vld [vmem:[%s3909_s1 + $0x280] ss:$8 sps:$4 sm:$0xff]  }
  0x74   :  { %2044 = vmatpush1.bf16.msra.mxu0 %v2749_v9  ;;  %1833 = vmatprep.subr.bf16.mxu1 %v2754_v10  ;;  %v2821_v9 = vld [vmem:[%s3909_s1 + $0x680] ss:$8 sps:$4 sm:$0xff]   ;;  %v2826_v10 = vld [vmem:[%s3909_s1 + $0x294] ss:$8 sps:$4 sm:$0xff]  }
  0x75   :  { %2045 = vmatprep.subr.bf16.mxu0 %v2757_v11  ;;  %v2829_v11 = vld [vmem:[%s3909_s1 + $0x694] ss:$8 sps:$4 sm:$0xff]  }
  0x77   :  { %1834 = vmatpush1.bf16.msra.mxu1 %v2752_v12  ;;  %v2824_v12 = vld [vmem:[%s3909_s1 + $0x290] ss:$8 sps:$4 sm:$0xff]  }
  0x78   :  { %2046 = vmatpush1.bf16.msra.mxu0 %v2755_v13  ;;  %1835 = vmatprep.subr.bf16.mxu1 %v2760_v14  ;;  %v2827_v13 = vld [vmem:[%s3909_s1 + $0x690] ss:$8 sps:$4 sm:$0xff]   ;;  %v2832_v14 = vld [vmem:[%s3909_s1 + $0x2a4] ss:$8 sps:$4 sm:$0xff]  }
  0x79   :  { %2047 = vmatprep.subr.bf16.mxu0 %v2763_v15  ;;  %v2835_v15 = vld [vmem:[%s3909_s1 + $0x6a4] ss:$8 sps:$4 sm:$0xff]  }
  0x7b   :  { %1836 = vmatpush1.bf16.msra.mxu1 %v2758_v16  ;;  %v2830_v16 = vld [vmem:[%s3909_s1 + $0x2a0] ss:$8 sps:$4 sm:$0xff]  }
  0x7c   :  { %2048 = vmatpush1.bf16.msra.mxu0 %v2761_v17  ;;  %1837 = vmatprep.subr.bf16.mxu1 %v2766_v18  ;;  %v2833_v17 = vld [vmem:[%s3909_s1 + $0x6a0] ss:$8 sps:$4 sm:$0xff]   ;;  %v2838_v18 = vld [vmem:[%s3909_s1 + $0x2b4] ss:$8 sps:$4 sm:$0xff]  }
  0x7d   :  { %2049 = vmatprep.subr.bf16.mxu0 %v2769_v19  ;;  %v2841_v19 = vld [vmem:[%s3909_s1 + $0x6b4] ss:$8 sps:$4 sm:$0xff]  }
  0x7f   :  { %1838 = vmatpush1.bf16.msra.mxu1 %v2764_v20  ;;  %v2836_v20 = vld [vmem:[%s3909_s1 + $0x2b0] ss:$8 sps:$4 sm:$0xff]  }
  0x80   :  { %2050 = vmatpush1.bf16.msra.mxu0 %v2767_v21  ;;  %1860 = vmatprep.subr.bf16.mxu1 %v2772_v22  ;;  %v2839_v21 = vld [vmem:[%s3909_s1 + $0x6b0] ss:$8 sps:$4 sm:$0xff]   ;;  %v2844_v22 = vld [vmem:[%s3909_s1 + $0x2c4] ss:$8 sps:$4 sm:$0xff]  }
  0x81   :  { %2072 = vmatprep.subr.bf16.mxu0 %v2775_v23  ;;  %v2847_v23 = vld [vmem:[%s3909_s1 + $0x6c4] ss:$8 sps:$4 sm:$0xff]  }
  0x82   :  { %1840 = vmatmul.mubr.bf16.vlgmr.msra.gmra.mrb[0].mxu1 %v2220_v27  ;;  %v2853_v27 = vld [vmem:[%s3909_s1 + $0x6d4] ss:$8 sps:$4 sm:$0xff]  }
  0x83   :  { %2052 = vmatmul.mubr.bf16.vlgmr.msra.gmra.mrb[0].mxu0 %v2228_v28  ;;  %1861 = vmatpush1.bf16.msra.mxu1 %v2770_v24  ;;  %v2842_v24 = vld [vmem:[%s3909_s1 + $0x2c0] ss:$8 sps:$4 sm:$0xff]   ;;  %v2848_v28 = vld [vmem:[%s3909_s1 + $0x2d0] ss:$8 sps:$4 sm:$0xff]  }
  0x84   :  { %2073 = vmatpush1.bf16.msra.mxu0 %v2773_v25  ;;  %1862 = vmatprep.subr.bf16.mxu1 %v2778_v30  ;;  %v2845_v25 = vld [vmem:[%s3909_s1 + $0x6c0] ss:$8 sps:$4 sm:$0xff]   ;;  %v2856_v30 = vld [vmem:[%s3909_s1 + $0x2e4] ss:$8 sps:$4 sm:$0xff]  }
  0x85   :  { %2074 = vmatprep.subr.bf16.mxu0 %v2781_v31  ;;  %1849 = vmatprep.mubr.bf16.mxu1 %v2237_v34  ;;  %v2859_v31 = vld [vmem:[%s3909_s1 + $0x6e4] ss:$8 sps:$4 sm:$0xff]   ;;  %v2862_v34 = vld [vmem:[%s3909_s1 + $0x2f4] ss:$8 sps:$4 sm:$0xff]  }
  0x86   :  { %2061 = vmatprep.mubr.bf16.mxu0 %v2245_v35  ;;  %v2865_v35 = vld [vmem:[%s3909_s1 + $0x6f4] ss:$8 sps:$4 sm:$0xff]  }
  0x87   :  { %1863 = vmatpush1.bf16.msra.mxu1 %v2776_v36  ;;  %v2860_v36 = vld [vmem:[%s3909_s1 + $0x2f0] ss:$8 sps:$4 sm:$0xff]  }
  0x88   :  { %2075 = vmatpush1.bf16.msra.mxu0 %v2779_v37  ;;  %1864 = vmatprep.subr.bf16.mxu1 %v2784_v38  ;;  %v2863_v37 = vld [vmem:[%s3909_s1 + $0x6f0] ss:$8 sps:$4 sm:$0xff]   ;;  %v2868_v38 = vld [vmem:[%s3909_s1 + $0x304] ss:$8 sps:$4 sm:$0xff]  }
  0x89   :  { %2076 = vmatprep.subr.bf16.mxu0 %v2787_v39  ;;  %v2871_v39 = vld [vmem:[%s3909_s1 + $0x704] ss:$8 sps:$4 sm:$0xff]  }
  0x8a   :  { %1850 = vmatmul.mubr.bf16.gmra.mrb[4].mxu1 %v2236_v43  ;;  %v2230_v43 = vcombine.low %v3479_v46, %v3484_v47  ;;  %v2874_v46 = vld [vmem:[%s3909_s1 + $0x314] ss:$8 sps:$4 sm:$0xff]  }
  0x8b   :  { %2062 = vmatmul.mubr.bf16.gmra.mrb[4].mxu0 %v2244_v44  ;;  %1865 = vmatpush1.bf16.msra.mxu1 %v2782_v40  ;;  %v32_v40 = vld [vmem:[%s3910_s0 + $0x90] sm:$0xff] }
  0x8c   :  { %2077 = vmatpush1.bf16.msra.mxu0 %v2785_v41  ;;  %1866 = vmatprep.subr.bf16.mxu1 %v2790_v48  ;;  %v2222_v41 = vcombine.low %v3469_v42, %v3474_v45  ;;  %v40_v44 = vld [vmem:[%s3910_s0 + $0xd0] sm:$0xff]  ;;  %v2866_v42 = vld [vmem:[%s3909_s1 + $0x300] ss:$8 sps:$4 sm:$0xff]  }
  0x8d   :  { %2078 = vmatprep.subr.bf16.mxu0 %v2793_v49  ;;  %1892 = vmatprep.mubr.bf16.mxu1 %v2223_v50  ;;  %v36_v48 = vld [vmem:[%s3910_s0 + $0xb0] sm:$0xff]  ;;  %v2869_v45 = vld [vmem:[%s3909_s1 + $0x700] ss:$8 sps:$4 sm:$0xff]   ;;  %v2239_v50 = vcombine.high %v32_v40, %v40_v44 }
  0x8e   :  { %2104 = vmatprep.mubr.bf16.mxu0 %v2231_v51  ;;  %v44_v49 = vld [vmem:[%s3910_s0 + $0xf0] sm:$0xff] }
  0x8f   :  { %1867 = vmatpush1.bf16.msra.mxu1 %v2788_v52  ;;  %v2877_v47 = vld [vmem:[%s3909_s1 + $0x714] ss:$8 sps:$4 sm:$0xff]   ;;  %v2247_v51 = vcombine.high %v36_v48, %v44_v49  ;;  %v2872_v52 = vld [vmem:[%s3909_s1 + $0x310] ss:$8 sps:$4 sm:$0xff]  }
  0x90   :  { %2079 = vmatpush1.bf16.msra.mxu0 %v2791_v53  ;;  %1868 = vmatprep.subr.bf16.mxu1 %v2796_v54  ;;  %v2875_v53 = vld [vmem:[%s3909_s1 + $0x710] ss:$8 sps:$4 sm:$0xff]   ;;  %v2880_v54 = vld [vmem:[%s3909_s1 + $0x324] ss:$8 sps:$4 sm:$0xff]  }
  0x91   :  { %2080 = vmatprep.subr.bf16.mxu0 %v2799_v55  ;;  %v2883_v55 = vld [vmem:[%s3909_s1 + $0x724] ss:$8 sps:$4 sm:$0xff]  }
  0x93   :  { %1869 = vmatpush1.bf16.msra.mxu1 %v2794_v56  ;;  %v3695_v56 = vld [vmem:[%s3910_s0 + $0x18] sm:$0xff] }
  0x94   :  { %2081 = vmatpush1.bf16.msra.mxu0 %v2797_v57  ;;  %1870 = vmatprep.subr.bf16.mxu1 %v2802_v58  ;;  %v2238_v57 = vcombine.low %v32_v40, %v40_v44  ;;  %v2246_v58 = vcombine.low %v36_v48, %v44_v49  ;;  %v2938_v40 = vld [vmem:[%s3909_s1 + $0x3c0] ss:$8 sps:$4 sm:$0xff]   ;;  %v2949_v44 = vld [vmem:[%s3909_s1 + $0x7d4] ss:$8 sps:$4 sm:$0xff]   ;;  %v2944_v48 = vld [vmem:[%s3909_s1 + $0x3d0] ss:$8 sps:$4 sm:$0xff]  }
  0x95   :  { %2082 = vmatprep.subr.bf16.mxu0 %v2805_v59  ;;  %v3700_v59 = vld [vmem:[%s3910_s0 + $0x58] sm:$0xff] }
  0x96   :  { %v2947_v49 = vld [vmem:[%s3909_s1 + $0x7d0] ss:$8 sps:$4 sm:$0xff]  }
  0x97   :  { %1871 = vmatpush1.bf16.msra.mxu1 %v2800_v60  ;;  %v3705_v60 = vld [vmem:[%s3910_s0 + $0x38] sm:$0xff] }
  0x98   :  { %2083 = vmatpush1.bf16.msra.mxu0 %v2803_v61  ;;  %1872 = vmatprep.subr.bf16.mxu1 %v2808_v62  ;;  %v3710_v61 = vld [vmem:[%s3910_s0 + $0x78] sm:$0xff]  ;;  %v2878_v62 = vld [vmem:[%s3909_s1 + $0x320] ss:$8 sps:$4 sm:$0xff]  }
  0x99   :  { %2084 = vmatprep.subr.bf16.mxu0 %v2811_v63  ;;  %v2881_v63 = vld [vmem:[%s3909_s1 + $0x720] ss:$8 sps:$4 sm:$0xff]  }
  0x9b   :  { %1873 = vmatpush1.bf16.msra.mxu1 %v2806_v0  ;;  %v2886_v0 = vld [vmem:[%s3909_s1 + $0x334] ss:$8 sps:$4 sm:$0xff]  }
  0x9c   :  { %2085 = vmatpush1.bf16.msra.mxu0 %v2809_v1  ;;  %1874 = vmatprep.subr.bf16.mxu1 %v2814_v2  ;;  %v2889_v1 = vld [vmem:[%s3909_s1 + $0x734] ss:$8 sps:$4 sm:$0xff]   ;;  %v2225_v2 = vcombine.high %v3695_v56, %v3700_v59 }
  0x9d   :  { %2086 = vmatprep.subr.bf16.mxu0 %v2817_v3  ;;  %v2233_v3 = vcombine.high %v3705_v60, %v3710_v61 }
  0x9f   :  { %1875 = vmatpush1.bf16.msra.mxu1 %v2812_v4  ;;  %v2884_v4 = vld [vmem:[%s3909_s1 + $0x330] ss:$8 sps:$4 sm:$0xff]  }
  0xa0   :  { %2087 = vmatpush1.bf16.msra.mxu0 %v2815_v5  ;;  %1876 = vmatprep.subr.bf16.mxu1 %v2820_v6  ;;  %v2887_v5 = vld [vmem:[%s3909_s1 + $0x730] ss:$8 sps:$4 sm:$0xff]   ;;  %v2892_v6 = vld [vmem:[%s3909_s1 + $0x344] ss:$8 sps:$4 sm:$0xff]  }
  0xa1   :  { %2088 = vmatprep.subr.bf16.mxu0 %v2823_v7  ;;  %v2895_v7 = vld [vmem:[%s3909_s1 + $0x744] ss:$8 sps:$4 sm:$0xff]  }
  0xa3   :  { %1877 = vmatpush1.bf16.msra.mxu1 %v2818_v8  ;;  %v2890_v8 = vld [vmem:[%s3909_s1 + $0x340] ss:$8 sps:$4 sm:$0xff]  }
  0xa4   :  { %2089 = vmatpush1.bf16.msra.mxu0 %v2821_v9  ;;  %1878 = vmatprep.subr.bf16.mxu1 %v2826_v10  ;;  %v2893_v9 = vld [vmem:[%s3909_s1 + $0x740] ss:$8 sps:$4 sm:$0xff]   ;;  %v2898_v10 = vld [vmem:[%s3909_s1 + $0x354] ss:$8 sps:$4 sm:$0xff]  }
  0xa5   :  { %2090 = vmatprep.subr.bf16.mxu0 %v2829_v11  ;;  %v2901_v11 = vld [vmem:[%s3909_s1 + $0x754] ss:$8 sps:$4 sm:$0xff]  }
  0xa7   :  { %1879 = vmatpush1.bf16.msra.mxu1 %v2824_v12  ;;  %v2896_v12 = vld [vmem:[%s3909_s1 + $0x350] ss:$8 sps:$4 sm:$0xff]  }
  0xa8   :  { %2091 = vmatpush1.bf16.msra.mxu0 %v2827_v13  ;;  %1880 = vmatprep.subr.bf16.mxu1 %v2832_v14  ;;  %v2899_v13 = vld [vmem:[%s3909_s1 + $0x750] ss:$8 sps:$4 sm:$0xff]   ;;  %v2904_v14 = vld [vmem:[%s3909_s1 + $0x364] ss:$8 sps:$4 sm:$0xff]  }
  0xa9   :  { %2092 = vmatprep.subr.bf16.mxu0 %v2835_v15  ;;  %v2907_v15 = vld [vmem:[%s3909_s1 + $0x764] ss:$8 sps:$4 sm:$0xff]  }
  0xab   :  { %1881 = vmatpush1.bf16.msra.mxu1 %v2830_v16  ;;  %v2902_v16 = vld [vmem:[%s3909_s1 + $0x360] ss:$8 sps:$4 sm:$0xff]  }
  0xac   :  { %2093 = vmatpush1.bf16.msra.mxu0 %v2833_v17  ;;  %1882 = vmatprep.subr.bf16.mxu1 %v2838_v18  ;;  %v2905_v17 = vld [vmem:[%s3909_s1 + $0x760] ss:$8 sps:$4 sm:$0xff]   ;;  %v2910_v18 = vld [vmem:[%s3909_s1 + $0x374] ss:$8 sps:$4 sm:$0xff]  }
  0xad   :  { %2094 = vmatprep.subr.bf16.mxu0 %v2841_v19  ;;  %v2913_v19 = vld [vmem:[%s3909_s1 + $0x774] ss:$8 sps:$4 sm:$0xff]  }
  0xaf   :  { %1883 = vmatpush1.bf16.msra.mxu1 %v2836_v20  ;;  %v2908_v20 = vld [vmem:[%s3909_s1 + $0x370] ss:$8 sps:$4 sm:$0xff]  }
  0xb0   :  { %2095 = vmatpush1.bf16.msra.mxu0 %v2839_v21  ;;  %1884 = vmatprep.subr.bf16.mxu1 %v2844_v22  ;;  %v2911_v21 = vld [vmem:[%s3909_s1 + $0x770] ss:$8 sps:$4 sm:$0xff]   ;;  %v2916_v22 = vld [vmem:[%s3909_s1 + $0x384] ss:$8 sps:$4 sm:$0xff]  }
  0xb1   :  { %2096 = vmatprep.subr.bf16.mxu0 %v2847_v23  ;;  %v2919_v23 = vld [vmem:[%s3909_s1 + $0x784] ss:$8 sps:$4 sm:$0xff]  }
  0xb3   :  { %1885 = vmatpush1.bf16.msra.mxu1 %v2842_v24  ;;  %v2914_v24 = vld [vmem:[%s3909_s1 + $0x380] ss:$8 sps:$4 sm:$0xff]  }
  0xb4   :  { %2097 = vmatpush1.bf16.msra.mxu0 %v2845_v25  ;;  %1886 = vmatprep.subr.bf16.mxu1 %v2850_v26  ;;  %v2917_v25 = vld [vmem:[%s3909_s1 + $0x780] ss:$8 sps:$4 sm:$0xff]   ;;  %v2922_v26 = vld [vmem:[%s3909_s1 + $0x394] ss:$8 sps:$4 sm:$0xff]  }
  0xb5   :  { %2098 = vmatprep.subr.bf16.mxu0 %v2853_v27  ;;  %v2925_v27 = vld [vmem:[%s3909_s1 + $0x794] ss:$8 sps:$4 sm:$0xff]  }
  0xb7   :  { %1887 = vmatpush1.bf16.msra.mxu1 %v2848_v28  ;;  %v2920_v28 = vld [vmem:[%s3909_s1 + $0x390] ss:$8 sps:$4 sm:$0xff]  }
  0xb8   :  { %2099 = vmatpush1.bf16.msra.mxu0 %v2851_v29  ;;  %1888 = vmatprep.subr.bf16.mxu1 %v2856_v30  ;;  %v2923_v29 = vld [vmem:[%s3909_s1 + $0x790] ss:$8 sps:$4 sm:$0xff]   ;;  %v2928_v30 = vld [vmem:[%s3909_s1 + $0x3a4] ss:$8 sps:$4 sm:$0xff]  }
  0xb9   :  { %2100 = vmatprep.subr.bf16.mxu0 %v2859_v31  ;;  %v2931_v31 = vld [vmem:[%s3909_s1 + $0x7a4] ss:$8 sps:$4 sm:$0xff]  }
  0xbb   :  { %1889 = vmatpush1.bf16.msra.mxu1 %v2854_v32  ;;  %v2926_v32 = vld [vmem:[%s3909_s1 + $0x3a0] ss:$8 sps:$4 sm:$0xff]  }
  0xbc   :  { %2101 = vmatpush1.bf16.msra.mxu0 %v2857_v33  ;;  %1890 = vmatprep.subr.bf16.mxu1 %v2862_v34  ;;  %v2929_v33 = vld [vmem:[%s3909_s1 + $0x7a0] ss:$8 sps:$4 sm:$0xff]   ;;  %v2934_v34 = vld [vmem:[%s3909_s1 + $0x3b4] ss:$8 sps:$4 sm:$0xff]  }
  0xbd   :  { %2102 = vmatprep.subr.bf16.mxu0 %v2865_v35  ;;  %v2937_v35 = vld [vmem:[%s3909_s1 + $0x7b4] ss:$8 sps:$4 sm:$0xff]  }
  0xbf   :  { %1891 = vmatpush1.bf16.msra.mxu1 %v2860_v36  ;;  %v2932_v36 = vld [vmem:[%s3909_s1 + $0x3b0] ss:$8 sps:$4 sm:$0xff]  }
  0xc0   :  { %2103 = vmatpush1.bf16.msra.mxu0 %v2863_v37  ;;  %1913 = vmatprep.subr.bf16.mxu1 %v2868_v38  ;;  %v2935_v37 = vld [vmem:[%s3909_s1 + $0x7b0] ss:$8 sps:$4 sm:$0xff]   ;;  %v2940_v38 = vld [vmem:[%s3909_s1 + $0x3c4] ss:$8 sps:$4 sm:$0xff]  }
  0xc1   :  { %2125 = vmatprep.subr.bf16.mxu0 %v2871_v39  ;;  %v2943_v39 = vld [vmem:[%s3909_s1 + $0x7c4] ss:$8 sps:$4 sm:$0xff]  }
  0xc2   :  { %1893 = vmatmul.mubr.bf16.vlgmr.msra.gmra.mrb[0].mxu1 %v2222_v41  ;;  %v2941_v41 = vld [vmem:[%s3909_s1 + $0x7c0] ss:$8 sps:$4 sm:$0xff]  }
  0xc3   :  { %2105 = vmatmul.mubr.bf16.vlgmr.msra.gmra.mrb[0].mxu0 %v2230_v43  ;;  %1914 = vmatpush1.bf16.msra.mxu1 %v2866_v42  ;;  %v2946_v43 = vld [vmem:[%s3909_s1 + $0x3d4] ss:$8 sps:$4 sm:$0xff]   ;;  %v2952_v42 = vld [vmem:[%s3909_s1 + $0x3e4] ss:$8 sps:$4 sm:$0xff]  }
  0xc4   :  { %2126 = vmatpush1.bf16.msra.mxu0 %v2869_v45  ;;  %1915 = vmatprep.subr.bf16.mxu1 %v2874_v46  ;;  %v2955_v45 = vld [vmem:[%s3909_s1 + $0x7e4] ss:$8 sps:$4 sm:$0xff]   ;;  %v2950_v46 = vld [vmem:[%s3909_s1 + $0x3e0] ss:$8 sps:$4 sm:$0xff]  }
  0xc5   :  { %2127 = vmatprep.subr.bf16.mxu0 %v2877_v47  ;;  %1902 = vmatprep.mubr.bf16.mxu1 %v2239_v50  ;;  %v2953_v47 = vld [vmem:[%s3909_s1 + $0x7e0] ss:$8 sps:$4 sm:$0xff]   ;;  %v2958_v50 = vld [vmem:[%s3909_s1 + $0x3f4] ss:$8 sps:$4 sm:$0xff]  }
  0xc6   :  { %2114 = vmatprep.mubr.bf16.mxu0 %v2247_v51  ;;  %v2961_v51 = vld [vmem:[%s3909_s1 + $0x7f4] ss:$8 sps:$4 sm:$0xff]  }
  0xc7   :  { %1916 = vmatpush1.bf16.msra.mxu1 %v2872_v52  ;;  %v2956_v52 = vld [vmem:[%s3909_s1 + $0x3f0] ss:$8 sps:$4 sm:$0xff]  }
  0xc8   :  { %2128 = vmatpush1.bf16.msra.mxu0 %v2875_v53  ;;  %1917 = vmatprep.subr.bf16.mxu1 %v2880_v54  ;;  %v2959_v53 = vld [vmem:[%s3909_s1 + $0x7f0] ss:$8 sps:$4 sm:$0xff]  }
  0xc9   :  { %2129 = vmatprep.subr.bf16.mxu0 %v2883_v55  ;;  %v33_v54 = vld [vmem:[%s3910_s0 + $0x98] sm:$0xff] }
  0xca   :  { %1903 = vmatmul.mubr.bf16.gmra.mrb[4].mxu1 %v2238_v57  ;;  %v41_v55 = vld [vmem:[%s3910_s0 + $0xd8] sm:$0xff] }
  0xcb   :  { %2115 = vmatmul.mubr.bf16.gmra.mrb[4].mxu0 %v2246_v58  ;;  %1918 = vmatpush1.bf16.msra.mxu1 %v2878_v62  ;;  %v37_v57 = vld [vmem:[%s3910_s0 + $0xb8] sm:$0xff]  ;;  %v2224_v62 = vcombine.low %v3695_v56, %v3700_v59  ;;  %v302_v56 = vld [vmem:[%s3911_s2] sm:$0x3] }
  0xcc   :  { %2130 = vmatpush1.bf16.msra.mxu0 %v2881_v63  ;;  %1919 = vmatprep.subr.bf16.mxu1 %v2886_v0  ;;  %v45_v58 = vld [vmem:[%s3910_s0 + $0xf8] sm:$0xff]  ;;  %v2232_v63 = vcombine.low %v3705_v60, %v3710_v61  ;;  %v2241_v0 = vcombine.high %v33_v54, %v41_v55 }
  0xcd   :  { %2131 = vmatprep.subr.bf16.mxu0 %v2889_v1  ;;  %1945 = vmatprep.mubr.bf16.mxu1 %v2225_v2  ;;  %v2249_v1 = vcombine.high %v37_v57, %v45_v58  ;;  %v2240_v2 = vcombine.low %v33_v54, %v41_v55 }
  0xce   :  { %2157 = vmatprep.mubr.bf16.mxu0 %v2233_v3  ;;  %v2248_v3 = vcombine.low %v37_v57, %v45_v58 }
  0xcf   :  { %1920 = vmatpush1.bf16.msra.mxu1 %v2884_v4  ;;  %v304_v4 = vlaneseq }
  0xd0   :  { %2132 = vmatpush1.bf16.msra.mxu0 %v2887_v5  ;;  %1921 = vmatprep.subr.bf16.mxu1 %v2892_v6 }
  0xd1   :  { %2133 = vmatprep.subr.bf16.mxu0 %v2895_v7  ;;  %v305_v5 = vshrl.u32 %v304_v4, 7 }
  0xd3   :  { %1922 = vmatpush1.bf16.msra.mxu1 %v2890_v8  ;;  %v306_v6 = vsub.s32 0, %v305_v5  ;;  %v310_v59 = vsub.s32 1, %v305_v5 }
  0xd4   :  { %2134 = vmatpush1.bf16.msra.mxu0 %v2893_v9  ;;  %1923 = vmatprep.subr.bf16.mxu1 %v2898_v10 }
  0xd5   :  { %2135 = vmatprep.subr.bf16.mxu0 %v2901_v11  ;;  %v307_v60 = vrot.slane %v302_v56, %v306_v6  ;;  %v311_v61 = vrot.slane %v302_v56, %v310_v59 }
  0xd7   :  { %1924 = vmatpush1.bf16.msra.mxu1 %v2896_v12 }
  0xd8   :  { %2136 = vmatpush1.bf16.msra.mxu0 %v2899_v13  ;;  %1925 = vmatprep.subr.bf16.mxu1 %v2904_v14 }
  0xd9   :  { %2137 = vmatprep.subr.bf16.mxu0 %v2907_v15 }
  0xdb   :  { %1926 = vmatpush1.bf16.msra.mxu1 %v2902_v16 }
  0xdc   :  { %2138 = vmatpush1.bf16.msra.mxu0 %v2905_v17  ;;  %1927 = vmatprep.subr.bf16.mxu1 %v2910_v18 }
  0xdd   :  { %2139 = vmatprep.subr.bf16.mxu0 %v2913_v19 }
  0xdf   :  { %1928 = vmatpush1.bf16.msra.mxu1 %v2908_v20 }
  0xe0   :  { %2140 = vmatpush1.bf16.msra.mxu0 %v2911_v21  ;;  %1929 = vmatprep.subr.bf16.mxu1 %v2916_v22 }
  0xe1   :  { %2141 = vmatprep.subr.bf16.mxu0 %v2919_v23 }
  0xe3   :  { %1930 = vmatpush1.bf16.msra.mxu1 %v2914_v24 }
  0xe4   :  { %2142 = vmatpush1.bf16.msra.mxu0 %v2917_v25  ;;  %1931 = vmatprep.subr.bf16.mxu1 %v2922_v26 }
  0xe5   :  { %2143 = vmatprep.subr.bf16.mxu0 %v2925_v27 }
  0xe7   :  { %1932 = vmatpush1.bf16.msra.mxu1 %v2920_v28 }
  0xe8   :  { %2144 = vmatpush1.bf16.msra.mxu0 %v2923_v29  ;;  %1933 = vmatprep.subr.bf16.mxu1 %v2928_v30 }
  0xe9   :  { %2145 = vmatprep.subr.bf16.mxu0 %v2931_v31 }
  0xeb   :  { %1934 = vmatpush1.bf16.msra.mxu1 %v2926_v32 }
  0xec   :  { %2146 = vmatpush1.bf16.msra.mxu0 %v2929_v33  ;;  %1935 = vmatprep.subr.bf16.mxu1 %v2934_v34 }
  0xed   :  { %2147 = vmatprep.subr.bf16.mxu0 %v2937_v35 }
  0xef   :  { %1936 = vmatpush1.bf16.msra.mxu1 %v2932_v36 }
  0xf0   :  { %2148 = vmatpush1.bf16.msra.mxu0 %v2935_v37  ;;  %1937 = vmatprep.subr.bf16.mxu1 %v2940_v38 }
  0xf1   :  { %2149 = vmatprep.subr.bf16.mxu0 %v2943_v39 }
  0xf3   :  { %1938 = vmatpush1.bf16.msra.mxu1 %v2938_v40 }
  0xf4   :  { %2150 = vmatpush1.bf16.msra.mxu0 %v2941_v41  ;;  %1939 = vmatprep.subr.bf16.mxu1 %v2946_v43 }
  0xf5   :  { %2151 = vmatprep.subr.bf16.mxu0 %v2949_v44 }
  0xf7   :  { %1940 = vmatpush1.bf16.msra.mxu1 %v2944_v48 }
  0xf8   :  { %2152 = vmatpush1.bf16.msra.mxu0 %v2947_v49  ;;  %1941 = vmatprep.subr.bf16.mxu1 %v2952_v42 }
  0xf9   :  { %2153 = vmatprep.subr.bf16.mxu0 %v2955_v45 }
  0xfb   :  { %1942 = vmatpush1.bf16.msra.mxu1 %v2950_v46 }
  0xfc   :  { %2154 = vmatpush1.bf16.msra.mxu0 %v2953_v47  ;;  %1943 = vmatprep.subr.bf16.mxu1 %v2958_v50 }
  0xfd   :  { %2155 = vmatprep.subr.bf16.mxu0 %v2961_v51 }
  0xff   :  { %1944 = vmatpush1.bf16.msra.mxu1 %v2956_v52 }
 0x100   :  { %2156 = vmatpush1.bf16.msra.mxu0 %v2959_v53 }
 0x102   :  { %1946 = vmatmul.mubr.bf16.vlgmr.msra.gmra.mrb[0].mxu1 %v2224_v62 }
 0x103   :  { %2158 = vmatmul.mubr.bf16.vlgmr.msra.gmra.mrb[0].mxu0 %v2232_v63  ;;  %1955 = vmatprep.mubr.bf16.mxu1 %v2241_v0 }
 0x104   :  { %2167 = vmatprep.mubr.bf16.mxu0 %v2249_v1 }
 0x10a   :  { %1956 = vmatmul.mubr.bf16.gmra.mrb[4].mxu1 %v2240_v2 }
 0x10b   :  { %2168 = vmatmul.mubr.bf16.gmra.mrb[4].mxu0 %v2248_v3 }
 0x1d5   :  { %v1947_v7 = vpop.f32.mrb[0].mxu1 }
 0x1d6   :  { %v2159_v8 = vpop.f32.mrb[0].mxu0  ;;  %v2514_v9 = vadd.f32 %v1947_v7, %v307_v60  ;;  %v1949_v10 = vpop.f32.mrb[1].mxu1 }
 0x1d7   :  { %v2161_v11 = vpop.f32.mrb[1].mxu0  ;;  %v2516_v12 = vadd.f32 %v1949_v10, %v311_v61  ;;  %v1951_v13 = vpop.f32.mrb[2].mxu1 }
 0x1d8   :  { %v2163_v14 = vpop.f32.mrb[2].mxu0  ;;  %v2515_v15 = vadd.f32 %v2514_v9, %v2159_v8  ;;  %v2518_v16 = vadd.f32 %v1951_v13, %v307_v60  ;;  %v1953_v17 = vpop.f32.mrb[3].mxu1 }
 0x1d9   :  { %v2165_v18 = vpop.f32.mrb[3].mxu0  ;;  %v2517_v19 = vadd.f32 %v2516_v12, %v2161_v11  ;;  %v2520_v20 = vadd.f32 %v1953_v17, %v311_v61 }
 0x1da   :  { %v2178_v21 = vmax.f32 %v2515_v15, 0.0  ;;  %v2519_v22 = vadd.f32 %v2518_v16, %v2163_v14 }
 0x1db   :  { %v2179_v23 = vmax.f32 %v2517_v19, 0.0  ;;  %v2521_v24 = vadd.f32 %v2520_v20, %v2165_v18 }
 0x1dc   :  { %v2180_v25 = vmax.f32 %v2519_v22, 0.0 }
 0x1dd   :  { %v2510_v26 = vpack.c.bf16 %v2179_v23, %v2178_v21  ;;  %v2181_v27 = vmax.f32 %v2521_v24, 0.0  ;;  %v1957_v28 = vpop.f32.mrb[4].mxu1 }
 0x1de   :  { %v2169_v29 = vpop.f32.mrb[4].mxu0  ;;  %v2522_v30 = vadd.f32 %v1957_v28, %v307_v60  ;;  %v1959_v31 = vpop.f32.mrb[5].mxu1 }
 0x1df   :  { %v2171_v32 = vpop.f32.mrb[5].mxu0  ;;  %2210 = vst [vmem:[%s3912_s3] sm:$0xff] %v2510_v26  ;;  %v2511_v33 = vpack.c.bf16 %v2181_v27, %v2180_v25  ;;  %v2524_v34 = vadd.f32 %v1959_v31, %v311_v61  ;;  %v1961_v35 = vpop.f32.mrb[6].mxu1 }
 0x1e0   :  { %v2173_v36 = vpop.f32.mrb[6].mxu0  ;;  %v2523_v37 = vadd.f32 %v2522_v30, %v2169_v29  ;;  %v2526_v38 = vadd.f32 %v1961_v35, %v307_v60  ;;  %v1963_v39 = vpop.f32.mrb[7].mxu1 }
 0x1e1   :  { %v2175_v40 = vpop.f32.mrb[7].mxu0  ;;  %2211 = vst [vmem:[%s3912_s3 + $0x8] sm:$0xff] %v2511_v33  ;;  %v2525_v41 = vadd.f32 %v2524_v34, %v2171_v32  ;;  %v2528_v43 = vadd.f32 %v1963_v39, %v311_v61 }
 0x1e2   :  { %v2182_v44 = vmax.f32 %v2523_v37, 0.0  ;;  %v2527_v48 = vadd.f32 %v2526_v38, %v2173_v36 }
 0x1e3   :  { %v2183_v49 = vmax.f32 %v2525_v41, 0.0  ;;  %v2529_v42 = vadd.f32 %v2528_v43, %v2175_v40 }
 0x1e4   :  { %v2184_v45 = vmax.f32 %v2527_v48, 0.0 }
 0x1e5   :  { %v2512_v46 = vpack.c.bf16 %v2183_v49, %v2182_v44  ;;  %v2185_v47 = vmax.f32 %v2529_v42, 0.0 }
 0x1e7   :  { %2212 = vst [vmem:[%s3912_s3 + $0x10] sm:$0xff] %v2512_v46  ;;  %v2513_v50 = vpack.c.bf16 %v2185_v47, %v2184_v45 }
 0x1e9   :  { %2213 = vst [vmem:[%s3912_s3 + $0x18] sm:$0xff] %v2513_v50 }

// kernel: autoencoder_forward.13
= control target key start
LH: loop header
LB: loop body
LE: loop exit
PB: predicated region body
PF: predicated region fallthrough
CT: control target
= control target key end

     0   :  { %v2680_v35 = vmov 0   ;;  %s3359_s1 = inlined_call_operand.vmem [shape: bf16[2304,128], index: 1, kind: input, shape index: {}]   ;;  %s3360_s0 = inlined_call_operand.vmem [shape: bf16[32,2304], index: 0, kind: input, shape index: {}]   ;;  %s3361_s2 = inlined_call_operand.vmem [shape: bf16[128,256], index: 2, kind: input, shape index: {}]   ;;  %s3362_s3 = inlined_call_operand.vmem [shape: bf16[32,256], index: 3, kind: output, shape index: {}]  }
   0x1   :  { %v2512_v0 = vld [vmem:[%s3359_s1 + $0x40] sm:$0xff]   ;;  %v2516_v4 = vld [vmem:[%s3359_s1 + $0x48] sm:$0xff]   ;;  %v2520_v8 = vld [vmem:[%s3359_s1 + $0x50] sm:$0xff]  }
   0x2   :  { %v2513_v1 = vld [vmem:[%s3359_s1 + $0xc0] sm:$0xff]   ;;  %2259 = vmatprep.subr.bf16.mxu0 %v2512_v0  ;;  %v2517_v5 = vld [vmem:[%s3359_s1 + $0xc8] sm:$0xff]   ;;  %v2521_v9 = vld [vmem:[%s3359_s1 + $0xd0] sm:$0xff]  }
   0x3   :  { %v2514_v2 = vld [vmem:[%s3359_s1] sm:$0xff]   ;;  %2287 = vmatprep.subr.bf16.mxu1 %v2513_v1  ;;  %v2518_v6 = vld [vmem:[%s3359_s1 + $0x8] sm:$0xff]   ;;  %v2522_v10 = vld [vmem:[%s3359_s1 + $0x10] sm:$0xff]  }
   0x4   :  { %v2515_v3 = vld [vmem:[%s3359_s1 + $0x80] sm:$0xff]   ;;  %2260 = vmatpush3.bf16.msra.mxu0 %v2514_v2  ;;  %v2519_v7 = vld [vmem:[%s3359_s1 + $0x88] sm:$0xff]   ;;  %v2523_v11 = vld [vmem:[%s3359_s1 + $0x90] sm:$0xff]  }
   0x5   :  { %2288 = vmatpush3.bf16.msra.mxu1 %v2515_v3  ;;  %2261 = vmatprep.subr.bf16.mxu0 %v2516_v4  ;;  %v2524_v12 = vld [vmem:[%s3359_s1 + $0x58] sm:$0xff]   ;;  %v2528_v16 = vld [vmem:[%s3359_s1 + $0x60] sm:$0xff]   ;;  %v2532_v20 = vld [vmem:[%s3359_s1 + $0x68] sm:$0xff]  }
   0x6   :  { %2289 = vmatprep.subr.bf16.mxu1 %v2517_v5  ;;  %v2525_v13 = vld [vmem:[%s3359_s1 + $0xd8] sm:$0xff]   ;;  %v2529_v17 = vld [vmem:[%s3359_s1 + $0xe0] sm:$0xff]   ;;  %v2533_v21 = vld [vmem:[%s3359_s1 + $0xe8] sm:$0xff]  }
   0x7   :  { %v2526_v14 = vld [vmem:[%s3359_s1 + $0x18] sm:$0xff]   ;;  %v2530_v18 = vld [vmem:[%s3359_s1 + $0x20] sm:$0xff]   ;;  %v2534_v22 = vld [vmem:[%s3359_s1 + $0x28] sm:$0xff]  }
   0x8   :  { %2262 = vmatpush3.bf16.msra.mxu0 %v2518_v6  ;;  %v2527_v15 = vld [vmem:[%s3359_s1 + $0x98] sm:$0xff]   ;;  %v2531_v19 = vld [vmem:[%s3359_s1 + $0xa0] sm:$0xff]   ;;  %v2535_v23 = vld [vmem:[%s3359_s1 + $0xa8] sm:$0xff]  }
   0x9   :  { %2290 = vmatpush3.bf16.msra.mxu1 %v2519_v7  ;;  %2263 = vmatprep.subr.bf16.mxu0 %v2520_v8  ;;  %v2536_v24 = vld [vmem:[%s3359_s1 + $0x70] sm:$0xff]   ;;  %v2540_v28 = vld [vmem:[%s3359_s1 + $0x78] sm:$0xff]   ;;  %v15_v32 = vld [vmem:[%s3360_s0] sm:$0xff] }
   0xa   :  { %2291 = vmatprep.subr.bf16.mxu1 %v2521_v9  ;;  %v2537_v25 = vld [vmem:[%s3359_s1 + $0xf0] sm:$0xff]   ;;  %v2541_v29 = vld [vmem:[%s3359_s1 + $0xf8] sm:$0xff]   ;;  %v24_v33 = vld [vmem:[%s3360_s0 + $0x48] sm:$0xff]  ;;  %v59_v36 = vmax.bf16 %v2680_v35, %v15_v32 }
   0xb   :  { %v2538_v26 = vld [vmem:[%s3359_s1 + $0x30] sm:$0xff]   ;;  %v2542_v30 = vld [vmem:[%s3359_s1 + $0x38] sm:$0xff]   ;;  %v16_v34 = vld [vmem:[%s3360_s0 + $0x8] sm:$0xff]  ;;  %v68_v37 = vmax.bf16 %v2680_v35, %v24_v33 }
   0xc   :  { %2264 = vmatpush3.bf16.msra.mxu0 %v2522_v10  ;;  %v2539_v27 = vld [vmem:[%s3359_s1 + $0xb0] sm:$0xff]   ;;  %v2543_v31 = vld [vmem:[%s3359_s1 + $0xb8] sm:$0xff]   ;;  %v60_v39 = vmax.bf16 %v2680_v35, %v16_v34  ;;  %v2544_v41 = vld [vmem:[%s3359_s1 + $0x140] sm:$0xff]  }
   0xd   :  { %2292 = vmatpush3.bf16.msra.mxu1 %v2523_v11  ;;  %2265 = vmatprep.subr.bf16.mxu0 %v2524_v12  ;;  %v25_v38 = vld [vmem:[%s3360_s0 + $0x50] sm:$0xff]  ;;  %v2056_v42 = vcombine.high %v59_v36, %v68_v37  ;;  %v2055_v43 = vcombine.low %v59_v36, %v68_v37  ;;  %v2545_v44 = vld [vmem:[%s3359_s1 + $0x100] sm:$0xff]   ;;  %v2548_v49 = vld [vmem:[%s3359_s1 + $0x148] sm:$0xff]  }
   0xe   :  { %2293 = vmatprep.subr.bf16.mxu1 %v2525_v13  ;;  %v69_v40 = vmax.bf16 %v2680_v35, %v25_v38  ;;  %v2546_v47 = vld [vmem:[%s3359_s1 + $0x1c0] sm:$0xff]   ;;  %v2549_v50 = vld [vmem:[%s3359_s1 + $0x108] sm:$0xff]   ;;  %v2552_v53 = vld [vmem:[%s3359_s1 + $0x150] sm:$0xff]  }
   0xf   :  { %1459 = vmatprep.mubr.bf16.mxu0 %v2056_v42  ;;  %v2547_v48 = vld [vmem:[%s3359_s1 + $0x180] sm:$0xff]   ;;  %v2550_v51 = vld [vmem:[%s3359_s1 + $0x1c8] sm:$0xff]   ;;  %v2553_v54 = vld [vmem:[%s3359_s1 + $0x110] sm:$0xff]  }
  0x10   :  { %2266 = vmatpush3.bf16.msra.mxu0 %v2526_v14  ;;  %v2058_v45 = vcombine.high %v60_v39, %v69_v40  ;;  %v2057_v46 = vcombine.low %v60_v39, %v69_v40  ;;  %v2551_v52 = vld [vmem:[%s3359_s1 + $0x188] sm:$0xff]   ;;  %v2554_v55 = vld [vmem:[%s3359_s1 + $0x1d0] sm:$0xff]   ;;  %v2556_v57 = vld [vmem:[%s3359_s1 + $0x158] sm:$0xff]  }
  0x11   :  { %2294 = vmatpush3.bf16.msra.mxu1 %v2527_v15  ;;  %2267 = vmatprep.subr.bf16.mxu0 %v2528_v16  ;;  %v2555_v56 = vld [vmem:[%s3359_s1 + $0x190] sm:$0xff]   ;;  %v2557_v58 = vld [vmem:[%s3359_s1 + $0x118] sm:$0xff]   ;;  %v2560_v61 = vld [vmem:[%s3359_s1 + $0x160] sm:$0xff]  }
  0x12   :  { %2295 = vmatprep.subr.bf16.mxu1 %v2529_v17  ;;  %1508 = vmatprep.mubr.bf16.mxu1 %v2058_v45  ;;  %v2558_v59 = vld [vmem:[%s3359_s1 + $0x1d8] sm:$0xff]   ;;  %v2561_v62 = vld [vmem:[%s3359_s1 + $0x120] sm:$0xff]   ;;  %v2564_v1 = vld [vmem:[%s3359_s1 + $0x168] sm:$0xff]  }
  0x13   :  { %v2559_v60 = vld [vmem:[%s3359_s1 + $0x198] sm:$0xff]   ;;  %v2562_v63 = vld [vmem:[%s3359_s1 + $0x1e0] sm:$0xff]   ;;  %v33_v2 = vld [vmem:[%s3360_s0 + $0x90] sm:$0xff] }
  0x14   :  { %2268 = vmatpush3.bf16.msra.mxu0 %v2530_v18  ;;  %v2563_v0 = vld [vmem:[%s3359_s1 + $0x1a0] sm:$0xff]   ;;  %v42_v3 = vld [vmem:[%s3360_s0 + $0xd8] sm:$0xff]  ;;  %v77_v4 = vmax.bf16 %v2680_v35, %v33_v2  ;;  %v2565_v10 = vld [vmem:[%s3359_s1 + $0x128] sm:$0xff]  }
  0x15   :  { %2296 = vmatpush3.bf16.msra.mxu1 %v2531_v19  ;;  %2269 = vmatprep.subr.bf16.mxu0 %v2532_v20  ;;  %v86_v5 = vmax.bf16 %v2680_v35, %v42_v3  ;;  %v34_v6 = vld [vmem:[%s3360_s0 + $0x98] sm:$0xff]  ;;  %v43_v7 = vld [vmem:[%s3360_s0 + $0xe0] sm:$0xff]  ;;  %v2566_v13 = vld [vmem:[%s3359_s1 + $0x1e8] sm:$0xff]  }
  0x16   :  { %2297 = vmatprep.subr.bf16.mxu1 %v2533_v21  ;;  %v78_v8 = vmax.bf16 %v2680_v35, %v34_v6  ;;  %v87_v9 = vmax.bf16 %v2680_v35, %v43_v7  ;;  %v2567_v16 = vld [vmem:[%s3359_s1 + $0x1a8] sm:$0xff]   ;;  %v2568_v17 = vld [vmem:[%s3359_s1 + $0x170] sm:$0xff]   ;;  %v2572_v21 = vld [vmem:[%s3359_s1 + $0x178] sm:$0xff]  }
  0x17   :  { %v2074_v11 = vcombine.high %v77_v4, %v86_v5  ;;  %v2073_v12 = vcombine.low %v77_v4, %v86_v5  ;;  %v2569_v18 = vld [vmem:[%s3359_s1 + $0x130] sm:$0xff]   ;;  %v2577_v37 = vld [vmem:[%s3359_s1 + $0x200] sm:$0xff]   ;;  %v2580_v42 = vld [vmem:[%s3359_s1 + $0x248] sm:$0xff]  }
  0x18   :  { %2270 = vmatpush3.bf16.msra.mxu0 %v2534_v22  ;;  %v2076_v14 = vcombine.high %v78_v8, %v87_v9  ;;  %v2075_v15 = vcombine.low %v78_v8, %v87_v9  ;;  %v2570_v19 = vld [vmem:[%s3359_s1 + $0x1f0] sm:$0xff]   ;;  %v2573_v22 = vld [vmem:[%s3359_s1 + $0x138] sm:$0xff]   ;;  %v2578_v38 = vld [vmem:[%s3359_s1 + $0x2c0] sm:$0xff]  }
  0x19   :  { %2298 = vmatpush3.bf16.msra.mxu1 %v2535_v23  ;;  %2271 = vmatprep.subr.bf16.mxu0 %v2536_v24  ;;  %v2571_v20 = vld [vmem:[%s3359_s1 + $0x1b0] sm:$0xff]   ;;  %v2574_v23 = vld [vmem:[%s3359_s1 + $0x1f8] sm:$0xff]   ;;  %v35_v45 = vld [vmem:[%s3360_s0 + $0xa0] sm:$0xff] }
  0x1a   :  { %2299 = vmatprep.subr.bf16.mxu1 %v2537_v25  ;;  %v17_v24 = vld [vmem:[%s3360_s0 + $0x10] sm:$0xff]  ;;  %v26_v25 = vld [vmem:[%s3360_s0 + $0x58] sm:$0xff]  ;;  %v2592_v2 = vld [vmem:[%s3359_s1 + $0x260] sm:$0xff]  }
  0x1b   :  { %v2593_v3 = vld [vmem:[%s3359_s1 + $0x220] sm:$0xff]   ;;  %v2596_v6 = vld [vmem:[%s3359_s1 + $0x268] sm:$0xff]  }
  0x1c   :  { %2272 = vmatpush3.bf16.msra.mxu0 %v2538_v26  ;;  %v61_v26 = vmax.bf16 %v2680_v35, %v17_v24  ;;  %v2594_v4 = vld [vmem:[%s3359_s1 + $0x2e0] sm:$0xff]   ;;  %v2597_v7 = vld [vmem:[%s3359_s1 + $0x228] sm:$0xff]  }
  0x1d   :  { %2300 = vmatpush3.bf16.msra.mxu1 %v2539_v27  ;;  %2273 = vmatprep.subr.bf16.mxu0 %v2540_v28  ;;  %v70_v27 = vmax.bf16 %v2680_v35, %v26_v25  ;;  %v2575_v28 = vld [vmem:[%s3359_s1 + $0x1b8] sm:$0xff]   ;;  %v2595_v5 = vld [vmem:[%s3359_s1 + $0x2a0] sm:$0xff]   ;;  %v2598_v8 = vld [vmem:[%s3359_s1 + $0x2e8] sm:$0xff]  }
  0x1e   :  { %2301 = vmatprep.subr.bf16.mxu1 %v2541_v29  ;;  %v2576_v29 = vld [vmem:[%s3359_s1 + $0x240] sm:$0xff]   ;;  %v2599_v9 = vld [vmem:[%s3359_s1 + $0x2a8] sm:$0xff]  }
  0x1f   :  { %v2059_v32 = vcombine.low %v61_v26, %v70_v27  ;;  %v2060_v33 = vcombine.high %v61_v26, %v70_v27  ;;  %v20_v25 = vld [vmem:[%s3360_s0 + $0x28] sm:$0xff]  ;;  %v29_v26 = vld [vmem:[%s3360_s0 + $0x70] sm:$0xff] }
  0x20   :  { %2274 = vmatpush3.bf16.msra.mxu0 %v2542_v30  ;;  %v18_v30 = vld [vmem:[%s3360_s0 + $0x18] sm:$0xff]  ;;  %v64_v27 = vmax.bf16 %v2680_v35, %v20_v25  ;;  %v2642_v25 = vld [vmem:[%s3359_s1 + $0x448] sm:$0xff]  }
  0x21   :  { %2302 = vmatpush3.bf16.msra.mxu1 %v2543_v31  ;;  %2315 = vmatprep.subr.bf16.mxu0 %v2544_v41  ;;  %v27_v31 = vld [vmem:[%s3360_s0 + $0x60] sm:$0xff]  ;;  %v62_v34 = vmax.bf16 %v2680_v35, %v18_v30 }
  0x22   :  { %2343 = vmatprep.subr.bf16.mxu1 %v2546_v47  ;;  %v71_v36 = vmax.bf16 %v2680_v35, %v27_v31  ;;  %v2579_v41 = vld [vmem:[%s3359_s1 + $0x280] sm:$0xff]   ;;  %v79_v47 = vmax.bf16 %v2680_v35, %v35_v45 }
  0x23   :  { %1460 = vmatmul.mubr.bf16.vlgmr.msra.gmra.mrb[0].mxu0 %v2055_v43  ;;  %v2581_v43 = vld [vmem:[%s3359_s1 + $0x208] sm:$0xff]   ;;  %v2610_v30 = vld [vmem:[%s3359_s1 + $0x3c0] sm:$0xff]  }
  0x24   :  { %1509 = vmatmul.mubr.bf16.vlgmr.msra.gmra.mrb[0].mxu1 %v2057_v46  ;;  %2316 = vmatpush3.bf16.msra.mxu0 %v2545_v44  ;;  %v2061_v39 = vcombine.low %v62_v34, %v71_v36  ;;  %v2062_v40 = vcombine.high %v62_v34, %v71_v36  ;;  %v2582_v44 = vld [vmem:[%s3359_s1 + $0x2c8] sm:$0xff]   ;;  %v47_v45 = vld [vmem:[%s3360_s0 + $0x100] sm:$0xff] }
  0x25   :  { %2317 = vmatprep.subr.bf16.mxu0 %v2548_v49  ;;  %2344 = vmatpush3.bf16.msra.mxu1 %v2547_v48  ;;  %v44_v46 = vld [vmem:[%s3360_s0 + $0xe8] sm:$0xff] }
  0x26   :  { %2345 = vmatprep.subr.bf16.mxu1 %v2550_v51  ;;  %1467 = vmatprep.mubr.bf16.mxu0 %v2074_v11  ;;  %v88_v48 = vmax.bf16 %v2680_v35, %v44_v46  ;;  %v2583_v49 = vld [vmem:[%s3359_s1 + $0x288] sm:$0xff]   ;;  %v2601_v11 = vld [vmem:[%s3359_s1 + $0x230] sm:$0xff]  }
  0x27   :  { %1516 = vmatprep.mubr.bf16.mxu1 %v2076_v14  ;;  %v36_v51 = vld [vmem:[%s3360_s0 + $0xa8] sm:$0xff]  ;;  %v2604_v14 = vld [vmem:[%s3359_s1 + $0x278] sm:$0xff]  }
  0x28   :  { %2318 = vmatpush3.bf16.msra.mxu0 %v2549_v50  ;;  %v2584_v50 = vld [vmem:[%s3359_s1 + $0x250] sm:$0xff]   ;;  %v2612_v34 = vld [vmem:[%s3359_s1 + $0x348] sm:$0xff]  }
  0x29   :  { %2319 = vmatprep.subr.bf16.mxu0 %v2552_v53  ;;  %2346 = vmatpush3.bf16.msra.mxu1 %v2551_v52  ;;  %v2078_v52 = vcombine.high %v79_v47, %v88_v48  ;;  %v2077_v53 = vcombine.low %v79_v47, %v88_v48  ;;  %v2613_v36 = vld [vmem:[%s3359_s1 + $0x308] sm:$0xff]  }
  0x2a   :  { %2347 = vmatprep.subr.bf16.mxu1 %v2554_v55  ;;  %v80_v55 = vmax.bf16 %v2680_v35, %v36_v51  ;;  %v2618_v51 = vld [vmem:[%s3359_s1 + $0x3d0] sm:$0xff]  }
  0x2b   :  { %1468 = vmatmul.mubr.bf16.gmra.mrb[4].mxu0 %v2073_v12  ;;  %v2602_v12 = vld [vmem:[%s3359_s1 + $0x2f0] sm:$0xff]  }
  0x2c   :  { %2320 = vmatpush3.bf16.msra.mxu0 %v2553_v54  ;;  %1517 = vmatmul.mubr.bf16.gmra.mrb[4].mxu1 %v2075_v15  ;;  %v45_v54 = vld [vmem:[%s3360_s0 + $0xf0] sm:$0xff]  ;;  %v2605_v15 = vld [vmem:[%s3359_s1 + $0x238] sm:$0xff]  }
  0x2d   :  { %2321 = vmatprep.subr.bf16.mxu0 %v2556_v57  ;;  %2348 = vmatpush3.bf16.msra.mxu1 %v2555_v56  ;;  %v89_v56 = vmax.bf16 %v2680_v35, %v45_v54  ;;  %v2585_v57 = vld [vmem:[%s3359_s1 + $0x210] sm:$0xff]  }
  0x2e   :  { %2349 = vmatprep.subr.bf16.mxu1 %v2558_v59  ;;  %1557 = vmatprep.mubr.bf16.mxu0 %v2060_v33  ;;  %v2611_v33 = vld [vmem:[%s3359_s1 + $0x380] sm:$0xff]   ;;  %v2619_v54 = vld [vmem:[%s3359_s1 + $0x390] sm:$0xff]  }
  0x2f   :  { %1606 = vmatprep.mubr.bf16.mxu1 %v2062_v40  ;;  %v2080_v59 = vcombine.high %v80_v55, %v89_v56 }
  0x30   :  { %2322 = vmatpush3.bf16.msra.mxu0 %v2557_v58  ;;  %v2586_v58 = vld [vmem:[%s3359_s1 + $0x2d0] sm:$0xff]  }
  0x31   :  { %2323 = vmatprep.subr.bf16.mxu0 %v2560_v61  ;;  %2350 = vmatpush3.bf16.msra.mxu1 %v2559_v60  ;;  %v2079_v60 = vcombine.low %v80_v55, %v89_v56  ;;  %v2587_v61 = vld [vmem:[%s3359_s1 + $0x290] sm:$0xff]   ;;  %v2620_v55 = vld [vmem:[%s3359_s1 + $0x358] sm:$0xff]  }
  0x32   :  { %2351 = vmatprep.subr.bf16.mxu1 %v2562_v63  ;;  %v2589_v63 = vld [vmem:[%s3359_s1 + $0x218] sm:$0xff]  }
  0x33   :  { %v2621_v56 = vld [vmem:[%s3359_s1 + $0x318] sm:$0xff]  }
  0x34   :  { %2324 = vmatpush3.bf16.msra.mxu0 %v2561_v62  ;;  %v2588_v62 = vld [vmem:[%s3359_s1 + $0x258] sm:$0xff]  }
  0x35   :  { %2325 = vmatprep.subr.bf16.mxu0 %v2564_v1  ;;  %2352 = vmatpush3.bf16.msra.mxu1 %v2563_v0  ;;  %v2590_v0 = vld [vmem:[%s3359_s1 + $0x2d8] sm:$0xff]  }
  0x36   :  { %2353 = vmatprep.subr.bf16.mxu1 %v2566_v13  ;;  %v2591_v1 = vld [vmem:[%s3359_s1 + $0x298] sm:$0xff]   ;;  %v2603_v13 = vld [vmem:[%s3359_s1 + $0x2b0] sm:$0xff]  }
  0x38   :  { %2326 = vmatpush3.bf16.msra.mxu0 %v2565_v10  ;;  %v2600_v10 = vld [vmem:[%s3359_s1 + $0x270] sm:$0xff]  }
  0x39   :  { %2354 = vmatpush3.bf16.msra.mxu1 %v2567_v16  ;;  %2327 = vmatprep.subr.bf16.mxu0 %v2568_v17  ;;  %v2606_v16 = vld [vmem:[%s3359_s1 + $0x2f8] sm:$0xff]   ;;  %v3053_v17 = vld [vmem:[%s3360_s0 + $0x20] sm:$0xff] }
  0x3a   :  { %2355 = vmatprep.subr.bf16.mxu1 %v2570_v19  ;;  %v63_v19 = vmax.bf16 %v2680_v35, %v3053_v17 }
  0x3c   :  { %2328 = vmatpush3.bf16.msra.mxu0 %v2569_v18  ;;  %v3058_v18 = vld [vmem:[%s3360_s0 + $0x68] sm:$0xff] }
  0x3d   :  { %2329 = vmatprep.subr.bf16.mxu0 %v2572_v21  ;;  %2356 = vmatpush3.bf16.msra.mxu1 %v2571_v20  ;;  %v72_v20 = vmax.bf16 %v2680_v35, %v3058_v18  ;;  %v2607_v21 = vld [vmem:[%s3359_s1 + $0x2b8] sm:$0xff]  }
  0x3e   :  { %2357 = vmatprep.subr.bf16.mxu1 %v2574_v23 }
  0x3f   :  { %v2063_v23 = vcombine.low %v63_v19, %v72_v20  ;;  %v2064_v24 = vcombine.high %v63_v19, %v72_v20 }
  0x40   :  { %2330 = vmatpush3.bf16.msra.mxu0 %v2573_v22  ;;  %v2608_v22 = vld [vmem:[%s3359_s1 + $0x340] sm:$0xff]  }
  0x41   :  { %2358 = vmatpush3.bf16.msra.mxu1 %v2575_v28  ;;  %2371 = vmatprep.subr.bf16.mxu0 %v2576_v29  ;;  %v73_v28 = vmax.bf16 %v2680_v35, %v29_v26  ;;  %v2609_v29 = vld [vmem:[%s3359_s1 + $0x300] sm:$0xff]  }
  0x42   :  { %2399 = vmatprep.subr.bf16.mxu1 %v2578_v38  ;;  %v3099_v38 = vld [vmem:[%s3360_s0 + $0xb0] sm:$0xff] }
  0x43   :  { %1558 = vmatmul.mubr.bf16.vlgmr.msra.gmra.mrb[8].mxu0 %v2059_v32  ;;  %v2065_v31 = vcombine.low %v64_v27, %v73_v28  ;;  %v2066_v32 = vcombine.high %v64_v27, %v73_v28  ;;  %v81_v40 = vmax.bf16 %v2680_v35, %v3099_v38  ;;  %v2643_v28 = vld [vmem:[%s3359_s1 + $0x408] sm:$0xff]  }
  0x44   :  { %2372 = vmatpush3.bf16.msra.mxu0 %v2577_v37  ;;  %1607 = vmatmul.mubr.bf16.vlgmr.msra.gmra.mrb[8].mxu1 %v2061_v39  ;;  %v2614_v37 = vld [vmem:[%s3359_s1 + $0x3c8] sm:$0xff]   ;;  %v3104_v39 = vld [vmem:[%s3360_s0 + $0xf8] sm:$0xff] }
  0x45   :  { %2373 = vmatprep.subr.bf16.mxu0 %v2580_v42  ;;  %2400 = vmatpush3.bf16.msra.mxu1 %v2579_v41  ;;  %v90_v41 = vmax.bf16 %v2680_v35, %v3104_v39  ;;  %v2615_v42 = vld [vmem:[%s3359_s1 + $0x388] sm:$0xff]  }
  0x46   :  { %2401 = vmatprep.subr.bf16.mxu1 %v2582_v44  ;;  %1565 = vmatprep.mubr.bf16.mxu0 %v2078_v52  ;;  %v38_v44 = vld [vmem:[%s3360_s0 + $0xb8] sm:$0xff] }
  0x47   :  { %1614 = vmatprep.mubr.bf16.mxu1 %v2080_v59  ;;  %v2082_v46 = vcombine.high %v81_v40, %v90_v41  ;;  %v2081_v47 = vcombine.low %v81_v40, %v90_v41  ;;  %v82_v48 = vmax.bf16 %v2680_v35, %v38_v44  ;;  %v2624_v59 = vld [vmem:[%s3359_s1 + $0x360] sm:$0xff]   ;;  %v2645_v44 = vld [vmem:[%s3359_s1 + $0x410] sm:$0xff]  }
  0x48   :  { %2374 = vmatpush3.bf16.msra.mxu0 %v2581_v43  ;;  %v2616_v43 = vld [vmem:[%s3359_s1 + $0x350] sm:$0xff]  }
  0x49   :  { %2402 = vmatpush3.bf16.msra.mxu1 %v2583_v49  ;;  %2375 = vmatprep.subr.bf16.mxu0 %v2584_v50  ;;  %v91_v49 = vmax.bf16 %v2680_v35, %v47_v45  ;;  %v2617_v50 = vld [vmem:[%s3359_s1 + $0x310] sm:$0xff]   ;;  %v2646_v45 = vld [vmem:[%s3359_s1 + $0x458] sm:$0xff]  }
  0x4a   :  { %2403 = vmatprep.subr.bf16.mxu1 %v2586_v58  ;;  %v2623_v58 = vld [vmem:[%s3359_s1 + $0x398] sm:$0xff]  }
  0x4b   :  { %1566 = vmatmul.mubr.bf16.gmra.mrb[12].mxu0 %v2077_v53  ;;  %v2084_v52 = vcombine.high %v82_v48, %v91_v49  ;;  %v2083_v53 = vcombine.low %v82_v48, %v91_v49  ;;  %v2648_v48 = vld [vmem:[%s3359_s1 + $0x460] sm:$0xff]  }
  0x4c   :  { %2376 = vmatpush3.bf16.msra.mxu0 %v2585_v57  ;;  %1615 = vmatmul.mubr.bf16.gmra.mrb[12].mxu1 %v2079_v60  ;;  %v2622_v57 = vld [vmem:[%s3359_s1 + $0x3d8] sm:$0xff]   ;;  %v2625_v60 = vld [vmem:[%s3359_s1 + $0x320] sm:$0xff]  }
  0x4d   :  { %2404 = vmatpush3.bf16.msra.mxu1 %v2587_v61  ;;  %2377 = vmatprep.subr.bf16.mxu0 %v2588_v62  ;;  %v2626_v61 = vld [vmem:[%s3359_s1 + $0x3e0] sm:$0xff]  }
  0x4e   :  { %2405 = vmatprep.subr.bf16.mxu1 %v2590_v0  ;;  %1655 = vmatprep.mubr.bf16.mxu0 %v2064_v24  ;;  %v2627_v62 = vld [vmem:[%s3359_s1 + $0x3a0] sm:$0xff]   ;;  %v2629_v0 = vld [vmem:[%s3359_s1 + $0x328] sm:$0xff]  }
  0x4f   :  { %1704 = vmatprep.mubr.bf16.mxu1 %v2066_v32  ;;  %v2641_v24 = vld [vmem:[%s3359_s1 + $0x400] sm:$0xff]  }
  0x50   :  { %2378 = vmatpush3.bf16.msra.mxu0 %v2589_v63  ;;  %v2628_v63 = vld [vmem:[%s3359_s1 + $0x368] sm:$0xff]   ;;  %v2649_v49 = vld [vmem:[%s3359_s1 + $0x420] sm:$0xff]  }
  0x51   :  { %2406 = vmatpush3.bf16.msra.mxu1 %v2591_v1  ;;  %2379 = vmatprep.subr.bf16.mxu0 %v2592_v2  ;;  %v2630_v1 = vld [vmem:[%s3359_s1 + $0x3e8] sm:$0xff]  }
  0x52   :  { %2407 = vmatprep.subr.bf16.mxu1 %v2594_v4  ;;  %v2631_v2 = vld [vmem:[%s3359_s1 + $0x3a8] sm:$0xff]   ;;  %v2633_v4 = vld [vmem:[%s3359_s1 + $0x330] sm:$0xff]  }
  0x54   :  { %2380 = vmatpush3.bf16.msra.mxu0 %v2593_v3  ;;  %v2632_v3 = vld [vmem:[%s3359_s1 + $0x370] sm:$0xff]  }
  0x55   :  { %2408 = vmatpush3.bf16.msra.mxu1 %v2595_v5  ;;  %2381 = vmatprep.subr.bf16.mxu0 %v2596_v6  ;;  %v2634_v5 = vld [vmem:[%s3359_s1 + $0x3f0] sm:$0xff]  }
  0x56   :  { %2409 = vmatprep.subr.bf16.mxu1 %v2598_v8  ;;  %v2635_v6 = vld [vmem:[%s3359_s1 + $0x3b0] sm:$0xff]   ;;  %v2637_v8 = vld [vmem:[%s3359_s1 + $0x338] sm:$0xff]  }
  0x58   :  { %2382 = vmatpush3.bf16.msra.mxu0 %v2597_v7  ;;  %v2636_v7 = vld [vmem:[%s3359_s1 + $0x378] sm:$0xff]  }
  0x59   :  { %2410 = vmatpush3.bf16.msra.mxu1 %v2599_v9  ;;  %2383 = vmatprep.subr.bf16.mxu0 %v2600_v10  ;;  %v2638_v9 = vld [vmem:[%s3359_s1 + $0x3f8] sm:$0xff]   ;;  %v21_v10 = vld [vmem:[%s3360_s0 + $0x30] sm:$0xff] }
  0x5a   :  { %2411 = vmatprep.subr.bf16.mxu1 %v2602_v12  ;;  %v65_v12 = vmax.bf16 %v2680_v35, %v21_v10  ;;  %v2667_v10 = vld [vmem:[%s3361_s2 + $0x34] ss:$8 sps:$4 sm:$0xff]  }
  0x5c   :  { %2384 = vmatpush3.bf16.msra.mxu0 %v2601_v11  ;;  %v30_v11 = vld [vmem:[%s3360_s0 + $0x78] sm:$0xff] }
  0x5d   :  { %2412 = vmatpush3.bf16.msra.mxu1 %v2603_v13  ;;  %2385 = vmatprep.subr.bf16.mxu0 %v2604_v14  ;;  %v74_v13 = vmax.bf16 %v2680_v35, %v30_v11  ;;  %v2639_v14 = vld [vmem:[%s3359_s1 + $0x3b8] sm:$0xff]  }
  0x5e   :  { %2413 = vmatprep.subr.bf16.mxu1 %v2606_v16  ;;  %v22_v16 = vld [vmem:[%s3360_s0 + $0x38] sm:$0xff] }
  0x5f   :  { %v2067_v19 = vcombine.low %v65_v12, %v74_v13  ;;  %v2068_v20 = vcombine.high %v65_v12, %v74_v13  ;;  %v2665_v11 = vld [vmem:[%s3361_s2 + $0x30] ss:$8 sps:$4 sm:$0xff]   ;;  %v2670_v12 = vld [vmem:[%s3361_s2 + $0x44] ss:$8 sps:$4 sm:$0xff]  }
  0x60   :  { %2386 = vmatpush3.bf16.msra.mxu0 %v2605_v15  ;;  %v2640_v15 = vld [vmem:[%s3359_s1 + $0x440] sm:$0xff]  }
  0x61   :  { %2414 = vmatpush3.bf16.msra.mxu1 %v2607_v21  ;;  %2427 = vmatprep.subr.bf16.mxu0 %v2608_v22  ;;  %v31_v21 = vld [vmem:[%s3360_s0 + $0x80] sm:$0xff]  ;;  %v66_v22 = vmax.bf16 %v2680_v35, %v22_v16 }
  0x62   :  { %2455 = vmatprep.subr.bf16.mxu1 %v2610_v30  ;;  %v48_v30 = vld [vmem:[%s3360_s0 + $0x108] sm:$0xff] }
  0x63   :  { %1656 = vmatmul.mubr.bf16.vlgmr.msra.gmra.mrb[16].mxu0 %v2063_v23  ;;  %v75_v23 = vmax.bf16 %v2680_v35, %v31_v21  ;;  %v92_v32 = vmax.bf16 %v2680_v35, %v48_v30  ;;  %v2668_v16 = vld [vmem:[%s3361_s2 + $0x40] ss:$8 sps:$4 sm:$0xff]  }
  0x64   :  { %2428 = vmatpush3.bf16.msra.mxu0 %v2609_v29  ;;  %1705 = vmatmul.mubr.bf16.vlgmr.msra.gmra.mrb[16].mxu1 %v2065_v31  ;;  %v39_v29 = vld [vmem:[%s3360_s0 + $0xc0] sm:$0xff] }
  0x65   :  { %2429 = vmatprep.subr.bf16.mxu0 %v2612_v34  ;;  %2456 = vmatpush3.bf16.msra.mxu1 %v2611_v33  ;;  %v2069_v26 = vcombine.low %v66_v22, %v75_v23  ;;  %v2070_v27 = vcombine.high %v66_v22, %v75_v23  ;;  %v83_v31 = vmax.bf16 %v2680_v35, %v39_v29  ;;  %v2644_v33 = vld [vmem:[%s3359_s1 + $0x450] sm:$0xff]   ;;  %v40_v34 = vld [vmem:[%s3360_s0 + $0xc8] sm:$0xff] }
  0x66   :  { %2457 = vmatprep.subr.bf16.mxu1 %v2614_v37  ;;  %1663 = vmatprep.mubr.bf16.mxu0 %v2082_v46  ;;  %v84_v40 = vmax.bf16 %v2680_v35, %v40_v34  ;;  %v2673_v29 = vld [vmem:[%s3361_s2 + $0x54] ss:$8 sps:$4 sm:$0xff]  }
  0x67   :  { %1712 = vmatprep.mubr.bf16.mxu1 %v2084_v52  ;;  %v2086_v37 = vcombine.high %v83_v31, %v92_v32  ;;  %v32_v52 = vld [vmem:[%s3360_s0 + $0x88] sm:$0xff]  ;;  %v2679_v34 = vld [vmem:[%s3361_s2 + $0x74] ss:$8 sps:$4 sm:$0xff]  }
  0x68   :  { %2430 = vmatpush3.bf16.msra.mxu0 %v2613_v36  ;;  %v49_v36 = vld [vmem:[%s3360_s0 + $0x110] sm:$0xff] }
  0x69   :  { %2458 = vmatpush3.bf16.msra.mxu1 %v2615_v42  ;;  %2431 = vmatprep.subr.bf16.mxu0 %v2616_v43  ;;  %v93_v41 = vmax.bf16 %v2680_v35, %v49_v36  ;;  %v2085_v42 = vcombine.low %v83_v31, %v92_v32  ;;  %v2671_v31 = vld [vmem:[%s3361_s2 + $0x50] ss:$8 sps:$4 sm:$0xff]   ;;  %v2676_v32 = vld [vmem:[%s3361_s2 + $0x64] ss:$8 sps:$4 sm:$0xff]  }
  0x6a   :  { %2459 = vmatprep.subr.bf16.mxu1 %v2618_v51  ;;  %v2650_v51 = vld [vmem:[%s3359_s1 + $0x468] sm:$0xff]   ;;  %v2677_v36 = vld [vmem:[%s3361_s2 + $0x70] ss:$8 sps:$4 sm:$0xff]  }
  0x6b   :  { %1664 = vmatmul.mubr.bf16.gmra.mrb[20].mxu0 %v2081_v47  ;;  %v2088_v43 = vcombine.high %v84_v40, %v93_v41  ;;  %v2087_v46 = vcombine.low %v84_v40, %v93_v41  ;;  %v2647_v47 = vld [vmem:[%s3359_s1 + $0x418] sm:$0xff]  }
  0x6c   :  { %2432 = vmatpush3.bf16.msra.mxu0 %v2617_v50  ;;  %1713 = vmatmul.mubr.bf16.gmra.mrb[20].mxu1 %v2083_v53  ;;  %v23_v50 = vld [vmem:[%s3360_s0 + $0x40] sm:$0xff] }
  0x6d   :  { %2433 = vmatprep.subr.bf16.mxu0 %v2620_v55  ;;  %2460 = vmatpush3.bf16.msra.mxu1 %v2619_v54  ;;  %v67_v53 = vmax.bf16 %v2680_v35, %v23_v50  ;;  %v76_v54 = vmax.bf16 %v2680_v35, %v32_v52  ;;  %v2651_v55 = vld [vmem:[%s3359_s1 + $0x428] sm:$0xff]  }
  0x6e   :  { %2461 = vmatprep.subr.bf16.mxu1 %v2622_v57  ;;  %1753 = vmatprep.mubr.bf16.mxu0 %v2068_v20  ;;  %v2652_v57 = vld [vmem:[%s3359_s1 + $0x470] sm:$0xff]  }
  0x6f   :  { %1802 = vmatprep.mubr.bf16.mxu1 %v2070_v27 }
  0x70   :  { %2434 = vmatpush3.bf16.msra.mxu0 %v2621_v56  ;;  %v2072_v56 = vcombine.high %v67_v53, %v76_v54 }
  0x71   :  { %2435 = vmatprep.subr.bf16.mxu0 %v2624_v59  ;;  %2462 = vmatpush3.bf16.msra.mxu1 %v2623_v58  ;;  %v2653_v58 = vld [vmem:[%s3359_s1 + $0x430] sm:$0xff]   ;;  %v2654_v59 = vld [vmem:[%s3359_s1 + $0x478] sm:$0xff]  }
  0x72   :  { %2463 = vmatprep.subr.bf16.mxu1 %v2626_v61  ;;  %v50_v61 = vld [vmem:[%s3360_s0 + $0x118] sm:$0xff] }
  0x74   :  { %2436 = vmatpush3.bf16.msra.mxu0 %v2625_v60  ;;  %v41_v60 = vld [vmem:[%s3360_s0 + $0xd0] sm:$0xff] }
  0x75   :  { %2437 = vmatprep.subr.bf16.mxu0 %v2628_v63  ;;  %2464 = vmatpush3.bf16.msra.mxu1 %v2627_v62  ;;  %v2655_v62 = vld [vmem:[%s3359_s1 + $0x438] sm:$0xff]   ;;  %v85_v63 = vmax.bf16 %v2680_v35, %v41_v60 }
  0x76   :  { %2465 = vmatprep.subr.bf16.mxu1 %v2630_v1  ;;  %v2071_v1 = vcombine.low %v67_v53, %v76_v54 }
  0x78   :  { %2438 = vmatpush3.bf16.msra.mxu0 %v2629_v0  ;;  %v94_v0 = vmax.bf16 %v2680_v35, %v50_v61 }
  0x79   :  { %2439 = vmatprep.subr.bf16.mxu0 %v2632_v3  ;;  %2466 = vmatpush3.bf16.msra.mxu1 %v2631_v2 }
  0x7a   :  { %2467 = vmatprep.subr.bf16.mxu1 %v2634_v5  ;;  %v2090_v2 = vcombine.high %v85_v63, %v94_v0  ;;  %v2089_v3 = vcombine.low %v85_v63, %v94_v0  ;;  %v2656_v5 = vld [vmem:[%s3361_s2] ss:$8 sps:$4 sm:$0xff]  }
  0x7c   :  { %2440 = vmatpush3.bf16.msra.mxu0 %v2633_v4  ;;  %v2658_v4 = vld [vmem:[%s3361_s2 + $0x4] ss:$8 sps:$4 sm:$0xff]  }
  0x7d   :  { %2441 = vmatprep.subr.bf16.mxu0 %v2636_v7  ;;  %2468 = vmatpush3.bf16.msra.mxu1 %v2635_v6  ;;  %v2661_v6 = vld [vmem:[%s3361_s2 + $0x14] ss:$8 sps:$4 sm:$0xff]   ;;  %v2659_v7 = vld [vmem:[%s3361_s2 + $0x10] ss:$8 sps:$4 sm:$0xff]  }
  0x7e   :  { %2469 = vmatprep.subr.bf16.mxu1 %v2638_v9  ;;  %v2662_v9 = vld [vmem:[%s3361_s2 + $0x20] ss:$8 sps:$4 sm:$0xff]  }
  0x80   :  { %2442 = vmatpush3.bf16.msra.mxu0 %v2637_v8  ;;  %v2664_v8 = vld [vmem:[%s3361_s2 + $0x24] ss:$8 sps:$4 sm:$0xff]  }
  0x81   :  { %2470 = vmatpush3.bf16.msra.mxu1 %v2639_v14  ;;  %2483 = vmatprep.subr.bf16.mxu0 %v2640_v15 }
  0x82   :  { %1970 = vmatprep.subr.bf16.mxu1 %v2658_v4 }
  0x83   :  { %1754 = vmatmul.mubr.bf16.vlgmr.msra.gmra.mrb[24].mxu0 %v2067_v19 }
  0x84   :  { %2484 = vmatpush3.bf16.msra.mxu0 %v2641_v24  ;;  %1803 = vmatmul.mubr.bf16.vlgmr.msra.gmra.mrb[24].mxu1 %v2069_v26 }
  0x85   :  { %2485 = vmatprep.subr.bf16.mxu0 %v2642_v25  ;;  %1761 = vmatprep.mubr.bf16.mxu0 %v2086_v37 }
  0x86   :  { %1810 = vmatprep.mubr.bf16.mxu1 %v2088_v43  ;;  %1971 = vmatpush1.bf16.msra.mxu1 %v2656_v5 }
  0x87   :  { %1972 = vmatprep.subr.bf16.mxu1 %v2661_v6 }
  0x88   :  { %2486 = vmatpush3.bf16.msra.mxu0 %v2643_v28 }
  0x89   :  { %2487 = vmatprep.subr.bf16.mxu0 %v2644_v33  ;;  %v2674_v33 = vld [vmem:[%s3361_s2 + $0x60] ss:$8 sps:$4 sm:$0xff]  }
  0x8a   :  { %1973 = vmatpush1.bf16.msra.mxu1 %v2659_v7 }
  0x8b   :  { %1762 = vmatmul.mubr.bf16.gmra.mrb[28].mxu0 %v2085_v42  ;;  %1974 = vmatprep.subr.bf16.mxu1 %v2664_v8 }
  0x8c   :  { %2488 = vmatpush3.bf16.msra.mxu0 %v2645_v44  ;;  %1811 = vmatmul.mubr.bf16.gmra.mrb[28].mxu1 %v2087_v46 }
  0x8d   :  { %2489 = vmatprep.subr.bf16.mxu0 %v2646_v45  ;;  %2002 = vmatprep.mubr.bf16.mxu1 %v2680_v35 }
  0x8e   :  { %1851 = vmatprep.mubr.bf16.mxu0 %v2072_v56  ;;  %1975 = vmatpush1.bf16.msra.mxu1 %v2662_v9 }
  0x8f   :  { %1976 = vmatprep.subr.bf16.mxu1 %v2667_v10 }
  0x90   :  { %2490 = vmatpush3.bf16.msra.mxu0 %v2647_v47 }
  0x91   :  { %2491 = vmatprep.subr.bf16.mxu0 %v2648_v48 }
  0x92   :  { %1977 = vmatpush1.bf16.msra.mxu1 %v2665_v11 }
  0x93   :  { %1978 = vmatprep.subr.bf16.mxu1 %v2670_v12 }
  0x94   :  { %2492 = vmatpush3.bf16.msra.mxu0 %v2649_v49 }
  0x95   :  { %2493 = vmatprep.subr.bf16.mxu0 %v2650_v51 }
  0x96   :  { %1979 = vmatpush1.bf16.msra.mxu1 %v2668_v16 }
  0x97   :  { %1980 = vmatprep.subr.bf16.mxu1 %v2673_v29 }
  0x98   :  { %2494 = vmatpush3.bf16.msra.mxu0 %v2651_v55 }
  0x99   :  { %2495 = vmatprep.subr.bf16.mxu0 %v2652_v57 }
  0x9a   :  { %1981 = vmatpush1.bf16.msra.mxu1 %v2671_v31 }
  0x9b   :  { %1982 = vmatprep.subr.bf16.mxu1 %v2676_v32 }
  0x9c   :  { %2496 = vmatpush3.bf16.msra.mxu0 %v2653_v58 }
  0x9d   :  { %2497 = vmatprep.subr.bf16.mxu0 %v2654_v59 }
  0x9e   :  { %1983 = vmatpush1.bf16.msra.mxu1 %v2674_v33 }
  0x9f   :  { %1984 = vmatprep.subr.bf16.mxu1 %v2679_v34 }
  0xa0   :  { %2498 = vmatpush3.bf16.msra.mxu0 %v2655_v62 }
  0xa2   :  { %1985 = vmatpush1.bf16.msra.mxu1 %v2677_v36 }
  0xa3   :  { %1852 = vmatmul.mubr.bf16.vlgmr.msra.gmra.mrb[32].mxu0 %v2071_v1 }
  0xa4   :  { %1859 = vmatprep.mubr.bf16.mxu0 %v2090_v2 }
  0xab   :  { %1860 = vmatmul.mubr.bf16.gmra.mrb[36].mxu0 %v2089_v3 }
  0xf6   :  { %v2275_v13 = vpop.f32.mrb[0].mxu0 }
  0xf7   :  { %v2303_v14 = vpop.f32.mrb[0].mxu1  ;;  %v2276_v15 = vpop.f32.mrb[1].mxu0 }
  0xf8   :  { %v2277_v19 = vadd.f32 %v2276_v15, %v2275_v13  ;;  %v2304_v20 = vpop.f32.mrb[1].mxu1  ;;  %v2278_v21 = vpop.f32.mrb[2].mxu0 }
  0xf9   :  { %v2305_v22 = vadd.f32 %v2304_v20, %v2303_v14  ;;  %v2306_v23 = vpop.f32.mrb[2].mxu1  ;;  %v2279_v24 = vpop.f32.mrb[3].mxu0 }
  0xfa   :  { %v2280_v25 = vadd.f32 %v2279_v24, %v2278_v21  ;;  %v2307_v26 = vpop.f32.mrb[3].mxu1 }
  0xfb   :  { %v1511_v27 = vadd.f32 %v2305_v22, %v2277_v19  ;;  %v2308_v28 = vadd.f32 %v2307_v26, %v2306_v23 }
  0xfd   :  { %v1514_v30 = vadd.f32 %v2308_v28, %v2280_v25 }
  0xfe   :  { %v2281_v37 = vpop.f32.mrb[4].mxu0 }
  0xff   :  { %v2309_v40 = vpop.f32.mrb[4].mxu1  ;;  %v2282_v41 = vpop.f32.mrb[5].mxu0 }
 0x100   :  { %v2283_v42 = vadd.f32 %v2282_v41, %v2281_v37  ;;  %v2310_v43 = vpop.f32.mrb[5].mxu1  ;;  %v2284_v44 = vpop.f32.mrb[6].mxu0 }
 0x101   :  { %v2311_v45 = vadd.f32 %v2310_v43, %v2309_v40  ;;  %v2312_v46 = vpop.f32.mrb[6].mxu1  ;;  %v2285_v47 = vpop.f32.mrb[7].mxu0 }
 0x102   :  { %v2286_v48 = vadd.f32 %v2285_v47, %v2284_v44  ;;  %v2313_v49 = vpop.f32.mrb[7].mxu1 }
 0x103   :  { %v1519_v50 = vadd.f32 %v2311_v45, %v2283_v42  ;;  %v2314_v51 = vadd.f32 %v2313_v49, %v2312_v46 }
 0x105   :  { %v1522_v52 = vadd.f32 %v2314_v51, %v2286_v48 }
 0x116   :  { %v2331_v53 = vpop.f32.mrb[8].mxu0 }
 0x117   :  { %v2332_v54 = vpop.f32.mrb[9].mxu0  ;;  %v2359_v57 = vpop.f32.mrb[8].mxu1 }
 0x118   :  { %v2333_v55 = vadd.f32 %v2332_v54, %v2331_v53  ;;  %v2334_v56 = vpop.f32.mrb[10].mxu0  ;;  %v2360_v59 = vpop.f32.mrb[9].mxu1 }
 0x119   :  { %v2335_v58 = vpop.f32.mrb[11].mxu0  ;;  %v2361_v62 = vadd.f32 %v2360_v59, %v2359_v57  ;;  %v2362_v63 = vpop.f32.mrb[10].mxu1 }
 0x11a   :  { %v1560_v60 = vadd.f32 %v2333_v55, %v1511_v27  ;;  %v2336_v61 = vadd.f32 %v2335_v58, %v2334_v56  ;;  %v2363_v0 = vpop.f32.mrb[11].mxu1 }
 0x11b   :  { %v2364_v3 = vadd.f32 %v2363_v0, %v2362_v63 }
 0x11c   :  { %v1563_v1 = vadd.f32 %v2336_v61, %v1514_v30  ;;  %v1609_v2 = vadd.f32 %v2361_v62, %v1560_v60 }
 0x11e   :  { %v1612_v4 = vadd.f32 %v2364_v3, %v1563_v1  ;;  %v2337_v5 = vpop.f32.mrb[12].mxu0 }
 0x11f   :  { %v2338_v6 = vpop.f32.mrb[13].mxu0  ;;  %v2365_v9 = vpop.f32.mrb[12].mxu1 }
 0x120   :  { %v2339_v7 = vadd.f32 %v2338_v6, %v2337_v5  ;;  %v2340_v8 = vpop.f32.mrb[14].mxu0  ;;  %v2366_v13 = vpop.f32.mrb[13].mxu1 }
 0x121   :  { %v2341_v10 = vpop.f32.mrb[15].mxu0  ;;  %v2367_v14 = vadd.f32 %v2366_v13, %v2365_v9  ;;  %v2368_v15 = vpop.f32.mrb[14].mxu1 }
 0x122   :  { %v1568_v11 = vadd.f32 %v2339_v7, %v1519_v50  ;;  %v2342_v12 = vadd.f32 %v2341_v10, %v2340_v8  ;;  %v2369_v19 = vpop.f32.mrb[15].mxu1 }
 0x123   :  { %v2370_v21 = vadd.f32 %v2369_v19, %v2368_v15 }
 0x124   :  { %v1571_v16 = vadd.f32 %v2342_v12, %v1522_v52  ;;  %v1617_v20 = vadd.f32 %v2367_v14, %v1568_v11 }
 0x126   :  { %v1620_v22 = vadd.f32 %v2370_v21, %v1571_v16 }
 0x136   :  { %v2387_v23 = vpop.f32.mrb[16].mxu0 }
 0x137   :  { %v2388_v24 = vpop.f32.mrb[17].mxu0  ;;  %v2415_v27 = vpop.f32.mrb[16].mxu1 }
 0x138   :  { %v2389_v25 = vadd.f32 %v2388_v24, %v2387_v23  ;;  %v2390_v26 = vpop.f32.mrb[18].mxu0  ;;  %v2416_v31 = vpop.f32.mrb[17].mxu1 }
 0x139   :  { %v2391_v28 = vpop.f32.mrb[19].mxu0  ;;  %v2417_v32 = vadd.f32 %v2416_v31, %v2415_v27  ;;  %v2418_v33 = vpop.f32.mrb[18].mxu1 }
 0x13a   :  { %v1658_v29 = vadd.f32 %v2389_v25, %v1609_v2  ;;  %v2392_v30 = vadd.f32 %v2391_v28, %v2390_v26  ;;  %v2419_v36 = vpop.f32.mrb[19].mxu1 }
 0x13b   :  { %v2420_v40 = vadd.f32 %v2419_v36, %v2418_v33 }
 0x13c   :  { %v1661_v34 = vadd.f32 %v2392_v30, %v1612_v4  ;;  %v1707_v37 = vadd.f32 %v2417_v32, %v1658_v29 }
 0x13e   :  { %v1710_v41 = vadd.f32 %v2420_v40, %v1661_v34  ;;  %v2393_v42 = vpop.f32.mrb[20].mxu0 }
 0x13f   :  { %v2394_v43 = vpop.f32.mrb[21].mxu0  ;;  %v2421_v46 = vpop.f32.mrb[20].mxu1 }
 0x140   :  { %v2395_v44 = vadd.f32 %v2394_v43, %v2393_v42  ;;  %v2396_v45 = vpop.f32.mrb[22].mxu0  ;;  %v2422_v48 = vpop.f32.mrb[21].mxu1 }
 0x141   :  { %v2397_v47 = vpop.f32.mrb[23].mxu0  ;;  %v2423_v51 = vadd.f32 %v2422_v48, %v2421_v46  ;;  %v2424_v52 = vpop.f32.mrb[22].mxu1 }
 0x142   :  { %v1666_v49 = vadd.f32 %v2395_v44, %v1617_v20  ;;  %v2398_v50 = vadd.f32 %v2397_v47, %v2396_v45  ;;  %v2425_v53 = vpop.f32.mrb[23].mxu1 }
 0x143   :  { %v2426_v56 = vadd.f32 %v2425_v53, %v2424_v52  ;;  %v51_v53 = vunpack.c.l.bf16 %v3053_v17 }
 0x144   :  { %v1669_v54 = vadd.f32 %v2398_v50, %v1620_v22  ;;  %v1715_v55 = vadd.f32 %v2423_v51, %v1666_v49 }
 0x146   :  { %v1718_v57 = vadd.f32 %v2426_v56, %v1669_v54  ;;  %v52_v54 = vunpack.c.h.bf16 %v3053_v17 }
 0x156   :  { %v2443_v58 = vpop.f32.mrb[24].mxu0 }
 0x157   :  { %v2444_v59 = vpop.f32.mrb[25].mxu0  ;;  %v2471_v62 = vpop.f32.mrb[24].mxu1 }
 0x158   :  { %v2445_v60 = vadd.f32 %v2444_v59, %v2443_v58  ;;  %v2446_v61 = vpop.f32.mrb[26].mxu0  ;;  %v2472_v2 = vpop.f32.mrb[25].mxu1 }
 0x159   :  { %v2447_v63 = vpop.f32.mrb[27].mxu0  ;;  %v2473_v3 = vadd.f32 %v2472_v2, %v2471_v62  ;;  %v2474_v4 = vpop.f32.mrb[26].mxu1  ;;  %v56_v2 = vunpack.c.h.bf16 %v3099_v38 }
 0x15a   :  { %v1756_v0 = vadd.f32 %v2445_v60, %v1707_v37  ;;  %v2448_v1 = vadd.f32 %v2447_v63, %v2446_v61  ;;  %v2475_v6 = vpop.f32.mrb[27].mxu1 }
 0x15b   :  { %v2476_v8 = vadd.f32 %v2475_v6, %v2474_v4  ;;  %v58_v4 = vunpack.c.h.bf16 %v3104_v39 }
 0x15c   :  { %v1759_v5 = vadd.f32 %v2448_v1, %v1710_v41  ;;  %v1805_v7 = vadd.f32 %v2473_v3, %v1756_v0  ;;  %v55_v1 = vunpack.c.l.bf16 %v3099_v38  ;;  %v57_v3 = vunpack.c.l.bf16 %v3104_v39 }
 0x15e   :  { %v2449_v9 = vpop.f32.mrb[28].mxu0  ;;  %v1808_v10 = vadd.f32 %v2476_v8, %v1759_v5 }
 0x15f   :  { %v2450_v11 = vpop.f32.mrb[29].mxu0  ;;  %v2477_v14 = vpop.f32.mrb[28].mxu1 }
 0x160   :  { %v2451_v12 = vadd.f32 %v2450_v11, %v2449_v9  ;;  %v2452_v13 = vpop.f32.mrb[30].mxu0  ;;  %v2478_v20 = vpop.f32.mrb[29].mxu1 }
 0x161   :  { %v2453_v15 = vpop.f32.mrb[31].mxu0  ;;  %v2479_v21 = vadd.f32 %v2478_v20, %v2477_v14  ;;  %v2480_v22 = vpop.f32.mrb[30].mxu1 }
 0x162   :  { %v1764_v16 = vadd.f32 %v2451_v12, %v1715_v55  ;;  %v2454_v19 = vadd.f32 %v2453_v15, %v2452_v13  ;;  %v2481_v24 = vpop.f32.mrb[31].mxu1  ;;  %v53_v55 = vunpack.c.l.bf16 %v3058_v18 }
 0x163   :  { %v2482_v26 = vadd.f32 %v2481_v24, %v2480_v22 }
 0x164   :  { %v1767_v23 = vadd.f32 %v2454_v19, %v1718_v57  ;;  %v1813_v25 = vadd.f32 %v2479_v21, %v1764_v16  ;;  %v54_v57 = vunpack.c.h.bf16 %v3058_v18 }
 0x166   :  { %v1816_v27 = vadd.f32 %v2482_v26, %v1767_v23 }
 0x176   :  { %v2499_v28 = vpop.f32.mrb[32].mxu0 }
 0x177   :  { %v2500_v29 = vpop.f32.mrb[33].mxu0 }
 0x178   :  { %v2501_v30 = vadd.f32 %v2500_v29, %v2499_v28  ;;  %v2502_v31 = vpop.f32.mrb[34].mxu0 }
 0x179   :  { %v2503_v32 = vpop.f32.mrb[35].mxu0 }
 0x17a   :  { %v1854_v33 = vadd.f32 %v2501_v30, %v1805_v7  ;;  %v2504_v34 = vadd.f32 %v2503_v32, %v2502_v31 }
 0x17c   :  { %v1857_v36 = vadd.f32 %v2504_v34, %v1808_v10  ;;  %v1868_v37 = vmax.f32 %v1854_v33, 0.0 }
 0x17e   :  { %v1869_v40 = vmax.f32 %v1857_v36, 0.0  ;;  %v2505_v41 = vpop.f32.mrb[36].mxu0 }
 0x17f   :  { %v2506_v42 = vpop.f32.mrb[37].mxu0 }
 0x180   :  { %v1872_v43 = vpack.c.bf16 %v1869_v40, %v1868_v37  ;;  %v2507_v44 = vadd.f32 %v2506_v42, %v2505_v41  ;;  %v2508_v45 = vpop.f32.mrb[38].mxu0 }
 0x181   :  { %v2509_v46 = vpop.f32.mrb[39].mxu0 }
 0x182   :  { %v1862_v47 = vadd.f32 %v2507_v44, %v1813_v25  ;;  %v2510_v48 = vadd.f32 %v2509_v46, %v2508_v45  ;;  %2003 = vmatmul.mubr.bf16.vlgmr.msra.gmra.mrb[32].mxu1 %v1872_v43 }
 0x183   :  { %2012 = vmatprep.mubr.bf16.mxu1 %v2680_v35 }
 0x184   :  { %v1865_v49 = vadd.f32 %v2510_v48, %v1816_v27  ;;  %v1870_v50 = vmax.f32 %v1862_v47, 0.0 }
 0x186   :  { %v1871_v51 = vmax.f32 %v1865_v49, 0.0 }
 0x188   :  { %v1873_v52 = vpack.c.bf16 %v1871_v51, %v1870_v50 }
 0x18a   :  { %2013 = vmatmul.mubr.bf16.gmra.mrb[36].mxu1 %v1873_v52 }
 0x255   :  { %v2004_v56 = vpop.f32.mrb[32].mxu1 }
 0x256   :  { %v2005_v58 = vadd.f32 %v2004_v56, %v51_v53  ;;  %v2006_v59 = vpop.f32.mrb[33].mxu1 }
 0x257   :  { %v2007_v60 = vadd.f32 %v2006_v59, %v52_v54  ;;  %v2008_v61 = vpop.f32.mrb[34].mxu1 }
 0x258   :  { %v2009_v62 = vadd.f32 %v2008_v61, %v53_v55  ;;  %v2010_v35 = vpop.f32.mrb[35].mxu1 }
 0x259   :  { %v2255_v63 = vpack.c.bf16 %v2007_v60, %v2005_v58  ;;  %v2011_v0 = vadd.f32 %v2010_v35, %v54_v57 }
 0x25b   :  { %2047 = vst [vmem:[%s3362_s3] sm:$0xff] %v2255_v63  ;;  %v2256_v17 = vpack.c.bf16 %v2011_v0, %v2009_v62 }
 0x25d   :  { %2048 = vst [vmem:[%s3362_s3 + $0x8] sm:$0xff] %v2256_v17  ;;  %v2014_v18 = vpop.f32.mrb[36].mxu1 }
 0x25e   :  { %v2015_v5 = vadd.f32 %v2014_v18, %v55_v1  ;;  %v2016_v6 = vpop.f32.mrb[37].mxu1 }
 0x25f   :  { %v2017_v7 = vadd.f32 %v2016_v6, %v56_v2  ;;  %v2018_v8 = vpop.f32.mrb[38].mxu1 }
 0x260   :  { %v2019_v9 = vadd.f32 %v2018_v8, %v57_v3  ;;  %v2020_v10 = vpop.f32.mrb[39].mxu1 }
 0x261   :  { %v2257_v11 = vpack.c.bf16 %v2017_v7, %v2015_v5  ;;  %v2021_v12 = vadd.f32 %v2020_v10, %v58_v4 }
 0x263   :  { %2049 = vst [vmem:[%s3362_s3 + $0x10] sm:$0xff] %v2257_v11  ;;  %v2258_v38 = vpack.c.bf16 %v2021_v12, %v2019_v9 }
 0x265   :  { %2050 = vst [vmem:[%s3362_s3 + $0x18] sm:$0xff] %v2258_v38 }

// kernel: autoencoder_forward.12
= control target key start
LH: loop header
LB: loop body
LE: loop exit
PB: predicated region body
PF: predicated region fallthrough
CT: control target
= control target key end

     0   :  { %s4408_s1 = inlined_call_operand.vmem [shape: bf16[2304,256], index: 1, kind: input, shape index: {}]   ;;  %s4409_s0 = inlined_call_operand.vmem [shape: bf16[32,2304], index: 0, kind: input, shape index: {}]   ;;  %s4410_s2 = inlined_call_operand.vmem [shape: f32[1,256], index: 2, kind: input, shape index: {}]   ;;  %s4411_s3 = inlined_call_operand.vmem [shape: bf16[32,256], index: 3, kind: output, shape index: {}]  }
   0x1   :  { %v2915_v0 = vld [vmem:[%s4408_s1 + $0x4] ss:$8 sps:$4 sm:$0xff]   ;;  %v2919_v2 = vld [vmem:[%s4408_s1] ss:$8 sps:$4 sm:$0xff]   ;;  %v2921_v4 = vld [vmem:[%s4408_s1 + $0x14] ss:$8 sps:$4 sm:$0xff]  }
   0x2   :  { %v2917_v1 = vld [vmem:[%s4408_s1 + $0x404] ss:$8 sps:$4 sm:$0xff]   ;;  %1970 = vmatprep.subr.bf16.mxu1 %v2915_v0  ;;  %v2920_v3 = vld [vmem:[%s4408_s1 + $0x400] ss:$8 sps:$4 sm:$0xff]   ;;  %v2923_v5 = vld [vmem:[%s4408_s1 + $0x414] ss:$8 sps:$4 sm:$0xff]  }
   0x3   :  { %2182 = vmatprep.subr.bf16.mxu0 %v2917_v1  ;;  %1971 = vmatpush1.bf16.msra.mxu1 %v2919_v2  ;;  %v2925_v6 = vld [vmem:[%s4408_s1 + $0x10] ss:$8 sps:$4 sm:$0xff]   ;;  %v2927_v8 = vld [vmem:[%s4408_s1 + $0x24] ss:$8 sps:$4 sm:$0xff]   ;;  %v2931_v10 = vld [vmem:[%s4408_s1 + $0x20] ss:$8 sps:$4 sm:$0xff]  }
   0x4   :  { %2183 = vmatpush1.bf16.msra.mxu0 %v2920_v3  ;;  %1972 = vmatprep.subr.bf16.mxu1 %v2921_v4  ;;  %v2926_v7 = vld [vmem:[%s4408_s1 + $0x410] ss:$8 sps:$4 sm:$0xff]   ;;  %v2929_v9 = vld [vmem:[%s4408_s1 + $0x424] ss:$8 sps:$4 sm:$0xff]   ;;  %v2932_v11 = vld [vmem:[%s4408_s1 + $0x420] ss:$8 sps:$4 sm:$0xff]  }
   0x5   :  { %2184 = vmatprep.subr.bf16.mxu0 %v2923_v5  ;;  %v2933_v12 = vld [vmem:[%s4408_s1 + $0x34] ss:$8 sps:$4 sm:$0xff]   ;;  %v2937_v14 = vld [vmem:[%s4408_s1 + $0x30] ss:$8 sps:$4 sm:$0xff]   ;;  %v2939_v16 = vld [vmem:[%s4408_s1 + $0x44] ss:$8 sps:$4 sm:$0xff]  }
   0x6   :  { %v2935_v13 = vld [vmem:[%s4408_s1 + $0x434] ss:$8 sps:$4 sm:$0xff]   ;;  %v2938_v15 = vld [vmem:[%s4408_s1 + $0x430] ss:$8 sps:$4 sm:$0xff]   ;;  %v2941_v17 = vld [vmem:[%s4408_s1 + $0x444] ss:$8 sps:$4 sm:$0xff]  }
   0x7   :  { %1973 = vmatpush1.bf16.msra.mxu1 %v2925_v6  ;;  %v2943_v18 = vld [vmem:[%s4408_s1 + $0x40] ss:$8 sps:$4 sm:$0xff]   ;;  %v2945_v20 = vld [vmem:[%s4408_s1 + $0x54] ss:$8 sps:$4 sm:$0xff]   ;;  %v2949_v22 = vld [vmem:[%s4408_s1 + $0x50] ss:$8 sps:$4 sm:$0xff]  }
   0x8   :  { %2185 = vmatpush1.bf16.msra.mxu0 %v2926_v7  ;;  %1974 = vmatprep.subr.bf16.mxu1 %v2927_v8  ;;  %v2944_v19 = vld [vmem:[%s4408_s1 + $0x440] ss:$8 sps:$4 sm:$0xff]   ;;  %v2947_v21 = vld [vmem:[%s4408_s1 + $0x454] ss:$8 sps:$4 sm:$0xff]   ;;  %v2950_v23 = vld [vmem:[%s4408_s1 + $0x450] ss:$8 sps:$4 sm:$0xff]  }
   0x9   :  { %2186 = vmatprep.subr.bf16.mxu0 %v2929_v9  ;;  %v2951_v24 = vld [vmem:[%s4408_s1 + $0x64] ss:$8 sps:$4 sm:$0xff]   ;;  %v2955_v26 = vld [vmem:[%s4408_s1 + $0x60] ss:$8 sps:$4 sm:$0xff]   ;;  %v2957_v28 = vld [vmem:[%s4408_s1 + $0x74] ss:$8 sps:$4 sm:$0xff]  }
   0xa   :  { %v2953_v25 = vld [vmem:[%s4408_s1 + $0x464] ss:$8 sps:$4 sm:$0xff]   ;;  %v2956_v27 = vld [vmem:[%s4408_s1 + $0x460] ss:$8 sps:$4 sm:$0xff]   ;;  %v2959_v29 = vld [vmem:[%s4408_s1 + $0x474] ss:$8 sps:$4 sm:$0xff]  }
   0xb   :  { %1975 = vmatpush1.bf16.msra.mxu1 %v2931_v10  ;;  %v2961_v30 = vld [vmem:[%s4408_s1 + $0x70] ss:$8 sps:$4 sm:$0xff]   ;;  %v2963_v32 = vld [vmem:[%s4408_s1 + $0x84] ss:$8 sps:$4 sm:$0xff]   ;;  %v2967_v34 = vld [vmem:[%s4408_s1 + $0x80] ss:$8 sps:$4 sm:$0xff]  }
   0xc   :  { %2187 = vmatpush1.bf16.msra.mxu0 %v2932_v11  ;;  %1976 = vmatprep.subr.bf16.mxu1 %v2933_v12  ;;  %v2962_v31 = vld [vmem:[%s4408_s1 + $0x470] ss:$8 sps:$4 sm:$0xff]   ;;  %v2965_v33 = vld [vmem:[%s4408_s1 + $0x484] ss:$8 sps:$4 sm:$0xff]   ;;  %v2968_v35 = vld [vmem:[%s4408_s1 + $0x480] ss:$8 sps:$4 sm:$0xff]  }
   0xd   :  { %2188 = vmatprep.subr.bf16.mxu0 %v2935_v13  ;;  %v2969_v36 = vld [vmem:[%s4408_s1 + $0x94] ss:$8 sps:$4 sm:$0xff]   ;;  %v2973_v38 = vld [vmem:[%s4408_s1 + $0x90] ss:$8 sps:$4 sm:$0xff]   ;;  %v2975_v40 = vld [vmem:[%s4408_s1 + $0xa4] ss:$8 sps:$4 sm:$0xff]  }
   0xe   :  { %v2971_v37 = vld [vmem:[%s4408_s1 + $0x494] ss:$8 sps:$4 sm:$0xff]   ;;  %v2974_v39 = vld [vmem:[%s4408_s1 + $0x490] ss:$8 sps:$4 sm:$0xff]   ;;  %v2977_v41 = vld [vmem:[%s4408_s1 + $0x4a4] ss:$8 sps:$4 sm:$0xff]  }
   0xf   :  { %1977 = vmatpush1.bf16.msra.mxu1 %v2937_v14  ;;  %v2979_v42 = vld [vmem:[%s4408_s1 + $0xa0] ss:$8 sps:$4 sm:$0xff]   ;;  %v2981_v44 = vld [vmem:[%s4408_s1 + $0xb4] ss:$8 sps:$4 sm:$0xff]   ;;  %v2985_v46 = vld [vmem:[%s4408_s1 + $0xb0] ss:$8 sps:$4 sm:$0xff]  }
  0x10   :  { %2189 = vmatpush1.bf16.msra.mxu0 %v2938_v15  ;;  %1978 = vmatprep.subr.bf16.mxu1 %v2939_v16  ;;  %v2980_v43 = vld [vmem:[%s4408_s1 + $0x4a0] ss:$8 sps:$4 sm:$0xff]   ;;  %v2983_v45 = vld [vmem:[%s4408_s1 + $0x4b4] ss:$8 sps:$4 sm:$0xff]   ;;  %v2986_v47 = vld [vmem:[%s4408_s1 + $0x4b0] ss:$8 sps:$4 sm:$0xff]  }
  0x11   :  { %2190 = vmatprep.subr.bf16.mxu0 %v2941_v17  ;;  %v3013_v48 = vld [vmem:[%s4409_s0 + $0x4] ss:$72 sps:$4 sm:$0xff]   ;;  %v2991_v52 = vld [vmem:[%s4408_s1 + $0xc0] ss:$8 sps:$4 sm:$0xff]   ;;  %v2993_v54 = vld [vmem:[%s4408_s1 + $0xd4] ss:$8 sps:$4 sm:$0xff]  }
  0x12   :  { %v2987_v49 = vld [vmem:[%s4408_s1 + $0xc4] ss:$8 sps:$4 sm:$0xff]   ;;  %2002 = vmatprep.mubr.bf16.mxu1 %v3013_v48  ;;  %v2992_v53 = vld [vmem:[%s4408_s1 + $0x4c0] ss:$8 sps:$4 sm:$0xff]   ;;  %v2995_v55 = vld [vmem:[%s4408_s1 + $0x4d4] ss:$8 sps:$4 sm:$0xff]  }
  0x13   :  { %1979 = vmatpush1.bf16.msra.mxu1 %v2943_v18  ;;  %v2989_v50 = vld [vmem:[%s4408_s1 + $0x4c4] ss:$8 sps:$4 sm:$0xff]   ;;  %v2997_v56 = vld [vmem:[%s4408_s1 + $0xd0] ss:$8 sps:$4 sm:$0xff]   ;;  %v3003_v60 = vld [vmem:[%s4408_s1 + $0xe0] ss:$8 sps:$4 sm:$0xff]  }
  0x14   :  { %2191 = vmatpush1.bf16.msra.mxu0 %v2944_v19  ;;  %1980 = vmatprep.subr.bf16.mxu1 %v2945_v20  ;;  %v3019_v51 = vld [vmem:[%s4409_s0 + $0x24] ss:$72 sps:$4 sm:$0xff]   ;;  %v2998_v57 = vld [vmem:[%s4408_s1 + $0x4d0] ss:$8 sps:$4 sm:$0xff]   ;;  %v3004_v61 = vld [vmem:[%s4408_s1 + $0x4e0] ss:$8 sps:$4 sm:$0xff]  }
  0x15   :  { %2192 = vmatprep.subr.bf16.mxu0 %v2947_v21  ;;  %2214 = vmatprep.mubr.bf16.mxu0 %v3019_v51  ;;  %v2999_v58 = vld [vmem:[%s4408_s1 + $0xe4] ss:$8 sps:$4 sm:$0xff]   ;;  %v3005_v62 = vld [vmem:[%s4408_s1 + $0xf4] ss:$8 sps:$4 sm:$0xff]   ;;  %v3009_v0 = vld [vmem:[%s4408_s1 + $0xf0] ss:$8 sps:$4 sm:$0xff]  }
  0x16   :  { %v3001_v59 = vld [vmem:[%s4408_s1 + $0x4e4] ss:$8 sps:$4 sm:$0xff]   ;;  %v3007_v63 = vld [vmem:[%s4408_s1 + $0x4f4] ss:$8 sps:$4 sm:$0xff]   ;;  %v3010_v1 = vld [vmem:[%s4408_s1 + $0x4f0] ss:$8 sps:$4 sm:$0xff]  }
  0x17   :  { %1981 = vmatpush1.bf16.msra.mxu1 %v2949_v22  ;;  %v3016_v2 = vld [vmem:[%s4408_s1 + $0x104] ss:$8 sps:$4 sm:$0xff]   ;;  %v3011_v4 = vld [vmem:[%s4409_s0] ss:$72 sps:$4 sm:$0xff]   ;;  %v3025_v8 = vld [vmem:[%s4408_s1 + $0x114] ss:$8 sps:$4 sm:$0xff]  }
  0x18   :  { %2193 = vmatpush1.bf16.msra.mxu0 %v2950_v23  ;;  %1982 = vmatprep.subr.bf16.mxu1 %v2951_v24  ;;  %v3022_v3 = vld [vmem:[%s4408_s1 + $0x504] ss:$8 sps:$4 sm:$0xff]   ;;  %v3014_v5 = vld [vmem:[%s4408_s1 + $0x100] ss:$8 sps:$4 sm:$0xff]   ;;  %v3028_v9 = vld [vmem:[%s4408_s1 + $0x514] ss:$8 sps:$4 sm:$0xff]  }
  0x19   :  { %2194 = vmatprep.subr.bf16.mxu0 %v2953_v25  ;;  %v3017_v6 = vld [vmem:[%s4409_s0 + $0x20] ss:$72 sps:$4 sm:$0xff]   ;;  %v3023_v10 = vld [vmem:[%s4408_s1 + $0x110] ss:$8 sps:$4 sm:$0xff]   ;;  %v3031_v12 = vld [vmem:[%s4408_s1 + $0x124] ss:$8 sps:$4 sm:$0xff]  }
  0x1a   :  { %v3020_v7 = vld [vmem:[%s4408_s1 + $0x500] ss:$8 sps:$4 sm:$0xff]   ;;  %v3026_v11 = vld [vmem:[%s4408_s1 + $0x510] ss:$8 sps:$4 sm:$0xff]   ;;  %v3034_v13 = vld [vmem:[%s4408_s1 + $0x524] ss:$8 sps:$4 sm:$0xff]  }
  0x1b   :  { %1983 = vmatpush1.bf16.msra.mxu1 %v2955_v26  ;;  %v3029_v14 = vld [vmem:[%s4408_s1 + $0x120] ss:$8 sps:$4 sm:$0xff]   ;;  %v3037_v16 = vld [vmem:[%s4408_s1 + $0x134] ss:$8 sps:$4 sm:$0xff]   ;;  %v3035_v18 = vld [vmem:[%s4408_s1 + $0x130] ss:$8 sps:$4 sm:$0xff]  }
  0x1c   :  { %2195 = vmatpush1.bf16.msra.mxu0 %v2956_v27  ;;  %1984 = vmatprep.subr.bf16.mxu1 %v2957_v28  ;;  %v3032_v15 = vld [vmem:[%s4408_s1 + $0x520] ss:$8 sps:$4 sm:$0xff]   ;;  %v3040_v17 = vld [vmem:[%s4408_s1 + $0x534] ss:$8 sps:$4 sm:$0xff]   ;;  %v3038_v19 = vld [vmem:[%s4408_s1 + $0x530] ss:$8 sps:$4 sm:$0xff]  }
  0x1d   :  { %2196 = vmatprep.subr.bf16.mxu0 %v2959_v29  ;;  %v3043_v20 = vld [vmem:[%s4408_s1 + $0x144] ss:$8 sps:$4 sm:$0xff]   ;;  %v3041_v22 = vld [vmem:[%s4408_s1 + $0x140] ss:$8 sps:$4 sm:$0xff]   ;;  %v3049_v24 = vld [vmem:[%s4408_s1 + $0x154] ss:$8 sps:$4 sm:$0xff]  }
  0x1e   :  { %v3046_v21 = vld [vmem:[%s4408_s1 + $0x544] ss:$8 sps:$4 sm:$0xff]   ;;  %v3044_v23 = vld [vmem:[%s4408_s1 + $0x540] ss:$8 sps:$4 sm:$0xff]   ;;  %v3052_v25 = vld [vmem:[%s4408_s1 + $0x554] ss:$8 sps:$4 sm:$0xff]  }
  0x1f   :  { %1985 = vmatpush1.bf16.msra.mxu1 %v2961_v30  ;;  %v3047_v26 = vld [vmem:[%s4408_s1 + $0x150] ss:$8 sps:$4 sm:$0xff]   ;;  %v3101_v28 = vld [vmem:[%s4409_s0 + $0x94] ss:$72 sps:$4 sm:$0xff]   ;;  %v3055_v29 = vld [vmem:[%s4408_s1 + $0x164] ss:$8 sps:$4 sm:$0xff]  }
  0x20   :  { %2197 = vmatpush1.bf16.msra.mxu0 %v2962_v31  ;;  %1986 = vmatprep.subr.bf16.mxu1 %v2963_v32  ;;  %v3050_v27 = vld [vmem:[%s4408_s1 + $0x550] ss:$8 sps:$4 sm:$0xff]   ;;  %v3058_v30 = vld [vmem:[%s4408_s1 + $0x564] ss:$8 sps:$4 sm:$0xff]   ;;  %v3106_v31 = vld [vmem:[%s4409_s0 + $0xb4] ss:$72 sps:$4 sm:$0xff]  }
  0x21   :  { %2198 = vmatprep.subr.bf16.mxu0 %v2965_v33  ;;  %v3053_v32 = vld [vmem:[%s4408_s1 + $0x160] ss:$8 sps:$4 sm:$0xff]   ;;  %v3071_v48 = vld [vmem:[%s4408_s1 + $0x190] ss:$8 sps:$4 sm:$0xff]   ;;  %v3082_v51 = vld [vmem:[%s4408_s1 + $0x5a4] ss:$8 sps:$4 sm:$0xff]  }
  0x22   :  { %v3056_v33 = vld [vmem:[%s4408_s1 + $0x560] ss:$8 sps:$4 sm:$0xff]  }
  0x23   :  { %1987 = vmatpush1.bf16.msra.mxu1 %v2967_v34  ;;  %v3111_v34 = vld [vmem:[%s4409_s0 + $0x90] ss:$72 sps:$4 sm:$0xff]  }
  0x24   :  { %2199 = vmatpush1.bf16.msra.mxu0 %v2968_v35  ;;  %1988 = vmatprep.subr.bf16.mxu1 %v2969_v36  ;;  %v3112_v35 = vld [vmem:[%s4409_s0 + $0xb0] ss:$72 sps:$4 sm:$0xff]   ;;  %v3061_v36 = vld [vmem:[%s4408_s1 + $0x174] ss:$8 sps:$4 sm:$0xff]  }
  0x25   :  { %2200 = vmatprep.subr.bf16.mxu0 %v2971_v37  ;;  %v3064_v37 = vld [vmem:[%s4408_s1 + $0x574] ss:$8 sps:$4 sm:$0xff]  }
  0x27   :  { %1989 = vmatpush1.bf16.msra.mxu1 %v2973_v38  ;;  %v3059_v38 = vld [vmem:[%s4408_s1 + $0x170] ss:$8 sps:$4 sm:$0xff]  }
  0x28   :  { %2201 = vmatpush1.bf16.msra.mxu0 %v2974_v39  ;;  %1990 = vmatprep.subr.bf16.mxu1 %v2975_v40  ;;  %v3062_v39 = vld [vmem:[%s4408_s1 + $0x570] ss:$8 sps:$4 sm:$0xff]   ;;  %v3121_v40 = vld [vmem:[%s4409_s0 + $0xc] ss:$72 sps:$4 sm:$0xff]  }
  0x29   :  { %2202 = vmatprep.subr.bf16.mxu0 %v2977_v41  ;;  %v3067_v41 = vld [vmem:[%s4408_s1 + $0x184] ss:$8 sps:$4 sm:$0xff]  }
  0x2b   :  { %1991 = vmatpush1.bf16.msra.mxu1 %v2979_v42  ;;  %v3070_v42 = vld [vmem:[%s4408_s1 + $0x584] ss:$8 sps:$4 sm:$0xff]  }
  0x2c   :  { %2203 = vmatpush1.bf16.msra.mxu0 %v2980_v43  ;;  %1992 = vmatprep.subr.bf16.mxu1 %v2981_v44  ;;  %v3127_v43 = vld [vmem:[%s4409_s0 + $0x2c] ss:$72 sps:$4 sm:$0xff]   ;;  %v3065_v44 = vld [vmem:[%s4408_s1 + $0x180] ss:$8 sps:$4 sm:$0xff]  }
  0x2d   :  { %2204 = vmatprep.subr.bf16.mxu0 %v2983_v45  ;;  %v3068_v45 = vld [vmem:[%s4408_s1 + $0x580] ss:$8 sps:$4 sm:$0xff]  }
  0x2f   :  { %1993 = vmatpush1.bf16.msra.mxu1 %v2985_v46  ;;  %v3073_v46 = vld [vmem:[%s4408_s1 + $0x194] ss:$8 sps:$4 sm:$0xff]  }
  0x30   :  { %2205 = vmatpush1.bf16.msra.mxu0 %v2986_v47  ;;  %1994 = vmatprep.subr.bf16.mxu1 %v2987_v49  ;;  %v3076_v47 = vld [vmem:[%s4408_s1 + $0x594] ss:$8 sps:$4 sm:$0xff]   ;;  %v3074_v49 = vld [vmem:[%s4408_s1 + $0x590] ss:$8 sps:$4 sm:$0xff]  }
  0x31   :  { %2206 = vmatprep.subr.bf16.mxu0 %v2989_v50  ;;  %v3079_v50 = vld [vmem:[%s4408_s1 + $0x1a4] ss:$8 sps:$4 sm:$0xff]  }
  0x33   :  { %1995 = vmatpush1.bf16.msra.mxu1 %v2991_v52  ;;  %v3077_v52 = vld [vmem:[%s4408_s1 + $0x1a0] ss:$8 sps:$4 sm:$0xff]  }
  0x34   :  { %2207 = vmatpush1.bf16.msra.mxu0 %v2992_v53  ;;  %1996 = vmatprep.subr.bf16.mxu1 %v2993_v54  ;;  %v3080_v53 = vld [vmem:[%s4408_s1 + $0x5a0] ss:$8 sps:$4 sm:$0xff]   ;;  %v3085_v54 = vld [vmem:[%s4408_s1 + $0x1b4] ss:$8 sps:$4 sm:$0xff]  }
  0x35   :  { %2208 = vmatprep.subr.bf16.mxu0 %v2995_v55  ;;  %v3088_v55 = vld [vmem:[%s4408_s1 + $0x5b4] ss:$8 sps:$4 sm:$0xff]  }
  0x37   :  { %1997 = vmatpush1.bf16.msra.mxu1 %v2997_v56  ;;  %v3083_v56 = vld [vmem:[%s4408_s1 + $0x1b0] ss:$8 sps:$4 sm:$0xff]  }
  0x38   :  { %2209 = vmatpush1.bf16.msra.mxu0 %v2998_v57  ;;  %1998 = vmatprep.subr.bf16.mxu1 %v2999_v58  ;;  %v3086_v57 = vld [vmem:[%s4408_s1 + $0x5b0] ss:$8 sps:$4 sm:$0xff]   ;;  %v3091_v58 = vld [vmem:[%s4408_s1 + $0x1c4] ss:$8 sps:$4 sm:$0xff]  }
  0x39   :  { %2210 = vmatprep.subr.bf16.mxu0 %v3001_v59  ;;  %v3094_v59 = vld [vmem:[%s4408_s1 + $0x5c4] ss:$8 sps:$4 sm:$0xff]  }
  0x3b   :  { %1999 = vmatpush1.bf16.msra.mxu1 %v3003_v60  ;;  %v3089_v60 = vld [vmem:[%s4408_s1 + $0x1c0] ss:$8 sps:$4 sm:$0xff]  }
  0x3c   :  { %2211 = vmatpush1.bf16.msra.mxu0 %v3004_v61  ;;  %2000 = vmatprep.subr.bf16.mxu1 %v3005_v62  ;;  %v3092_v61 = vld [vmem:[%s4408_s1 + $0x5c0] ss:$8 sps:$4 sm:$0xff]   ;;  %v3097_v62 = vld [vmem:[%s4408_s1 + $0x1d4] ss:$8 sps:$4 sm:$0xff]  }
  0x3d   :  { %2212 = vmatprep.subr.bf16.mxu0 %v3007_v63  ;;  %v3100_v63 = vld [vmem:[%s4408_s1 + $0x5d4] ss:$8 sps:$4 sm:$0xff]  }
  0x3f   :  { %2001 = vmatpush1.bf16.msra.mxu1 %v3009_v0  ;;  %v3095_v0 = vld [vmem:[%s4408_s1 + $0x1d0] ss:$8 sps:$4 sm:$0xff]  }
  0x40   :  { %2213 = vmatpush1.bf16.msra.mxu0 %v3010_v1  ;;  %2023 = vmatprep.subr.bf16.mxu1 %v3016_v2  ;;  %v3098_v1 = vld [vmem:[%s4408_s1 + $0x5d0] ss:$8 sps:$4 sm:$0xff]   ;;  %v3105_v2 = vld [vmem:[%s4408_s1 + $0x1e4] ss:$8 sps:$4 sm:$0xff]  }
  0x41   :  { %2235 = vmatprep.subr.bf16.mxu0 %v3022_v3  ;;  %v3110_v3 = vld [vmem:[%s4408_s1 + $0x5e4] ss:$8 sps:$4 sm:$0xff]  }
  0x42   :  { %2003 = vmatmul.mubr.bf16.vlgmr.msra.gmra.mrb[0].mxu1 %v3011_v4  ;;  %v3103_v4 = vld [vmem:[%s4408_s1 + $0x1e0] ss:$8 sps:$4 sm:$0xff]  }
  0x43   :  { %2215 = vmatmul.mubr.bf16.vlgmr.msra.gmra.mrb[0].mxu0 %v3017_v6  ;;  %2024 = vmatpush1.bf16.msra.mxu1 %v3014_v5  ;;  %v3108_v5 = vld [vmem:[%s4408_s1 + $0x5e0] ss:$8 sps:$4 sm:$0xff]   ;;  %v3115_v6 = vld [vmem:[%s4408_s1 + $0x1f4] ss:$8 sps:$4 sm:$0xff]  }
  0x44   :  { %2236 = vmatpush1.bf16.msra.mxu0 %v3020_v7  ;;  %2025 = vmatprep.subr.bf16.mxu1 %v3025_v8  ;;  %v3118_v7 = vld [vmem:[%s4408_s1 + $0x5f4] ss:$8 sps:$4 sm:$0xff]   ;;  %v3113_v8 = vld [vmem:[%s4408_s1 + $0x1f0] ss:$8 sps:$4 sm:$0xff]  }
  0x45   :  { %2237 = vmatprep.subr.bf16.mxu0 %v3028_v9  ;;  %2012 = vmatprep.mubr.bf16.mxu1 %v3101_v28  ;;  %v3116_v9 = vld [vmem:[%s4408_s1 + $0x5f0] ss:$8 sps:$4 sm:$0xff]   ;;  %v3145_v28 = vld [vmem:[%s4408_s1 + $0x234] ss:$8 sps:$4 sm:$0xff]  }
  0x46   :  { %2224 = vmatprep.mubr.bf16.mxu0 %v3106_v31  ;;  %v3146_v31 = vld [vmem:[%s4408_s1 + $0x630] ss:$8 sps:$4 sm:$0xff]  }
  0x47   :  { %2026 = vmatpush1.bf16.msra.mxu1 %v3023_v10  ;;  %v3124_v10 = vld [vmem:[%s4408_s1 + $0x204] ss:$8 sps:$4 sm:$0xff]  }
  0x48   :  { %2238 = vmatpush1.bf16.msra.mxu0 %v3026_v11  ;;  %2027 = vmatprep.subr.bf16.mxu1 %v3031_v12  ;;  %v3130_v11 = vld [vmem:[%s4408_s1 + $0x604] ss:$8 sps:$4 sm:$0xff]   ;;  %v3119_v12 = vld [vmem:[%s4409_s0 + $0x8] ss:$72 sps:$4 sm:$0xff]  }
  0x49   :  { %2239 = vmatprep.subr.bf16.mxu0 %v3034_v13  ;;  %v3122_v13 = vld [vmem:[%s4408_s1 + $0x200] ss:$8 sps:$4 sm:$0xff]  }
  0x4a   :  { %2013 = vmatmul.mubr.bf16.gmra.mrb[4].mxu1 %v3111_v34  ;;  %v3154_v34 = vld [vmem:[%s4408_s1 + $0x644] ss:$8 sps:$4 sm:$0xff]  }
  0x4b   :  { %2028 = vmatpush1.bf16.msra.mxu1 %v3029_v14  ;;  %2225 = vmatmul.mubr.bf16.gmra.mrb[4].mxu0 %v3112_v35  ;;  %v3125_v14 = vld [vmem:[%s4409_s0 + $0x28] ss:$72 sps:$4 sm:$0xff]   ;;  %v3235_v35 = vld [vmem:[%s4409_s0 + $0x34] ss:$72 sps:$4 sm:$0xff]  }
  0x4c   :  { %2240 = vmatpush1.bf16.msra.mxu0 %v3032_v15  ;;  %2029 = vmatprep.subr.bf16.mxu1 %v3037_v16  ;;  %v3128_v15 = vld [vmem:[%s4408_s1 + $0x600] ss:$8 sps:$4 sm:$0xff]   ;;  %v3133_v16 = vld [vmem:[%s4408_s1 + $0x214] ss:$8 sps:$4 sm:$0xff]  }
  0x4d   :  { %2241 = vmatprep.subr.bf16.mxu0 %v3040_v17  ;;  %2055 = vmatprep.mubr.bf16.mxu1 %v3121_v40  ;;  %v3136_v17 = vld [vmem:[%s4408_s1 + $0x614] ss:$8 sps:$4 sm:$0xff]   ;;  %v3155_v40 = vld [vmem:[%s4408_s1 + $0x250] ss:$8 sps:$4 sm:$0xff]  }
  0x4e   :  { %2267 = vmatprep.mubr.bf16.mxu0 %v3127_v43  ;;  %v3166_v43 = vld [vmem:[%s4408_s1 + $0x664] ss:$8 sps:$4 sm:$0xff]  }
  0x4f   :  { %2030 = vmatpush1.bf16.msra.mxu1 %v3035_v18  ;;  %v3131_v18 = vld [vmem:[%s4408_s1 + $0x210] ss:$8 sps:$4 sm:$0xff]  }
  0x50   :  { %2242 = vmatpush1.bf16.msra.mxu0 %v3038_v19  ;;  %2031 = vmatprep.subr.bf16.mxu1 %v3043_v20  ;;  %v3134_v19 = vld [vmem:[%s4408_s1 + $0x610] ss:$8 sps:$4 sm:$0xff]   ;;  %v3209_v20 = vld [vmem:[%s4409_s0 + $0x9c] ss:$72 sps:$4 sm:$0xff]  }
  0x51   :  { %2243 = vmatprep.subr.bf16.mxu0 %v3046_v21  ;;  %v3139_v21 = vld [vmem:[%s4408_s1 + $0x224] ss:$8 sps:$4 sm:$0xff]  }
  0x53   :  { %2032 = vmatpush1.bf16.msra.mxu1 %v3041_v22  ;;  %v3142_v22 = vld [vmem:[%s4408_s1 + $0x624] ss:$8 sps:$4 sm:$0xff]  }
  0x54   :  { %2244 = vmatpush1.bf16.msra.mxu0 %v3044_v23  ;;  %2033 = vmatprep.subr.bf16.mxu1 %v3049_v24  ;;  %v3214_v23 = vld [vmem:[%s4409_s0 + $0xbc] ss:$72 sps:$4 sm:$0xff]   ;;  %v3137_v24 = vld [vmem:[%s4408_s1 + $0x220] ss:$8 sps:$4 sm:$0xff]  }
  0x55   :  { %2245 = vmatprep.subr.bf16.mxu0 %v3052_v25  ;;  %v3140_v25 = vld [vmem:[%s4408_s1 + $0x620] ss:$8 sps:$4 sm:$0xff]  }
  0x57   :  { %2034 = vmatpush1.bf16.msra.mxu1 %v3047_v26  ;;  %v3219_v26 = vld [vmem:[%s4409_s0 + $0x98] ss:$72 sps:$4 sm:$0xff]  }
  0x58   :  { %2246 = vmatpush1.bf16.msra.mxu0 %v3050_v27  ;;  %2035 = vmatprep.subr.bf16.mxu1 %v3055_v29  ;;  %v3220_v27 = vld [vmem:[%s4409_s0 + $0xb8] ss:$72 sps:$4 sm:$0xff]   ;;  %v3148_v29 = vld [vmem:[%s4408_s1 + $0x634] ss:$8 sps:$4 sm:$0xff]  }
  0x59   :  { %2247 = vmatprep.subr.bf16.mxu0 %v3058_v30  ;;  %v3143_v30 = vld [vmem:[%s4408_s1 + $0x230] ss:$8 sps:$4 sm:$0xff]  }
  0x5b   :  { %2036 = vmatpush1.bf16.msra.mxu1 %v3053_v32  ;;  %v3229_v32 = vld [vmem:[%s4409_s0 + $0x14] ss:$72 sps:$4 sm:$0xff]  }
  0x5c   :  { %2248 = vmatpush1.bf16.msra.mxu0 %v3056_v33  ;;  %2037 = vmatprep.subr.bf16.mxu1 %v3061_v36  ;;  %v3151_v33 = vld [vmem:[%s4408_s1 + $0x244] ss:$8 sps:$4 sm:$0xff]   ;;  %v3149_v36 = vld [vmem:[%s4408_s1 + $0x240] ss:$8 sps:$4 sm:$0xff]  }
  0x5d   :  { %2249 = vmatprep.subr.bf16.mxu0 %v3064_v37  ;;  %v3152_v37 = vld [vmem:[%s4408_s1 + $0x640] ss:$8 sps:$4 sm:$0xff]  }
  0x5f   :  { %2038 = vmatpush1.bf16.msra.mxu1 %v3059_v38  ;;  %v3157_v38 = vld [vmem:[%s4408_s1 + $0x254] ss:$8 sps:$4 sm:$0xff]  }
  0x60   :  { %2250 = vmatpush1.bf16.msra.mxu0 %v3062_v39  ;;  %2039 = vmatprep.subr.bf16.mxu1 %v3067_v41  ;;  %v3160_v39 = vld [vmem:[%s4408_s1 + $0x654] ss:$8 sps:$4 sm:$0xff]   ;;  %v3158_v41 = vld [vmem:[%s4408_s1 + $0x650] ss:$8 sps:$4 sm:$0xff]  }
  0x61   :  { %2251 = vmatprep.subr.bf16.mxu0 %v3070_v42  ;;  %v3163_v42 = vld [vmem:[%s4408_s1 + $0x264] ss:$8 sps:$4 sm:$0xff]  }
  0x63   :  { %2040 = vmatpush1.bf16.msra.mxu1 %v3065_v44  ;;  %v3161_v44 = vld [vmem:[%s4408_s1 + $0x260] ss:$8 sps:$4 sm:$0xff]  }
  0x64   :  { %2252 = vmatpush1.bf16.msra.mxu0 %v3068_v45  ;;  %2041 = vmatprep.subr.bf16.mxu1 %v3073_v46  ;;  %v3164_v45 = vld [vmem:[%s4408_s1 + $0x660] ss:$8 sps:$4 sm:$0xff]   ;;  %v3169_v46 = vld [vmem:[%s4408_s1 + $0x274] ss:$8 sps:$4 sm:$0xff]  }
  0x65   :  { %2253 = vmatprep.subr.bf16.mxu0 %v3076_v47  ;;  %v3172_v47 = vld [vmem:[%s4408_s1 + $0x674] ss:$8 sps:$4 sm:$0xff]  }
  0x67   :  { %2042 = vmatpush1.bf16.msra.mxu1 %v3071_v48  ;;  %v3167_v48 = vld [vmem:[%s4408_s1 + $0x270] ss:$8 sps:$4 sm:$0xff]  }
  0x68   :  { %2254 = vmatpush1.bf16.msra.mxu0 %v3074_v49  ;;  %2043 = vmatprep.subr.bf16.mxu1 %v3079_v50  ;;  %v3170_v49 = vld [vmem:[%s4408_s1 + $0x670] ss:$8 sps:$4 sm:$0xff]   ;;  %v3175_v50 = vld [vmem:[%s4408_s1 + $0x284] ss:$8 sps:$4 sm:$0xff]  }
  0x69   :  { %2255 = vmatprep.subr.bf16.mxu0 %v3082_v51  ;;  %v3178_v51 = vld [vmem:[%s4408_s1 + $0x684] ss:$8 sps:$4 sm:$0xff]  }
  0x6b   :  { %2044 = vmatpush1.bf16.msra.mxu1 %v3077_v52  ;;  %v3173_v52 = vld [vmem:[%s4408_s1 + $0x280] ss:$8 sps:$4 sm:$0xff]  }
  0x6c   :  { %2256 = vmatpush1.bf16.msra.mxu0 %v3080_v53  ;;  %2045 = vmatprep.subr.bf16.mxu1 %v3085_v54  ;;  %v3176_v53 = vld [vmem:[%s4408_s1 + $0x680] ss:$8 sps:$4 sm:$0xff]   ;;  %v3181_v54 = vld [vmem:[%s4408_s1 + $0x294] ss:$8 sps:$4 sm:$0xff]  }
  0x6d   :  { %2257 = vmatprep.subr.bf16.mxu0 %v3088_v55  ;;  %v3184_v55 = vld [vmem:[%s4408_s1 + $0x694] ss:$8 sps:$4 sm:$0xff]  }
  0x6f   :  { %2046 = vmatpush1.bf16.msra.mxu1 %v3083_v56  ;;  %v3179_v56 = vld [vmem:[%s4408_s1 + $0x290] ss:$8 sps:$4 sm:$0xff]  }
  0x70   :  { %2258 = vmatpush1.bf16.msra.mxu0 %v3086_v57  ;;  %2047 = vmatprep.subr.bf16.mxu1 %v3091_v58  ;;  %v3182_v57 = vld [vmem:[%s4408_s1 + $0x690] ss:$8 sps:$4 sm:$0xff]   ;;  %v3187_v58 = vld [vmem:[%s4408_s1 + $0x2a4] ss:$8 sps:$4 sm:$0xff]  }
  0x71   :  { %2259 = vmatprep.subr.bf16.mxu0 %v3094_v59  ;;  %v3190_v59 = vld [vmem:[%s4408_s1 + $0x6a4] ss:$8 sps:$4 sm:$0xff]  }
  0x73   :  { %2048 = vmatpush1.bf16.msra.mxu1 %v3089_v60  ;;  %v3185_v60 = vld [vmem:[%s4408_s1 + $0x2a0] ss:$8 sps:$4 sm:$0xff]  }
  0x74   :  { %2260 = vmatpush1.bf16.msra.mxu0 %v3092_v61  ;;  %2049 = vmatprep.subr.bf16.mxu1 %v3097_v62  ;;  %v3188_v61 = vld [vmem:[%s4408_s1 + $0x6a0] ss:$8 sps:$4 sm:$0xff]   ;;  %v3193_v62 = vld [vmem:[%s4408_s1 + $0x2b4] ss:$8 sps:$4 sm:$0xff]  }
  0x75   :  { %2261 = vmatprep.subr.bf16.mxu0 %v3100_v63  ;;  %v3196_v63 = vld [vmem:[%s4408_s1 + $0x6b4] ss:$8 sps:$4 sm:$0xff]  }
  0x77   :  { %2050 = vmatpush1.bf16.msra.mxu1 %v3095_v0  ;;  %v3191_v0 = vld [vmem:[%s4408_s1 + $0x2b0] ss:$8 sps:$4 sm:$0xff]  }
  0x78   :  { %2262 = vmatpush1.bf16.msra.mxu0 %v3098_v1  ;;  %2051 = vmatprep.subr.bf16.mxu1 %v3105_v2  ;;  %v3194_v1 = vld [vmem:[%s4408_s1 + $0x6b0] ss:$8 sps:$4 sm:$0xff]   ;;  %v3199_v2 = vld [vmem:[%s4408_s1 + $0x2c4] ss:$8 sps:$4 sm:$0xff]  }
  0x79   :  { %2263 = vmatprep.subr.bf16.mxu0 %v3110_v3  ;;  %v3202_v3 = vld [vmem:[%s4408_s1 + $0x6c4] ss:$8 sps:$4 sm:$0xff]  }
  0x7b   :  { %2052 = vmatpush1.bf16.msra.mxu1 %v3103_v4  ;;  %v3197_v4 = vld [vmem:[%s4408_s1 + $0x2c0] ss:$8 sps:$4 sm:$0xff]  }
  0x7c   :  { %2264 = vmatpush1.bf16.msra.mxu0 %v3108_v5  ;;  %2053 = vmatprep.subr.bf16.mxu1 %v3115_v6  ;;  %v3200_v5 = vld [vmem:[%s4408_s1 + $0x6c0] ss:$8 sps:$4 sm:$0xff]   ;;  %v3205_v6 = vld [vmem:[%s4408_s1 + $0x2d4] ss:$8 sps:$4 sm:$0xff]  }
  0x7d   :  { %2265 = vmatprep.subr.bf16.mxu0 %v3118_v7  ;;  %v3208_v7 = vld [vmem:[%s4408_s1 + $0x6d4] ss:$8 sps:$4 sm:$0xff]  }
  0x7f   :  { %2054 = vmatpush1.bf16.msra.mxu1 %v3113_v8  ;;  %v3203_v8 = vld [vmem:[%s4408_s1 + $0x2d0] ss:$8 sps:$4 sm:$0xff]  }
  0x80   :  { %2266 = vmatpush1.bf16.msra.mxu0 %v3116_v9  ;;  %2076 = vmatprep.subr.bf16.mxu1 %v3124_v10  ;;  %v3206_v9 = vld [vmem:[%s4408_s1 + $0x6d0] ss:$8 sps:$4 sm:$0xff]   ;;  %v3213_v10 = vld [vmem:[%s4408_s1 + $0x2e4] ss:$8 sps:$4 sm:$0xff]  }
  0x81   :  { %2288 = vmatprep.subr.bf16.mxu0 %v3130_v11  ;;  %v3218_v11 = vld [vmem:[%s4408_s1 + $0x6e4] ss:$8 sps:$4 sm:$0xff]  }
  0x82   :  { %2056 = vmatmul.mubr.bf16.vlgmr.msra.gmra.mrb[0].mxu1 %v3119_v12  ;;  %v3211_v12 = vld [vmem:[%s4408_s1 + $0x2e0] ss:$8 sps:$4 sm:$0xff]  }
  0x83   :  { %2268 = vmatmul.mubr.bf16.vlgmr.msra.gmra.mrb[0].mxu0 %v3125_v14  ;;  %2077 = vmatpush1.bf16.msra.mxu1 %v3122_v13  ;;  %v3216_v13 = vld [vmem:[%s4408_s1 + $0x6e0] ss:$8 sps:$4 sm:$0xff]   ;;  %v3223_v14 = vld [vmem:[%s4408_s1 + $0x2f4] ss:$8 sps:$4 sm:$0xff]  }
  0x84   :  { %2289 = vmatpush1.bf16.msra.mxu0 %v3128_v15  ;;  %2078 = vmatprep.subr.bf16.mxu1 %v3133_v16  ;;  %v3226_v15 = vld [vmem:[%s4408_s1 + $0x6f4] ss:$8 sps:$4 sm:$0xff]   ;;  %v3221_v16 = vld [vmem:[%s4408_s1 + $0x2f0] ss:$8 sps:$4 sm:$0xff]  }
  0x85   :  { %2290 = vmatprep.subr.bf16.mxu0 %v3136_v17  ;;  %2065 = vmatprep.mubr.bf16.mxu1 %v3209_v20  ;;  %v3224_v17 = vld [vmem:[%s4408_s1 + $0x6f0] ss:$8 sps:$4 sm:$0xff]  }
  0x86   :  { %2277 = vmatprep.mubr.bf16.mxu0 %v3214_v23  ;;  %v3227_v20 = vld [vmem:[%s4409_s0 + $0x10] ss:$72 sps:$4 sm:$0xff]   ;;  %v3236_v23 = vld [vmem:[%s4408_s1 + $0x700] ss:$8 sps:$4 sm:$0xff]  }
  0x87   :  { %2079 = vmatpush1.bf16.msra.mxu1 %v3131_v18  ;;  %v3232_v18 = vld [vmem:[%s4408_s1 + $0x304] ss:$8 sps:$4 sm:$0xff]  }
  0x88   :  { %2291 = vmatpush1.bf16.msra.mxu0 %v3134_v19  ;;  %2080 = vmatprep.subr.bf16.mxu1 %v3139_v21  ;;  %v3238_v19 = vld [vmem:[%s4408_s1 + $0x704] ss:$8 sps:$4 sm:$0xff]   ;;  %v3230_v21 = vld [vmem:[%s4408_s1 + $0x300] ss:$8 sps:$4 sm:$0xff]  }
  0x89   :  { %2292 = vmatprep.subr.bf16.mxu0 %v3142_v22  ;;  %v3233_v22 = vld [vmem:[%s4409_s0 + $0x30] ss:$72 sps:$4 sm:$0xff]  }
  0x8a   :  { %2066 = vmatmul.mubr.bf16.gmra.mrb[4].mxu1 %v3219_v26  ;;  %v3317_v26 = vld [vmem:[%s4409_s0 + $0xa4] ss:$72 sps:$4 sm:$0xff]  }
  0x8b   :  { %2278 = vmatmul.mubr.bf16.gmra.mrb[4].mxu0 %v3220_v27  ;;  %2081 = vmatpush1.bf16.msra.mxu1 %v3137_v24  ;;  %v3241_v24 = vld [vmem:[%s4408_s1 + $0x314] ss:$8 sps:$4 sm:$0xff]   ;;  %v3319_v27 = vld [vmem:[%s4409_s0 + $0xc4] ss:$72 sps:$4 sm:$0xff]  }
  0x8c   :  { %2293 = vmatpush1.bf16.msra.mxu0 %v3140_v25  ;;  %2082 = vmatprep.subr.bf16.mxu1 %v3145_v28  ;;  %v3244_v25 = vld [vmem:[%s4408_s1 + $0x714] ss:$8 sps:$4 sm:$0xff]   ;;  %v3239_v28 = vld [vmem:[%s4408_s1 + $0x310] ss:$8 sps:$4 sm:$0xff]  }
  0x8d   :  { %2294 = vmatprep.subr.bf16.mxu0 %v3148_v29  ;;  %2108 = vmatprep.mubr.bf16.mxu1 %v3229_v32  ;;  %v3242_v29 = vld [vmem:[%s4408_s1 + $0x710] ss:$8 sps:$4 sm:$0xff]   ;;  %v3245_v32 = vld [vmem:[%s4408_s1 + $0x320] ss:$8 sps:$4 sm:$0xff]  }
  0x8e   :  { %2320 = vmatprep.mubr.bf16.mxu0 %v3235_v35  ;;  %v3325_v35 = vld [vmem:[%s4409_s0 + $0xc0] ss:$72 sps:$4 sm:$0xff]  }
  0x8f   :  { %2083 = vmatpush1.bf16.msra.mxu1 %v3143_v30  ;;  %v3247_v30 = vld [vmem:[%s4408_s1 + $0x324] ss:$8 sps:$4 sm:$0xff]  }
  0x90   :  { %2295 = vmatpush1.bf16.msra.mxu0 %v3146_v31  ;;  %2084 = vmatprep.subr.bf16.mxu1 %v3151_v33  ;;  %v3250_v31 = vld [vmem:[%s4408_s1 + $0x724] ss:$8 sps:$4 sm:$0xff]   ;;  %v3248_v33 = vld [vmem:[%s4408_s1 + $0x720] ss:$8 sps:$4 sm:$0xff]  }
  0x91   :  { %2296 = vmatprep.subr.bf16.mxu0 %v3154_v34  ;;  %v3321_v34 = vld [vmem:[%s4409_s0 + $0xa0] ss:$72 sps:$4 sm:$0xff]  }
  0x93   :  { %2085 = vmatpush1.bf16.msra.mxu1 %v3149_v36  ;;  %v3253_v36 = vld [vmem:[%s4408_s1 + $0x334] ss:$8 sps:$4 sm:$0xff]  }
  0x94   :  { %2297 = vmatpush1.bf16.msra.mxu0 %v3152_v37  ;;  %2086 = vmatprep.subr.bf16.mxu1 %v3157_v38  ;;  %v3256_v37 = vld [vmem:[%s4408_s1 + $0x734] ss:$8 sps:$4 sm:$0xff]  }
  0x95   :  { %2298 = vmatprep.subr.bf16.mxu0 %v3160_v39  ;;  %v3337_v38 = vld [vmem:[%s4409_s0 + $0x1c] ss:$72 sps:$4 sm:$0xff]  }
  0x96   :  { %v3340_v39 = vld [vmem:[%s4409_s0 + $0x3c] ss:$72 sps:$4 sm:$0xff]  }
  0x97   :  { %2087 = vmatpush1.bf16.msra.mxu1 %v3155_v40  ;;  %v3251_v40 = vld [vmem:[%s4408_s1 + $0x330] ss:$8 sps:$4 sm:$0xff]  }
  0x98   :  { %2299 = vmatpush1.bf16.msra.mxu0 %v3158_v41  ;;  %2088 = vmatprep.subr.bf16.mxu1 %v3163_v42  ;;  %v3254_v41 = vld [vmem:[%s4408_s1 + $0x730] ss:$8 sps:$4 sm:$0xff]   ;;  %v3259_v42 = vld [vmem:[%s4408_s1 + $0x344] ss:$8 sps:$4 sm:$0xff]  }
  0x99   :  { %2300 = vmatprep.subr.bf16.mxu0 %v3166_v43  ;;  %v3262_v43 = vld [vmem:[%s4408_s1 + $0x744] ss:$8 sps:$4 sm:$0xff]  }
  0x9b   :  { %2089 = vmatpush1.bf16.msra.mxu1 %v3161_v44  ;;  %v3257_v44 = vld [vmem:[%s4408_s1 + $0x340] ss:$8 sps:$4 sm:$0xff]  }
  0x9c   :  { %2301 = vmatpush1.bf16.msra.mxu0 %v3164_v45  ;;  %2090 = vmatprep.subr.bf16.mxu1 %v3169_v46  ;;  %v3260_v45 = vld [vmem:[%s4408_s1 + $0x740] ss:$8 sps:$4 sm:$0xff]   ;;  %v3265_v46 = vld [vmem:[%s4408_s1 + $0x354] ss:$8 sps:$4 sm:$0xff]  }
  0x9d   :  { %2302 = vmatprep.subr.bf16.mxu0 %v3172_v47  ;;  %v3268_v47 = vld [vmem:[%s4408_s1 + $0x754] ss:$8 sps:$4 sm:$0xff]  }
  0x9f   :  { %2091 = vmatpush1.bf16.msra.mxu1 %v3167_v48  ;;  %v3263_v48 = vld [vmem:[%s4408_s1 + $0x350] ss:$8 sps:$4 sm:$0xff]  }
  0xa0   :  { %2303 = vmatpush1.bf16.msra.mxu0 %v3170_v49  ;;  %2092 = vmatprep.subr.bf16.mxu1 %v3175_v50  ;;  %v3266_v49 = vld [vmem:[%s4408_s1 + $0x750] ss:$8 sps:$4 sm:$0xff]   ;;  %v3271_v50 = vld [vmem:[%s4408_s1 + $0x364] ss:$8 sps:$4 sm:$0xff]  }
  0xa1   :  { %2304 = vmatprep.subr.bf16.mxu0 %v3178_v51  ;;  %v3274_v51 = vld [vmem:[%s4408_s1 + $0x764] ss:$8 sps:$4 sm:$0xff]  }
  0xa3   :  { %2093 = vmatpush1.bf16.msra.mxu1 %v3173_v52  ;;  %v3269_v52 = vld [vmem:[%s4408_s1 + $0x360] ss:$8 sps:$4 sm:$0xff]  }
  0xa4   :  { %2305 = vmatpush1.bf16.msra.mxu0 %v3176_v53  ;;  %2094 = vmatprep.subr.bf16.mxu1 %v3181_v54  ;;  %v3272_v53 = vld [vmem:[%s4408_s1 + $0x760] ss:$8 sps:$4 sm:$0xff]   ;;  %v3277_v54 = vld [vmem:[%s4408_s1 + $0x374] ss:$8 sps:$4 sm:$0xff]  }
  0xa5   :  { %2306 = vmatprep.subr.bf16.mxu0 %v3184_v55  ;;  %v3280_v55 = vld [vmem:[%s4408_s1 + $0x774] ss:$8 sps:$4 sm:$0xff]  }
  0xa7   :  { %2095 = vmatpush1.bf16.msra.mxu1 %v3179_v56  ;;  %v3275_v56 = vld [vmem:[%s4408_s1 + $0x370] ss:$8 sps:$4 sm:$0xff]  }
  0xa8   :  { %2307 = vmatpush1.bf16.msra.mxu0 %v3182_v57  ;;  %2096 = vmatprep.subr.bf16.mxu1 %v3187_v58  ;;  %v3278_v57 = vld [vmem:[%s4408_s1 + $0x770] ss:$8 sps:$4 sm:$0xff]   ;;  %v3283_v58 = vld [vmem:[%s4408_s1 + $0x384] ss:$8 sps:$4 sm:$0xff]  }
  0xa9   :  { %2308 = vmatprep.subr.bf16.mxu0 %v3190_v59  ;;  %v3286_v59 = vld [vmem:[%s4408_s1 + $0x784] ss:$8 sps:$4 sm:$0xff]  }
  0xab   :  { %2097 = vmatpush1.bf16.msra.mxu1 %v3185_v60  ;;  %v3281_v60 = vld [vmem:[%s4408_s1 + $0x380] ss:$8 sps:$4 sm:$0xff]  }
  0xac   :  { %2309 = vmatpush1.bf16.msra.mxu0 %v3188_v61  ;;  %2098 = vmatprep.subr.bf16.mxu1 %v3193_v62  ;;  %v3284_v61 = vld [vmem:[%s4408_s1 + $0x780] ss:$8 sps:$4 sm:$0xff]   ;;  %v3289_v62 = vld [vmem:[%s4408_s1 + $0x394] ss:$8 sps:$4 sm:$0xff]  }
  0xad   :  { %2310 = vmatprep.subr.bf16.mxu0 %v3196_v63  ;;  %v3292_v63 = vld [vmem:[%s4408_s1 + $0x794] ss:$8 sps:$4 sm:$0xff]  }
  0xaf   :  { %2099 = vmatpush1.bf16.msra.mxu1 %v3191_v0  ;;  %v3287_v0 = vld [vmem:[%s4408_s1 + $0x390] ss:$8 sps:$4 sm:$0xff]  }
  0xb0   :  { %2311 = vmatpush1.bf16.msra.mxu0 %v3194_v1  ;;  %2100 = vmatprep.subr.bf16.mxu1 %v3199_v2  ;;  %v3290_v1 = vld [vmem:[%s4408_s1 + $0x790] ss:$8 sps:$4 sm:$0xff]   ;;  %v3295_v2 = vld [vmem:[%s4408_s1 + $0x3a4] ss:$8 sps:$4 sm:$0xff]  }
  0xb1   :  { %2312 = vmatprep.subr.bf16.mxu0 %v3202_v3  ;;  %v3298_v3 = vld [vmem:[%s4408_s1 + $0x7a4] ss:$8 sps:$4 sm:$0xff]  }
  0xb3   :  { %2101 = vmatpush1.bf16.msra.mxu1 %v3197_v4  ;;  %v3293_v4 = vld [vmem:[%s4408_s1 + $0x3a0] ss:$8 sps:$4 sm:$0xff]  }
  0xb4   :  { %2313 = vmatpush1.bf16.msra.mxu0 %v3200_v5  ;;  %2102 = vmatprep.subr.bf16.mxu1 %v3205_v6  ;;  %v3296_v5 = vld [vmem:[%s4408_s1 + $0x7a0] ss:$8 sps:$4 sm:$0xff]   ;;  %v3301_v6 = vld [vmem:[%s4408_s1 + $0x3b4] ss:$8 sps:$4 sm:$0xff]  }
  0xb5   :  { %2314 = vmatprep.subr.bf16.mxu0 %v3208_v7  ;;  %v3304_v7 = vld [vmem:[%s4408_s1 + $0x7b4] ss:$8 sps:$4 sm:$0xff]  }
  0xb7   :  { %2103 = vmatpush1.bf16.msra.mxu1 %v3203_v8  ;;  %v3299_v8 = vld [vmem:[%s4408_s1 + $0x3b0] ss:$8 sps:$4 sm:$0xff]  }
  0xb8   :  { %2315 = vmatpush1.bf16.msra.mxu0 %v3206_v9  ;;  %2104 = vmatprep.subr.bf16.mxu1 %v3213_v10  ;;  %v3302_v9 = vld [vmem:[%s4408_s1 + $0x7b0] ss:$8 sps:$4 sm:$0xff]   ;;  %v3307_v10 = vld [vmem:[%s4408_s1 + $0x3c4] ss:$8 sps:$4 sm:$0xff]  }
  0xb9   :  { %2316 = vmatprep.subr.bf16.mxu0 %v3218_v11  ;;  %v3310_v11 = vld [vmem:[%s4408_s1 + $0x7c4] ss:$8 sps:$4 sm:$0xff]  }
  0xbb   :  { %2105 = vmatpush1.bf16.msra.mxu1 %v3211_v12  ;;  %v3305_v12 = vld [vmem:[%s4408_s1 + $0x3c0] ss:$8 sps:$4 sm:$0xff]  }
  0xbc   :  { %2317 = vmatpush1.bf16.msra.mxu0 %v3216_v13  ;;  %2106 = vmatprep.subr.bf16.mxu1 %v3223_v14  ;;  %v3308_v13 = vld [vmem:[%s4408_s1 + $0x7c0] ss:$8 sps:$4 sm:$0xff]   ;;  %v3313_v14 = vld [vmem:[%s4408_s1 + $0x3d4] ss:$8 sps:$4 sm:$0xff]  }
  0xbd   :  { %2318 = vmatprep.subr.bf16.mxu0 %v3226_v15  ;;  %v3316_v15 = vld [vmem:[%s4408_s1 + $0x7d4] ss:$8 sps:$4 sm:$0xff]  }
  0xbf   :  { %2107 = vmatpush1.bf16.msra.mxu1 %v3221_v16  ;;  %v3311_v16 = vld [vmem:[%s4408_s1 + $0x3d0] ss:$8 sps:$4 sm:$0xff]  }
  0xc0   :  { %2319 = vmatpush1.bf16.msra.mxu0 %v3224_v17  ;;  %2129 = vmatprep.subr.bf16.mxu1 %v3232_v18  ;;  %v3314_v17 = vld [vmem:[%s4408_s1 + $0x7d0] ss:$8 sps:$4 sm:$0xff]   ;;  %v3324_v18 = vld [vmem:[%s4408_s1 + $0x3e4] ss:$8 sps:$4 sm:$0xff]  }
  0xc1   :  { %2341 = vmatprep.subr.bf16.mxu0 %v3238_v19  ;;  %v3328_v19 = vld [vmem:[%s4408_s1 + $0x7e4] ss:$8 sps:$4 sm:$0xff]  }
  0xc2   :  { %2109 = vmatmul.mubr.bf16.vlgmr.msra.gmra.mrb[0].mxu1 %v3227_v20  ;;  %v3322_v20 = vld [vmem:[%s4408_s1 + $0x3e0] ss:$8 sps:$4 sm:$0xff]  }
  0xc3   :  { %2321 = vmatmul.mubr.bf16.vlgmr.msra.gmra.mrb[0].mxu0 %v3233_v22  ;;  %2130 = vmatpush1.bf16.msra.mxu1 %v3230_v21  ;;  %v3326_v21 = vld [vmem:[%s4408_s1 + $0x7e0] ss:$8 sps:$4 sm:$0xff]   ;;  %v3331_v22 = vld [vmem:[%s4408_s1 + $0x3f4] ss:$8 sps:$4 sm:$0xff]  }
  0xc4   :  { %2342 = vmatpush1.bf16.msra.mxu0 %v3236_v23  ;;  %2131 = vmatprep.subr.bf16.mxu1 %v3241_v24  ;;  %v3334_v23 = vld [vmem:[%s4408_s1 + $0x7f4] ss:$8 sps:$4 sm:$0xff]   ;;  %v3329_v24 = vld [vmem:[%s4408_s1 + $0x3f0] ss:$8 sps:$4 sm:$0xff]  }
  0xc5   :  { %2343 = vmatprep.subr.bf16.mxu0 %v3244_v25  ;;  %2118 = vmatprep.mubr.bf16.mxu1 %v3317_v26  ;;  %v3332_v25 = vld [vmem:[%s4408_s1 + $0x7f0] ss:$8 sps:$4 sm:$0xff]   ;;  %v3343_v26 = vld [vmem:[%s4408_s1 + $0x804] ss:$8 sps:$4 sm:$0xff]  }
  0xc6   :  { %2330 = vmatprep.mubr.bf16.mxu0 %v3319_v27  ;;  %v3335_v27 = vld [vmem:[%s4409_s0 + $0x18] ss:$72 sps:$4 sm:$0xff]  }
  0xc7   :  { %2132 = vmatpush1.bf16.msra.mxu1 %v3239_v28  ;;  %v3338_v28 = vld [vmem:[%s4409_s0 + $0x38] ss:$72 sps:$4 sm:$0xff]  }
  0xc8   :  { %2344 = vmatpush1.bf16.msra.mxu0 %v3242_v29  ;;  %2133 = vmatprep.subr.bf16.mxu1 %v3247_v30  ;;  %v3341_v29 = vld [vmem:[%s4408_s1 + $0x800] ss:$8 sps:$4 sm:$0xff]   ;;  %v3346_v30 = vld [vmem:[%s4408_s1 + $0x814] ss:$8 sps:$4 sm:$0xff]  }
  0xc9   :  { %2345 = vmatprep.subr.bf16.mxu0 %v3250_v31  ;;  %v3347_v31 = vld [vmem:[%s4409_s0 + $0xac] ss:$72 sps:$4 sm:$0xff]  }
  0xca   :  { %2119 = vmatmul.mubr.bf16.gmra.mrb[4].mxu1 %v3321_v34  ;;  %v3355_v34 = vld [vmem:[%s4408_s1 + $0x824] ss:$8 sps:$4 sm:$0xff]  }
  0xcb   :  { %2331 = vmatmul.mubr.bf16.gmra.mrb[4].mxu0 %v3325_v35  ;;  %2134 = vmatpush1.bf16.msra.mxu1 %v3245_v32  ;;  %v3349_v32 = vld [vmem:[%s4409_s0 + $0xcc] ss:$72 sps:$4 sm:$0xff]   ;;  %v3351_v35 = vld [vmem:[%s4409_s0 + $0xa8] ss:$72 sps:$4 sm:$0xff]  }
  0xcc   :  { %2346 = vmatpush1.bf16.msra.mxu0 %v3248_v33  ;;  %2135 = vmatprep.subr.bf16.mxu1 %v3253_v36  ;;  %v3344_v33 = vld [vmem:[%s4408_s1 + $0x810] ss:$8 sps:$4 sm:$0xff]  }
  0xcd   :  { %2347 = vmatprep.subr.bf16.mxu0 %v3256_v37  ;;  %2161 = vmatprep.mubr.bf16.mxu1 %v3337_v38  ;;  %v3352_v36 = vld [vmem:[%s4409_s0 + $0xc8] ss:$72 sps:$4 sm:$0xff]   ;;  %v3358_v38 = vld [vmem:[%s4408_s1 + $0x834] ss:$8 sps:$4 sm:$0xff]  }
  0xce   :  { %2373 = vmatprep.mubr.bf16.mxu0 %v3340_v39  ;;  %v3353_v37 = vld [vmem:[%s4408_s1 + $0x820] ss:$8 sps:$4 sm:$0xff]   ;;  %v3397_v39 = vld [vmem:[%s4409_s0 + $0x44] ss:$72 sps:$4 sm:$0xff]  }
  0xcf   :  { %2136 = vmatpush1.bf16.msra.mxu1 %v3251_v40  ;;  %v3400_v40 = vld [vmem:[%s4409_s0 + $0xd4] ss:$72 sps:$4 sm:$0xff]  }
  0xd0   :  { %2348 = vmatpush1.bf16.msra.mxu0 %v3254_v41  ;;  %2137 = vmatprep.subr.bf16.mxu1 %v3259_v42  ;;  %v3356_v41 = vld [vmem:[%s4408_s1 + $0x830] ss:$8 sps:$4 sm:$0xff]   ;;  %v3361_v42 = vld [vmem:[%s4408_s1 + $0x844] ss:$8 sps:$4 sm:$0xff]  }
  0xd1   :  { %2349 = vmatprep.subr.bf16.mxu0 %v3262_v43  ;;  %v3359_v43 = vld [vmem:[%s4408_s1 + $0x840] ss:$8 sps:$4 sm:$0xff]  }
  0xd3   :  { %2138 = vmatpush1.bf16.msra.mxu1 %v3257_v44  ;;  %v3364_v44 = vld [vmem:[%s4408_s1 + $0x854] ss:$8 sps:$4 sm:$0xff]  }
  0xd4   :  { %2350 = vmatpush1.bf16.msra.mxu0 %v3260_v45  ;;  %2139 = vmatprep.subr.bf16.mxu1 %v3265_v46  ;;  %v3362_v45 = vld [vmem:[%s4408_s1 + $0x850] ss:$8 sps:$4 sm:$0xff]   ;;  %v3367_v46 = vld [vmem:[%s4408_s1 + $0x864] ss:$8 sps:$4 sm:$0xff]  }
  0xd5   :  { %2351 = vmatprep.subr.bf16.mxu0 %v3268_v47  ;;  %v3365_v47 = vld [vmem:[%s4408_s1 + $0x860] ss:$8 sps:$4 sm:$0xff]  }
  0xd7   :  { %2140 = vmatpush1.bf16.msra.mxu1 %v3263_v48  ;;  %v3370_v48 = vld [vmem:[%s4408_s1 + $0x874] ss:$8 sps:$4 sm:$0xff]  }
  0xd8   :  { %2352 = vmatpush1.bf16.msra.mxu0 %v3266_v49  ;;  %2141 = vmatprep.subr.bf16.mxu1 %v3271_v50  ;;  %v3368_v49 = vld [vmem:[%s4408_s1 + $0x870] ss:$8 sps:$4 sm:$0xff]   ;;  %v3373_v50 = vld [vmem:[%s4408_s1 + $0x884] ss:$8 sps:$4 sm:$0xff]  }
  0xd9   :  { %2353 = vmatprep.subr.bf16.mxu0 %v3274_v51  ;;  %v3371_v51 = vld [vmem:[%s4408_s1 + $0x880] ss:$8 sps:$4 sm:$0xff]  }
  0xdb   :  { %2142 = vmatpush1.bf16.msra.mxu1 %v3269_v52  ;;  %v3376_v52 = vld [vmem:[%s4408_s1 + $0x894] ss:$8 sps:$4 sm:$0xff]  }
  0xdc   :  { %2354 = vmatpush1.bf16.msra.mxu0 %v3272_v53  ;;  %2143 = vmatprep.subr.bf16.mxu1 %v3277_v54  ;;  %v3374_v53 = vld [vmem:[%s4408_s1 + $0x890] ss:$8 sps:$4 sm:$0xff]   ;;  %v3379_v54 = vld [vmem:[%s4408_s1 + $0x8a4] ss:$8 sps:$4 sm:$0xff]  }
  0xdd   :  { %2355 = vmatprep.subr.bf16.mxu0 %v3280_v55  ;;  %v3377_v55 = vld [vmem:[%s4408_s1 + $0x8a0] ss:$8 sps:$4 sm:$0xff]  }
  0xdf   :  { %2144 = vmatpush1.bf16.msra.mxu1 %v3275_v56  ;;  %v3382_v56 = vld [vmem:[%s4408_s1 + $0x8b4] ss:$8 sps:$4 sm:$0xff]  }
  0xe0   :  { %2356 = vmatpush1.bf16.msra.mxu0 %v3278_v57  ;;  %2145 = vmatprep.subr.bf16.mxu1 %v3283_v58  ;;  %v3380_v57 = vld [vmem:[%s4408_s1 + $0x8b0] ss:$8 sps:$4 sm:$0xff]   ;;  %v3385_v58 = vld [vmem:[%s4408_s1 + $0x8c4] ss:$8 sps:$4 sm:$0xff]  }
  0xe1   :  { %2357 = vmatprep.subr.bf16.mxu0 %v3286_v59  ;;  %v3383_v59 = vld [vmem:[%s4408_s1 + $0x8c0] ss:$8 sps:$4 sm:$0xff]  }
  0xe3   :  { %2146 = vmatpush1.bf16.msra.mxu1 %v3281_v60  ;;  %v3388_v60 = vld [vmem:[%s4408_s1 + $0x8d4] ss:$8 sps:$4 sm:$0xff]  }
  0xe4   :  { %2358 = vmatpush1.bf16.msra.mxu0 %v3284_v61  ;;  %2147 = vmatprep.subr.bf16.mxu1 %v3289_v62  ;;  %v3386_v61 = vld [vmem:[%s4408_s1 + $0x8d0] ss:$8 sps:$4 sm:$0xff]   ;;  %v3391_v62 = vld [vmem:[%s4408_s1 + $0x8e4] ss:$8 sps:$4 sm:$0xff]  }
  0xe5   :  { %2359 = vmatprep.subr.bf16.mxu0 %v3292_v63  ;;  %v3389_v63 = vld [vmem:[%s4408_s1 + $0x8e0] ss:$8 sps:$4 sm:$0xff]  }
  0xe7   :  { %2148 = vmatpush1.bf16.msra.mxu1 %v3287_v0  ;;  %v3394_v0 = vld [vmem:[%s4408_s1 + $0x8f4] ss:$8 sps:$4 sm:$0xff]  }
  0xe8   :  { %2360 = vmatpush1.bf16.msra.mxu0 %v3290_v1  ;;  %2149 = vmatprep.subr.bf16.mxu1 %v3295_v2  ;;  %v3392_v1 = vld [vmem:[%s4408_s1 + $0x8f0] ss:$8 sps:$4 sm:$0xff]   ;;  %v3395_v2 = vld [vmem:[%s4409_s0 + $0x40] ss:$72 sps:$4 sm:$0xff]  }
  0xe9   :  { %2361 = vmatprep.subr.bf16.mxu0 %v3298_v3  ;;  %v3398_v3 = vld [vmem:[%s4409_s0 + $0xd0] ss:$72 sps:$4 sm:$0xff]  }
  0xeb   :  { %2150 = vmatpush1.bf16.msra.mxu1 %v3293_v4  ;;  %v340_v4 = vlaneseq }
  0xec   :  { %2362 = vmatpush1.bf16.msra.mxu0 %v3296_v5  ;;  %2151 = vmatprep.subr.bf16.mxu1 %v3301_v6 }
  0xed   :  { %2363 = vmatprep.subr.bf16.mxu0 %v3304_v7  ;;  %v341_v5 = vshrl.u32 %v340_v4, 7 }
  0xef   :  { %2152 = vmatpush1.bf16.msra.mxu1 %v3299_v8 }
  0xf0   :  { %2364 = vmatpush1.bf16.msra.mxu0 %v3302_v9  ;;  %2153 = vmatprep.subr.bf16.mxu1 %v3307_v10  ;;  %v342_v9 = vsub.s32 0, %v341_v5 }
  0xf1   :  { %2365 = vmatprep.subr.bf16.mxu0 %v3310_v11  ;;  %v338_v11 = vld [vmem:[%s4410_s2] sm:$0x3] }
  0xf3   :  { %2154 = vmatpush1.bf16.msra.mxu1 %v3305_v12  ;;  %v346_v12 = vsub.s32 1, %v341_v5 }
  0xf4   :  { %2366 = vmatpush1.bf16.msra.mxu0 %v3308_v13  ;;  %2155 = vmatprep.subr.bf16.mxu1 %v3313_v14  ;;  %v343_v13 = vrot.slane %v338_v11, %v342_v9 }
  0xf5   :  { %2367 = vmatprep.subr.bf16.mxu0 %v3316_v15  ;;  %v347_v14 = vrot.slane %v338_v11, %v346_v12 }
  0xf7   :  { %2156 = vmatpush1.bf16.msra.mxu1 %v3311_v16 }
  0xf8   :  { %2368 = vmatpush1.bf16.msra.mxu0 %v3314_v17  ;;  %2157 = vmatprep.subr.bf16.mxu1 %v3324_v18 }
  0xf9   :  { %2369 = vmatprep.subr.bf16.mxu0 %v3328_v19 }
  0xfb   :  { %2158 = vmatpush1.bf16.msra.mxu1 %v3322_v20 }
  0xfc   :  { %2370 = vmatpush1.bf16.msra.mxu0 %v3326_v21  ;;  %2159 = vmatprep.subr.bf16.mxu1 %v3331_v22 }
  0xfd   :  { %2371 = vmatprep.subr.bf16.mxu0 %v3334_v23 }
  0xff   :  { %2160 = vmatpush1.bf16.msra.mxu1 %v3329_v24 }
 0x100   :  { %2372 = vmatpush1.bf16.msra.mxu0 %v3332_v25  ;;  %2811 = vmatprep.subr.bf16.mxu1 %v3343_v26 }
 0x101   :  { %2394 = vmatprep.subr.bf16.mxu0 %v3343_v26 }
 0x102   :  { %2162 = vmatmul.mubr.bf16.vlgmr.msra.gmra.mrb[0].mxu1 %v3335_v27 }
 0x103   :  { %2374 = vmatmul.mubr.bf16.vlgmr.msra.gmra.mrb[0].mxu0 %v3338_v28  ;;  %2827 = vmatpush1.bf16.msra.mxu1 %v3341_v29 }
 0x104   :  { %2395 = vmatpush1.bf16.msra.mxu0 %v3341_v29  ;;  %2812 = vmatprep.subr.bf16.mxu1 %v3346_v30 }
 0x105   :  { %2396 = vmatprep.subr.bf16.mxu0 %v3346_v30  ;;  %2171 = vmatprep.mubr.bf16.mxu1 %v3347_v31 }
 0x106   :  { %2383 = vmatprep.mubr.bf16.mxu0 %v3349_v32 }
 0x107   :  { %2828 = vmatpush1.bf16.msra.mxu1 %v3344_v33 }
 0x108   :  { %2397 = vmatpush1.bf16.msra.mxu0 %v3344_v33  ;;  %2813 = vmatprep.subr.bf16.mxu1 %v3355_v34 }
 0x109   :  { %2398 = vmatprep.subr.bf16.mxu0 %v3355_v34 }
 0x10a   :  { %2172 = vmatmul.mubr.bf16.gmra.mrb[4].mxu1 %v3351_v35 }
 0x10b   :  { %2384 = vmatmul.mubr.bf16.gmra.mrb[4].mxu0 %v3352_v36  ;;  %2829 = vmatpush1.bf16.msra.mxu1 %v3353_v37 }
 0x10c   :  { %2399 = vmatpush1.bf16.msra.mxu0 %v3353_v37  ;;  %2814 = vmatprep.subr.bf16.mxu1 %v3358_v38 }
 0x10d   :  { %2400 = vmatprep.subr.bf16.mxu0 %v3358_v38  ;;  %2426 = vmatprep.mubr.bf16.mxu0 %v3397_v39 }
 0x10e   :  { %2436 = vmatprep.mubr.bf16.mxu1 %v3400_v40 }
 0x10f   :  { %2830 = vmatpush1.bf16.msra.mxu1 %v3356_v41 }
 0x110   :  { %2401 = vmatpush1.bf16.msra.mxu0 %v3356_v41  ;;  %2815 = vmatprep.subr.bf16.mxu1 %v3361_v42 }
 0x111   :  { %2402 = vmatprep.subr.bf16.mxu0 %v3361_v42 }
 0x113   :  { %2831 = vmatpush1.bf16.msra.mxu1 %v3359_v43 }
 0x114   :  { %2403 = vmatpush1.bf16.msra.mxu0 %v3359_v43  ;;  %2816 = vmatprep.subr.bf16.mxu1 %v3364_v44 }
 0x115   :  { %2404 = vmatprep.subr.bf16.mxu0 %v3364_v44 }
 0x117   :  { %2832 = vmatpush1.bf16.msra.mxu1 %v3362_v45 }
 0x118   :  { %2405 = vmatpush1.bf16.msra.mxu0 %v3362_v45  ;;  %2817 = vmatprep.subr.bf16.mxu1 %v3367_v46 }
 0x119   :  { %2406 = vmatprep.subr.bf16.mxu0 %v3367_v46 }
 0x11b   :  { %2833 = vmatpush1.bf16.msra.mxu1 %v3365_v47 }
 0x11c   :  { %2407 = vmatpush1.bf16.msra.mxu0 %v3365_v47  ;;  %2818 = vmatprep.subr.bf16.mxu1 %v3370_v48 }
 0x11d   :  { %2408 = vmatprep.subr.bf16.mxu0 %v3370_v48 }
 0x11f   :  { %2834 = vmatpush1.bf16.msra.mxu1 %v3368_v49 }
 0x120   :  { %2409 = vmatpush1.bf16.msra.mxu0 %v3368_v49  ;;  %2819 = vmatprep.subr.bf16.mxu1 %v3373_v50 }
 0x121   :  { %2410 = vmatprep.subr.bf16.mxu0 %v3373_v50 }
 0x123   :  { %2835 = vmatpush1.bf16.msra.mxu1 %v3371_v51 }
 0x124   :  { %2411 = vmatpush1.bf16.msra.mxu0 %v3371_v51  ;;  %2820 = vmatprep.subr.bf16.mxu1 %v3376_v52 }
 0x125   :  { %2412 = vmatprep.subr.bf16.mxu0 %v3376_v52 }
 0x127   :  { %2836 = vmatpush1.bf16.msra.mxu1 %v3374_v53 }
 0x128   :  { %2413 = vmatpush1.bf16.msra.mxu0 %v3374_v53  ;;  %2821 = vmatprep.subr.bf16.mxu1 %v3379_v54 }
 0x129   :  { %2414 = vmatprep.subr.bf16.mxu0 %v3379_v54 }
 0x12b   :  { %2837 = vmatpush1.bf16.msra.mxu1 %v3377_v55 }
 0x12c   :  { %2415 = vmatpush1.bf16.msra.mxu0 %v3377_v55  ;;  %2822 = vmatprep.subr.bf16.mxu1 %v3382_v56 }
 0x12d   :  { %2416 = vmatprep.subr.bf16.mxu0 %v3382_v56 }
 0x12f   :  { %2838 = vmatpush1.bf16.msra.mxu1 %v3380_v57 }
 0x130   :  { %2417 = vmatpush1.bf16.msra.mxu0 %v3380_v57  ;;  %2823 = vmatprep.subr.bf16.mxu1 %v3385_v58 }
 0x131   :  { %2418 = vmatprep.subr.bf16.mxu0 %v3385_v58 }
 0x133   :  { %2839 = vmatpush1.bf16.msra.mxu1 %v3383_v59 }
 0x134   :  { %2419 = vmatpush1.bf16.msra.mxu0 %v3383_v59  ;;  %2824 = vmatprep.subr.bf16.mxu1 %v3388_v60 }
 0x135   :  { %2420 = vmatprep.subr.bf16.mxu0 %v3388_v60 }
 0x137   :  { %2840 = vmatpush1.bf16.msra.mxu1 %v3386_v61 }
 0x138   :  { %2421 = vmatpush1.bf16.msra.mxu0 %v3386_v61  ;;  %2825 = vmatprep.subr.bf16.mxu1 %v3391_v62 }
 0x139   :  { %2422 = vmatprep.subr.bf16.mxu0 %v3391_v62 }
 0x13b   :  { %2841 = vmatpush1.bf16.msra.mxu1 %v3389_v63 }
 0x13c   :  { %2423 = vmatpush1.bf16.msra.mxu0 %v3389_v63  ;;  %2826 = vmatprep.subr.bf16.mxu1 %v3394_v0 }
 0x13d   :  { %2424 = vmatprep.subr.bf16.mxu0 %v3394_v0 }
 0x13f   :  { %2842 = vmatpush1.bf16.msra.mxu1 %v3392_v1 }
 0x140   :  { %2425 = vmatpush1.bf16.msra.mxu0 %v3392_v1 }
 0x142   :  { %2437 = vmatmul.mubr.bf16.vlgmr.msra.gmra.mrb[8].mxu1 %v3398_v3 }
 0x143   :  { %2427 = vmatmul.mubr.bf16.vlgmr.msra.gmra.mrb[0].mxu0 %v3395_v2 }
 0x1d5   :  { %v2163_v6 = vpop.f32.mrb[0].mxu1 }
 0x1d6   :  { %v2165_v7 = vpop.f32.mrb[1].mxu1  ;;  %v2843_v31 = vadd.f32 %v2163_v6, %v343_v13 }
 0x1d7   :  { %v2167_v8 = vpop.f32.mrb[2].mxu1  ;;  %v2845_v32 = vadd.f32 %v2165_v7, %v347_v14 }
 0x1d8   :  { %v2169_v10 = vpop.f32.mrb[3].mxu1  ;;  %v2847_v35 = vadd.f32 %v2167_v8, %v343_v13 }
 0x1d9   :  { %v2849_v40 = vadd.f32 %v2169_v10, %v347_v14 }
 0x1dd   :  { %v2173_v15 = vpop.f32.mrb[4].mxu1 }
 0x1de   :  { %v2385_v16 = vpop.f32.mrb[4].mxu0  ;;  %v2851_v17 = vadd.f32 %v2173_v15, %v343_v13  ;;  %v2175_v18 = vpop.f32.mrb[5].mxu1 }
 0x1df   :  { %v2387_v19 = vpop.f32.mrb[5].mxu0  ;;  %v2854_v20 = vadd.f32 %v2175_v18, %v347_v14  ;;  %v2177_v21 = vpop.f32.mrb[6].mxu1 }
 0x1e0   :  { %v2389_v22 = vpop.f32.mrb[6].mxu0  ;;  %v2852_v23 = vadd.f32 %v2851_v17, %v2385_v16  ;;  %v2857_v24 = vadd.f32 %v2177_v21, %v343_v13  ;;  %v2179_v25 = vpop.f32.mrb[7].mxu1 }
 0x1e1   :  { %v2391_v26 = vpop.f32.mrb[7].mxu0  ;;  %v2855_v27 = vadd.f32 %v2854_v20, %v2387_v19  ;;  %v2860_v28 = vadd.f32 %v2179_v25, %v347_v14 }
 0x1e2   :  { %v2858_v29 = vadd.f32 %v2857_v24, %v2389_v22 }
 0x1e3   :  { %v2861_v30 = vadd.f32 %v2860_v28, %v2391_v26 }
 0x215   :  { %v2438_v34 = vpop.f32.mrb[8].mxu1 }
 0x216   :  { %v2428_v33 = vpop.f32.mrb[0].mxu0  ;;  %v2853_v37 = vadd.f32 %v2852_v23, %v2438_v34  ;;  %v2440_v39 = vpop.f32.mrb[9].mxu1 }
 0x217   :  { %v2844_v36 = vadd.f32 %v2843_v31, %v2428_v33  ;;  %v2430_v38 = vpop.f32.mrb[1].mxu0  ;;  %v2856_v42 = vadd.f32 %v2855_v27, %v2440_v39  ;;  %v2442_v44 = vpop.f32.mrb[10].mxu1 }
 0x218   :  { %v2846_v41 = vadd.f32 %v2845_v32, %v2430_v38  ;;  %v2432_v43 = vpop.f32.mrb[2].mxu0  ;;  %v2859_v46 = vadd.f32 %v2858_v29, %v2442_v44  ;;  %v2444_v48 = vpop.f32.mrb[11].mxu1 }
 0x219   :  { %v2848_v45 = vadd.f32 %v2847_v35, %v2432_v43  ;;  %v2434_v47 = vpop.f32.mrb[3].mxu0  ;;  %v2809_v50 = vpack.c.bf16 %v2856_v42, %v2853_v37  ;;  %v2862_v52 = vadd.f32 %v2861_v30, %v2444_v48 }
 0x21a   :  { %v2807_v49 = vpack.c.bf16 %v2846_v41, %v2844_v36  ;;  %v2850_v51 = vadd.f32 %v2849_v40, %v2434_v47 }
 0x21b   :  { %2473 = vst [vmem:[%s4411_s3 + $0x10] sm:$0xff] %v2809_v50  ;;  %v2810_v54 = vpack.c.bf16 %v2862_v52, %v2859_v46 }
 0x21c   :  { %2471 = vst [vmem:[%s4411_s3] sm:$0xff] %v2807_v49  ;;  %v2808_v53 = vpack.c.bf16 %v2850_v51, %v2848_v45 }
 0x21d   :  { %2474 = vst [vmem:[%s4411_s3 + $0x18] sm:$0xff] %v2810_v54 }
 0x21e   :  { %2472 = vst [vmem:[%s4411_s3 + $0x8] sm:$0xff] %v2808_v53 }

// kernel: autoencoder_forward.14
= control target key start
LH: loop header
LB: loop body
LE: loop exit
PB: predicated region body
PF: predicated region fallthrough
CT: control target
= control target key end

     0   :  { %v2688_v35 = vmov 0   ;;  %s3367_s1 = inlined_call_operand.vmem [shape: bf16[2304,128], index: 1, kind: input, shape index: {}]   ;;  %s3368_s0 = inlined_call_operand.vmem [shape: bf16[32,2304], index: 0, kind: input, shape index: {}]   ;;  %s3369_s2 = inlined_call_operand.vmem [shape: bf16[128,256], index: 2, kind: input, shape index: {}]   ;;  %s3370_s3 = inlined_call_operand.vmem [shape: bf16[32,256], index: 3, kind: output, shape index: {}]  }
   0x1   :  { %v2520_v0 = vld [vmem:[%s3367_s1 + $0x40] sm:$0xff]   ;;  %v2524_v4 = vld [vmem:[%s3367_s1 + $0x48] sm:$0xff]   ;;  %v2528_v8 = vld [vmem:[%s3367_s1 + $0x50] sm:$0xff]  }
   0x2   :  { %v2521_v1 = vld [vmem:[%s3367_s1 + $0xc0] sm:$0xff]   ;;  %2267 = vmatprep.subr.bf16.mxu0 %v2520_v0  ;;  %v2525_v5 = vld [vmem:[%s3367_s1 + $0xc8] sm:$0xff]   ;;  %v2529_v9 = vld [vmem:[%s3367_s1 + $0xd0] sm:$0xff]  }
   0x3   :  { %v2522_v2 = vld [vmem:[%s3367_s1] sm:$0xff]   ;;  %2295 = vmatprep.subr.bf16.mxu1 %v2521_v1  ;;  %v2526_v6 = vld [vmem:[%s3367_s1 + $0x8] sm:$0xff]   ;;  %v2530_v10 = vld [vmem:[%s3367_s1 + $0x10] sm:$0xff]  }
   0x4   :  { %v2523_v3 = vld [vmem:[%s3367_s1 + $0x80] sm:$0xff]   ;;  %2268 = vmatpush3.bf16.msra.mxu0 %v2522_v2  ;;  %v2527_v7 = vld [vmem:[%s3367_s1 + $0x88] sm:$0xff]   ;;  %v2531_v11 = vld [vmem:[%s3367_s1 + $0x90] sm:$0xff]  }
   0x5   :  { %2296 = vmatpush3.bf16.msra.mxu1 %v2523_v3  ;;  %2269 = vmatprep.subr.bf16.mxu0 %v2524_v4  ;;  %v2532_v12 = vld [vmem:[%s3367_s1 + $0x58] sm:$0xff]   ;;  %v2536_v16 = vld [vmem:[%s3367_s1 + $0x60] sm:$0xff]   ;;  %v2540_v20 = vld [vmem:[%s3367_s1 + $0x68] sm:$0xff]  }
   0x6   :  { %2297 = vmatprep.subr.bf16.mxu1 %v2525_v5  ;;  %v2533_v13 = vld [vmem:[%s3367_s1 + $0xd8] sm:$0xff]   ;;  %v2537_v17 = vld [vmem:[%s3367_s1 + $0xe0] sm:$0xff]   ;;  %v2541_v21 = vld [vmem:[%s3367_s1 + $0xe8] sm:$0xff]  }
   0x7   :  { %v2534_v14 = vld [vmem:[%s3367_s1 + $0x18] sm:$0xff]   ;;  %v2538_v18 = vld [vmem:[%s3367_s1 + $0x20] sm:$0xff]   ;;  %v2542_v22 = vld [vmem:[%s3367_s1 + $0x28] sm:$0xff]  }
   0x8   :  { %2270 = vmatpush3.bf16.msra.mxu0 %v2526_v6  ;;  %v2535_v15 = vld [vmem:[%s3367_s1 + $0x98] sm:$0xff]   ;;  %v2539_v19 = vld [vmem:[%s3367_s1 + $0xa0] sm:$0xff]   ;;  %v2543_v23 = vld [vmem:[%s3367_s1 + $0xa8] sm:$0xff]  }
   0x9   :  { %2298 = vmatpush3.bf16.msra.mxu1 %v2527_v7  ;;  %2271 = vmatprep.subr.bf16.mxu0 %v2528_v8  ;;  %v2544_v24 = vld [vmem:[%s3367_s1 + $0x70] sm:$0xff]   ;;  %v2548_v28 = vld [vmem:[%s3367_s1 + $0x78] sm:$0xff]   ;;  %v15_v32 = vld [vmem:[%s3368_s0] sm:$0xff] }
   0xa   :  { %2299 = vmatprep.subr.bf16.mxu1 %v2529_v9  ;;  %v2545_v25 = vld [vmem:[%s3367_s1 + $0xf0] sm:$0xff]   ;;  %v2549_v29 = vld [vmem:[%s3367_s1 + $0xf8] sm:$0xff]   ;;  %v24_v33 = vld [vmem:[%s3368_s0 + $0x48] sm:$0xff]  ;;  %v59_v36 = vmax.bf16 %v2688_v35, %v15_v32 }
   0xb   :  { %v2546_v26 = vld [vmem:[%s3367_s1 + $0x30] sm:$0xff]   ;;  %v2550_v30 = vld [vmem:[%s3367_s1 + $0x38] sm:$0xff]   ;;  %v16_v34 = vld [vmem:[%s3368_s0 + $0x8] sm:$0xff]  ;;  %v68_v37 = vmax.bf16 %v2688_v35, %v24_v33 }
   0xc   :  { %2272 = vmatpush3.bf16.msra.mxu0 %v2530_v10  ;;  %v2547_v27 = vld [vmem:[%s3367_s1 + $0xb0] sm:$0xff]   ;;  %v2551_v31 = vld [vmem:[%s3367_s1 + $0xb8] sm:$0xff]   ;;  %v60_v39 = vmax.bf16 %v2688_v35, %v16_v34  ;;  %v2552_v41 = vld [vmem:[%s3367_s1 + $0x140] sm:$0xff]  }
   0xd   :  { %2300 = vmatpush3.bf16.msra.mxu1 %v2531_v11  ;;  %2273 = vmatprep.subr.bf16.mxu0 %v2532_v12  ;;  %v25_v38 = vld [vmem:[%s3368_s0 + $0x50] sm:$0xff]  ;;  %v2064_v42 = vcombine.high %v59_v36, %v68_v37  ;;  %v2063_v43 = vcombine.low %v59_v36, %v68_v37  ;;  %v2553_v44 = vld [vmem:[%s3367_s1 + $0x100] sm:$0xff]   ;;  %v2556_v49 = vld [vmem:[%s3367_s1 + $0x148] sm:$0xff]  }
   0xe   :  { %2301 = vmatprep.subr.bf16.mxu1 %v2533_v13  ;;  %v69_v40 = vmax.bf16 %v2688_v35, %v25_v38  ;;  %v2554_v47 = vld [vmem:[%s3367_s1 + $0x1c0] sm:$0xff]   ;;  %v2557_v50 = vld [vmem:[%s3367_s1 + $0x108] sm:$0xff]   ;;  %v2560_v53 = vld [vmem:[%s3367_s1 + $0x150] sm:$0xff]  }
   0xf   :  { %1459 = vmatprep.mubr.bf16.mxu0 %v2064_v42  ;;  %v2555_v48 = vld [vmem:[%s3367_s1 + $0x180] sm:$0xff]   ;;  %v2558_v51 = vld [vmem:[%s3367_s1 + $0x1c8] sm:$0xff]   ;;  %v2561_v54 = vld [vmem:[%s3367_s1 + $0x110] sm:$0xff]  }
  0x10   :  { %2274 = vmatpush3.bf16.msra.mxu0 %v2534_v14  ;;  %v2066_v45 = vcombine.high %v60_v39, %v69_v40  ;;  %v2065_v46 = vcombine.low %v60_v39, %v69_v40  ;;  %v2559_v52 = vld [vmem:[%s3367_s1 + $0x188] sm:$0xff]   ;;  %v2562_v55 = vld [vmem:[%s3367_s1 + $0x1d0] sm:$0xff]   ;;  %v2564_v57 = vld [vmem:[%s3367_s1 + $0x158] sm:$0xff]  }
  0x11   :  { %2302 = vmatpush3.bf16.msra.mxu1 %v2535_v15  ;;  %2275 = vmatprep.subr.bf16.mxu0 %v2536_v16  ;;  %v2563_v56 = vld [vmem:[%s3367_s1 + $0x190] sm:$0xff]   ;;  %v2565_v58 = vld [vmem:[%s3367_s1 + $0x118] sm:$0xff]   ;;  %v2568_v61 = vld [vmem:[%s3367_s1 + $0x160] sm:$0xff]  }
  0x12   :  { %2303 = vmatprep.subr.bf16.mxu1 %v2537_v17  ;;  %1508 = vmatprep.mubr.bf16.mxu1 %v2066_v45  ;;  %v2566_v59 = vld [vmem:[%s3367_s1 + $0x1d8] sm:$0xff]   ;;  %v2569_v62 = vld [vmem:[%s3367_s1 + $0x120] sm:$0xff]   ;;  %v2572_v1 = vld [vmem:[%s3367_s1 + $0x168] sm:$0xff]  }
  0x13   :  { %v2567_v60 = vld [vmem:[%s3367_s1 + $0x198] sm:$0xff]   ;;  %v2570_v63 = vld [vmem:[%s3367_s1 + $0x1e0] sm:$0xff]   ;;  %v33_v2 = vld [vmem:[%s3368_s0 + $0x90] sm:$0xff] }
  0x14   :  { %2276 = vmatpush3.bf16.msra.mxu0 %v2538_v18  ;;  %v2571_v0 = vld [vmem:[%s3367_s1 + $0x1a0] sm:$0xff]   ;;  %v42_v3 = vld [vmem:[%s3368_s0 + $0xd8] sm:$0xff]  ;;  %v77_v4 = vmax.bf16 %v2688_v35, %v33_v2  ;;  %v2573_v10 = vld [vmem:[%s3367_s1 + $0x128] sm:$0xff]  }
  0x15   :  { %2304 = vmatpush3.bf16.msra.mxu1 %v2539_v19  ;;  %2277 = vmatprep.subr.bf16.mxu0 %v2540_v20  ;;  %v86_v5 = vmax.bf16 %v2688_v35, %v42_v3  ;;  %v34_v6 = vld [vmem:[%s3368_s0 + $0x98] sm:$0xff]  ;;  %v43_v7 = vld [vmem:[%s3368_s0 + $0xe0] sm:$0xff]  ;;  %v2574_v13 = vld [vmem:[%s3367_s1 + $0x1e8] sm:$0xff]  }
  0x16   :  { %2305 = vmatprep.subr.bf16.mxu1 %v2541_v21  ;;  %v78_v8 = vmax.bf16 %v2688_v35, %v34_v6  ;;  %v87_v9 = vmax.bf16 %v2688_v35, %v43_v7  ;;  %v2575_v16 = vld [vmem:[%s3367_s1 + $0x1a8] sm:$0xff]   ;;  %v2576_v17 = vld [vmem:[%s3367_s1 + $0x170] sm:$0xff]   ;;  %v2580_v21 = vld [vmem:[%s3367_s1 + $0x178] sm:$0xff]  }
  0x17   :  { %v2082_v11 = vcombine.high %v77_v4, %v86_v5  ;;  %v2081_v12 = vcombine.low %v77_v4, %v86_v5  ;;  %v2577_v18 = vld [vmem:[%s3367_s1 + $0x130] sm:$0xff]   ;;  %v2585_v37 = vld [vmem:[%s3367_s1 + $0x200] sm:$0xff]   ;;  %v2588_v42 = vld [vmem:[%s3367_s1 + $0x248] sm:$0xff]  }
  0x18   :  { %2278 = vmatpush3.bf16.msra.mxu0 %v2542_v22  ;;  %v2084_v14 = vcombine.high %v78_v8, %v87_v9  ;;  %v2083_v15 = vcombine.low %v78_v8, %v87_v9  ;;  %v2578_v19 = vld [vmem:[%s3367_s1 + $0x1f0] sm:$0xff]   ;;  %v2581_v22 = vld [vmem:[%s3367_s1 + $0x138] sm:$0xff]   ;;  %v2586_v38 = vld [vmem:[%s3367_s1 + $0x2c0] sm:$0xff]  }
  0x19   :  { %2306 = vmatpush3.bf16.msra.mxu1 %v2543_v23  ;;  %2279 = vmatprep.subr.bf16.mxu0 %v2544_v24  ;;  %v2579_v20 = vld [vmem:[%s3367_s1 + $0x1b0] sm:$0xff]   ;;  %v2582_v23 = vld [vmem:[%s3367_s1 + $0x1f8] sm:$0xff]   ;;  %v35_v45 = vld [vmem:[%s3368_s0 + $0xa0] sm:$0xff] }
  0x1a   :  { %2307 = vmatprep.subr.bf16.mxu1 %v2545_v25  ;;  %v17_v24 = vld [vmem:[%s3368_s0 + $0x10] sm:$0xff]  ;;  %v26_v25 = vld [vmem:[%s3368_s0 + $0x58] sm:$0xff]  ;;  %v2600_v2 = vld [vmem:[%s3367_s1 + $0x260] sm:$0xff]  }
  0x1b   :  { %v2601_v3 = vld [vmem:[%s3367_s1 + $0x220] sm:$0xff]   ;;  %v2604_v6 = vld [vmem:[%s3367_s1 + $0x268] sm:$0xff]  }
  0x1c   :  { %2280 = vmatpush3.bf16.msra.mxu0 %v2546_v26  ;;  %v61_v26 = vmax.bf16 %v2688_v35, %v17_v24  ;;  %v2602_v4 = vld [vmem:[%s3367_s1 + $0x2e0] sm:$0xff]   ;;  %v2605_v7 = vld [vmem:[%s3367_s1 + $0x228] sm:$0xff]  }
  0x1d   :  { %2308 = vmatpush3.bf16.msra.mxu1 %v2547_v27  ;;  %2281 = vmatprep.subr.bf16.mxu0 %v2548_v28  ;;  %v70_v27 = vmax.bf16 %v2688_v35, %v26_v25  ;;  %v2583_v28 = vld [vmem:[%s3367_s1 + $0x1b8] sm:$0xff]   ;;  %v2603_v5 = vld [vmem:[%s3367_s1 + $0x2a0] sm:$0xff]   ;;  %v2606_v8 = vld [vmem:[%s3367_s1 + $0x2e8] sm:$0xff]  }
  0x1e   :  { %2309 = vmatprep.subr.bf16.mxu1 %v2549_v29  ;;  %v2584_v29 = vld [vmem:[%s3367_s1 + $0x240] sm:$0xff]   ;;  %v2607_v9 = vld [vmem:[%s3367_s1 + $0x2a8] sm:$0xff]  }
  0x1f   :  { %v2067_v32 = vcombine.low %v61_v26, %v70_v27  ;;  %v2068_v33 = vcombine.high %v61_v26, %v70_v27  ;;  %v20_v25 = vld [vmem:[%s3368_s0 + $0x28] sm:$0xff]  ;;  %v29_v26 = vld [vmem:[%s3368_s0 + $0x70] sm:$0xff] }
  0x20   :  { %2282 = vmatpush3.bf16.msra.mxu0 %v2550_v30  ;;  %v18_v30 = vld [vmem:[%s3368_s0 + $0x18] sm:$0xff]  ;;  %v64_v27 = vmax.bf16 %v2688_v35, %v20_v25  ;;  %v2650_v25 = vld [vmem:[%s3367_s1 + $0x448] sm:$0xff]  }
  0x21   :  { %2310 = vmatpush3.bf16.msra.mxu1 %v2551_v31  ;;  %2323 = vmatprep.subr.bf16.mxu0 %v2552_v41  ;;  %v27_v31 = vld [vmem:[%s3368_s0 + $0x60] sm:$0xff]  ;;  %v62_v34 = vmax.bf16 %v2688_v35, %v18_v30 }
  0x22   :  { %2351 = vmatprep.subr.bf16.mxu1 %v2554_v47  ;;  %v71_v36 = vmax.bf16 %v2688_v35, %v27_v31  ;;  %v2587_v41 = vld [vmem:[%s3367_s1 + $0x280] sm:$0xff]   ;;  %v79_v47 = vmax.bf16 %v2688_v35, %v35_v45 }
  0x23   :  { %1460 = vmatmul.mubr.bf16.vlgmr.msra.gmra.mrb[0].mxu0 %v2063_v43  ;;  %v2589_v43 = vld [vmem:[%s3367_s1 + $0x208] sm:$0xff]   ;;  %v2618_v30 = vld [vmem:[%s3367_s1 + $0x3c0] sm:$0xff]  }
  0x24   :  { %1509 = vmatmul.mubr.bf16.vlgmr.msra.gmra.mrb[0].mxu1 %v2065_v46  ;;  %2324 = vmatpush3.bf16.msra.mxu0 %v2553_v44  ;;  %v2069_v39 = vcombine.low %v62_v34, %v71_v36  ;;  %v2070_v40 = vcombine.high %v62_v34, %v71_v36  ;;  %v2590_v44 = vld [vmem:[%s3367_s1 + $0x2c8] sm:$0xff]   ;;  %v47_v45 = vld [vmem:[%s3368_s0 + $0x100] sm:$0xff] }
  0x25   :  { %2325 = vmatprep.subr.bf16.mxu0 %v2556_v49  ;;  %2352 = vmatpush3.bf16.msra.mxu1 %v2555_v48  ;;  %v44_v46 = vld [vmem:[%s3368_s0 + $0xe8] sm:$0xff] }
  0x26   :  { %2353 = vmatprep.subr.bf16.mxu1 %v2558_v51  ;;  %1467 = vmatprep.mubr.bf16.mxu0 %v2082_v11  ;;  %v88_v48 = vmax.bf16 %v2688_v35, %v44_v46  ;;  %v2591_v49 = vld [vmem:[%s3367_s1 + $0x288] sm:$0xff]   ;;  %v2609_v11 = vld [vmem:[%s3367_s1 + $0x230] sm:$0xff]  }
  0x27   :  { %1516 = vmatprep.mubr.bf16.mxu1 %v2084_v14  ;;  %v36_v51 = vld [vmem:[%s3368_s0 + $0xa8] sm:$0xff]  ;;  %v2612_v14 = vld [vmem:[%s3367_s1 + $0x278] sm:$0xff]  }
  0x28   :  { %2326 = vmatpush3.bf16.msra.mxu0 %v2557_v50  ;;  %v2592_v50 = vld [vmem:[%s3367_s1 + $0x250] sm:$0xff]   ;;  %v2620_v34 = vld [vmem:[%s3367_s1 + $0x348] sm:$0xff]  }
  0x29   :  { %2327 = vmatprep.subr.bf16.mxu0 %v2560_v53  ;;  %2354 = vmatpush3.bf16.msra.mxu1 %v2559_v52  ;;  %v2086_v52 = vcombine.high %v79_v47, %v88_v48  ;;  %v2085_v53 = vcombine.low %v79_v47, %v88_v48  ;;  %v2621_v36 = vld [vmem:[%s3367_s1 + $0x308] sm:$0xff]  }
  0x2a   :  { %2355 = vmatprep.subr.bf16.mxu1 %v2562_v55  ;;  %v80_v55 = vmax.bf16 %v2688_v35, %v36_v51  ;;  %v2626_v51 = vld [vmem:[%s3367_s1 + $0x3d0] sm:$0xff]  }
  0x2b   :  { %1468 = vmatmul.mubr.bf16.gmra.mrb[4].mxu0 %v2081_v12  ;;  %v2610_v12 = vld [vmem:[%s3367_s1 + $0x2f0] sm:$0xff]  }
  0x2c   :  { %2328 = vmatpush3.bf16.msra.mxu0 %v2561_v54  ;;  %1517 = vmatmul.mubr.bf16.gmra.mrb[4].mxu1 %v2083_v15  ;;  %v45_v54 = vld [vmem:[%s3368_s0 + $0xf0] sm:$0xff]  ;;  %v2613_v15 = vld [vmem:[%s3367_s1 + $0x238] sm:$0xff]  }
  0x2d   :  { %2329 = vmatprep.subr.bf16.mxu0 %v2564_v57  ;;  %2356 = vmatpush3.bf16.msra.mxu1 %v2563_v56  ;;  %v89_v56 = vmax.bf16 %v2688_v35, %v45_v54  ;;  %v2593_v57 = vld [vmem:[%s3367_s1 + $0x210] sm:$0xff]  }
  0x2e   :  { %2357 = vmatprep.subr.bf16.mxu1 %v2566_v59  ;;  %1557 = vmatprep.mubr.bf16.mxu0 %v2068_v33  ;;  %v2619_v33 = vld [vmem:[%s3367_s1 + $0x380] sm:$0xff]   ;;  %v2627_v54 = vld [vmem:[%s3367_s1 + $0x390] sm:$0xff]  }
  0x2f   :  { %1606 = vmatprep.mubr.bf16.mxu1 %v2070_v40  ;;  %v2088_v59 = vcombine.high %v80_v55, %v89_v56 }
  0x30   :  { %2330 = vmatpush3.bf16.msra.mxu0 %v2565_v58  ;;  %v2594_v58 = vld [vmem:[%s3367_s1 + $0x2d0] sm:$0xff]  }
  0x31   :  { %2331 = vmatprep.subr.bf16.mxu0 %v2568_v61  ;;  %2358 = vmatpush3.bf16.msra.mxu1 %v2567_v60  ;;  %v2087_v60 = vcombine.low %v80_v55, %v89_v56  ;;  %v2595_v61 = vld [vmem:[%s3367_s1 + $0x290] sm:$0xff]   ;;  %v2628_v55 = vld [vmem:[%s3367_s1 + $0x358] sm:$0xff]  }
  0x32   :  { %2359 = vmatprep.subr.bf16.mxu1 %v2570_v63  ;;  %v2597_v63 = vld [vmem:[%s3367_s1 + $0x218] sm:$0xff]  }
  0x33   :  { %v2629_v56 = vld [vmem:[%s3367_s1 + $0x318] sm:$0xff]  }
  0x34   :  { %2332 = vmatpush3.bf16.msra.mxu0 %v2569_v62  ;;  %v2596_v62 = vld [vmem:[%s3367_s1 + $0x258] sm:$0xff]  }
  0x35   :  { %2333 = vmatprep.subr.bf16.mxu0 %v2572_v1  ;;  %2360 = vmatpush3.bf16.msra.mxu1 %v2571_v0  ;;  %v2598_v0 = vld [vmem:[%s3367_s1 + $0x2d8] sm:$0xff]  }
  0x36   :  { %2361 = vmatprep.subr.bf16.mxu1 %v2574_v13  ;;  %v2599_v1 = vld [vmem:[%s3367_s1 + $0x298] sm:$0xff]   ;;  %v2611_v13 = vld [vmem:[%s3367_s1 + $0x2b0] sm:$0xff]  }
  0x38   :  { %2334 = vmatpush3.bf16.msra.mxu0 %v2573_v10  ;;  %v2608_v10 = vld [vmem:[%s3367_s1 + $0x270] sm:$0xff]  }
  0x39   :  { %2362 = vmatpush3.bf16.msra.mxu1 %v2575_v16  ;;  %2335 = vmatprep.subr.bf16.mxu0 %v2576_v17  ;;  %v2614_v16 = vld [vmem:[%s3367_s1 + $0x2f8] sm:$0xff]   ;;  %v3061_v17 = vld [vmem:[%s3368_s0 + $0x20] sm:$0xff] }
  0x3a   :  { %2363 = vmatprep.subr.bf16.mxu1 %v2578_v19  ;;  %v63_v19 = vmax.bf16 %v2688_v35, %v3061_v17 }
  0x3c   :  { %2336 = vmatpush3.bf16.msra.mxu0 %v2577_v18  ;;  %v3066_v18 = vld [vmem:[%s3368_s0 + $0x68] sm:$0xff] }
  0x3d   :  { %2337 = vmatprep.subr.bf16.mxu0 %v2580_v21  ;;  %2364 = vmatpush3.bf16.msra.mxu1 %v2579_v20  ;;  %v72_v20 = vmax.bf16 %v2688_v35, %v3066_v18  ;;  %v2615_v21 = vld [vmem:[%s3367_s1 + $0x2b8] sm:$0xff]  }
  0x3e   :  { %2365 = vmatprep.subr.bf16.mxu1 %v2582_v23 }
  0x3f   :  { %v2071_v23 = vcombine.low %v63_v19, %v72_v20  ;;  %v2072_v24 = vcombine.high %v63_v19, %v72_v20 }
  0x40   :  { %2338 = vmatpush3.bf16.msra.mxu0 %v2581_v22  ;;  %v2616_v22 = vld [vmem:[%s3367_s1 + $0x340] sm:$0xff]  }
  0x41   :  { %2366 = vmatpush3.bf16.msra.mxu1 %v2583_v28  ;;  %2379 = vmatprep.subr.bf16.mxu0 %v2584_v29  ;;  %v73_v28 = vmax.bf16 %v2688_v35, %v29_v26  ;;  %v2617_v29 = vld [vmem:[%s3367_s1 + $0x300] sm:$0xff]  }
  0x42   :  { %2407 = vmatprep.subr.bf16.mxu1 %v2586_v38  ;;  %v3107_v38 = vld [vmem:[%s3368_s0 + $0xb0] sm:$0xff] }
  0x43   :  { %1558 = vmatmul.mubr.bf16.vlgmr.msra.gmra.mrb[8].mxu0 %v2067_v32  ;;  %v2073_v31 = vcombine.low %v64_v27, %v73_v28  ;;  %v2074_v32 = vcombine.high %v64_v27, %v73_v28  ;;  %v81_v40 = vmax.bf16 %v2688_v35, %v3107_v38  ;;  %v2651_v28 = vld [vmem:[%s3367_s1 + $0x408] sm:$0xff]  }
  0x44   :  { %2380 = vmatpush3.bf16.msra.mxu0 %v2585_v37  ;;  %1607 = vmatmul.mubr.bf16.vlgmr.msra.gmra.mrb[8].mxu1 %v2069_v39  ;;  %v2622_v37 = vld [vmem:[%s3367_s1 + $0x3c8] sm:$0xff]   ;;  %v3112_v39 = vld [vmem:[%s3368_s0 + $0xf8] sm:$0xff] }
  0x45   :  { %2381 = vmatprep.subr.bf16.mxu0 %v2588_v42  ;;  %2408 = vmatpush3.bf16.msra.mxu1 %v2587_v41  ;;  %v90_v41 = vmax.bf16 %v2688_v35, %v3112_v39  ;;  %v2623_v42 = vld [vmem:[%s3367_s1 + $0x388] sm:$0xff]  }
  0x46   :  { %2409 = vmatprep.subr.bf16.mxu1 %v2590_v44  ;;  %1565 = vmatprep.mubr.bf16.mxu0 %v2086_v52  ;;  %v38_v44 = vld [vmem:[%s3368_s0 + $0xb8] sm:$0xff] }
  0x47   :  { %1614 = vmatprep.mubr.bf16.mxu1 %v2088_v59  ;;  %v2090_v46 = vcombine.high %v81_v40, %v90_v41  ;;  %v2089_v47 = vcombine.low %v81_v40, %v90_v41  ;;  %v82_v48 = vmax.bf16 %v2688_v35, %v38_v44  ;;  %v2632_v59 = vld [vmem:[%s3367_s1 + $0x360] sm:$0xff]   ;;  %v2653_v44 = vld [vmem:[%s3367_s1 + $0x410] sm:$0xff]  }
  0x48   :  { %2382 = vmatpush3.bf16.msra.mxu0 %v2589_v43  ;;  %v2624_v43 = vld [vmem:[%s3367_s1 + $0x350] sm:$0xff]  }
  0x49   :  { %2410 = vmatpush3.bf16.msra.mxu1 %v2591_v49  ;;  %2383 = vmatprep.subr.bf16.mxu0 %v2592_v50  ;;  %v91_v49 = vmax.bf16 %v2688_v35, %v47_v45  ;;  %v2625_v50 = vld [vmem:[%s3367_s1 + $0x310] sm:$0xff]   ;;  %v2654_v45 = vld [vmem:[%s3367_s1 + $0x458] sm:$0xff]  }
  0x4a   :  { %2411 = vmatprep.subr.bf16.mxu1 %v2594_v58  ;;  %v2631_v58 = vld [vmem:[%s3367_s1 + $0x398] sm:$0xff]  }
  0x4b   :  { %1566 = vmatmul.mubr.bf16.gmra.mrb[12].mxu0 %v2085_v53  ;;  %v2092_v52 = vcombine.high %v82_v48, %v91_v49  ;;  %v2091_v53 = vcombine.low %v82_v48, %v91_v49  ;;  %v2656_v48 = vld [vmem:[%s3367_s1 + $0x460] sm:$0xff]  }
  0x4c   :  { %2384 = vmatpush3.bf16.msra.mxu0 %v2593_v57  ;;  %1615 = vmatmul.mubr.bf16.gmra.mrb[12].mxu1 %v2087_v60  ;;  %v2630_v57 = vld [vmem:[%s3367_s1 + $0x3d8] sm:$0xff]   ;;  %v2633_v60 = vld [vmem:[%s3367_s1 + $0x320] sm:$0xff]  }
  0x4d   :  { %2412 = vmatpush3.bf16.msra.mxu1 %v2595_v61  ;;  %2385 = vmatprep.subr.bf16.mxu0 %v2596_v62  ;;  %v2634_v61 = vld [vmem:[%s3367_s1 + $0x3e0] sm:$0xff]  }
  0x4e   :  { %2413 = vmatprep.subr.bf16.mxu1 %v2598_v0  ;;  %1655 = vmatprep.mubr.bf16.mxu0 %v2072_v24  ;;  %v2635_v62 = vld [vmem:[%s3367_s1 + $0x3a0] sm:$0xff]   ;;  %v2637_v0 = vld [vmem:[%s3367_s1 + $0x328] sm:$0xff]  }
  0x4f   :  { %1704 = vmatprep.mubr.bf16.mxu1 %v2074_v32  ;;  %v2649_v24 = vld [vmem:[%s3367_s1 + $0x400] sm:$0xff]  }
  0x50   :  { %2386 = vmatpush3.bf16.msra.mxu0 %v2597_v63  ;;  %v2636_v63 = vld [vmem:[%s3367_s1 + $0x368] sm:$0xff]   ;;  %v2657_v49 = vld [vmem:[%s3367_s1 + $0x420] sm:$0xff]  }
  0x51   :  { %2414 = vmatpush3.bf16.msra.mxu1 %v2599_v1  ;;  %2387 = vmatprep.subr.bf16.mxu0 %v2600_v2  ;;  %v2638_v1 = vld [vmem:[%s3367_s1 + $0x3e8] sm:$0xff]  }
  0x52   :  { %2415 = vmatprep.subr.bf16.mxu1 %v2602_v4  ;;  %v2639_v2 = vld [vmem:[%s3367_s1 + $0x3a8] sm:$0xff]   ;;  %v2641_v4 = vld [vmem:[%s3367_s1 + $0x330] sm:$0xff]  }
  0x54   :  { %2388 = vmatpush3.bf16.msra.mxu0 %v2601_v3  ;;  %v2640_v3 = vld [vmem:[%s3367_s1 + $0x370] sm:$0xff]  }
  0x55   :  { %2416 = vmatpush3.bf16.msra.mxu1 %v2603_v5  ;;  %2389 = vmatprep.subr.bf16.mxu0 %v2604_v6  ;;  %v2642_v5 = vld [vmem:[%s3367_s1 + $0x3f0] sm:$0xff]  }
  0x56   :  { %2417 = vmatprep.subr.bf16.mxu1 %v2606_v8  ;;  %v2643_v6 = vld [vmem:[%s3367_s1 + $0x3b0] sm:$0xff]   ;;  %v2645_v8 = vld [vmem:[%s3367_s1 + $0x338] sm:$0xff]  }
  0x58   :  { %2390 = vmatpush3.bf16.msra.mxu0 %v2605_v7  ;;  %v2644_v7 = vld [vmem:[%s3367_s1 + $0x378] sm:$0xff]  }
  0x59   :  { %2418 = vmatpush3.bf16.msra.mxu1 %v2607_v9  ;;  %2391 = vmatprep.subr.bf16.mxu0 %v2608_v10  ;;  %v2646_v9 = vld [vmem:[%s3367_s1 + $0x3f8] sm:$0xff]   ;;  %v21_v10 = vld [vmem:[%s3368_s0 + $0x30] sm:$0xff] }
  0x5a   :  { %2419 = vmatprep.subr.bf16.mxu1 %v2610_v12  ;;  %v65_v12 = vmax.bf16 %v2688_v35, %v21_v10  ;;  %v2675_v10 = vld [vmem:[%s3369_s2 + $0x34] ss:$8 sps:$4 sm:$0xff]  }
  0x5c   :  { %2392 = vmatpush3.bf16.msra.mxu0 %v2609_v11  ;;  %v30_v11 = vld [vmem:[%s3368_s0 + $0x78] sm:$0xff] }
  0x5d   :  { %2420 = vmatpush3.bf16.msra.mxu1 %v2611_v13  ;;  %2393 = vmatprep.subr.bf16.mxu0 %v2612_v14  ;;  %v74_v13 = vmax.bf16 %v2688_v35, %v30_v11  ;;  %v2647_v14 = vld [vmem:[%s3367_s1 + $0x3b8] sm:$0xff]  }
  0x5e   :  { %2421 = vmatprep.subr.bf16.mxu1 %v2614_v16  ;;  %v22_v16 = vld [vmem:[%s3368_s0 + $0x38] sm:$0xff] }
  0x5f   :  { %v2075_v19 = vcombine.low %v65_v12, %v74_v13  ;;  %v2076_v20 = vcombine.high %v65_v12, %v74_v13  ;;  %v2673_v11 = vld [vmem:[%s3369_s2 + $0x30] ss:$8 sps:$4 sm:$0xff]   ;;  %v2678_v12 = vld [vmem:[%s3369_s2 + $0x44] ss:$8 sps:$4 sm:$0xff]  }
  0x60   :  { %2394 = vmatpush3.bf16.msra.mxu0 %v2613_v15  ;;  %v2648_v15 = vld [vmem:[%s3367_s1 + $0x440] sm:$0xff]  }
  0x61   :  { %2422 = vmatpush3.bf16.msra.mxu1 %v2615_v21  ;;  %2435 = vmatprep.subr.bf16.mxu0 %v2616_v22  ;;  %v31_v21 = vld [vmem:[%s3368_s0 + $0x80] sm:$0xff]  ;;  %v66_v22 = vmax.bf16 %v2688_v35, %v22_v16 }
  0x62   :  { %2463 = vmatprep.subr.bf16.mxu1 %v2618_v30  ;;  %v48_v30 = vld [vmem:[%s3368_s0 + $0x108] sm:$0xff] }
  0x63   :  { %1656 = vmatmul.mubr.bf16.vlgmr.msra.gmra.mrb[16].mxu0 %v2071_v23  ;;  %v75_v23 = vmax.bf16 %v2688_v35, %v31_v21  ;;  %v92_v32 = vmax.bf16 %v2688_v35, %v48_v30  ;;  %v2676_v16 = vld [vmem:[%s3369_s2 + $0x40] ss:$8 sps:$4 sm:$0xff]  }
  0x64   :  { %2436 = vmatpush3.bf16.msra.mxu0 %v2617_v29  ;;  %1705 = vmatmul.mubr.bf16.vlgmr.msra.gmra.mrb[16].mxu1 %v2073_v31  ;;  %v39_v29 = vld [vmem:[%s3368_s0 + $0xc0] sm:$0xff] }
  0x65   :  { %2437 = vmatprep.subr.bf16.mxu0 %v2620_v34  ;;  %2464 = vmatpush3.bf16.msra.mxu1 %v2619_v33  ;;  %v2077_v26 = vcombine.low %v66_v22, %v75_v23  ;;  %v2078_v27 = vcombine.high %v66_v22, %v75_v23  ;;  %v83_v31 = vmax.bf16 %v2688_v35, %v39_v29  ;;  %v2652_v33 = vld [vmem:[%s3367_s1 + $0x450] sm:$0xff]   ;;  %v40_v34 = vld [vmem:[%s3368_s0 + $0xc8] sm:$0xff] }
  0x66   :  { %2465 = vmatprep.subr.bf16.mxu1 %v2622_v37  ;;  %1663 = vmatprep.mubr.bf16.mxu0 %v2090_v46  ;;  %v84_v40 = vmax.bf16 %v2688_v35, %v40_v34  ;;  %v2681_v29 = vld [vmem:[%s3369_s2 + $0x54] ss:$8 sps:$4 sm:$0xff]  }
  0x67   :  { %1712 = vmatprep.mubr.bf16.mxu1 %v2092_v52  ;;  %v2094_v37 = vcombine.high %v83_v31, %v92_v32  ;;  %v32_v52 = vld [vmem:[%s3368_s0 + $0x88] sm:$0xff]  ;;  %v2687_v34 = vld [vmem:[%s3369_s2 + $0x74] ss:$8 sps:$4 sm:$0xff]  }
  0x68   :  { %2438 = vmatpush3.bf16.msra.mxu0 %v2621_v36  ;;  %v49_v36 = vld [vmem:[%s3368_s0 + $0x110] sm:$0xff] }
  0x69   :  { %2466 = vmatpush3.bf16.msra.mxu1 %v2623_v42  ;;  %2439 = vmatprep.subr.bf16.mxu0 %v2624_v43  ;;  %v93_v41 = vmax.bf16 %v2688_v35, %v49_v36  ;;  %v2093_v42 = vcombine.low %v83_v31, %v92_v32  ;;  %v2679_v31 = vld [vmem:[%s3369_s2 + $0x50] ss:$8 sps:$4 sm:$0xff]   ;;  %v2684_v32 = vld [vmem:[%s3369_s2 + $0x64] ss:$8 sps:$4 sm:$0xff]  }
  0x6a   :  { %2467 = vmatprep.subr.bf16.mxu1 %v2626_v51  ;;  %v2658_v51 = vld [vmem:[%s3367_s1 + $0x468] sm:$0xff]   ;;  %v2685_v36 = vld [vmem:[%s3369_s2 + $0x70] ss:$8 sps:$4 sm:$0xff]  }
  0x6b   :  { %1664 = vmatmul.mubr.bf16.gmra.mrb[20].mxu0 %v2089_v47  ;;  %v2096_v43 = vcombine.high %v84_v40, %v93_v41  ;;  %v2095_v46 = vcombine.low %v84_v40, %v93_v41  ;;  %v2655_v47 = vld [vmem:[%s3367_s1 + $0x418] sm:$0xff]  }
  0x6c   :  { %2440 = vmatpush3.bf16.msra.mxu0 %v2625_v50  ;;  %1713 = vmatmul.mubr.bf16.gmra.mrb[20].mxu1 %v2091_v53  ;;  %v23_v50 = vld [vmem:[%s3368_s0 + $0x40] sm:$0xff] }
  0x6d   :  { %2441 = vmatprep.subr.bf16.mxu0 %v2628_v55  ;;  %2468 = vmatpush3.bf16.msra.mxu1 %v2627_v54  ;;  %v67_v53 = vmax.bf16 %v2688_v35, %v23_v50  ;;  %v76_v54 = vmax.bf16 %v2688_v35, %v32_v52  ;;  %v2659_v55 = vld [vmem:[%s3367_s1 + $0x428] sm:$0xff]  }
  0x6e   :  { %2469 = vmatprep.subr.bf16.mxu1 %v2630_v57  ;;  %1753 = vmatprep.mubr.bf16.mxu0 %v2076_v20  ;;  %v2660_v57 = vld [vmem:[%s3367_s1 + $0x470] sm:$0xff]  }
  0x6f   :  { %1802 = vmatprep.mubr.bf16.mxu1 %v2078_v27 }
  0x70   :  { %2442 = vmatpush3.bf16.msra.mxu0 %v2629_v56  ;;  %v2080_v56 = vcombine.high %v67_v53, %v76_v54 }
  0x71   :  { %2443 = vmatprep.subr.bf16.mxu0 %v2632_v59  ;;  %2470 = vmatpush3.bf16.msra.mxu1 %v2631_v58  ;;  %v2661_v58 = vld [vmem:[%s3367_s1 + $0x430] sm:$0xff]   ;;  %v2662_v59 = vld [vmem:[%s3367_s1 + $0x478] sm:$0xff]  }
  0x72   :  { %2471 = vmatprep.subr.bf16.mxu1 %v2634_v61  ;;  %v50_v61 = vld [vmem:[%s3368_s0 + $0x118] sm:$0xff] }
  0x74   :  { %2444 = vmatpush3.bf16.msra.mxu0 %v2633_v60  ;;  %v41_v60 = vld [vmem:[%s3368_s0 + $0xd0] sm:$0xff] }
  0x75   :  { %2445 = vmatprep.subr.bf16.mxu0 %v2636_v63  ;;  %2472 = vmatpush3.bf16.msra.mxu1 %v2635_v62  ;;  %v2663_v62 = vld [vmem:[%s3367_s1 + $0x438] sm:$0xff]   ;;  %v85_v63 = vmax.bf16 %v2688_v35, %v41_v60 }
  0x76   :  { %2473 = vmatprep.subr.bf16.mxu1 %v2638_v1  ;;  %v2079_v1 = vcombine.low %v67_v53, %v76_v54 }
  0x78   :  { %2446 = vmatpush3.bf16.msra.mxu0 %v2637_v0  ;;  %v94_v0 = vmax.bf16 %v2688_v35, %v50_v61 }
  0x79   :  { %2447 = vmatprep.subr.bf16.mxu0 %v2640_v3  ;;  %2474 = vmatpush3.bf16.msra.mxu1 %v2639_v2 }
  0x7a   :  { %2475 = vmatprep.subr.bf16.mxu1 %v2642_v5  ;;  %v2098_v2 = vcombine.high %v85_v63, %v94_v0  ;;  %v2097_v3 = vcombine.low %v85_v63, %v94_v0  ;;  %v2664_v5 = vld [vmem:[%s3369_s2] ss:$8 sps:$4 sm:$0xff]  }
  0x7c   :  { %2448 = vmatpush3.bf16.msra.mxu0 %v2641_v4  ;;  %v2666_v4 = vld [vmem:[%s3369_s2 + $0x4] ss:$8 sps:$4 sm:$0xff]  }
  0x7d   :  { %2449 = vmatprep.subr.bf16.mxu0 %v2644_v7  ;;  %2476 = vmatpush3.bf16.msra.mxu1 %v2643_v6  ;;  %v2669_v6 = vld [vmem:[%s3369_s2 + $0x14] ss:$8 sps:$4 sm:$0xff]   ;;  %v2667_v7 = vld [vmem:[%s3369_s2 + $0x10] ss:$8 sps:$4 sm:$0xff]  }
  0x7e   :  { %2477 = vmatprep.subr.bf16.mxu1 %v2646_v9  ;;  %v2670_v9 = vld [vmem:[%s3369_s2 + $0x20] ss:$8 sps:$4 sm:$0xff]  }
  0x80   :  { %2450 = vmatpush3.bf16.msra.mxu0 %v2645_v8  ;;  %v2672_v8 = vld [vmem:[%s3369_s2 + $0x24] ss:$8 sps:$4 sm:$0xff]  }
  0x81   :  { %2478 = vmatpush3.bf16.msra.mxu1 %v2647_v14  ;;  %2491 = vmatprep.subr.bf16.mxu0 %v2648_v15 }
  0x82   :  { %1970 = vmatprep.subr.bf16.mxu1 %v2666_v4 }
  0x83   :  { %1754 = vmatmul.mubr.bf16.vlgmr.msra.gmra.mrb[24].mxu0 %v2075_v19 }
  0x84   :  { %2492 = vmatpush3.bf16.msra.mxu0 %v2649_v24  ;;  %1803 = vmatmul.mubr.bf16.vlgmr.msra.gmra.mrb[24].mxu1 %v2077_v26 }
  0x85   :  { %2493 = vmatprep.subr.bf16.mxu0 %v2650_v25  ;;  %1761 = vmatprep.mubr.bf16.mxu0 %v2094_v37 }
  0x86   :  { %1810 = vmatprep.mubr.bf16.mxu1 %v2096_v43  ;;  %1971 = vmatpush1.bf16.msra.mxu1 %v2664_v5 }
  0x87   :  { %1972 = vmatprep.subr.bf16.mxu1 %v2669_v6 }
  0x88   :  { %2494 = vmatpush3.bf16.msra.mxu0 %v2651_v28 }
  0x89   :  { %2495 = vmatprep.subr.bf16.mxu0 %v2652_v33  ;;  %v2682_v33 = vld [vmem:[%s3369_s2 + $0x60] ss:$8 sps:$4 sm:$0xff]  }
  0x8a   :  { %1973 = vmatpush1.bf16.msra.mxu1 %v2667_v7 }
  0x8b   :  { %1762 = vmatmul.mubr.bf16.gmra.mrb[28].mxu0 %v2093_v42  ;;  %1974 = vmatprep.subr.bf16.mxu1 %v2672_v8 }
  0x8c   :  { %2496 = vmatpush3.bf16.msra.mxu0 %v2653_v44  ;;  %1811 = vmatmul.mubr.bf16.gmra.mrb[28].mxu1 %v2095_v46 }
  0x8d   :  { %2497 = vmatprep.subr.bf16.mxu0 %v2654_v45  ;;  %2002 = vmatprep.mubr.bf16.mxu1 %v2688_v35 }
  0x8e   :  { %1851 = vmatprep.mubr.bf16.mxu0 %v2080_v56  ;;  %1975 = vmatpush1.bf16.msra.mxu1 %v2670_v9 }
  0x8f   :  { %1976 = vmatprep.subr.bf16.mxu1 %v2675_v10 }
  0x90   :  { %2498 = vmatpush3.bf16.msra.mxu0 %v2655_v47 }
  0x91   :  { %2499 = vmatprep.subr.bf16.mxu0 %v2656_v48 }
  0x92   :  { %1977 = vmatpush1.bf16.msra.mxu1 %v2673_v11 }
  0x93   :  { %1978 = vmatprep.subr.bf16.mxu1 %v2678_v12 }
  0x94   :  { %2500 = vmatpush3.bf16.msra.mxu0 %v2657_v49 }
  0x95   :  { %2501 = vmatprep.subr.bf16.mxu0 %v2658_v51 }
  0x96   :  { %1979 = vmatpush1.bf16.msra.mxu1 %v2676_v16 }
  0x97   :  { %1980 = vmatprep.subr.bf16.mxu1 %v2681_v29 }
  0x98   :  { %2502 = vmatpush3.bf16.msra.mxu0 %v2659_v55 }
  0x99   :  { %2503 = vmatprep.subr.bf16.mxu0 %v2660_v57 }
  0x9a   :  { %1981 = vmatpush1.bf16.msra.mxu1 %v2679_v31 }
  0x9b   :  { %1982 = vmatprep.subr.bf16.mxu1 %v2684_v32 }
  0x9c   :  { %2504 = vmatpush3.bf16.msra.mxu0 %v2661_v58 }
  0x9d   :  { %2505 = vmatprep.subr.bf16.mxu0 %v2662_v59 }
  0x9e   :  { %1983 = vmatpush1.bf16.msra.mxu1 %v2682_v33 }
  0x9f   :  { %1984 = vmatprep.subr.bf16.mxu1 %v2687_v34 }
  0xa0   :  { %2506 = vmatpush3.bf16.msra.mxu0 %v2663_v62 }
  0xa2   :  { %1985 = vmatpush1.bf16.msra.mxu1 %v2685_v36 }
  0xa3   :  { %1852 = vmatmul.mubr.bf16.vlgmr.msra.gmra.mrb[32].mxu0 %v2079_v1 }
  0xa4   :  { %1859 = vmatprep.mubr.bf16.mxu0 %v2098_v2 }
  0xab   :  { %1860 = vmatmul.mubr.bf16.gmra.mrb[36].mxu0 %v2097_v3 }
  0xf6   :  { %v2283_v13 = vpop.f32.mrb[0].mxu0 }
  0xf7   :  { %v2311_v14 = vpop.f32.mrb[0].mxu1  ;;  %v2284_v15 = vpop.f32.mrb[1].mxu0 }
  0xf8   :  { %v2285_v19 = vadd.f32 %v2284_v15, %v2283_v13  ;;  %v2312_v20 = vpop.f32.mrb[1].mxu1  ;;  %v2286_v21 = vpop.f32.mrb[2].mxu0 }
  0xf9   :  { %v2313_v22 = vadd.f32 %v2312_v20, %v2311_v14  ;;  %v2314_v23 = vpop.f32.mrb[2].mxu1  ;;  %v2287_v24 = vpop.f32.mrb[3].mxu0 }
  0xfa   :  { %v2288_v25 = vadd.f32 %v2287_v24, %v2286_v21  ;;  %v2315_v26 = vpop.f32.mrb[3].mxu1 }
  0xfb   :  { %v1511_v27 = vadd.f32 %v2313_v22, %v2285_v19  ;;  %v2316_v28 = vadd.f32 %v2315_v26, %v2314_v23 }
  0xfd   :  { %v1514_v30 = vadd.f32 %v2316_v28, %v2288_v25 }
  0xfe   :  { %v2289_v37 = vpop.f32.mrb[4].mxu0 }
  0xff   :  { %v2317_v40 = vpop.f32.mrb[4].mxu1  ;;  %v2290_v41 = vpop.f32.mrb[5].mxu0 }
 0x100   :  { %v2291_v42 = vadd.f32 %v2290_v41, %v2289_v37  ;;  %v2318_v43 = vpop.f32.mrb[5].mxu1  ;;  %v2292_v44 = vpop.f32.mrb[6].mxu0 }
 0x101   :  { %v2319_v45 = vadd.f32 %v2318_v43, %v2317_v40  ;;  %v2320_v46 = vpop.f32.mrb[6].mxu1  ;;  %v2293_v47 = vpop.f32.mrb[7].mxu0 }
 0x102   :  { %v2294_v48 = vadd.f32 %v2293_v47, %v2292_v44  ;;  %v2321_v49 = vpop.f32.mrb[7].mxu1 }
 0x103   :  { %v1519_v50 = vadd.f32 %v2319_v45, %v2291_v42  ;;  %v2322_v51 = vadd.f32 %v2321_v49, %v2320_v46 }
 0x105   :  { %v1522_v52 = vadd.f32 %v2322_v51, %v2294_v48 }
 0x116   :  { %v2339_v53 = vpop.f32.mrb[8].mxu0 }
 0x117   :  { %v2340_v54 = vpop.f32.mrb[9].mxu0  ;;  %v2367_v57 = vpop.f32.mrb[8].mxu1 }
 0x118   :  { %v2341_v55 = vadd.f32 %v2340_v54, %v2339_v53  ;;  %v2342_v56 = vpop.f32.mrb[10].mxu0  ;;  %v2368_v59 = vpop.f32.mrb[9].mxu1 }
 0x119   :  { %v2343_v58 = vpop.f32.mrb[11].mxu0  ;;  %v2369_v62 = vadd.f32 %v2368_v59, %v2367_v57  ;;  %v2370_v63 = vpop.f32.mrb[10].mxu1 }
 0x11a   :  { %v1560_v60 = vadd.f32 %v2341_v55, %v1511_v27  ;;  %v2344_v61 = vadd.f32 %v2343_v58, %v2342_v56  ;;  %v2371_v0 = vpop.f32.mrb[11].mxu1 }
 0x11b   :  { %v2372_v3 = vadd.f32 %v2371_v0, %v2370_v63 }
 0x11c   :  { %v1563_v1 = vadd.f32 %v2344_v61, %v1514_v30  ;;  %v1609_v2 = vadd.f32 %v2369_v62, %v1560_v60 }
 0x11e   :  { %v1612_v4 = vadd.f32 %v2372_v3, %v1563_v1  ;;  %v2345_v5 = vpop.f32.mrb[12].mxu0 }
 0x11f   :  { %v2346_v6 = vpop.f32.mrb[13].mxu0  ;;  %v2373_v9 = vpop.f32.mrb[12].mxu1 }
 0x120   :  { %v2347_v7 = vadd.f32 %v2346_v6, %v2345_v5  ;;  %v2348_v8 = vpop.f32.mrb[14].mxu0  ;;  %v2374_v13 = vpop.f32.mrb[13].mxu1 }
 0x121   :  { %v2349_v10 = vpop.f32.mrb[15].mxu0  ;;  %v2375_v14 = vadd.f32 %v2374_v13, %v2373_v9  ;;  %v2376_v15 = vpop.f32.mrb[14].mxu1 }
 0x122   :  { %v1568_v11 = vadd.f32 %v2347_v7, %v1519_v50  ;;  %v2350_v12 = vadd.f32 %v2349_v10, %v2348_v8  ;;  %v2377_v19 = vpop.f32.mrb[15].mxu1 }
 0x123   :  { %v2378_v21 = vadd.f32 %v2377_v19, %v2376_v15 }
 0x124   :  { %v1571_v16 = vadd.f32 %v2350_v12, %v1522_v52  ;;  %v1617_v20 = vadd.f32 %v2375_v14, %v1568_v11 }
 0x126   :  { %v1620_v22 = vadd.f32 %v2378_v21, %v1571_v16 }
 0x136   :  { %v2395_v23 = vpop.f32.mrb[16].mxu0 }
 0x137   :  { %v2396_v24 = vpop.f32.mrb[17].mxu0  ;;  %v2423_v27 = vpop.f32.mrb[16].mxu1 }
 0x138   :  { %v2397_v25 = vadd.f32 %v2396_v24, %v2395_v23  ;;  %v2398_v26 = vpop.f32.mrb[18].mxu0  ;;  %v2424_v31 = vpop.f32.mrb[17].mxu1 }
 0x139   :  { %v2399_v28 = vpop.f32.mrb[19].mxu0  ;;  %v2425_v32 = vadd.f32 %v2424_v31, %v2423_v27  ;;  %v2426_v33 = vpop.f32.mrb[18].mxu1 }
 0x13a   :  { %v1658_v29 = vadd.f32 %v2397_v25, %v1609_v2  ;;  %v2400_v30 = vadd.f32 %v2399_v28, %v2398_v26  ;;  %v2427_v36 = vpop.f32.mrb[19].mxu1 }
 0x13b   :  { %v2428_v40 = vadd.f32 %v2427_v36, %v2426_v33 }
 0x13c   :  { %v1661_v34 = vadd.f32 %v2400_v30, %v1612_v4  ;;  %v1707_v37 = vadd.f32 %v2425_v32, %v1658_v29 }
 0x13e   :  { %v1710_v41 = vadd.f32 %v2428_v40, %v1661_v34  ;;  %v2401_v42 = vpop.f32.mrb[20].mxu0 }
 0x13f   :  { %v2402_v43 = vpop.f32.mrb[21].mxu0  ;;  %v2429_v46 = vpop.f32.mrb[20].mxu1 }
 0x140   :  { %v2403_v44 = vadd.f32 %v2402_v43, %v2401_v42  ;;  %v2404_v45 = vpop.f32.mrb[22].mxu0  ;;  %v2430_v48 = vpop.f32.mrb[21].mxu1 }
 0x141   :  { %v2405_v47 = vpop.f32.mrb[23].mxu0  ;;  %v2431_v51 = vadd.f32 %v2430_v48, %v2429_v46  ;;  %v2432_v52 = vpop.f32.mrb[22].mxu1 }
 0x142   :  { %v1666_v49 = vadd.f32 %v2403_v44, %v1617_v20  ;;  %v2406_v50 = vadd.f32 %v2405_v47, %v2404_v45  ;;  %v2433_v53 = vpop.f32.mrb[23].mxu1 }
 0x143   :  { %v2434_v56 = vadd.f32 %v2433_v53, %v2432_v52  ;;  %v51_v53 = vunpack.c.l.bf16 %v3061_v17 }
 0x144   :  { %v1669_v54 = vadd.f32 %v2406_v50, %v1620_v22  ;;  %v1715_v55 = vadd.f32 %v2431_v51, %v1666_v49 }
 0x146   :  { %v1718_v57 = vadd.f32 %v2434_v56, %v1669_v54  ;;  %v52_v54 = vunpack.c.h.bf16 %v3061_v17  ;;  %v56_v17 = vunpack.c.h.bf16 %v3107_v38 }
 0x156   :  { %v2451_v58 = vpop.f32.mrb[24].mxu0 }
 0x157   :  { %v2452_v59 = vpop.f32.mrb[25].mxu0  ;;  %v2479_v62 = vpop.f32.mrb[24].mxu1 }
 0x158   :  { %v2453_v60 = vadd.f32 %v2452_v59, %v2451_v58  ;;  %v2454_v61 = vpop.f32.mrb[26].mxu0  ;;  %v2480_v2 = vpop.f32.mrb[25].mxu1 }
 0x159   :  { %v2455_v63 = vpop.f32.mrb[27].mxu0  ;;  %v2481_v3 = vadd.f32 %v2480_v2, %v2479_v62  ;;  %v2482_v4 = vpop.f32.mrb[26].mxu1 }
 0x15a   :  { %v1756_v0 = vadd.f32 %v2453_v60, %v1707_v37  ;;  %v2456_v1 = vadd.f32 %v2455_v63, %v2454_v61  ;;  %v2483_v6 = vpop.f32.mrb[27].mxu1 }
 0x15b   :  { %v2484_v8 = vadd.f32 %v2483_v6, %v2482_v4  ;;  %v57_v6 = vunpack.c.l.bf16 %v3112_v39 }
 0x15c   :  { %v1759_v5 = vadd.f32 %v2456_v1, %v1710_v41  ;;  %v1805_v7 = vadd.f32 %v2481_v3, %v1756_v0  ;;  %v55_v3 = vunpack.c.l.bf16 %v3107_v38 }
 0x15e   :  { %v2457_v9 = vpop.f32.mrb[28].mxu0  ;;  %v1808_v10 = vadd.f32 %v2484_v8, %v1759_v5  ;;  %v58_v8 = vunpack.c.h.bf16 %v3112_v39 }
 0x15f   :  { %v2458_v11 = vpop.f32.mrb[29].mxu0  ;;  %v2485_v14 = vpop.f32.mrb[28].mxu1 }
 0x160   :  { %v2459_v12 = vadd.f32 %v2458_v11, %v2457_v9  ;;  %v2460_v13 = vpop.f32.mrb[30].mxu0  ;;  %v2486_v20 = vpop.f32.mrb[29].mxu1 }
 0x161   :  { %v2461_v15 = vpop.f32.mrb[31].mxu0  ;;  %v2487_v21 = vadd.f32 %v2486_v20, %v2485_v14  ;;  %v2488_v22 = vpop.f32.mrb[30].mxu1 }
 0x162   :  { %v1764_v16 = vadd.f32 %v2459_v12, %v1715_v55  ;;  %v2462_v19 = vadd.f32 %v2461_v15, %v2460_v13  ;;  %v2489_v24 = vpop.f32.mrb[31].mxu1  ;;  %v53_v55 = vunpack.c.l.bf16 %v3066_v18 }
 0x163   :  { %v2490_v26 = vadd.f32 %v2489_v24, %v2488_v22 }
 0x164   :  { %v1767_v23 = vadd.f32 %v2462_v19, %v1718_v57  ;;  %v1813_v25 = vadd.f32 %v2487_v21, %v1764_v16  ;;  %v54_v57 = vunpack.c.h.bf16 %v3066_v18 }
 0x166   :  { %v1816_v27 = vadd.f32 %v2490_v26, %v1767_v23 }
 0x176   :  { %v2507_v28 = vpop.f32.mrb[32].mxu0 }
 0x177   :  { %v2508_v29 = vpop.f32.mrb[33].mxu0 }
 0x178   :  { %v2509_v30 = vadd.f32 %v2508_v29, %v2507_v28  ;;  %v2510_v31 = vpop.f32.mrb[34].mxu0 }
 0x179   :  { %v2511_v32 = vpop.f32.mrb[35].mxu0 }
 0x17a   :  { %v1854_v33 = vadd.f32 %v2509_v30, %v1805_v7  ;;  %v2512_v34 = vadd.f32 %v2511_v32, %v2510_v31 }
 0x17c   :  { %v1857_v36 = vadd.f32 %v2512_v34, %v1808_v10  ;;  %v1868_v37 = vmax.f32 %v1854_v33, 0.0 }
 0x17e   :  { %v1869_v40 = vmax.f32 %v1857_v36, 0.0  ;;  %v2513_v41 = vpop.f32.mrb[36].mxu0 }
 0x17f   :  { %v2514_v42 = vpop.f32.mrb[37].mxu0 }
 0x180   :  { %v1872_v43 = vpack.c.bf16 %v1869_v40, %v1868_v37  ;;  %v2515_v44 = vadd.f32 %v2514_v42, %v2513_v41  ;;  %v2516_v45 = vpop.f32.mrb[38].mxu0 }
 0x181   :  { %v2517_v46 = vpop.f32.mrb[39].mxu0 }
 0x182   :  { %v1862_v47 = vadd.f32 %v2515_v44, %v1813_v25  ;;  %v2518_v48 = vadd.f32 %v2517_v46, %v2516_v45  ;;  %2003 = vmatmul.mubr.bf16.vlgmr.msra.gmra.mrb[32].mxu1 %v1872_v43 }
 0x183   :  { %2012 = vmatprep.mubr.bf16.mxu1 %v2688_v35 }
 0x184   :  { %v1865_v49 = vadd.f32 %v2518_v48, %v1816_v27  ;;  %v1870_v50 = vmax.f32 %v1862_v47, 0.0 }
 0x186   :  { %v1871_v51 = vmax.f32 %v1865_v49, 0.0 }
 0x188   :  { %v1873_v52 = vpack.c.bf16 %v1871_v51, %v1870_v50 }
 0x18a   :  { %2013 = vmatmul.mubr.bf16.gmra.mrb[36].mxu1 %v1873_v52 }
 0x255   :  { %v2004_v56 = vpop.f32.mrb[32].mxu1 }
 0x256   :  { %v2005_v58 = vadd.f32 %v2004_v56, %v51_v53  ;;  %v2006_v59 = vpop.f32.mrb[33].mxu1 }
 0x257   :  { %v2007_v60 = vadd.f32 %v2006_v59, %v52_v54  ;;  %v2008_v61 = vpop.f32.mrb[34].mxu1 }
 0x258   :  { %v2023_v62 = vmax.f32 %v2005_v58, 0.0  ;;  %v2009_v35 = vadd.f32 %v2008_v61, %v53_v55  ;;  %v2010_v63 = vpop.f32.mrb[35].mxu1 }
 0x259   :  { %v2024_v0 = vmax.f32 %v2007_v60, 0.0  ;;  %v2011_v1 = vadd.f32 %v2010_v63, %v54_v57 }
 0x25a   :  { %v2025_v2 = vmax.f32 %v2009_v35, 0.0 }
 0x25b   :  { %v2263_v4 = vpack.c.bf16 %v2024_v0, %v2023_v62  ;;  %v2026_v5 = vmax.f32 %v2011_v1, 0.0 }
 0x25d   :  { %2055 = vst [vmem:[%s3370_s3] sm:$0xff] %v2263_v4  ;;  %v2264_v18 = vpack.c.bf16 %v2026_v5, %v2025_v2  ;;  %v2014_v7 = vpop.f32.mrb[36].mxu1 }
 0x25e   :  { %v2015_v9 = vadd.f32 %v2014_v7, %v55_v3  ;;  %v2016_v10 = vpop.f32.mrb[37].mxu1 }
 0x25f   :  { %2056 = vst [vmem:[%s3370_s3 + $0x8] sm:$0xff] %v2264_v18  ;;  %v2017_v11 = vadd.f32 %v2016_v10, %v56_v17  ;;  %v2018_v12 = vpop.f32.mrb[38].mxu1 }
 0x260   :  { %v2027_v13 = vmax.f32 %v2015_v9, 0.0  ;;  %v2019_v38 = vadd.f32 %v2018_v12, %v57_v6  ;;  %v2020_v14 = vpop.f32.mrb[39].mxu1 }
 0x261   :  { %v2028_v15 = vmax.f32 %v2017_v11, 0.0  ;;  %v2021_v16 = vadd.f32 %v2020_v14, %v58_v8 }
 0x262   :  { %v2029_v19 = vmax.f32 %v2019_v38, 0.0 }
 0x263   :  { %v2265_v20 = vpack.c.bf16 %v2028_v15, %v2027_v13  ;;  %v2030_v21 = vmax.f32 %v2021_v16, 0.0 }
 0x265   :  { %2057 = vst [vmem:[%s3370_s3 + $0x10] sm:$0xff] %v2265_v20  ;;  %v2266_v39 = vpack.c.bf16 %v2030_v21, %v2029_v19 }
 0x267   :  { %2058 = vst [vmem:[%s3370_s3 + $0x18] sm:$0xff] %v2266_v39 }

// kernel: autoencoder_forward.19
= control target key start
LH: loop header
LB: loop body
LE: loop exit
PB: predicated region body
PF: predicated region fallthrough
CT: control target
= control target key end

     0   :  { %s2788_s1 = inlined_call_operand.vmem [shape: bf16[1152,128], index: 1, kind: input, shape index: {}]   ;;  %s2789_s0 = inlined_call_operand.vmem [shape: bf16[128,1152], index: 0, kind: input, shape index: {}]   ;;  %s2790_s2 = inlined_call_operand.vmem [shape: f32[1,128], index: 2, kind: input, shape index: {}]   ;;  %s2791_s3 = inlined_call_operand.vmem [shape: f32[128,128], index: 3, kind: output, shape index: {}]  }
   0x1   :  { %v2016_v0 = vld [vmem:[%s2788_s1 + $0x40] sm:$0xff]   ;;  %v2020_v4 = vld [vmem:[%s2788_s1 + $0x48] sm:$0xff]   ;;  %v2024_v8 = vld [vmem:[%s2788_s1 + $0x50] sm:$0xff]  }
   0x2   :  { %v2017_v1 = vld [vmem:[%s2788_s1 + $0xc0] sm:$0xff]   ;;  %1696 = vmatprep.subr.bf16.mxu0 %v2016_v0  ;;  %v2021_v5 = vld [vmem:[%s2788_s1 + $0xc8] sm:$0xff]   ;;  %v2025_v9 = vld [vmem:[%s2788_s1 + $0xd0] sm:$0xff]  }
   0x3   :  { %v2018_v2 = vld [vmem:[%s2788_s1] sm:$0xff]   ;;  %1760 = vmatprep.subr.bf16.mxu1 %v2017_v1  ;;  %v2022_v6 = vld [vmem:[%s2788_s1 + $0x8] sm:$0xff]   ;;  %v2026_v10 = vld [vmem:[%s2788_s1 + $0x10] sm:$0xff]  }
   0x4   :  { %v2019_v3 = vld [vmem:[%s2788_s1 + $0x80] sm:$0xff]   ;;  %1697 = vmatpush3.bf16.msra.mxu0 %v2018_v2  ;;  %v2023_v7 = vld [vmem:[%s2788_s1 + $0x88] sm:$0xff]   ;;  %v2027_v11 = vld [vmem:[%s2788_s1 + $0x90] sm:$0xff]  }
   0x5   :  { %1761 = vmatpush3.bf16.msra.mxu1 %v2019_v3  ;;  %1698 = vmatprep.subr.bf16.mxu0 %v2020_v4  ;;  %v2028_v12 = vld [vmem:[%s2788_s1 + $0x58] sm:$0xff]   ;;  %v2032_v16 = vld [vmem:[%s2788_s1 + $0x60] sm:$0xff]   ;;  %v2036_v20 = vld [vmem:[%s2788_s1 + $0x68] sm:$0xff]  }
   0x6   :  { %1762 = vmatprep.subr.bf16.mxu1 %v2021_v5  ;;  %v2029_v13 = vld [vmem:[%s2788_s1 + $0xd8] sm:$0xff]   ;;  %v2033_v17 = vld [vmem:[%s2788_s1 + $0xe0] sm:$0xff]   ;;  %v2037_v21 = vld [vmem:[%s2788_s1 + $0xe8] sm:$0xff]  }
   0x7   :  { %v2030_v14 = vld [vmem:[%s2788_s1 + $0x18] sm:$0xff]   ;;  %v2034_v18 = vld [vmem:[%s2788_s1 + $0x20] sm:$0xff]   ;;  %v2038_v22 = vld [vmem:[%s2788_s1 + $0x28] sm:$0xff]  }
   0x8   :  { %1699 = vmatpush3.bf16.msra.mxu0 %v2022_v6  ;;  %v2031_v15 = vld [vmem:[%s2788_s1 + $0x98] sm:$0xff]   ;;  %v2035_v19 = vld [vmem:[%s2788_s1 + $0xa0] sm:$0xff]   ;;  %v2039_v23 = vld [vmem:[%s2788_s1 + $0xa8] sm:$0xff]  }
   0x9   :  { %1763 = vmatpush3.bf16.msra.mxu1 %v2023_v7  ;;  %1700 = vmatprep.subr.bf16.mxu0 %v2024_v8  ;;  %v2040_v24 = vld [vmem:[%s2788_s1 + $0x70] sm:$0xff]   ;;  %v2044_v28 = vld [vmem:[%s2788_s1 + $0x78] sm:$0xff]   ;;  %v2048_v32 = vld [vmem:[%s2789_s0] ss:$36 sps:$4 sm:$0xff]  }
   0xa   :  { %1764 = vmatprep.subr.bf16.mxu1 %v2025_v9  ;;  %v2041_v25 = vld [vmem:[%s2788_s1 + $0xf0] sm:$0xff]   ;;  %v2045_v29 = vld [vmem:[%s2788_s1 + $0xf8] sm:$0xff]   ;;  %v2050_v33 = vld [vmem:[%s2789_s0 + $0x4] ss:$36 sps:$4 sm:$0xff]  }
   0xb   :  { %v2042_v26 = vld [vmem:[%s2788_s1 + $0x30] sm:$0xff]   ;;  %v2046_v30 = vld [vmem:[%s2788_s1 + $0x38] sm:$0xff]   ;;  %v2051_v34 = vld [vmem:[%s2789_s0 + $0x8] ss:$36 sps:$4 sm:$0xff]   ;;  %1078 = vmatprep.mubr.bf16.mxu0 %v2050_v33 }
   0xc   :  { %1701 = vmatpush3.bf16.msra.mxu0 %v2026_v10  ;;  %v2043_v27 = vld [vmem:[%s2788_s1 + $0xb0] sm:$0xff]   ;;  %v2047_v31 = vld [vmem:[%s2788_s1 + $0xb8] sm:$0xff]   ;;  %v2054_v36 = vld [vmem:[%s2788_s1 + $0x140] sm:$0xff]  }
   0xd   :  { %1765 = vmatpush3.bf16.msra.mxu1 %v2027_v11  ;;  %1702 = vmatprep.subr.bf16.mxu0 %v2028_v12  ;;  %v2053_v35 = vld [vmem:[%s2789_s0 + $0xc] ss:$36 sps:$4 sm:$0xff]   ;;  %v2055_v37 = vld [vmem:[%s2788_s1 + $0x1c0] sm:$0xff]   ;;  %v2060_v41 = vld [vmem:[%s2789_s0 + $0x54] ss:$36 sps:$4 sm:$0xff]  }
   0xe   :  { %1766 = vmatprep.subr.bf16.mxu1 %v2029_v13  ;;  %1175 = vmatprep.mubr.bf16.mxu1 %v2053_v35  ;;  %v2056_v38 = vld [vmem:[%s2788_s1 + $0x100] sm:$0xff]   ;;  %v2058_v40 = vld [vmem:[%s2789_s0 + $0x4c] ss:$36 sps:$4 sm:$0xff]   ;;  %v2068_v48 = vld [vmem:[%s2789_s0 + $0x94] ss:$36 sps:$4 sm:$0xff]  }
   0xf   :  { %v2057_v39 = vld [vmem:[%s2788_s1 + $0x180] sm:$0xff]   ;;  %v2062_v42 = vld [vmem:[%s2789_s0 + $0x48] ss:$36 sps:$4 sm:$0xff]   ;;  %v2063_v43 = vld [vmem:[%s2789_s0 + $0x50] ss:$36 sps:$4 sm:$0xff]  }
  0x10   :  { %1703 = vmatpush3.bf16.msra.mxu0 %v2030_v14  ;;  %v2064_v44 = vld [vmem:[%s2788_s1 + $0x148] sm:$0xff]   ;;  %v2070_v49 = vld [vmem:[%s2789_s0 + $0x9c] ss:$36 sps:$4 sm:$0xff]   ;;  %v2072_v50 = vld [vmem:[%s2789_s0 + $0x90] ss:$36 sps:$4 sm:$0xff]  }
  0x11   :  { %1767 = vmatpush3.bf16.msra.mxu1 %v2031_v15  ;;  %1704 = vmatprep.subr.bf16.mxu0 %v2032_v16  ;;  %v2065_v45 = vld [vmem:[%s2788_s1 + $0x1c8] sm:$0xff]   ;;  %v2073_v51 = vld [vmem:[%s2789_s0 + $0x98] ss:$36 sps:$4 sm:$0xff]   ;;  %v2074_v52 = vld [vmem:[%s2788_s1 + $0x150] sm:$0xff]  }
  0x12   :  { %1768 = vmatprep.subr.bf16.mxu1 %v2033_v17  ;;  %v2066_v46 = vld [vmem:[%s2788_s1 + $0x108] sm:$0xff]   ;;  %v2075_v53 = vld [vmem:[%s2788_s1 + $0x1d0] sm:$0xff]   ;;  %v2078_v56 = vld [vmem:[%s2789_s0 + $0xdc] ss:$36 sps:$4 sm:$0xff]  }
  0x13   :  { %v2067_v47 = vld [vmem:[%s2788_s1 + $0x188] sm:$0xff]   ;;  %v2076_v54 = vld [vmem:[%s2788_s1 + $0x110] sm:$0xff]   ;;  %v2082_v58 = vld [vmem:[%s2789_s0 + $0xd8] ss:$36 sps:$4 sm:$0xff]  }
  0x14   :  { %1705 = vmatpush3.bf16.msra.mxu0 %v2034_v18  ;;  %v2077_v55 = vld [vmem:[%s2788_s1 + $0x190] sm:$0xff]   ;;  %v2080_v57 = vld [vmem:[%s2789_s0 + $0xe4] ss:$36 sps:$4 sm:$0xff]   ;;  %v2084_v60 = vld [vmem:[%s2788_s1 + $0x158] sm:$0xff]  }
  0x15   :  { %1769 = vmatpush3.bf16.msra.mxu1 %v2035_v19  ;;  %1706 = vmatprep.subr.bf16.mxu0 %v2036_v20  ;;  %v2083_v59 = vld [vmem:[%s2789_s0 + $0xe0] ss:$36 sps:$4 sm:$0xff]   ;;  %v2085_v61 = vld [vmem:[%s2788_s1 + $0x1d8] sm:$0xff]   ;;  %v2090_v1 = vld [vmem:[%s2789_s0 + $0x12c] ss:$36 sps:$4 sm:$0xff]  }
  0x16   :  { %1770 = vmatprep.subr.bf16.mxu1 %v2037_v21  ;;  %v2086_v62 = vld [vmem:[%s2788_s1 + $0x118] sm:$0xff]   ;;  %v2088_v0 = vld [vmem:[%s2789_s0 + $0x124] ss:$36 sps:$4 sm:$0xff]   ;;  %v2098_v8 = vld [vmem:[%s2789_s0 + $0x16c] ss:$36 sps:$4 sm:$0xff]  }
  0x17   :  { %v2087_v63 = vld [vmem:[%s2788_s1 + $0x198] sm:$0xff]   ;;  %v2092_v2 = vld [vmem:[%s2789_s0 + $0x120] ss:$36 sps:$4 sm:$0xff]   ;;  %v2093_v4 = vld [vmem:[%s2789_s0 + $0x128] ss:$36 sps:$4 sm:$0xff]  }
  0x18   :  { %1707 = vmatpush3.bf16.msra.mxu0 %v2038_v22  ;;  %v2094_v3 = vld [vmem:[%s2788_s1 + $0x160] sm:$0xff]   ;;  %v2100_v9 = vld [vmem:[%s2789_s0 + $0x174] ss:$36 sps:$4 sm:$0xff]   ;;  %v2104_v10 = vld [vmem:[%s2788_s1 + $0x168] sm:$0xff]  }
  0x19   :  { %1771 = vmatpush3.bf16.msra.mxu1 %v2039_v23  ;;  %1708 = vmatprep.subr.bf16.mxu0 %v2040_v24  ;;  %v2095_v5 = vld [vmem:[%s2788_s1 + $0x1e0] sm:$0xff]   ;;  %v2105_v11 = vld [vmem:[%s2788_s1 + $0x1e8] sm:$0xff]   ;;  %v2103_v15 = vld [vmem:[%s2789_s0 + $0x170] ss:$36 sps:$4 sm:$0xff]  }
  0x1a   :  { %1772 = vmatprep.subr.bf16.mxu1 %v2041_v25  ;;  %v2096_v6 = vld [vmem:[%s2788_s1 + $0x120] sm:$0xff]   ;;  %v2102_v12 = vld [vmem:[%s2789_s0 + $0x168] ss:$36 sps:$4 sm:$0xff]   ;;  %v2108_v16 = vld [vmem:[%s2789_s0 + $0x1b4] ss:$36 sps:$4 sm:$0xff]  }
  0x1b   :  { %v2097_v7 = vld [vmem:[%s2788_s1 + $0x1a0] sm:$0xff]   ;;  %v2106_v13 = vld [vmem:[%s2788_s1 + $0x128] sm:$0xff]   ;;  %v2114_v18 = vld [vmem:[%s2788_s1 + $0x170] sm:$0xff]  }
  0x1c   :  { %1709 = vmatpush3.bf16.msra.mxu0 %v2042_v26  ;;  %v2107_v14 = vld [vmem:[%s2788_s1 + $0x1a8] sm:$0xff]   ;;  %v2110_v17 = vld [vmem:[%s2789_s0 + $0x1bc] ss:$36 sps:$4 sm:$0xff]   ;;  %v2115_v19 = vld [vmem:[%s2788_s1 + $0x1f0] sm:$0xff]  }
  0x1d   :  { %1773 = vmatpush3.bf16.msra.mxu1 %v2043_v27  ;;  %1710 = vmatprep.subr.bf16.mxu0 %v2044_v28  ;;  %v2116_v20 = vld [vmem:[%s2788_s1 + $0x130] sm:$0xff]   ;;  %v2113_v23 = vld [vmem:[%s2789_s0 + $0x1b8] ss:$36 sps:$4 sm:$0xff]   ;;  %v2120_v25 = vld [vmem:[%s2789_s0 + $0x204] ss:$36 sps:$4 sm:$0xff]  }
  0x1e   :  { %1774 = vmatprep.subr.bf16.mxu1 %v2045_v29  ;;  %v2117_v21 = vld [vmem:[%s2788_s1 + $0x1b0] sm:$0xff]   ;;  %v2118_v24 = vld [vmem:[%s2789_s0 + $0x1fc] ss:$36 sps:$4 sm:$0xff]  }
  0x1f   :  { %v2112_v22 = vld [vmem:[%s2789_s0 + $0x1b0] ss:$36 sps:$4 sm:$0xff]   ;;  %v2124_v26 = vld [vmem:[%s2788_s1 + $0x178] sm:$0xff]  }
  0x20   :  { %1711 = vmatpush3.bf16.msra.mxu0 %v2046_v30  ;;  %v2125_v27 = vld [vmem:[%s2788_s1 + $0x1f8] sm:$0xff]   ;;  %v2128_v35 = vld [vmem:[%s2789_s0 + $0x10] ss:$36 sps:$4 sm:$0xff]  }
  0x21   :  { %1775 = vmatpush3.bf16.msra.mxu1 %v2047_v31  ;;  %1824 = vmatprep.subr.bf16.mxu0 %v2054_v36  ;;  %v2126_v28 = vld [vmem:[%s2788_s1 + $0x138] sm:$0xff]   ;;  %v2123_v31 = vld [vmem:[%s2789_s0 + $0x200] ss:$36 sps:$4 sm:$0xff]  }
  0x22   :  { %1888 = vmatprep.subr.bf16.mxu1 %v2055_v37  ;;  %v2127_v29 = vld [vmem:[%s2788_s1 + $0x1b8] sm:$0xff]  }
  0x23   :  { %1079 = vmatmul.mubr.bf16.vlgmr.msra.gmra.mrb[0].mxu0 %v2048_v32  ;;  %v2122_v30 = vld [vmem:[%s2789_s0 + $0x1f8] ss:$36 sps:$4 sm:$0xff]   ;;  %v2134_v32 = vld [vmem:[%s2788_s1 + $0x200] sm:$0xff]  }
  0x24   :  { %1176 = vmatmul.mubr.bf16.vlgmr.msra.gmra.mrb[0].mxu1 %v2051_v34  ;;  %1825 = vmatpush3.bf16.msra.mxu0 %v2056_v38  ;;  %v2130_v33 = vld [vmem:[%s2789_s0 + $0x14] ss:$36 sps:$4 sm:$0xff]   ;;  %v2133_v34 = vld [vmem:[%s2789_s0 + $0x1c] ss:$36 sps:$4 sm:$0xff]   ;;  %v2137_v38 = vld [vmem:[%s2789_s0 + $0x64] ss:$36 sps:$4 sm:$0xff]  }
  0x25   :  { %1889 = vmatpush3.bf16.msra.mxu1 %v2057_v39  ;;  %1086 = vmatprep.mubr.bf16.mxu0 %v2058_v40  ;;  %v2131_v36 = vld [vmem:[%s2789_s0 + $0x18] ss:$36 sps:$4 sm:$0xff]   ;;  %v2141_v39 = vld [vmem:[%s2788_s1 + $0x208] sm:$0xff]   ;;  %v2148_v40 = vld [vmem:[%s2788_s1 + $0x210] sm:$0xff]  }
  0x26   :  { %1183 = vmatprep.mubr.bf16.mxu1 %v2060_v41  ;;  %1826 = vmatprep.subr.bf16.mxu0 %v2064_v44  ;;  %v2135_v37 = vld [vmem:[%s2789_s0 + $0x5c] ss:$36 sps:$4 sm:$0xff]   ;;  %v2144_v44 = vld [vmem:[%s2789_s0 + $0xac] ss:$36 sps:$4 sm:$0xff]  }
  0x27   :  { %1890 = vmatprep.subr.bf16.mxu1 %v2065_v45  ;;  %v2139_v41 = vld [vmem:[%s2789_s0 + $0x58] ss:$36 sps:$4 sm:$0xff]  }
  0x28   :  { %1827 = vmatpush3.bf16.msra.mxu0 %v2066_v46  ;;  %v2155_v45 = vld [vmem:[%s2788_s1 + $0x218] sm:$0xff]   ;;  %v2162_v46 = vld [vmem:[%s2788_s1 + $0x220] sm:$0xff]  }
  0x29   :  { %1891 = vmatpush3.bf16.msra.mxu1 %v2067_v47  ;;  %1828 = vmatprep.subr.bf16.mxu0 %v2074_v52  ;;  %v2146_v47 = vld [vmem:[%s2789_s0 + $0xa0] ss:$36 sps:$4 sm:$0xff]   ;;  %v2153_v52 = vld [vmem:[%s2789_s0 + $0xe8] ss:$36 sps:$4 sm:$0xff]  }
  0x2a   :  { %1892 = vmatprep.subr.bf16.mxu1 %v2075_v53  ;;  %v2176_v53 = vld [vmem:[%s2788_s1 + $0x230] sm:$0xff]  }
  0x2b   :  { %1087 = vmatmul.mubr.bf16.gmra.mrb[4].mxu0 %v2062_v42  ;;  %v2140_v42 = vld [vmem:[%s2789_s0 + $0x60] ss:$36 sps:$4 sm:$0xff]  }
  0x2c   :  { %1184 = vmatmul.mubr.bf16.gmra.mrb[4].mxu1 %v2063_v43  ;;  %1094 = vmatprep.mubr.bf16.mxu0 %v2068_v48  ;;  %v2142_v43 = vld [vmem:[%s2789_s0 + $0xa4] ss:$36 sps:$4 sm:$0xff]  }
  0x2d   :  { %1191 = vmatprep.mubr.bf16.mxu1 %v2070_v49  ;;  %1829 = vmatpush3.bf16.msra.mxu0 %v2076_v54  ;;  %v2147_v48 = vld [vmem:[%s2789_s0 + $0xa8] ss:$36 sps:$4 sm:$0xff]   ;;  %v2154_v54 = vld [vmem:[%s2789_s0 + $0xf0] ss:$36 sps:$4 sm:$0xff]  }
  0x2e   :  { %1893 = vmatpush3.bf16.msra.mxu1 %v2077_v55  ;;  %1830 = vmatprep.subr.bf16.mxu0 %v2084_v60  ;;  %v2149_v49 = vld [vmem:[%s2789_s0 + $0xec] ss:$36 sps:$4 sm:$0xff]   ;;  %v2156_v55 = vld [vmem:[%s2789_s0 + $0x134] ss:$36 sps:$4 sm:$0xff]   ;;  %v2163_v60 = vld [vmem:[%s2789_s0 + $0x17c] ss:$36 sps:$4 sm:$0xff]  }
  0x2f   :  { %1894 = vmatprep.subr.bf16.mxu1 %v2085_v61  ;;  %v2165_v61 = vld [vmem:[%s2789_s0 + $0x184] ss:$36 sps:$4 sm:$0xff]  }
  0x31   :  { %1831 = vmatpush3.bf16.msra.mxu0 %v2086_v62  ;;  %v2167_v62 = vld [vmem:[%s2789_s0 + $0x178] ss:$36 sps:$4 sm:$0xff]  }
  0x32   :  { %1895 = vmatpush3.bf16.msra.mxu1 %v2087_v63  ;;  %1832 = vmatprep.subr.bf16.mxu0 %v2094_v3  ;;  %v2168_v63 = vld [vmem:[%s2789_s0 + $0x180] ss:$36 sps:$4 sm:$0xff]   ;;  %v2175_v3 = vld [vmem:[%s2789_s0 + $0x1c8] ss:$36 sps:$4 sm:$0xff]  }
  0x33   :  { %1095 = vmatmul.mubr.bf16.gmra.mrb[8].mxu0 %v2072_v50  ;;  %1896 = vmatprep.subr.bf16.mxu1 %v2095_v5  ;;  %v2151_v50 = vld [vmem:[%s2789_s0 + $0xf4] ss:$36 sps:$4 sm:$0xff]  }
  0x34   :  { %1192 = vmatmul.mubr.bf16.gmra.mrb[8].mxu1 %v2073_v51  ;;  %1102 = vmatprep.mubr.bf16.mxu0 %v2078_v56  ;;  %v2169_v51 = vld [vmem:[%s2788_s1 + $0x228] sm:$0xff]   ;;  %v2158_v56 = vld [vmem:[%s2789_s0 + $0x13c] ss:$36 sps:$4 sm:$0xff]   ;;  %v2179_v5 = vld [vmem:[%s2789_s0 + $0x214] ss:$36 sps:$4 sm:$0xff]  }
  0x35   :  { %1199 = vmatprep.mubr.bf16.mxu1 %v2080_v57  ;;  %1833 = vmatpush3.bf16.msra.mxu0 %v2096_v6  ;;  %v2183_v57 = vld [vmem:[%s2788_s1 + $0x238] sm:$0xff]   ;;  %v2181_v6 = vld [vmem:[%s2789_s0 + $0x208] ss:$36 sps:$4 sm:$0xff]  }
  0x36   :  { %1897 = vmatpush3.bf16.msra.mxu1 %v2097_v7  ;;  %1834 = vmatprep.subr.bf16.mxu0 %v2104_v10  ;;  %v2182_v7 = vld [vmem:[%s2789_s0 + $0x210] ss:$36 sps:$4 sm:$0xff]   ;;  %v2186_v10 = vld [vmem:[%s2789_s0 + $0x68] ss:$36 sps:$4 sm:$0xff]  }
  0x37   :  { %1898 = vmatprep.subr.bf16.mxu1 %v2105_v11  ;;  %v2187_v11 = vld [vmem:[%s2789_s0 + $0x188] ss:$36 sps:$4 sm:$0xff]  }
  0x39   :  { %1835 = vmatpush3.bf16.msra.mxu0 %v2106_v13  ;;  %v2189_v13 = vld [vmem:[%s2789_s0 + $0x1d0] ss:$36 sps:$4 sm:$0xff]  }
  0x3a   :  { %1899 = vmatpush3.bf16.msra.mxu1 %v2107_v14  ;;  %1836 = vmatprep.subr.bf16.mxu0 %v2114_v18  ;;  %v2190_v14 = vld [vmem:[%s2789_s0 + $0xf8] ss:$36 sps:$4 sm:$0xff]   ;;  %v2647_v18 = vld [vmem:[%s2790_s2] ss:$0 sm:$0xff] }
  0x3b   :  { %1103 = vmatmul.mubr.bf16.gmra.mrb[12].mxu0 %v2082_v58  ;;  %1900 = vmatprep.subr.bf16.mxu1 %v2115_v19  ;;  %v2160_v58 = vld [vmem:[%s2789_s0 + $0x130] ss:$36 sps:$4 sm:$0xff]  }
  0x3c   :  { %1200 = vmatmul.mubr.bf16.gmra.mrb[12].mxu1 %v2083_v59  ;;  %1110 = vmatprep.mubr.bf16.mxu0 %v2088_v0  ;;  %v2161_v59 = vld [vmem:[%s2789_s0 + $0x138] ss:$36 sps:$4 sm:$0xff]   ;;  %v2170_v0 = vld [vmem:[%s2789_s0 + $0x1c4] ss:$36 sps:$4 sm:$0xff]  }
  0x3d   :  { %1207 = vmatprep.mubr.bf16.mxu1 %v2090_v1  ;;  %1837 = vmatpush3.bf16.msra.mxu0 %v2116_v20  ;;  %v2172_v1 = vld [vmem:[%s2789_s0 + $0x1cc] ss:$36 sps:$4 sm:$0xff]  }
  0x3e   :  { %1901 = vmatpush3.bf16.msra.mxu1 %v2117_v21  ;;  %1838 = vmatprep.subr.bf16.mxu0 %v2124_v26 }
  0x3f   :  { %1902 = vmatprep.subr.bf16.mxu1 %v2125_v27 }
  0x41   :  { %1839 = vmatpush3.bf16.msra.mxu0 %v2126_v28 }
  0x42   :  { %1903 = vmatpush3.bf16.msra.mxu1 %v2127_v29  ;;  %1968 = vmatprep.subr.bf16.mxu0 %v2134_v32 }
  0x43   :  { %1111 = vmatmul.mubr.bf16.gmra.mrb[16].mxu0 %v2092_v2  ;;  %2000 = vmatprep.subr.bf16.mxu1 %v2134_v32  ;;  %v2174_v2 = vld [vmem:[%s2789_s0 + $0x1c0] ss:$36 sps:$4 sm:$0xff]  }
  0x44   :  { %1208 = vmatmul.mubr.bf16.gmra.mrb[16].mxu1 %v2093_v4  ;;  %1118 = vmatprep.mubr.bf16.mxu0 %v2098_v8  ;;  %v2177_v4 = vld [vmem:[%s2789_s0 + $0x20c] ss:$36 sps:$4 sm:$0xff]   ;;  %v2184_v8 = vld [vmem:[%s2789_s0 + $0x20] ss:$36 sps:$4 sm:$0xff]  }
  0x45   :  { %1215 = vmatprep.mubr.bf16.mxu1 %v2100_v9  ;;  %v2185_v9 = vld [vmem:[%s2789_s0 + $0x140] ss:$36 sps:$4 sm:$0xff]  }
  0x4b   :  { %1119 = vmatmul.mubr.bf16.gmra.mrb[20].mxu0 %v2102_v12  ;;  %v2188_v12 = vld [vmem:[%s2789_s0 + $0xb0] ss:$36 sps:$4 sm:$0xff]  }
  0x4c   :  { %1216 = vmatmul.mubr.bf16.gmra.mrb[20].mxu1 %v2103_v15  ;;  %1126 = vmatprep.mubr.bf16.mxu0 %v2108_v16  ;;  %v2191_v15 = vld [vmem:[%s2789_s0 + $0x218] ss:$36 sps:$4 sm:$0xff]  }
  0x4d   :  { %1223 = vmatprep.mubr.bf16.mxu1 %v2110_v17 }
  0x53   :  { %1127 = vmatmul.mubr.bf16.gmra.mrb[24].mxu0 %v2112_v22 }
  0x54   :  { %1224 = vmatmul.mubr.bf16.gmra.mrb[24].mxu1 %v2113_v23  ;;  %1134 = vmatprep.mubr.bf16.mxu0 %v2118_v24 }
  0x55   :  { %1231 = vmatprep.mubr.bf16.mxu1 %v2120_v25 }
  0x5b   :  { %1135 = vmatmul.mubr.bf16.gmra.mrb[28].mxu0 %v2122_v30 }
  0x5c   :  { %1232 = vmatmul.mubr.bf16.gmra.mrb[28].mxu1 %v2123_v31  ;;  %1272 = vmatprep.mubr.bf16.mxu0 %v2130_v33 }
  0x5d   :  { %1369 = vmatprep.mubr.bf16.mxu1 %v2133_v34 }
  0x63   :  { %1273 = vmatmul.mubr.bf16.vlgmr.msra.gmra.mrb[32].mxu0 %v2128_v35 }
  0x64   :  { %1370 = vmatmul.mubr.bf16.vlgmr.msra.gmra.mrb[32].mxu1 %v2131_v36  ;;  %1969 = vmatpush3.bf16.msra.mxu0 %v2134_v32 }
  0x65   :  { %2008 = vmatpush3.bf16.msra.mxu1 %v2134_v32  ;;  %1280 = vmatprep.mubr.bf16.mxu0 %v2135_v37 }
  0x66   :  { %1377 = vmatprep.mubr.bf16.mxu1 %v2137_v38  ;;  %1970 = vmatprep.subr.bf16.mxu0 %v2141_v39 }
  0x67   :  { %2001 = vmatprep.subr.bf16.mxu1 %v2141_v39 }
  0x68   :  { %1971 = vmatpush3.bf16.msra.mxu0 %v2141_v39 }
  0x69   :  { %2009 = vmatpush3.bf16.msra.mxu1 %v2141_v39  ;;  %1972 = vmatprep.subr.bf16.mxu0 %v2148_v40 }
  0x6a   :  { %2002 = vmatprep.subr.bf16.mxu1 %v2148_v40 }
  0x6b   :  { %1281 = vmatmul.mubr.bf16.gmra.mrb[36].mxu0 %v2139_v41 }
  0x6c   :  { %1378 = vmatmul.mubr.bf16.gmra.mrb[36].mxu1 %v2140_v42  ;;  %1288 = vmatprep.mubr.bf16.mxu0 %v2142_v43 }
  0x6d   :  { %1385 = vmatprep.mubr.bf16.mxu1 %v2144_v44  ;;  %1973 = vmatpush3.bf16.msra.mxu0 %v2148_v40 }
  0x6e   :  { %2010 = vmatpush3.bf16.msra.mxu1 %v2148_v40  ;;  %1974 = vmatprep.subr.bf16.mxu0 %v2155_v45 }
  0x6f   :  { %2003 = vmatprep.subr.bf16.mxu1 %v2155_v45 }
  0x71   :  { %1975 = vmatpush3.bf16.msra.mxu0 %v2155_v45 }
  0x72   :  { %2011 = vmatpush3.bf16.msra.mxu1 %v2155_v45  ;;  %1976 = vmatprep.subr.bf16.mxu0 %v2162_v46 }
  0x73   :  { %1289 = vmatmul.mubr.bf16.gmra.mrb[40].mxu0 %v2146_v47  ;;  %2004 = vmatprep.subr.bf16.mxu1 %v2162_v46 }
  0x74   :  { %1386 = vmatmul.mubr.bf16.gmra.mrb[40].mxu1 %v2147_v48  ;;  %1296 = vmatprep.mubr.bf16.mxu0 %v2149_v49 }
  0x75   :  { %1393 = vmatprep.mubr.bf16.mxu1 %v2151_v50  ;;  %1977 = vmatpush3.bf16.msra.mxu0 %v2162_v46 }
  0x76   :  { %2012 = vmatpush3.bf16.msra.mxu1 %v2162_v46  ;;  %1978 = vmatprep.subr.bf16.mxu0 %v2169_v51 }
  0x77   :  { %2005 = vmatprep.subr.bf16.mxu1 %v2169_v51 }
  0x79   :  { %1979 = vmatpush3.bf16.msra.mxu0 %v2169_v51 }
  0x7a   :  { %2013 = vmatpush3.bf16.msra.mxu1 %v2169_v51  ;;  %1980 = vmatprep.subr.bf16.mxu0 %v2176_v53 }
  0x7b   :  { %1297 = vmatmul.mubr.bf16.gmra.mrb[44].mxu0 %v2153_v52  ;;  %2006 = vmatprep.subr.bf16.mxu1 %v2176_v53 }
  0x7c   :  { %1394 = vmatmul.mubr.bf16.gmra.mrb[44].mxu1 %v2154_v54  ;;  %1304 = vmatprep.mubr.bf16.mxu0 %v2156_v55 }
  0x7d   :  { %1401 = vmatprep.mubr.bf16.mxu1 %v2158_v56  ;;  %1981 = vmatpush3.bf16.msra.mxu0 %v2176_v53 }
  0x7e   :  { %2014 = vmatpush3.bf16.msra.mxu1 %v2176_v53  ;;  %1982 = vmatprep.subr.bf16.mxu0 %v2183_v57 }
  0x7f   :  { %2007 = vmatprep.subr.bf16.mxu1 %v2183_v57 }
  0x81   :  { %1983 = vmatpush3.bf16.msra.mxu0 %v2183_v57 }
  0x82   :  { %2015 = vmatpush3.bf16.msra.mxu1 %v2183_v57 }
  0x83   :  { %1305 = vmatmul.mubr.bf16.gmra.mrb[48].mxu0 %v2160_v58 }
  0x84   :  { %1402 = vmatmul.mubr.bf16.gmra.mrb[48].mxu1 %v2161_v59  ;;  %1312 = vmatprep.mubr.bf16.mxu0 %v2163_v60 }
  0x85   :  { %1409 = vmatprep.mubr.bf16.mxu1 %v2165_v61 }
  0x8b   :  { %1313 = vmatmul.mubr.bf16.gmra.mrb[52].mxu0 %v2167_v62 }
  0x8c   :  { %1410 = vmatmul.mubr.bf16.gmra.mrb[52].mxu1 %v2168_v63  ;;  %1320 = vmatprep.mubr.bf16.mxu0 %v2170_v0 }
  0x8d   :  { %1417 = vmatprep.mubr.bf16.mxu1 %v2172_v1 }
  0x93   :  { %1321 = vmatmul.mubr.bf16.gmra.mrb[56].mxu0 %v2174_v2 }
  0x94   :  { %1418 = vmatmul.mubr.bf16.gmra.mrb[56].mxu1 %v2175_v3  ;;  %1328 = vmatprep.mubr.bf16.mxu0 %v2177_v4 }
  0x95   :  { %1425 = vmatprep.mubr.bf16.mxu1 %v2179_v5 }
  0x9b   :  { %1329 = vmatmul.mubr.bf16.gmra.mrb[60].mxu0 %v2181_v6 }
  0x9c   :  { %1426 = vmatmul.mubr.bf16.gmra.mrb[60].mxu1 %v2182_v7  ;;  %1984 = vmatprep.mubr.bf16.mxu0 %v2184_v8 }
  0x9d   :  { %1992 = vmatprep.mubr.bf16.mxu1 %v2185_v9 }
  0xa3   :  { %1985 = vmatmul.mubr.bf16.vlgmr.msra.gmra.mrb[64].mxu0 %v2186_v10 }
  0xa4   :  { %1993 = vmatmul.mubr.bf16.vlgmr.msra.gmra.mrb[64].mxu1 %v2187_v11  ;;  %1988 = vmatprep.mubr.bf16.mxu0 %v2188_v12 }
  0xa5   :  { %1996 = vmatprep.mubr.bf16.mxu1 %v2189_v13 }
  0xab   :  { %1989 = vmatmul.mubr.bf16.gmra.mrb[68].mxu0 %v2190_v14 }
  0xac   :  { %1997 = vmatmul.mubr.bf16.gmra.mrb[68].mxu1 %v2191_v15 }
  0xf6   :  { %v1712_v16 = vpop.f32.mrb[0].mxu0 }
  0xf7   :  { %v1776_v17 = vpop.f32.mrb[0].mxu1  ;;  %v1713_v19 = vpop.f32.mrb[1].mxu0 }
  0xf8   :  { %v1714_v20 = vadd.f32 %v1713_v19, %v1712_v16  ;;  %v1777_v21 = vpop.f32.mrb[1].mxu1  ;;  %v1715_v22 = vpop.f32.mrb[2].mxu0 }
  0xf9   :  { %v1778_v23 = vadd.f32 %v1777_v21, %v1776_v17  ;;  %v1779_v24 = vpop.f32.mrb[2].mxu1  ;;  %v1716_v25 = vpop.f32.mrb[3].mxu0 }
  0xfa   :  { %v1081_v26 = vadd.f32 %v1714_v20, %v2647_v18  ;;  %v1717_v27 = vadd.f32 %v1716_v25, %v1715_v22  ;;  %v1780_v28 = vpop.f32.mrb[3].mxu1 }
  0xfb   :  { %v1781_v29 = vadd.f32 %v1780_v28, %v1779_v24 }
  0xfc   :  { %v2650_v30 = vadd.f32 %v1778_v23, %v1081_v26  ;;  %v1084_v31 = vadd.f32 %v1717_v27, %v2647_v18 }
  0xfe   :  { %v2653_v32 = vadd.f32 %v1781_v29, %v1084_v31  ;;  %v1718_v33 = vpop.f32.mrb[4].mxu0 }
  0xff   :  { %v1782_v34 = vpop.f32.mrb[4].mxu1  ;;  %v1719_v35 = vpop.f32.mrb[5].mxu0 }
 0x100   :  { %v1720_v36 = vadd.f32 %v1719_v35, %v1718_v33  ;;  %v1783_v37 = vpop.f32.mrb[5].mxu1  ;;  %v1721_v38 = vpop.f32.mrb[6].mxu0 }
 0x101   :  { %v1784_v39 = vadd.f32 %v1783_v37, %v1782_v34  ;;  %v1785_v40 = vpop.f32.mrb[6].mxu1  ;;  %v1722_v41 = vpop.f32.mrb[7].mxu0 }
 0x102   :  { %v1089_v42 = vadd.f32 %v1720_v36, %v2647_v18  ;;  %v1723_v43 = vadd.f32 %v1722_v41, %v1721_v38  ;;  %v1786_v44 = vpop.f32.mrb[7].mxu1 }
 0x103   :  { %v1787_v45 = vadd.f32 %v1786_v44, %v1785_v40 }
 0x104   :  { %v2656_v46 = vadd.f32 %v1784_v39, %v1089_v42  ;;  %v1092_v47 = vadd.f32 %v1723_v43, %v2647_v18 }
 0x106   :  { %v2659_v48 = vadd.f32 %v1787_v45, %v1092_v47  ;;  %v1724_v49 = vpop.f32.mrb[8].mxu0 }
 0x107   :  { %v1788_v50 = vpop.f32.mrb[8].mxu1  ;;  %v1725_v51 = vpop.f32.mrb[9].mxu0 }
 0x108   :  { %v1726_v52 = vadd.f32 %v1725_v51, %v1724_v49  ;;  %v1789_v53 = vpop.f32.mrb[9].mxu1  ;;  %v1727_v54 = vpop.f32.mrb[10].mxu0 }
 0x109   :  { %v1790_v55 = vadd.f32 %v1789_v53, %v1788_v50  ;;  %v1791_v56 = vpop.f32.mrb[10].mxu1  ;;  %v1728_v57 = vpop.f32.mrb[11].mxu0 }
 0x10a   :  { %v1097_v58 = vadd.f32 %v1726_v52, %v2647_v18  ;;  %v1729_v59 = vadd.f32 %v1728_v57, %v1727_v54  ;;  %v1792_v60 = vpop.f32.mrb[11].mxu1 }
 0x10b   :  { %v1793_v61 = vadd.f32 %v1792_v60, %v1791_v56 }
 0x10c   :  { %v2662_v62 = vadd.f32 %v1790_v55, %v1097_v58  ;;  %v1100_v63 = vadd.f32 %v1729_v59, %v2647_v18 }
 0x10e   :  { %v2665_v0 = vadd.f32 %v1793_v61, %v1100_v63  ;;  %v1730_v1 = vpop.f32.mrb[12].mxu0 }
 0x10f   :  { %v1794_v2 = vpop.f32.mrb[12].mxu1  ;;  %v1731_v3 = vpop.f32.mrb[13].mxu0 }
 0x110   :  { %v1732_v4 = vadd.f32 %v1731_v3, %v1730_v1  ;;  %v1795_v5 = vpop.f32.mrb[13].mxu1  ;;  %v1733_v6 = vpop.f32.mrb[14].mxu0 }
 0x111   :  { %v1796_v7 = vadd.f32 %v1795_v5, %v1794_v2  ;;  %v1797_v8 = vpop.f32.mrb[14].mxu1  ;;  %v1734_v9 = vpop.f32.mrb[15].mxu0 }
 0x112   :  { %v1105_v10 = vadd.f32 %v1732_v4, %v2647_v18  ;;  %v1735_v11 = vadd.f32 %v1734_v9, %v1733_v6  ;;  %v1798_v12 = vpop.f32.mrb[15].mxu1 }
 0x113   :  { %v1799_v13 = vadd.f32 %v1798_v12, %v1797_v8 }
 0x114   :  { %v2668_v14 = vadd.f32 %v1796_v7, %v1105_v10  ;;  %v1108_v15 = vadd.f32 %v1735_v11, %v2647_v18 }
 0x116   :  { %v2671_v16 = vadd.f32 %v1799_v13, %v1108_v15  ;;  %v1736_v17 = vpop.f32.mrb[16].mxu0 }
 0x117   :  { %v1800_v19 = vpop.f32.mrb[16].mxu1  ;;  %v1737_v20 = vpop.f32.mrb[17].mxu0 }
 0x118   :  { %v1738_v21 = vadd.f32 %v1737_v20, %v1736_v17  ;;  %v1801_v22 = vpop.f32.mrb[17].mxu1  ;;  %v1739_v23 = vpop.f32.mrb[18].mxu0 }
 0x119   :  { %v1802_v24 = vadd.f32 %v1801_v22, %v1800_v19  ;;  %v1803_v25 = vpop.f32.mrb[18].mxu1  ;;  %v1740_v26 = vpop.f32.mrb[19].mxu0 }
 0x11a   :  { %v1113_v27 = vadd.f32 %v1738_v21, %v2647_v18  ;;  %v1741_v28 = vadd.f32 %v1740_v26, %v1739_v23  ;;  %v1804_v29 = vpop.f32.mrb[19].mxu1 }
 0x11b   :  { %v1805_v31 = vadd.f32 %v1804_v29, %v1803_v25 }
 0x11c   :  { %v2674_v33 = vadd.f32 %v1802_v24, %v1113_v27  ;;  %v1116_v34 = vadd.f32 %v1741_v28, %v2647_v18 }
 0x11e   :  { %v2677_v35 = vadd.f32 %v1805_v31, %v1116_v34  ;;  %v1742_v36 = vpop.f32.mrb[20].mxu0 }
 0x11f   :  { %v1806_v37 = vpop.f32.mrb[20].mxu1  ;;  %v1743_v38 = vpop.f32.mrb[21].mxu0 }
 0x120   :  { %v1744_v39 = vadd.f32 %v1743_v38, %v1742_v36  ;;  %v1807_v40 = vpop.f32.mrb[21].mxu1  ;;  %v1745_v41 = vpop.f32.mrb[22].mxu0 }
 0x121   :  { %v1808_v42 = vadd.f32 %v1807_v40, %v1806_v37  ;;  %v1809_v43 = vpop.f32.mrb[22].mxu1  ;;  %v1746_v44 = vpop.f32.mrb[23].mxu0 }
 0x122   :  { %v1121_v45 = vadd.f32 %v1744_v39, %v2647_v18  ;;  %v1747_v47 = vadd.f32 %v1746_v44, %v1745_v41  ;;  %v1810_v49 = vpop.f32.mrb[23].mxu1 }
 0x123   :  { %v1811_v50 = vadd.f32 %v1810_v49, %v1809_v43 }
 0x124   :  { %v2680_v51 = vadd.f32 %v1808_v42, %v1121_v45  ;;  %v1124_v52 = vadd.f32 %v1747_v47, %v2647_v18 }
 0x126   :  { %v2683_v53 = vadd.f32 %v1811_v50, %v1124_v52  ;;  %v1748_v54 = vpop.f32.mrb[24].mxu0 }
 0x127   :  { %v1812_v55 = vpop.f32.mrb[24].mxu1  ;;  %v1749_v56 = vpop.f32.mrb[25].mxu0 }
 0x128   :  { %v1750_v57 = vadd.f32 %v1749_v56, %v1748_v54  ;;  %v1813_v58 = vpop.f32.mrb[25].mxu1  ;;  %v1751_v59 = vpop.f32.mrb[26].mxu0 }
 0x129   :  { %v1814_v60 = vadd.f32 %v1813_v58, %v1812_v55  ;;  %v1815_v61 = vpop.f32.mrb[26].mxu1  ;;  %v1752_v63 = vpop.f32.mrb[27].mxu0 }
 0x12a   :  { %v1129_v1 = vadd.f32 %v1750_v57, %v2647_v18  ;;  %v1753_v2 = vadd.f32 %v1752_v63, %v1751_v59  ;;  %v1816_v3 = vpop.f32.mrb[27].mxu1 }
 0x12b   :  { %v1817_v4 = vadd.f32 %v1816_v3, %v1815_v61 }
 0x12c   :  { %v2686_v5 = vadd.f32 %v1814_v60, %v1129_v1  ;;  %v1132_v6 = vadd.f32 %v1753_v2, %v2647_v18 }
 0x12e   :  { %v2689_v7 = vadd.f32 %v1817_v4, %v1132_v6  ;;  %v1754_v8 = vpop.f32.mrb[28].mxu0 }
 0x12f   :  { %v1818_v9 = vpop.f32.mrb[28].mxu1  ;;  %v1755_v10 = vpop.f32.mrb[29].mxu0 }
 0x130   :  { %v1756_v11 = vadd.f32 %v1755_v10, %v1754_v8  ;;  %v1819_v12 = vpop.f32.mrb[29].mxu1  ;;  %v1757_v13 = vpop.f32.mrb[30].mxu0 }
 0x131   :  { %v1820_v15 = vadd.f32 %v1819_v12, %v1818_v9  ;;  %v1821_v17 = vpop.f32.mrb[30].mxu1  ;;  %v1758_v19 = vpop.f32.mrb[31].mxu0 }
 0x132   :  { %v1137_v20 = vadd.f32 %v1756_v11, %v2647_v18  ;;  %v1759_v21 = vadd.f32 %v1758_v19, %v1757_v13  ;;  %v1822_v22 = vpop.f32.mrb[31].mxu1 }
 0x133   :  { %v1823_v23 = vadd.f32 %v1822_v22, %v1821_v17 }
 0x134   :  { %v2692_v24 = vadd.f32 %v1820_v15, %v1137_v20  ;;  %v1140_v25 = vadd.f32 %v1759_v21, %v2647_v18 }
 0x136   :  { %v2695_v26 = vadd.f32 %v1823_v23, %v1140_v25  ;;  %v1840_v27 = vpop.f32.mrb[32].mxu0 }
 0x137   :  { %v1904_v28 = vpop.f32.mrb[32].mxu1  ;;  %v1841_v29 = vpop.f32.mrb[33].mxu0 }
 0x138   :  { %v1842_v31 = vadd.f32 %v1841_v29, %v1840_v27  ;;  %v1905_v34 = vpop.f32.mrb[33].mxu1  ;;  %v1843_v36 = vpop.f32.mrb[34].mxu0 }
 0x139   :  { %v1906_v37 = vadd.f32 %v1905_v34, %v1904_v28  ;;  %v1907_v38 = vpop.f32.mrb[34].mxu1  ;;  %v1844_v39 = vpop.f32.mrb[35].mxu0 }
 0x13a   :  { %v1275_v40 = vadd.f32 %v1842_v31, %v2650_v30  ;;  %v1845_v41 = vadd.f32 %v1844_v39, %v1843_v36  ;;  %v1908_v42 = vpop.f32.mrb[35].mxu1 }
 0x13b   :  { %v1909_v43 = vadd.f32 %v1908_v42, %v1907_v38 }
 0x13c   :  { %v1278_v44 = vadd.f32 %v1845_v41, %v2653_v32  ;;  %v2699_v45 = vadd.f32 %v1906_v37, %v1275_v40 }
 0x13e   :  { %v1846_v18 = vpop.f32.mrb[36].mxu0  ;;  %v2701_v47 = vadd.f32 %v1909_v43, %v1278_v44 }
 0x13f   :  { %v1910_v49 = vpop.f32.mrb[36].mxu1  ;;  %v1847_v50 = vpop.f32.mrb[37].mxu0 }
 0x140   :  { %v1848_v52 = vadd.f32 %v1847_v50, %v1846_v18  ;;  %v1911_v54 = vpop.f32.mrb[37].mxu1  ;;  %v1849_v55 = vpop.f32.mrb[38].mxu0 }
 0x141   :  { %v1912_v56 = vadd.f32 %v1911_v54, %v1910_v49  ;;  %v1913_v57 = vpop.f32.mrb[38].mxu1  ;;  %v1850_v58 = vpop.f32.mrb[39].mxu0 }
 0x142   :  { %v1283_v30 = vadd.f32 %v1848_v52, %v2656_v46  ;;  %v1851_v59 = vadd.f32 %v1850_v58, %v1849_v55  ;;  %v1914_v60 = vpop.f32.mrb[39].mxu1 }
 0x143   :  { %v1915_v61 = vadd.f32 %v1914_v60, %v1913_v57 }
 0x144   :  { %v1286_v32 = vadd.f32 %v1851_v59, %v2659_v48  ;;  %v2705_v63 = vadd.f32 %v1912_v56, %v1283_v30 }
 0x146   :  { %v1852_v1 = vpop.f32.mrb[40].mxu0  ;;  %v2707_v2 = vadd.f32 %v1915_v61, %v1286_v32 }
 0x147   :  { %v1916_v3 = vpop.f32.mrb[40].mxu1  ;;  %v1853_v4 = vpop.f32.mrb[41].mxu0 }
 0x148   :  { %v1854_v6 = vadd.f32 %v1853_v4, %v1852_v1  ;;  %v1917_v8 = vpop.f32.mrb[41].mxu1  ;;  %v1855_v9 = vpop.f32.mrb[42].mxu0 }
 0x149   :  { %v1918_v10 = vadd.f32 %v1917_v8, %v1916_v3  ;;  %v1919_v11 = vpop.f32.mrb[42].mxu1  ;;  %v1856_v12 = vpop.f32.mrb[43].mxu0 }
 0x14a   :  { %v1291_v46 = vadd.f32 %v1854_v6, %v2662_v62  ;;  %v1857_v13 = vadd.f32 %v1856_v12, %v1855_v9  ;;  %v1920_v15 = vpop.f32.mrb[43].mxu1 }
 0x14b   :  { %v1921_v17 = vadd.f32 %v1920_v15, %v1919_v11 }
 0x14c   :  { %v1294_v48 = vadd.f32 %v1857_v13, %v2665_v0  ;;  %v2711_v19 = vadd.f32 %v1918_v10, %v1291_v46 }
 0x14e   :  { %v1858_v20 = vpop.f32.mrb[44].mxu0  ;;  %v2713_v21 = vadd.f32 %v1921_v17, %v1294_v48 }
 0x14f   :  { %v1922_v22 = vpop.f32.mrb[44].mxu1  ;;  %v1859_v23 = vpop.f32.mrb[45].mxu0 }
 0x150   :  { %v1860_v25 = vadd.f32 %v1859_v23, %v1858_v20  ;;  %v1923_v27 = vpop.f32.mrb[45].mxu1  ;;  %v1861_v28 = vpop.f32.mrb[46].mxu0 }
 0x151   :  { %v1924_v29 = vadd.f32 %v1923_v27, %v1922_v22  ;;  %v1925_v31 = vpop.f32.mrb[46].mxu1  ;;  %v1862_v34 = vpop.f32.mrb[47].mxu0 }
 0x152   :  { %v1299_v62 = vadd.f32 %v1860_v25, %v2668_v14  ;;  %v1863_v36 = vadd.f32 %v1862_v34, %v1861_v28  ;;  %v1926_v37 = vpop.f32.mrb[47].mxu1 }
 0x153   :  { %v1927_v38 = vadd.f32 %v1926_v37, %v1925_v31 }
 0x154   :  { %v1302_v0 = vadd.f32 %v1863_v36, %v2671_v16  ;;  %v2717_v39 = vadd.f32 %v1924_v29, %v1299_v62 }
 0x156   :  { %v1864_v40 = vpop.f32.mrb[48].mxu0  ;;  %v2719_v41 = vadd.f32 %v1927_v38, %v1302_v0 }
 0x157   :  { %v1928_v42 = vpop.f32.mrb[48].mxu1  ;;  %v1865_v43 = vpop.f32.mrb[49].mxu0 }
 0x158   :  { %v1866_v44 = vadd.f32 %v1865_v43, %v1864_v40  ;;  %v1929_v18 = vpop.f32.mrb[49].mxu1  ;;  %v1867_v49 = vpop.f32.mrb[50].mxu0 }
 0x159   :  { %v1930_v50 = vadd.f32 %v1929_v18, %v1928_v42  ;;  %v1931_v52 = vpop.f32.mrb[50].mxu1  ;;  %v1868_v54 = vpop.f32.mrb[51].mxu0 }
 0x15a   :  { %v1307_v14 = vadd.f32 %v1866_v44, %v2674_v33  ;;  %v1869_v55 = vadd.f32 %v1868_v54, %v1867_v49  ;;  %v1932_v56 = vpop.f32.mrb[51].mxu1 }
 0x15b   :  { %v1933_v57 = vadd.f32 %v1932_v56, %v1931_v52 }
 0x15c   :  { %v1310_v16 = vadd.f32 %v1869_v55, %v2677_v35  ;;  %v1404_v58 = vadd.f32 %v1930_v50, %v1307_v14 }
 0x15e   :  { %v1870_v30 = vpop.f32.mrb[52].mxu0  ;;  %v2723_v59 = vadd.f32 %v1933_v57, %v1310_v16 }
 0x15f   :  { %v1934_v60 = vpop.f32.mrb[52].mxu1  ;;  %v1871_v61 = vpop.f32.mrb[53].mxu0 }
 0x160   :  { %v1872_v32 = vadd.f32 %v1871_v61, %v1870_v30  ;;  %v1935_v1 = vpop.f32.mrb[53].mxu1  ;;  %v1873_v3 = vpop.f32.mrb[54].mxu0 }
 0x161   :  { %v1936_v4 = vadd.f32 %v1935_v1, %v1934_v60  ;;  %v1937_v6 = vpop.f32.mrb[54].mxu1  ;;  %v1874_v8 = vpop.f32.mrb[55].mxu0 }
 0x162   :  { %v1315_v9 = vadd.f32 %v1872_v32, %v2680_v51  ;;  %v1875_v33 = vadd.f32 %v1874_v8, %v1873_v3  ;;  %v1938_v10 = vpop.f32.mrb[55].mxu1 }
 0x163   :  { %v1939_v11 = vadd.f32 %v1938_v10, %v1937_v6 }
 0x164   :  { %v1318_v12 = vadd.f32 %v1875_v33, %v2683_v53  ;;  %v1412_v35 = vadd.f32 %v1936_v4, %v1315_v9 }
 0x166   :  { %v1876_v46 = vpop.f32.mrb[56].mxu0  ;;  %v1415_v13 = vadd.f32 %v1939_v11, %v1318_v12 }
 0x167   :  { %v1940_v15 = vpop.f32.mrb[56].mxu1  ;;  %v1877_v17 = vpop.f32.mrb[57].mxu0 }
 0x168   :  { %v1878_v48 = vadd.f32 %v1877_v17, %v1876_v46  ;;  %v1941_v20 = vpop.f32.mrb[57].mxu1  ;;  %v1879_v22 = vpop.f32.mrb[58].mxu0 }
 0x169   :  { %v1942_v23 = vadd.f32 %v1941_v20, %v1940_v15  ;;  %v1943_v25 = vpop.f32.mrb[58].mxu1  ;;  %v1880_v27 = vpop.f32.mrb[59].mxu0 }
 0x16a   :  { %v1323_v28 = vadd.f32 %v1878_v48, %v2686_v5  ;;  %v1881_v29 = vadd.f32 %v1880_v27, %v1879_v22  ;;  %v1944_v51 = vpop.f32.mrb[59].mxu1 }
 0x16b   :  { %v1945_v31 = vadd.f32 %v1944_v51, %v1943_v25 }
 0x16c   :  { %v1326_v34 = vadd.f32 %v1881_v29, %v2689_v7  ;;  %v1420_v62 = vadd.f32 %v1942_v23, %v1323_v28 }
 0x16e   :  { %v1882_v53 = vpop.f32.mrb[60].mxu0  ;;  %v1423_v36 = vadd.f32 %v1945_v31, %v1326_v34 }
 0x16f   :  { %v1946_v37 = vpop.f32.mrb[60].mxu1  ;;  %v1883_v38 = vpop.f32.mrb[61].mxu0 }
 0x170   :  { %v1884_v0 = vadd.f32 %v1883_v38, %v1882_v53  ;;  %v1947_v40 = vpop.f32.mrb[61].mxu1  ;;  %v1885_v42 = vpop.f32.mrb[62].mxu0 }
 0x171   :  { %v1948_v43 = vadd.f32 %v1947_v40, %v1946_v37  ;;  %v1949_v44 = vpop.f32.mrb[62].mxu1  ;;  %v1886_v18 = vpop.f32.mrb[63].mxu0 }
 0x172   :  { %v1331_v49 = vadd.f32 %v1884_v0, %v2692_v24  ;;  %v1887_v50 = vadd.f32 %v1886_v18, %v1885_v42  ;;  %v1950_v5 = vpop.f32.mrb[63].mxu1 }
 0x173   :  { %v1951_v52 = vadd.f32 %v1950_v5, %v1949_v44 }
 0x174   :  { %v1334_v54 = vadd.f32 %v1887_v50, %v2695_v26  ;;  %v1428_v14 = vadd.f32 %v1948_v43, %v1331_v49 }
 0x176   :  { %v1986_v7 = vpop.f32.mrb[64].mxu0  ;;  %v1431_v55 = vadd.f32 %v1951_v52, %v1334_v54 }
 0x177   :  { %v1477_v56 = vadd.f32 %v1986_v7, %v2705_v63  ;;  %v1994_v57 = vpop.f32.mrb[64].mxu1  ;;  %v1468_v16 = vpop.f32.mrb[65].mxu0 }
 0x178   :  { %v1509_v30 = vadd.f32 %v1994_v57, %v1412_v35  ;;  %v1469_v60 = vadd.f32 %v1468_v16, %v2699_v45  ;;  %v1500_v61 = vpop.f32.mrb[65].mxu1  ;;  %v1987_v32 = vpop.f32.mrb[66].mxu0 }
 0x179   :  { %1533 = vst [vmem:[%s2791_s3 + $0x10] sm:$0xff] %v1477_v56  ;;  %v1501_v24 = vadd.f32 %v1500_v61, %v1404_v58  ;;  %v1480_v1 = vadd.f32 %v1987_v32, %v2707_v2  ;;  %v1995_v26 = vpop.f32.mrb[66].mxu1  ;;  %v1471_v3 = vpop.f32.mrb[67].mxu0 }
 0x17a   :  { %1541 = vst [vmem:[%s2791_s3 + $0x50] sm:$0xff] %v1509_v30  ;;  %1531 = vst [vmem:[%s2791_s3] sm:$0xff] %v1469_v60  ;;  %v1512_v45 = vadd.f32 %v1995_v26, %v1415_v13  ;;  %v1472_v63 = vadd.f32 %v1471_v3, %v2701_v47  ;;  %v1503_v4 = vpop.f32.mrb[67].mxu1 }
 0x17b   :  { %1539 = vst [vmem:[%s2791_s3 + $0x40] sm:$0xff] %v1501_v24  ;;  %1534 = vst [vmem:[%s2791_s3 + $0x18] sm:$0xff] %v1480_v1  ;;  %v1504_v2 = vadd.f32 %v1503_v4, %v2723_v59 }
 0x17c   :  { %1542 = vst [vmem:[%s2791_s3 + $0x58] sm:$0xff] %v1512_v45  ;;  %1532 = vst [vmem:[%s2791_s3 + $0x8] sm:$0xff] %v1472_v63 }
 0x17d   :  { %1540 = vst [vmem:[%s2791_s3 + $0x48] sm:$0xff] %v1504_v2 }
 0x17e   :  { %v1990_v47 = vpop.f32.mrb[68].mxu0 }
 0x17f   :  { %v1493_v58 = vadd.f32 %v1990_v47, %v2717_v39  ;;  %v1998_v6 = vpop.f32.mrb[68].mxu1  ;;  %v1484_v8 = vpop.f32.mrb[69].mxu0 }
 0x180   :  { %v1525_v9 = vadd.f32 %v1998_v6, %v1428_v14  ;;  %v1485_v59 = vadd.f32 %v1484_v8, %v2711_v19  ;;  %v1516_v33 = vpop.f32.mrb[69].mxu1  ;;  %v1991_v10 = vpop.f32.mrb[70].mxu0 }
 0x181   :  { %1537 = vst [vmem:[%s2791_s3 + $0x30] sm:$0xff] %v1493_v58  ;;  %v1517_v11 = vadd.f32 %v1516_v33, %v1420_v62  ;;  %v1496_v12 = vadd.f32 %v1991_v10, %v2719_v41  ;;  %v1999_v35 = vpop.f32.mrb[70].mxu1  ;;  %v1487_v46 = vpop.f32.mrb[71].mxu0 }
 0x182   :  { %1545 = vst [vmem:[%s2791_s3 + $0x70] sm:$0xff] %v1525_v9  ;;  %1535 = vst [vmem:[%s2791_s3 + $0x20] sm:$0xff] %v1485_v59  ;;  %v1528_v19 = vadd.f32 %v1999_v35, %v1431_v55  ;;  %v1488_v39 = vadd.f32 %v1487_v46, %v2713_v21  ;;  %v1519_v13 = vpop.f32.mrb[71].mxu1 }
 0x183   :  { %1543 = vst [vmem:[%s2791_s3 + $0x60] sm:$0xff] %v1517_v11  ;;  %1538 = vst [vmem:[%s2791_s3 + $0x38] sm:$0xff] %v1496_v12  ;;  %v1520_v41 = vadd.f32 %v1519_v13, %v1423_v36 }
 0x184   :  { %1546 = vst [vmem:[%s2791_s3 + $0x78] sm:$0xff] %v1528_v19  ;;  %1536 = vst [vmem:[%s2791_s3 + $0x28] sm:$0xff] %v1488_v39 }
 0x185   :  { %1544 = vst [vmem:[%s2791_s3 + $0x68] sm:$0xff] %v1520_v41 }

// kernel: autoencoder_forward.18
= control target key start
LH: loop header
LB: loop body
LE: loop exit
PB: predicated region body
PF: predicated region fallthrough
CT: control target
= control target key end

     0   :  { %s8311_s1 = inlined_call_operand.vmem [shape: bf16[2304,512], index: 1, kind: input, shape index: {}]   ;;  %s8312_s0 = inlined_call_operand.vmem [shape: bf16[32,2304], index: 0, kind: input, shape index: {}]   ;;  %s8313_s2 = inlined_call_operand.vmem [shape: f32[1,512], index: 2, kind: input, shape index: {}]   ;;  %s8314_s3 = inlined_call_operand.vmem [shape: bf16[32,512], index: 3, kind: output, shape index: {}]  }
   0x1   :  { %v5510_v0 = vld [vmem:[%s8311_s1 + $0x4] ss:$16 sps:$4 sm:$0xff]   ;;  %v5512_v1 = vld [vmem:[%s8311_s1 + $0xc] ss:$16 sps:$4 sm:$0xff]   ;;  %v5514_v2 = vld [vmem:[%s8311_s1] ss:$16 sps:$4 sm:$0xff]  }
   0x2   :  { %3708 = vmatprep.subr.bf16.mxu0 %v5510_v0  ;;  %v5515_v3 = vld [vmem:[%s8311_s1 + $0x8] ss:$16 sps:$4 sm:$0xff]   ;;  %4185 = vmatprep.subr.bf16.mxu1 %v5512_v1  ;;  %v5516_v4 = vld [vmem:[%s8311_s1 + $0x24] ss:$16 sps:$4 sm:$0xff]   ;;  %v5518_v5 = vld [vmem:[%s8311_s1 + $0x2c] ss:$16 sps:$4 sm:$0xff]  }
   0x3   :  { %3709 = vmatpush1.bf16.msra.mxu0 %v5514_v2  ;;  %4186 = vmatpush1.bf16.msra.mxu1 %v5515_v3  ;;  %v5520_v6 = vld [vmem:[%s8311_s1 + $0x20] ss:$16 sps:$4 sm:$0xff]   ;;  %v5521_v7 = vld [vmem:[%s8311_s1 + $0x28] ss:$16 sps:$4 sm:$0xff]   ;;  %v5522_v8 = vld [vmem:[%s8311_s1 + $0x44] ss:$16 sps:$4 sm:$0xff]  }
   0x4   :  { %3710 = vmatprep.subr.bf16.mxu0 %v5516_v4  ;;  %4187 = vmatprep.subr.bf16.mxu1 %v5518_v5  ;;  %v5524_v9 = vld [vmem:[%s8311_s1 + $0x4c] ss:$16 sps:$4 sm:$0xff]   ;;  %v5526_v10 = vld [vmem:[%s8311_s1 + $0x40] ss:$16 sps:$4 sm:$0xff]   ;;  %v5527_v11 = vld [vmem:[%s8311_s1 + $0x48] ss:$16 sps:$4 sm:$0xff]  }
   0x5   :  { %v5528_v12 = vld [vmem:[%s8311_s1 + $0x64] ss:$16 sps:$4 sm:$0xff]   ;;  %v5530_v13 = vld [vmem:[%s8311_s1 + $0x6c] ss:$16 sps:$4 sm:$0xff]   ;;  %v5532_v14 = vld [vmem:[%s8311_s1 + $0x60] ss:$16 sps:$4 sm:$0xff]  }
   0x6   :  { %v5533_v15 = vld [vmem:[%s8311_s1 + $0x68] ss:$16 sps:$4 sm:$0xff]   ;;  %v5534_v16 = vld [vmem:[%s8311_s1 + $0x84] ss:$16 sps:$4 sm:$0xff]   ;;  %v5536_v17 = vld [vmem:[%s8311_s1 + $0x8c] ss:$16 sps:$4 sm:$0xff]  }
   0x7   :  { %3711 = vmatpush1.bf16.msra.mxu0 %v5520_v6  ;;  %4188 = vmatpush1.bf16.msra.mxu1 %v5521_v7  ;;  %v5538_v18 = vld [vmem:[%s8311_s1 + $0x80] ss:$16 sps:$4 sm:$0xff]   ;;  %v5539_v19 = vld [vmem:[%s8311_s1 + $0x88] ss:$16 sps:$4 sm:$0xff]   ;;  %v5540_v20 = vld [vmem:[%s8311_s1 + $0xa4] ss:$16 sps:$4 sm:$0xff]  }
   0x8   :  { %3712 = vmatprep.subr.bf16.mxu0 %v5522_v8  ;;  %4189 = vmatprep.subr.bf16.mxu1 %v5524_v9  ;;  %v5542_v21 = vld [vmem:[%s8311_s1 + $0xac] ss:$16 sps:$4 sm:$0xff]   ;;  %v5544_v22 = vld [vmem:[%s8311_s1 + $0xa0] ss:$16 sps:$4 sm:$0xff]   ;;  %v5545_v23 = vld [vmem:[%s8311_s1 + $0xa8] ss:$16 sps:$4 sm:$0xff]  }
   0x9   :  { %v5546_v24 = vld [vmem:[%s8311_s1 + $0xc4] ss:$16 sps:$4 sm:$0xff]   ;;  %v5548_v25 = vld [vmem:[%s8311_s1 + $0xcc] ss:$16 sps:$4 sm:$0xff]   ;;  %v5550_v26 = vld [vmem:[%s8311_s1 + $0xc0] ss:$16 sps:$4 sm:$0xff]  }
   0xa   :  { %v5551_v27 = vld [vmem:[%s8311_s1 + $0xc8] ss:$16 sps:$4 sm:$0xff]   ;;  %v5552_v28 = vld [vmem:[%s8311_s1 + $0xe4] ss:$16 sps:$4 sm:$0xff]   ;;  %v5554_v29 = vld [vmem:[%s8311_s1 + $0xec] ss:$16 sps:$4 sm:$0xff]  }
   0xb   :  { %3713 = vmatpush1.bf16.msra.mxu0 %v5526_v10  ;;  %4190 = vmatpush1.bf16.msra.mxu1 %v5527_v11  ;;  %v5556_v30 = vld [vmem:[%s8311_s1 + $0xe0] ss:$16 sps:$4 sm:$0xff]   ;;  %v5557_v31 = vld [vmem:[%s8311_s1 + $0xe8] ss:$16 sps:$4 sm:$0xff]   ;;  %v5558_v32 = vld [vmem:[%s8311_s1 + $0x104] ss:$16 sps:$4 sm:$0xff]  }
   0xc   :  { %3714 = vmatprep.subr.bf16.mxu0 %v5528_v12  ;;  %4191 = vmatprep.subr.bf16.mxu1 %v5530_v13  ;;  %v5560_v33 = vld [vmem:[%s8311_s1 + $0x10c] ss:$16 sps:$4 sm:$0xff]   ;;  %v5562_v34 = vld [vmem:[%s8311_s1 + $0x100] ss:$16 sps:$4 sm:$0xff]   ;;  %v5563_v35 = vld [vmem:[%s8311_s1 + $0x108] ss:$16 sps:$4 sm:$0xff]  }
   0xd   :  { %v5564_v36 = vld [vmem:[%s8311_s1 + $0x124] ss:$16 sps:$4 sm:$0xff]   ;;  %v5566_v37 = vld [vmem:[%s8311_s1 + $0x12c] ss:$16 sps:$4 sm:$0xff]   ;;  %v5568_v38 = vld [vmem:[%s8311_s1 + $0x120] ss:$16 sps:$4 sm:$0xff]  }
   0xe   :  { %v5569_v39 = vld [vmem:[%s8311_s1 + $0x128] ss:$16 sps:$4 sm:$0xff]   ;;  %v5570_v40 = vld [vmem:[%s8311_s1 + $0x144] ss:$16 sps:$4 sm:$0xff]   ;;  %v5572_v41 = vld [vmem:[%s8311_s1 + $0x14c] ss:$16 sps:$4 sm:$0xff]  }
   0xf   :  { %3715 = vmatpush1.bf16.msra.mxu0 %v5532_v14  ;;  %4192 = vmatpush1.bf16.msra.mxu1 %v5533_v15  ;;  %v5574_v42 = vld [vmem:[%s8311_s1 + $0x140] ss:$16 sps:$4 sm:$0xff]   ;;  %v5575_v43 = vld [vmem:[%s8311_s1 + $0x148] ss:$16 sps:$4 sm:$0xff]   ;;  %v5576_v44 = vld [vmem:[%s8311_s1 + $0x164] ss:$16 sps:$4 sm:$0xff]  }
  0x10   :  { %3716 = vmatprep.subr.bf16.mxu0 %v5534_v16  ;;  %4193 = vmatprep.subr.bf16.mxu1 %v5536_v17  ;;  %v5578_v45 = vld [vmem:[%s8311_s1 + $0x16c] ss:$16 sps:$4 sm:$0xff]   ;;  %v5580_v46 = vld [vmem:[%s8311_s1 + $0x160] ss:$16 sps:$4 sm:$0xff]   ;;  %v5581_v47 = vld [vmem:[%s8311_s1 + $0x168] ss:$16 sps:$4 sm:$0xff]  }
  0x11   :  { %v5608_v48 = vld [vmem:[%s8312_s0 + $0x4] ss:$72 sps:$4 sm:$0xff]   ;;  %v5586_v51 = vld [vmem:[%s8311_s1 + $0x180] ss:$16 sps:$4 sm:$0xff]   ;;  %v5587_v52 = vld [vmem:[%s8311_s1 + $0x188] ss:$16 sps:$4 sm:$0xff]  }
  0x12   :  { %v5582_v49 = vld [vmem:[%s8311_s1 + $0x184] ss:$16 sps:$4 sm:$0xff]   ;;  %v5584_v50 = vld [vmem:[%s8311_s1 + $0x18c] ss:$16 sps:$4 sm:$0xff]   ;;  %3740 = vmatprep.mubr.bf16.mxu0 %v5608_v48  ;;  %4217 = vmatprep.mubr.bf16.mxu1 %v5608_v48  ;;  %v5592_v55 = vld [vmem:[%s8311_s1 + $0x1a0] ss:$16 sps:$4 sm:$0xff]  }
  0x13   :  { %3717 = vmatpush1.bf16.msra.mxu0 %v5538_v18  ;;  %4194 = vmatpush1.bf16.msra.mxu1 %v5539_v19  ;;  %v5588_v53 = vld [vmem:[%s8311_s1 + $0x1a4] ss:$16 sps:$4 sm:$0xff]   ;;  %v5590_v54 = vld [vmem:[%s8311_s1 + $0x1ac] ss:$16 sps:$4 sm:$0xff]   ;;  %v5593_v56 = vld [vmem:[%s8311_s1 + $0x1a8] ss:$16 sps:$4 sm:$0xff]  }
  0x14   :  { %3718 = vmatprep.subr.bf16.mxu0 %v5540_v20  ;;  %4195 = vmatprep.subr.bf16.mxu1 %v5542_v21  ;;  %v5594_v57 = vld [vmem:[%s8311_s1 + $0x1c4] ss:$16 sps:$4 sm:$0xff]   ;;  %v5596_v58 = vld [vmem:[%s8311_s1 + $0x1cc] ss:$16 sps:$4 sm:$0xff]   ;;  %v5598_v59 = vld [vmem:[%s8311_s1 + $0x1c0] ss:$16 sps:$4 sm:$0xff]  }
  0x15   :  { %v5599_v60 = vld [vmem:[%s8311_s1 + $0x1c8] ss:$16 sps:$4 sm:$0xff]   ;;  %v5600_v61 = vld [vmem:[%s8311_s1 + $0x1e4] ss:$16 sps:$4 sm:$0xff]   ;;  %v5602_v62 = vld [vmem:[%s8311_s1 + $0x1ec] ss:$16 sps:$4 sm:$0xff]  }
  0x16   :  { %v5604_v63 = vld [vmem:[%s8311_s1 + $0x1e0] ss:$16 sps:$4 sm:$0xff]   ;;  %v5605_v0 = vld [vmem:[%s8311_s1 + $0x1e8] ss:$16 sps:$4 sm:$0xff]   ;;  %v5611_v1 = vld [vmem:[%s8311_s1 + $0x204] ss:$16 sps:$4 sm:$0xff]  }
  0x17   :  { %3719 = vmatpush1.bf16.msra.mxu0 %v5544_v22  ;;  %4196 = vmatpush1.bf16.msra.mxu1 %v5545_v23  ;;  %v5614_v2 = vld [vmem:[%s8311_s1 + $0x20c] ss:$16 sps:$4 sm:$0xff]   ;;  %v5606_v3 = vld [vmem:[%s8312_s0] ss:$72 sps:$4 sm:$0xff]   ;;  %v5617_v6 = vld [vmem:[%s8311_s1 + $0x224] ss:$16 sps:$4 sm:$0xff]  }
  0x18   :  { %3720 = vmatprep.subr.bf16.mxu0 %v5546_v24  ;;  %4197 = vmatprep.subr.bf16.mxu1 %v5548_v25  ;;  %v5609_v4 = vld [vmem:[%s8311_s1 + $0x200] ss:$16 sps:$4 sm:$0xff]   ;;  %v5612_v5 = vld [vmem:[%s8311_s1 + $0x208] ss:$16 sps:$4 sm:$0xff]   ;;  %v5620_v7 = vld [vmem:[%s8311_s1 + $0x22c] ss:$16 sps:$4 sm:$0xff]  }
  0x19   :  { %v5615_v8 = vld [vmem:[%s8311_s1 + $0x220] ss:$16 sps:$4 sm:$0xff]   ;;  %v5618_v9 = vld [vmem:[%s8311_s1 + $0x228] ss:$16 sps:$4 sm:$0xff]   ;;  %v5623_v10 = vld [vmem:[%s8311_s1 + $0x244] ss:$16 sps:$4 sm:$0xff]  }
  0x1a   :  { %v5626_v11 = vld [vmem:[%s8311_s1 + $0x24c] ss:$16 sps:$4 sm:$0xff]   ;;  %v5621_v12 = vld [vmem:[%s8311_s1 + $0x240] ss:$16 sps:$4 sm:$0xff]   ;;  %v5624_v13 = vld [vmem:[%s8311_s1 + $0x248] ss:$16 sps:$4 sm:$0xff]  }
  0x1b   :  { %3721 = vmatpush1.bf16.msra.mxu0 %v5550_v26  ;;  %4198 = vmatpush1.bf16.msra.mxu1 %v5551_v27  ;;  %v5629_v14 = vld [vmem:[%s8311_s1 + $0x264] ss:$16 sps:$4 sm:$0xff]   ;;  %v5632_v15 = vld [vmem:[%s8311_s1 + $0x26c] ss:$16 sps:$4 sm:$0xff]   ;;  %v5627_v16 = vld [vmem:[%s8311_s1 + $0x260] ss:$16 sps:$4 sm:$0xff]  }
  0x1c   :  { %3722 = vmatprep.subr.bf16.mxu0 %v5552_v28  ;;  %4199 = vmatprep.subr.bf16.mxu1 %v5554_v29  ;;  %v5630_v17 = vld [vmem:[%s8311_s1 + $0x268] ss:$16 sps:$4 sm:$0xff]   ;;  %v5635_v18 = vld [vmem:[%s8311_s1 + $0x284] ss:$16 sps:$4 sm:$0xff]   ;;  %v5638_v19 = vld [vmem:[%s8311_s1 + $0x28c] ss:$16 sps:$4 sm:$0xff]  }
  0x1d   :  { %v5633_v20 = vld [vmem:[%s8311_s1 + $0x280] ss:$16 sps:$4 sm:$0xff]   ;;  %v5636_v21 = vld [vmem:[%s8311_s1 + $0x288] ss:$16 sps:$4 sm:$0xff]   ;;  %v5641_v22 = vld [vmem:[%s8311_s1 + $0x2a4] ss:$16 sps:$4 sm:$0xff]  }
  0x1e   :  { %v5644_v23 = vld [vmem:[%s8311_s1 + $0x2ac] ss:$16 sps:$4 sm:$0xff]   ;;  %v5639_v25 = vld [vmem:[%s8311_s1 + $0x2a0] ss:$16 sps:$4 sm:$0xff]   ;;  %v5642_v26 = vld [vmem:[%s8311_s1 + $0x2a8] ss:$16 sps:$4 sm:$0xff]  }
  0x1f   :  { %3723 = vmatpush1.bf16.msra.mxu0 %v5556_v30  ;;  %4200 = vmatpush1.bf16.msra.mxu1 %v5557_v31  ;;  %v5693_v24 = vld [vmem:[%s8312_s0 + $0x94] ss:$72 sps:$4 sm:$0xff]   ;;  %v5701_v29 = vld [vmem:[%s8312_s0 + $0x90] ss:$72 sps:$4 sm:$0xff]  }
  0x20   :  { %3724 = vmatprep.subr.bf16.mxu0 %v5558_v32  ;;  %4201 = vmatprep.subr.bf16.mxu1 %v5560_v33  ;;  %v5647_v27 = vld [vmem:[%s8311_s1 + $0x2c4] ss:$16 sps:$4 sm:$0xff]   ;;  %v5650_v28 = vld [vmem:[%s8311_s1 + $0x2cc] ss:$16 sps:$4 sm:$0xff]   ;;  %v5645_v30 = vld [vmem:[%s8311_s1 + $0x2c0] ss:$16 sps:$4 sm:$0xff]  }
  0x21   :  { %v5648_v31 = vld [vmem:[%s8311_s1 + $0x2c8] ss:$16 sps:$4 sm:$0xff]   ;;  %v5653_v32 = vld [vmem:[%s8311_s1 + $0x2e4] ss:$16 sps:$4 sm:$0xff]   ;;  %v5656_v33 = vld [vmem:[%s8311_s1 + $0x2ec] ss:$16 sps:$4 sm:$0xff]  }
  0x22   :  { %v5672_v48 = vld [vmem:[%s8311_s1 + $0x348] ss:$16 sps:$4 sm:$0xff]  }
  0x23   :  { %3725 = vmatpush1.bf16.msra.mxu0 %v5562_v34  ;;  %4202 = vmatpush1.bf16.msra.mxu1 %v5563_v35  ;;  %v5710_v34 = vld [vmem:[%s8312_s0 + $0xc] ss:$72 sps:$4 sm:$0xff]   ;;  %v5651_v35 = vld [vmem:[%s8311_s1 + $0x2e0] ss:$16 sps:$4 sm:$0xff]  }
  0x24   :  { %3726 = vmatprep.subr.bf16.mxu0 %v5564_v36  ;;  %4203 = vmatprep.subr.bf16.mxu1 %v5566_v37  ;;  %v5654_v36 = vld [vmem:[%s8311_s1 + $0x2e8] ss:$16 sps:$4 sm:$0xff]   ;;  %v5659_v37 = vld [vmem:[%s8311_s1 + $0x304] ss:$16 sps:$4 sm:$0xff]  }
  0x27   :  { %3727 = vmatpush1.bf16.msra.mxu0 %v5568_v38  ;;  %4204 = vmatpush1.bf16.msra.mxu1 %v5569_v39  ;;  %v5662_v38 = vld [vmem:[%s8311_s1 + $0x30c] ss:$16 sps:$4 sm:$0xff]   ;;  %v5657_v39 = vld [vmem:[%s8311_s1 + $0x300] ss:$16 sps:$4 sm:$0xff]  }
  0x28   :  { %3728 = vmatprep.subr.bf16.mxu0 %v5570_v40  ;;  %4205 = vmatprep.subr.bf16.mxu1 %v5572_v41  ;;  %v5660_v40 = vld [vmem:[%s8311_s1 + $0x308] ss:$16 sps:$4 sm:$0xff]   ;;  %v5665_v41 = vld [vmem:[%s8311_s1 + $0x324] ss:$16 sps:$4 sm:$0xff]  }
  0x2b   :  { %3729 = vmatpush1.bf16.msra.mxu0 %v5574_v42  ;;  %4206 = vmatpush1.bf16.msra.mxu1 %v5575_v43  ;;  %v5668_v42 = vld [vmem:[%s8311_s1 + $0x32c] ss:$16 sps:$4 sm:$0xff]   ;;  %v5663_v43 = vld [vmem:[%s8311_s1 + $0x320] ss:$16 sps:$4 sm:$0xff]  }
  0x2c   :  { %3730 = vmatprep.subr.bf16.mxu0 %v5576_v44  ;;  %4207 = vmatprep.subr.bf16.mxu1 %v5578_v45  ;;  %v5666_v44 = vld [vmem:[%s8311_s1 + $0x328] ss:$16 sps:$4 sm:$0xff]   ;;  %v5671_v45 = vld [vmem:[%s8311_s1 + $0x344] ss:$16 sps:$4 sm:$0xff]  }
  0x2f   :  { %3731 = vmatpush1.bf16.msra.mxu0 %v5580_v46  ;;  %4208 = vmatpush1.bf16.msra.mxu1 %v5581_v47  ;;  %v5674_v46 = vld [vmem:[%s8311_s1 + $0x34c] ss:$16 sps:$4 sm:$0xff]   ;;  %v5669_v47 = vld [vmem:[%s8311_s1 + $0x340] ss:$16 sps:$4 sm:$0xff]  }
  0x30   :  { %3732 = vmatprep.subr.bf16.mxu0 %v5582_v49  ;;  %4209 = vmatprep.subr.bf16.mxu1 %v5584_v50  ;;  %v5677_v49 = vld [vmem:[%s8311_s1 + $0x364] ss:$16 sps:$4 sm:$0xff]   ;;  %v5680_v50 = vld [vmem:[%s8311_s1 + $0x36c] ss:$16 sps:$4 sm:$0xff]  }
  0x33   :  { %3733 = vmatpush1.bf16.msra.mxu0 %v5586_v51  ;;  %4210 = vmatpush1.bf16.msra.mxu1 %v5587_v52  ;;  %v5675_v51 = vld [vmem:[%s8311_s1 + $0x360] ss:$16 sps:$4 sm:$0xff]   ;;  %v5678_v52 = vld [vmem:[%s8311_s1 + $0x368] ss:$16 sps:$4 sm:$0xff]  }
  0x34   :  { %3734 = vmatprep.subr.bf16.mxu0 %v5588_v53  ;;  %4211 = vmatprep.subr.bf16.mxu1 %v5590_v54  ;;  %v5683_v53 = vld [vmem:[%s8311_s1 + $0x384] ss:$16 sps:$4 sm:$0xff]   ;;  %v5686_v54 = vld [vmem:[%s8311_s1 + $0x38c] ss:$16 sps:$4 sm:$0xff]  }
  0x37   :  { %3735 = vmatpush1.bf16.msra.mxu0 %v5592_v55  ;;  %4212 = vmatpush1.bf16.msra.mxu1 %v5593_v56  ;;  %v5681_v55 = vld [vmem:[%s8311_s1 + $0x380] ss:$16 sps:$4 sm:$0xff]   ;;  %v5684_v56 = vld [vmem:[%s8311_s1 + $0x388] ss:$16 sps:$4 sm:$0xff]  }
  0x38   :  { %3736 = vmatprep.subr.bf16.mxu0 %v5594_v57  ;;  %4213 = vmatprep.subr.bf16.mxu1 %v5596_v58  ;;  %v5689_v57 = vld [vmem:[%s8311_s1 + $0x3a4] ss:$16 sps:$4 sm:$0xff]   ;;  %v5692_v58 = vld [vmem:[%s8311_s1 + $0x3ac] ss:$16 sps:$4 sm:$0xff]  }
  0x3b   :  { %3737 = vmatpush1.bf16.msra.mxu0 %v5598_v59  ;;  %4214 = vmatpush1.bf16.msra.mxu1 %v5599_v60  ;;  %v5687_v59 = vld [vmem:[%s8311_s1 + $0x3a0] ss:$16 sps:$4 sm:$0xff]   ;;  %v5690_v60 = vld [vmem:[%s8311_s1 + $0x3a8] ss:$16 sps:$4 sm:$0xff]  }
  0x3c   :  { %3738 = vmatprep.subr.bf16.mxu0 %v5600_v61  ;;  %4215 = vmatprep.subr.bf16.mxu1 %v5602_v62  ;;  %v5697_v61 = vld [vmem:[%s8311_s1 + $0x3c4] ss:$16 sps:$4 sm:$0xff]   ;;  %v5700_v62 = vld [vmem:[%s8311_s1 + $0x3cc] ss:$16 sps:$4 sm:$0xff]  }
  0x3f   :  { %3739 = vmatpush1.bf16.msra.mxu0 %v5604_v63  ;;  %4216 = vmatpush1.bf16.msra.mxu1 %v5605_v0  ;;  %v5695_v63 = vld [vmem:[%s8311_s1 + $0x3c0] ss:$16 sps:$4 sm:$0xff]   ;;  %v5698_v0 = vld [vmem:[%s8311_s1 + $0x3c8] ss:$16 sps:$4 sm:$0xff]  }
  0x40   :  { %3761 = vmatprep.subr.bf16.mxu0 %v5611_v1  ;;  %4238 = vmatprep.subr.bf16.mxu1 %v5614_v2  ;;  %v5704_v1 = vld [vmem:[%s8311_s1 + $0x3e4] ss:$16 sps:$4 sm:$0xff]   ;;  %v5707_v2 = vld [vmem:[%s8311_s1 + $0x3ec] ss:$16 sps:$4 sm:$0xff]  }
  0x42   :  { %3741 = vmatmul.mubr.bf16.vlgmr.msra.gmra.mrb[0].mxu0 %v5606_v3  ;;  %4218 = vmatmul.mubr.bf16.vlgmr.msra.gmra.mrb[0].mxu1 %v5606_v3  ;;  %v5702_v3 = vld [vmem:[%s8311_s1 + $0x3e0] ss:$16 sps:$4 sm:$0xff]  }
  0x43   :  { %3762 = vmatpush1.bf16.msra.mxu0 %v5609_v4  ;;  %4239 = vmatpush1.bf16.msra.mxu1 %v5612_v5  ;;  %v5705_v4 = vld [vmem:[%s8311_s1 + $0x3e8] ss:$16 sps:$4 sm:$0xff]   ;;  %v5713_v5 = vld [vmem:[%s8311_s1 + $0x404] ss:$16 sps:$4 sm:$0xff]  }
  0x44   :  { %3763 = vmatprep.subr.bf16.mxu0 %v5617_v6  ;;  %4240 = vmatprep.subr.bf16.mxu1 %v5620_v7  ;;  %v5716_v6 = vld [vmem:[%s8311_s1 + $0x40c] ss:$16 sps:$4 sm:$0xff]   ;;  %v5708_v7 = vld [vmem:[%s8312_s0 + $0x8] ss:$72 sps:$4 sm:$0xff]  }
  0x45   :  { %3750 = vmatprep.mubr.bf16.mxu0 %v5693_v24  ;;  %4227 = vmatprep.mubr.bf16.mxu1 %v5693_v24  ;;  %v5732_v24 = vld [vmem:[%s8311_s1 + $0x468] ss:$16 sps:$4 sm:$0xff]  }
  0x47   :  { %3764 = vmatpush1.bf16.msra.mxu0 %v5615_v8  ;;  %4241 = vmatpush1.bf16.msra.mxu1 %v5618_v9  ;;  %v5711_v8 = vld [vmem:[%s8311_s1 + $0x400] ss:$16 sps:$4 sm:$0xff]   ;;  %v5714_v9 = vld [vmem:[%s8311_s1 + $0x408] ss:$16 sps:$4 sm:$0xff]  }
  0x48   :  { %3765 = vmatprep.subr.bf16.mxu0 %v5623_v10  ;;  %4242 = vmatprep.subr.bf16.mxu1 %v5626_v11  ;;  %v5719_v10 = vld [vmem:[%s8311_s1 + $0x424] ss:$16 sps:$4 sm:$0xff]   ;;  %v5722_v11 = vld [vmem:[%s8311_s1 + $0x42c] ss:$16 sps:$4 sm:$0xff]  }
  0x4a   :  { %3751 = vmatmul.mubr.bf16.gmra.mrb[4].mxu0 %v5701_v29  ;;  %4228 = vmatmul.mubr.bf16.gmra.mrb[4].mxu1 %v5701_v29  ;;  %v5743_v29 = vld [vmem:[%s8311_s1 + $0x4a4] ss:$16 sps:$4 sm:$0xff]  }
  0x4b   :  { %3766 = vmatpush1.bf16.msra.mxu0 %v5621_v12  ;;  %4243 = vmatpush1.bf16.msra.mxu1 %v5624_v13  ;;  %v5795_v12 = vld [vmem:[%s8312_s0 + $0x9c] ss:$72 sps:$4 sm:$0xff]   ;;  %v5717_v13 = vld [vmem:[%s8311_s1 + $0x420] ss:$16 sps:$4 sm:$0xff]  }
  0x4c   :  { %3767 = vmatprep.subr.bf16.mxu0 %v5629_v14  ;;  %4244 = vmatprep.subr.bf16.mxu1 %v5632_v15  ;;  %v5720_v14 = vld [vmem:[%s8311_s1 + $0x428] ss:$16 sps:$4 sm:$0xff]   ;;  %v5725_v15 = vld [vmem:[%s8311_s1 + $0x444] ss:$16 sps:$4 sm:$0xff]  }
  0x4d   :  { %3793 = vmatprep.mubr.bf16.mxu0 %v5710_v34  ;;  %4270 = vmatprep.mubr.bf16.mxu1 %v5710_v34  ;;  %v5752_v34 = vld [vmem:[%s8311_s1 + $0x4cc] ss:$16 sps:$4 sm:$0xff]  }
  0x4f   :  { %3768 = vmatpush1.bf16.msra.mxu0 %v5627_v16  ;;  %4245 = vmatpush1.bf16.msra.mxu1 %v5630_v17  ;;  %v5728_v16 = vld [vmem:[%s8311_s1 + $0x44c] ss:$16 sps:$4 sm:$0xff]   ;;  %v5723_v17 = vld [vmem:[%s8311_s1 + $0x440] ss:$16 sps:$4 sm:$0xff]  }
  0x50   :  { %3769 = vmatprep.subr.bf16.mxu0 %v5635_v18  ;;  %4246 = vmatprep.subr.bf16.mxu1 %v5638_v19  ;;  %v5726_v18 = vld [vmem:[%s8311_s1 + $0x448] ss:$16 sps:$4 sm:$0xff]  }
  0x51   :  { %v5803_v19 = vld [vmem:[%s8312_s0 + $0x98] ss:$72 sps:$4 sm:$0xff]  }
  0x53   :  { %3770 = vmatpush1.bf16.msra.mxu0 %v5633_v20  ;;  %4247 = vmatpush1.bf16.msra.mxu1 %v5636_v21  ;;  %v5731_v20 = vld [vmem:[%s8311_s1 + $0x464] ss:$16 sps:$4 sm:$0xff]   ;;  %v5734_v21 = vld [vmem:[%s8311_s1 + $0x46c] ss:$16 sps:$4 sm:$0xff]  }
  0x54   :  { %3771 = vmatprep.subr.bf16.mxu0 %v5641_v22  ;;  %4248 = vmatprep.subr.bf16.mxu1 %v5644_v23  ;;  %v5812_v22 = vld [vmem:[%s8312_s0 + $0x14] ss:$72 sps:$4 sm:$0xff]   ;;  %v5729_v23 = vld [vmem:[%s8311_s1 + $0x460] ss:$16 sps:$4 sm:$0xff]  }
  0x57   :  { %3772 = vmatpush1.bf16.msra.mxu0 %v5639_v25  ;;  %4249 = vmatpush1.bf16.msra.mxu1 %v5642_v26  ;;  %v5737_v25 = vld [vmem:[%s8311_s1 + $0x484] ss:$16 sps:$4 sm:$0xff]   ;;  %v5740_v26 = vld [vmem:[%s8311_s1 + $0x48c] ss:$16 sps:$4 sm:$0xff]  }
  0x58   :  { %3773 = vmatprep.subr.bf16.mxu0 %v5647_v27  ;;  %4250 = vmatprep.subr.bf16.mxu1 %v5650_v28  ;;  %v5735_v27 = vld [vmem:[%s8311_s1 + $0x480] ss:$16 sps:$4 sm:$0xff]   ;;  %v5738_v28 = vld [vmem:[%s8311_s1 + $0x488] ss:$16 sps:$4 sm:$0xff]  }
  0x5b   :  { %3774 = vmatpush1.bf16.msra.mxu0 %v5645_v30  ;;  %4251 = vmatpush1.bf16.msra.mxu1 %v5648_v31  ;;  %v5746_v30 = vld [vmem:[%s8311_s1 + $0x4ac] ss:$16 sps:$4 sm:$0xff]   ;;  %v5741_v31 = vld [vmem:[%s8311_s1 + $0x4a0] ss:$16 sps:$4 sm:$0xff]  }
  0x5c   :  { %3775 = vmatprep.subr.bf16.mxu0 %v5653_v32  ;;  %4252 = vmatprep.subr.bf16.mxu1 %v5656_v33  ;;  %v5744_v32 = vld [vmem:[%s8311_s1 + $0x4a8] ss:$16 sps:$4 sm:$0xff]   ;;  %v5749_v33 = vld [vmem:[%s8311_s1 + $0x4c4] ss:$16 sps:$4 sm:$0xff]  }
  0x5f   :  { %3776 = vmatpush1.bf16.msra.mxu0 %v5651_v35  ;;  %4253 = vmatpush1.bf16.msra.mxu1 %v5654_v36  ;;  %v5747_v35 = vld [vmem:[%s8311_s1 + $0x4c0] ss:$16 sps:$4 sm:$0xff]   ;;  %v5750_v36 = vld [vmem:[%s8311_s1 + $0x4c8] ss:$16 sps:$4 sm:$0xff]  }
  0x60   :  { %3777 = vmatprep.subr.bf16.mxu0 %v5659_v37  ;;  %4254 = vmatprep.subr.bf16.mxu1 %v5662_v38  ;;  %v5755_v37 = vld [vmem:[%s8311_s1 + $0x4e4] ss:$16 sps:$4 sm:$0xff]   ;;  %v5758_v38 = vld [vmem:[%s8311_s1 + $0x4ec] ss:$16 sps:$4 sm:$0xff]  }
  0x63   :  { %3778 = vmatpush1.bf16.msra.mxu0 %v5657_v39  ;;  %4255 = vmatpush1.bf16.msra.mxu1 %v5660_v40  ;;  %v5753_v39 = vld [vmem:[%s8311_s1 + $0x4e0] ss:$16 sps:$4 sm:$0xff]   ;;  %v5756_v40 = vld [vmem:[%s8311_s1 + $0x4e8] ss:$16 sps:$4 sm:$0xff]  }
  0x64   :  { %3779 = vmatprep.subr.bf16.mxu0 %v5665_v41  ;;  %4256 = vmatprep.subr.bf16.mxu1 %v5668_v42  ;;  %v5761_v41 = vld [vmem:[%s8311_s1 + $0x504] ss:$16 sps:$4 sm:$0xff]   ;;  %v5764_v42 = vld [vmem:[%s8311_s1 + $0x50c] ss:$16 sps:$4 sm:$0xff]  }
  0x67   :  { %3780 = vmatpush1.bf16.msra.mxu0 %v5663_v43  ;;  %4257 = vmatpush1.bf16.msra.mxu1 %v5666_v44  ;;  %v5759_v43 = vld [vmem:[%s8311_s1 + $0x500] ss:$16 sps:$4 sm:$0xff]   ;;  %v5762_v44 = vld [vmem:[%s8311_s1 + $0x508] ss:$16 sps:$4 sm:$0xff]  }
  0x68   :  { %3781 = vmatprep.subr.bf16.mxu0 %v5671_v45  ;;  %4258 = vmatprep.subr.bf16.mxu1 %v5674_v46  ;;  %v5767_v45 = vld [vmem:[%s8311_s1 + $0x524] ss:$16 sps:$4 sm:$0xff]   ;;  %v5770_v46 = vld [vmem:[%s8311_s1 + $0x52c] ss:$16 sps:$4 sm:$0xff]  }
  0x6b   :  { %3782 = vmatpush1.bf16.msra.mxu0 %v5669_v47  ;;  %4259 = vmatpush1.bf16.msra.mxu1 %v5672_v48  ;;  %v5765_v47 = vld [vmem:[%s8311_s1 + $0x520] ss:$16 sps:$4 sm:$0xff]   ;;  %v5768_v48 = vld [vmem:[%s8311_s1 + $0x528] ss:$16 sps:$4 sm:$0xff]  }
  0x6c   :  { %3783 = vmatprep.subr.bf16.mxu0 %v5677_v49  ;;  %4260 = vmatprep.subr.bf16.mxu1 %v5680_v50  ;;  %v5773_v49 = vld [vmem:[%s8311_s1 + $0x544] ss:$16 sps:$4 sm:$0xff]   ;;  %v5776_v50 = vld [vmem:[%s8311_s1 + $0x54c] ss:$16 sps:$4 sm:$0xff]  }
  0x6f   :  { %3784 = vmatpush1.bf16.msra.mxu0 %v5675_v51  ;;  %4261 = vmatpush1.bf16.msra.mxu1 %v5678_v52  ;;  %v5771_v51 = vld [vmem:[%s8311_s1 + $0x540] ss:$16 sps:$4 sm:$0xff]   ;;  %v5774_v52 = vld [vmem:[%s8311_s1 + $0x548] ss:$16 sps:$4 sm:$0xff]  }
  0x70   :  { %3785 = vmatprep.subr.bf16.mxu0 %v5683_v53  ;;  %4262 = vmatprep.subr.bf16.mxu1 %v5686_v54  ;;  %v5779_v53 = vld [vmem:[%s8311_s1 + $0x564] ss:$16 sps:$4 sm:$0xff]   ;;  %v5782_v54 = vld [vmem:[%s8311_s1 + $0x56c] ss:$16 sps:$4 sm:$0xff]  }
  0x73   :  { %3786 = vmatpush1.bf16.msra.mxu0 %v5681_v55  ;;  %4263 = vmatpush1.bf16.msra.mxu1 %v5684_v56  ;;  %v5777_v55 = vld [vmem:[%s8311_s1 + $0x560] ss:$16 sps:$4 sm:$0xff]   ;;  %v5780_v56 = vld [vmem:[%s8311_s1 + $0x568] ss:$16 sps:$4 sm:$0xff]  }
  0x74   :  { %3787 = vmatprep.subr.bf16.mxu0 %v5689_v57  ;;  %4264 = vmatprep.subr.bf16.mxu1 %v5692_v58  ;;  %v5785_v57 = vld [vmem:[%s8311_s1 + $0x584] ss:$16 sps:$4 sm:$0xff]   ;;  %v5788_v58 = vld [vmem:[%s8311_s1 + $0x58c] ss:$16 sps:$4 sm:$0xff]  }
  0x77   :  { %3788 = vmatpush1.bf16.msra.mxu0 %v5687_v59  ;;  %4265 = vmatpush1.bf16.msra.mxu1 %v5690_v60  ;;  %v5783_v59 = vld [vmem:[%s8311_s1 + $0x580] ss:$16 sps:$4 sm:$0xff]   ;;  %v5786_v60 = vld [vmem:[%s8311_s1 + $0x588] ss:$16 sps:$4 sm:$0xff]  }
  0x78   :  { %3789 = vmatprep.subr.bf16.mxu0 %v5697_v61  ;;  %4266 = vmatprep.subr.bf16.mxu1 %v5700_v62  ;;  %v5791_v61 = vld [vmem:[%s8311_s1 + $0x5a4] ss:$16 sps:$4 sm:$0xff]   ;;  %v5794_v62 = vld [vmem:[%s8311_s1 + $0x5ac] ss:$16 sps:$4 sm:$0xff]  }
  0x7b   :  { %3790 = vmatpush1.bf16.msra.mxu0 %v5695_v63  ;;  %4267 = vmatpush1.bf16.msra.mxu1 %v5698_v0  ;;  %v5789_v63 = vld [vmem:[%s8311_s1 + $0x5a0] ss:$16 sps:$4 sm:$0xff]   ;;  %v5792_v0 = vld [vmem:[%s8311_s1 + $0x5a8] ss:$16 sps:$4 sm:$0xff]  }
  0x7c   :  { %3791 = vmatprep.subr.bf16.mxu0 %v5704_v1  ;;  %4268 = vmatprep.subr.bf16.mxu1 %v5707_v2  ;;  %v5799_v1 = vld [vmem:[%s8311_s1 + $0x5c4] ss:$16 sps:$4 sm:$0xff]   ;;  %v5802_v2 = vld [vmem:[%s8311_s1 + $0x5cc] ss:$16 sps:$4 sm:$0xff]  }
  0x7f   :  { %3792 = vmatpush1.bf16.msra.mxu0 %v5702_v3  ;;  %4269 = vmatpush1.bf16.msra.mxu1 %v5705_v4  ;;  %v5797_v3 = vld [vmem:[%s8311_s1 + $0x5c0] ss:$16 sps:$4 sm:$0xff]   ;;  %v5800_v4 = vld [vmem:[%s8311_s1 + $0x5c8] ss:$16 sps:$4 sm:$0xff]  }
  0x80   :  { %3814 = vmatprep.subr.bf16.mxu0 %v5713_v5  ;;  %4291 = vmatprep.subr.bf16.mxu1 %v5716_v6  ;;  %v5806_v5 = vld [vmem:[%s8311_s1 + $0x5e4] ss:$16 sps:$4 sm:$0xff]   ;;  %v5809_v6 = vld [vmem:[%s8311_s1 + $0x5ec] ss:$16 sps:$4 sm:$0xff]  }
  0x82   :  { %3794 = vmatmul.mubr.bf16.vlgmr.msra.gmra.mrb[0].mxu0 %v5708_v7  ;;  %4271 = vmatmul.mubr.bf16.vlgmr.msra.gmra.mrb[0].mxu1 %v5708_v7  ;;  %v5804_v7 = vld [vmem:[%s8311_s1 + $0x5e0] ss:$16 sps:$4 sm:$0xff]  }
  0x83   :  { %3815 = vmatpush1.bf16.msra.mxu0 %v5711_v8  ;;  %4292 = vmatpush1.bf16.msra.mxu1 %v5714_v9  ;;  %v5807_v8 = vld [vmem:[%s8311_s1 + $0x5e8] ss:$16 sps:$4 sm:$0xff]   ;;  %v5815_v9 = vld [vmem:[%s8311_s1 + $0x604] ss:$16 sps:$4 sm:$0xff]  }
  0x84   :  { %3816 = vmatprep.subr.bf16.mxu0 %v5719_v10  ;;  %4293 = vmatprep.subr.bf16.mxu1 %v5722_v11  ;;  %v5818_v10 = vld [vmem:[%s8311_s1 + $0x60c] ss:$16 sps:$4 sm:$0xff]   ;;  %v5810_v11 = vld [vmem:[%s8312_s0 + $0x10] ss:$72 sps:$4 sm:$0xff]  }
  0x85   :  { %3803 = vmatprep.mubr.bf16.mxu0 %v5795_v12  ;;  %4280 = vmatprep.mubr.bf16.mxu1 %v5795_v12  ;;  %v5813_v12 = vld [vmem:[%s8311_s1 + $0x600] ss:$16 sps:$4 sm:$0xff]  }
  0x87   :  { %3817 = vmatpush1.bf16.msra.mxu0 %v5717_v13  ;;  %4294 = vmatpush1.bf16.msra.mxu1 %v5720_v14  ;;  %v5816_v13 = vld [vmem:[%s8311_s1 + $0x608] ss:$16 sps:$4 sm:$0xff]   ;;  %v5821_v14 = vld [vmem:[%s8311_s1 + $0x624] ss:$16 sps:$4 sm:$0xff]  }
  0x88   :  { %3818 = vmatprep.subr.bf16.mxu0 %v5725_v15  ;;  %4295 = vmatprep.subr.bf16.mxu1 %v5728_v16  ;;  %v5824_v15 = vld [vmem:[%s8311_s1 + $0x62c] ss:$16 sps:$4 sm:$0xff]  }
  0x89   :  { %v5897_v16 = vld [vmem:[%s8312_s0 + $0xa4] ss:$72 sps:$4 sm:$0xff]  }
  0x8a   :  { %3804 = vmatmul.mubr.bf16.gmra.mrb[4].mxu0 %v5803_v19  ;;  %4281 = vmatmul.mubr.bf16.gmra.mrb[4].mxu1 %v5803_v19  ;;  %v5827_v19 = vld [vmem:[%s8311_s1 + $0x644] ss:$16 sps:$4 sm:$0xff]  }
  0x8b   :  { %3819 = vmatpush1.bf16.msra.mxu0 %v5723_v17  ;;  %4296 = vmatpush1.bf16.msra.mxu1 %v5726_v18  ;;  %v5819_v17 = vld [vmem:[%s8311_s1 + $0x620] ss:$16 sps:$4 sm:$0xff]   ;;  %v5822_v18 = vld [vmem:[%s8311_s1 + $0x628] ss:$16 sps:$4 sm:$0xff]  }
  0x8c   :  { %3820 = vmatprep.subr.bf16.mxu0 %v5731_v20  ;;  %4297 = vmatprep.subr.bf16.mxu1 %v5734_v21  ;;  %v5830_v20 = vld [vmem:[%s8311_s1 + $0x64c] ss:$16 sps:$4 sm:$0xff]   ;;  %v5825_v21 = vld [vmem:[%s8311_s1 + $0x640] ss:$16 sps:$4 sm:$0xff]  }
  0x8d   :  { %3846 = vmatprep.mubr.bf16.mxu0 %v5812_v22  ;;  %4323 = vmatprep.mubr.bf16.mxu1 %v5812_v22  ;;  %v5828_v22 = vld [vmem:[%s8311_s1 + $0x648] ss:$16 sps:$4 sm:$0xff]  }
  0x8f   :  { %3821 = vmatpush1.bf16.msra.mxu0 %v5729_v23  ;;  %4298 = vmatpush1.bf16.msra.mxu1 %v5732_v24  ;;  %v5905_v23 = vld [vmem:[%s8312_s0 + $0xa0] ss:$72 sps:$4 sm:$0xff]   ;;  %v5833_v24 = vld [vmem:[%s8311_s1 + $0x664] ss:$16 sps:$4 sm:$0xff]  }
  0x90   :  { %3822 = vmatprep.subr.bf16.mxu0 %v5737_v25  ;;  %4299 = vmatprep.subr.bf16.mxu1 %v5740_v26  ;;  %v5836_v25 = vld [vmem:[%s8311_s1 + $0x66c] ss:$16 sps:$4 sm:$0xff]  }
  0x91   :  { %v5914_v26 = vld [vmem:[%s8312_s0 + $0x1c] ss:$72 sps:$4 sm:$0xff]  }
  0x93   :  { %3823 = vmatpush1.bf16.msra.mxu0 %v5735_v27  ;;  %4300 = vmatpush1.bf16.msra.mxu1 %v5738_v28  ;;  %v5831_v27 = vld [vmem:[%s8311_s1 + $0x660] ss:$16 sps:$4 sm:$0xff]   ;;  %v5834_v28 = vld [vmem:[%s8311_s1 + $0x668] ss:$16 sps:$4 sm:$0xff]  }
  0x94   :  { %3824 = vmatprep.subr.bf16.mxu0 %v5743_v29  ;;  %4301 = vmatprep.subr.bf16.mxu1 %v5746_v30  ;;  %v5839_v29 = vld [vmem:[%s8311_s1 + $0x684] ss:$16 sps:$4 sm:$0xff]   ;;  %v5842_v30 = vld [vmem:[%s8311_s1 + $0x68c] ss:$16 sps:$4 sm:$0xff]  }
  0x97   :  { %3825 = vmatpush1.bf16.msra.mxu0 %v5741_v31  ;;  %4302 = vmatpush1.bf16.msra.mxu1 %v5744_v32  ;;  %v5837_v31 = vld [vmem:[%s8311_s1 + $0x680] ss:$16 sps:$4 sm:$0xff]   ;;  %v5840_v32 = vld [vmem:[%s8311_s1 + $0x688] ss:$16 sps:$4 sm:$0xff]  }
  0x98   :  { %3826 = vmatprep.subr.bf16.mxu0 %v5749_v33  ;;  %4303 = vmatprep.subr.bf16.mxu1 %v5752_v34  ;;  %v5845_v33 = vld [vmem:[%s8311_s1 + $0x6a4] ss:$16 sps:$4 sm:$0xff]   ;;  %v5848_v34 = vld [vmem:[%s8311_s1 + $0x6ac] ss:$16 sps:$4 sm:$0xff]  }
  0x9b   :  { %3827 = vmatpush1.bf16.msra.mxu0 %v5747_v35  ;;  %4304 = vmatpush1.bf16.msra.mxu1 %v5750_v36  ;;  %v5843_v35 = vld [vmem:[%s8311_s1 + $0x6a0] ss:$16 sps:$4 sm:$0xff]   ;;  %v5846_v36 = vld [vmem:[%s8311_s1 + $0x6a8] ss:$16 sps:$4 sm:$0xff]  }
  0x9c   :  { %3828 = vmatprep.subr.bf16.mxu0 %v5755_v37  ;;  %4305 = vmatprep.subr.bf16.mxu1 %v5758_v38  ;;  %v5851_v37 = vld [vmem:[%s8311_s1 + $0x6c4] ss:$16 sps:$4 sm:$0xff]   ;;  %v5854_v38 = vld [vmem:[%s8311_s1 + $0x6cc] ss:$16 sps:$4 sm:$0xff]  }
  0x9f   :  { %3829 = vmatpush1.bf16.msra.mxu0 %v5753_v39  ;;  %4306 = vmatpush1.bf16.msra.mxu1 %v5756_v40  ;;  %v5849_v39 = vld [vmem:[%s8311_s1 + $0x6c0] ss:$16 sps:$4 sm:$0xff]   ;;  %v5852_v40 = vld [vmem:[%s8311_s1 + $0x6c8] ss:$16 sps:$4 sm:$0xff]  }
  0xa0   :  { %3830 = vmatprep.subr.bf16.mxu0 %v5761_v41  ;;  %4307 = vmatprep.subr.bf16.mxu1 %v5764_v42  ;;  %v5857_v41 = vld [vmem:[%s8311_s1 + $0x6e4] ss:$16 sps:$4 sm:$0xff]   ;;  %v5860_v42 = vld [vmem:[%s8311_s1 + $0x6ec] ss:$16 sps:$4 sm:$0xff]  }
  0xa3   :  { %3831 = vmatpush1.bf16.msra.mxu0 %v5759_v43  ;;  %4308 = vmatpush1.bf16.msra.mxu1 %v5762_v44  ;;  %v5855_v43 = vld [vmem:[%s8311_s1 + $0x6e0] ss:$16 sps:$4 sm:$0xff]   ;;  %v5858_v44 = vld [vmem:[%s8311_s1 + $0x6e8] ss:$16 sps:$4 sm:$0xff]  }
  0xa4   :  { %3832 = vmatprep.subr.bf16.mxu0 %v5767_v45  ;;  %4309 = vmatprep.subr.bf16.mxu1 %v5770_v46  ;;  %v5863_v45 = vld [vmem:[%s8311_s1 + $0x704] ss:$16 sps:$4 sm:$0xff]   ;;  %v5866_v46 = vld [vmem:[%s8311_s1 + $0x70c] ss:$16 sps:$4 sm:$0xff]  }
  0xa7   :  { %3833 = vmatpush1.bf16.msra.mxu0 %v5765_v47  ;;  %4310 = vmatpush1.bf16.msra.mxu1 %v5768_v48  ;;  %v5861_v47 = vld [vmem:[%s8311_s1 + $0x700] ss:$16 sps:$4 sm:$0xff]   ;;  %v5864_v48 = vld [vmem:[%s8311_s1 + $0x708] ss:$16 sps:$4 sm:$0xff]  }
  0xa8   :  { %3834 = vmatprep.subr.bf16.mxu0 %v5773_v49  ;;  %4311 = vmatprep.subr.bf16.mxu1 %v5776_v50  ;;  %v5869_v49 = vld [vmem:[%s8311_s1 + $0x724] ss:$16 sps:$4 sm:$0xff]   ;;  %v5872_v50 = vld [vmem:[%s8311_s1 + $0x72c] ss:$16 sps:$4 sm:$0xff]  }
  0xab   :  { %3835 = vmatpush1.bf16.msra.mxu0 %v5771_v51  ;;  %4312 = vmatpush1.bf16.msra.mxu1 %v5774_v52  ;;  %v5867_v51 = vld [vmem:[%s8311_s1 + $0x720] ss:$16 sps:$4 sm:$0xff]   ;;  %v5870_v52 = vld [vmem:[%s8311_s1 + $0x728] ss:$16 sps:$4 sm:$0xff]  }
  0xac   :  { %3836 = vmatprep.subr.bf16.mxu0 %v5779_v53  ;;  %4313 = vmatprep.subr.bf16.mxu1 %v5782_v54  ;;  %v5875_v53 = vld [vmem:[%s8311_s1 + $0x744] ss:$16 sps:$4 sm:$0xff]   ;;  %v5878_v54 = vld [vmem:[%s8311_s1 + $0x74c] ss:$16 sps:$4 sm:$0xff]  }
  0xaf   :  { %3837 = vmatpush1.bf16.msra.mxu0 %v5777_v55  ;;  %4314 = vmatpush1.bf16.msra.mxu1 %v5780_v56  ;;  %v5873_v55 = vld [vmem:[%s8311_s1 + $0x740] ss:$16 sps:$4 sm:$0xff]   ;;  %v5876_v56 = vld [vmem:[%s8311_s1 + $0x748] ss:$16 sps:$4 sm:$0xff]  }
  0xb0   :  { %3838 = vmatprep.subr.bf16.mxu0 %v5785_v57  ;;  %4315 = vmatprep.subr.bf16.mxu1 %v5788_v58  ;;  %v5881_v57 = vld [vmem:[%s8311_s1 + $0x764] ss:$16 sps:$4 sm:$0xff]   ;;  %v5884_v58 = vld [vmem:[%s8311_s1 + $0x76c] ss:$16 sps:$4 sm:$0xff]  }
  0xb3   :  { %3839 = vmatpush1.bf16.msra.mxu0 %v5783_v59  ;;  %4316 = vmatpush1.bf16.msra.mxu1 %v5786_v60  ;;  %v5879_v59 = vld [vmem:[%s8311_s1 + $0x760] ss:$16 sps:$4 sm:$0xff]   ;;  %v5882_v60 = vld [vmem:[%s8311_s1 + $0x768] ss:$16 sps:$4 sm:$0xff]  }
  0xb4   :  { %3840 = vmatprep.subr.bf16.mxu0 %v5791_v61  ;;  %4317 = vmatprep.subr.bf16.mxu1 %v5794_v62  ;;  %v5887_v61 = vld [vmem:[%s8311_s1 + $0x784] ss:$16 sps:$4 sm:$0xff]   ;;  %v5890_v62 = vld [vmem:[%s8311_s1 + $0x78c] ss:$16 sps:$4 sm:$0xff]  }
  0xb7   :  { %3841 = vmatpush1.bf16.msra.mxu0 %v5789_v63  ;;  %4318 = vmatpush1.bf16.msra.mxu1 %v5792_v0  ;;  %v5885_v63 = vld [vmem:[%s8311_s1 + $0x780] ss:$16 sps:$4 sm:$0xff]   ;;  %v5888_v0 = vld [vmem:[%s8311_s1 + $0x788] ss:$16 sps:$4 sm:$0xff]  }
  0xb8   :  { %3842 = vmatprep.subr.bf16.mxu0 %v5799_v1  ;;  %4319 = vmatprep.subr.bf16.mxu1 %v5802_v2  ;;  %v5893_v1 = vld [vmem:[%s8311_s1 + $0x7a4] ss:$16 sps:$4 sm:$0xff]   ;;  %v5896_v2 = vld [vmem:[%s8311_s1 + $0x7ac] ss:$16 sps:$4 sm:$0xff]  }
  0xbb   :  { %3843 = vmatpush1.bf16.msra.mxu0 %v5797_v3  ;;  %4320 = vmatpush1.bf16.msra.mxu1 %v5800_v4  ;;  %v5891_v3 = vld [vmem:[%s8311_s1 + $0x7a0] ss:$16 sps:$4 sm:$0xff]   ;;  %v5894_v4 = vld [vmem:[%s8311_s1 + $0x7a8] ss:$16 sps:$4 sm:$0xff]  }
  0xbc   :  { %3844 = vmatprep.subr.bf16.mxu0 %v5806_v5  ;;  %4321 = vmatprep.subr.bf16.mxu1 %v5809_v6  ;;  %v5901_v5 = vld [vmem:[%s8311_s1 + $0x7c4] ss:$16 sps:$4 sm:$0xff]   ;;  %v5904_v6 = vld [vmem:[%s8311_s1 + $0x7cc] ss:$16 sps:$4 sm:$0xff]  }
  0xbf   :  { %3845 = vmatpush1.bf16.msra.mxu0 %v5804_v7  ;;  %4322 = vmatpush1.bf16.msra.mxu1 %v5807_v8  ;;  %v5899_v7 = vld [vmem:[%s8311_s1 + $0x7c0] ss:$16 sps:$4 sm:$0xff]   ;;  %v5902_v8 = vld [vmem:[%s8311_s1 + $0x7c8] ss:$16 sps:$4 sm:$0xff]  }
  0xc0   :  { %3867 = vmatprep.subr.bf16.mxu0 %v5815_v9  ;;  %4344 = vmatprep.subr.bf16.mxu1 %v5818_v10  ;;  %v5908_v9 = vld [vmem:[%s8311_s1 + $0x7e4] ss:$16 sps:$4 sm:$0xff]   ;;  %v5911_v10 = vld [vmem:[%s8311_s1 + $0x7ec] ss:$16 sps:$4 sm:$0xff]  }
  0xc2   :  { %3847 = vmatmul.mubr.bf16.vlgmr.msra.gmra.mrb[0].mxu0 %v5810_v11  ;;  %4324 = vmatmul.mubr.bf16.vlgmr.msra.gmra.mrb[0].mxu1 %v5810_v11  ;;  %v5906_v11 = vld [vmem:[%s8311_s1 + $0x7e0] ss:$16 sps:$4 sm:$0xff]  }
  0xc3   :  { %3868 = vmatpush1.bf16.msra.mxu0 %v5813_v12  ;;  %4345 = vmatpush1.bf16.msra.mxu1 %v5816_v13  ;;  %v5909_v12 = vld [vmem:[%s8311_s1 + $0x7e8] ss:$16 sps:$4 sm:$0xff]   ;;  %v5917_v13 = vld [vmem:[%s8311_s1 + $0x804] ss:$16 sps:$4 sm:$0xff]  }
  0xc4   :  { %3869 = vmatprep.subr.bf16.mxu0 %v5821_v14  ;;  %4346 = vmatprep.subr.bf16.mxu1 %v5824_v15  ;;  %v5920_v14 = vld [vmem:[%s8311_s1 + $0x80c] ss:$16 sps:$4 sm:$0xff]   ;;  %v5912_v15 = vld [vmem:[%s8312_s0 + $0x18] ss:$72 sps:$4 sm:$0xff]  }
  0xc5   :  { %3856 = vmatprep.mubr.bf16.mxu0 %v5897_v16  ;;  %4333 = vmatprep.mubr.bf16.mxu1 %v5897_v16  ;;  %v5915_v16 = vld [vmem:[%s8311_s1 + $0x800] ss:$16 sps:$4 sm:$0xff]  }
  0xc7   :  { %3870 = vmatpush1.bf16.msra.mxu0 %v5819_v17  ;;  %4347 = vmatpush1.bf16.msra.mxu1 %v5822_v18  ;;  %v5918_v17 = vld [vmem:[%s8311_s1 + $0x808] ss:$16 sps:$4 sm:$0xff]   ;;  %v5923_v18 = vld [vmem:[%s8311_s1 + $0x824] ss:$16 sps:$4 sm:$0xff]  }
  0xc8   :  { %3871 = vmatprep.subr.bf16.mxu0 %v5827_v19  ;;  %4348 = vmatprep.subr.bf16.mxu1 %v5830_v20  ;;  %v5926_v19 = vld [vmem:[%s8311_s1 + $0x82c] ss:$16 sps:$4 sm:$0xff]  }
  0xc9   :  { %v5999_v20 = vld [vmem:[%s8312_s0 + $0xac] ss:$72 sps:$4 sm:$0xff]  }
  0xca   :  { %3857 = vmatmul.mubr.bf16.gmra.mrb[4].mxu0 %v5905_v23  ;;  %4334 = vmatmul.mubr.bf16.gmra.mrb[4].mxu1 %v5905_v23  ;;  %v5929_v23 = vld [vmem:[%s8311_s1 + $0x844] ss:$16 sps:$4 sm:$0xff]  }
  0xcb   :  { %3872 = vmatpush1.bf16.msra.mxu0 %v5825_v21  ;;  %4349 = vmatpush1.bf16.msra.mxu1 %v5828_v22  ;;  %v5921_v21 = vld [vmem:[%s8311_s1 + $0x820] ss:$16 sps:$4 sm:$0xff]   ;;  %v5924_v22 = vld [vmem:[%s8311_s1 + $0x828] ss:$16 sps:$4 sm:$0xff]  }
  0xcc   :  { %3873 = vmatprep.subr.bf16.mxu0 %v5833_v24  ;;  %4350 = vmatprep.subr.bf16.mxu1 %v5836_v25  ;;  %v5932_v24 = vld [vmem:[%s8311_s1 + $0x84c] ss:$16 sps:$4 sm:$0xff]   ;;  %v5927_v25 = vld [vmem:[%s8311_s1 + $0x840] ss:$16 sps:$4 sm:$0xff]  }
  0xcd   :  { %3899 = vmatprep.mubr.bf16.mxu0 %v5914_v26  ;;  %4376 = vmatprep.mubr.bf16.mxu1 %v5914_v26  ;;  %v6007_v26 = vld [vmem:[%s8312_s0 + $0xa8] ss:$72 sps:$4 sm:$0xff]  }
  0xcf   :  { %3874 = vmatpush1.bf16.msra.mxu0 %v5831_v27  ;;  %4351 = vmatpush1.bf16.msra.mxu1 %v5834_v28  ;;  %v5930_v27 = vld [vmem:[%s8311_s1 + $0x848] ss:$16 sps:$4 sm:$0xff]   ;;  %v5935_v28 = vld [vmem:[%s8311_s1 + $0x864] ss:$16 sps:$4 sm:$0xff]  }
  0xd0   :  { %3875 = vmatprep.subr.bf16.mxu0 %v5839_v29  ;;  %4352 = vmatprep.subr.bf16.mxu1 %v5842_v30  ;;  %v5938_v29 = vld [vmem:[%s8311_s1 + $0x86c] ss:$16 sps:$4 sm:$0xff]  }
  0xd1   :  { %v6016_v30 = vld [vmem:[%s8312_s0 + $0x24] ss:$72 sps:$4 sm:$0xff]  }
  0xd3   :  { %3876 = vmatpush1.bf16.msra.mxu0 %v5837_v31  ;;  %4353 = vmatpush1.bf16.msra.mxu1 %v5840_v32  ;;  %v5933_v31 = vld [vmem:[%s8311_s1 + $0x860] ss:$16 sps:$4 sm:$0xff]   ;;  %v5936_v32 = vld [vmem:[%s8311_s1 + $0x868] ss:$16 sps:$4 sm:$0xff]  }
  0xd4   :  { %3877 = vmatprep.subr.bf16.mxu0 %v5845_v33  ;;  %4354 = vmatprep.subr.bf16.mxu1 %v5848_v34  ;;  %v5941_v33 = vld [vmem:[%s8311_s1 + $0x884] ss:$16 sps:$4 sm:$0xff]   ;;  %v5944_v34 = vld [vmem:[%s8311_s1 + $0x88c] ss:$16 sps:$4 sm:$0xff]  }
  0xd7   :  { %3878 = vmatpush1.bf16.msra.mxu0 %v5843_v35  ;;  %4355 = vmatpush1.bf16.msra.mxu1 %v5846_v36  ;;  %v5939_v35 = vld [vmem:[%s8311_s1 + $0x880] ss:$16 sps:$4 sm:$0xff]   ;;  %v5942_v36 = vld [vmem:[%s8311_s1 + $0x888] ss:$16 sps:$4 sm:$0xff]  }
  0xd8   :  { %3879 = vmatprep.subr.bf16.mxu0 %v5851_v37  ;;  %4356 = vmatprep.subr.bf16.mxu1 %v5854_v38  ;;  %v5947_v37 = vld [vmem:[%s8311_s1 + $0x8a4] ss:$16 sps:$4 sm:$0xff]   ;;  %v5950_v38 = vld [vmem:[%s8311_s1 + $0x8ac] ss:$16 sps:$4 sm:$0xff]  }
  0xdb   :  { %3880 = vmatpush1.bf16.msra.mxu0 %v5849_v39  ;;  %4357 = vmatpush1.bf16.msra.mxu1 %v5852_v40  ;;  %v5945_v39 = vld [vmem:[%s8311_s1 + $0x8a0] ss:$16 sps:$4 sm:$0xff]   ;;  %v5948_v40 = vld [vmem:[%s8311_s1 + $0x8a8] ss:$16 sps:$4 sm:$0xff]  }
  0xdc   :  { %3881 = vmatprep.subr.bf16.mxu0 %v5857_v41  ;;  %4358 = vmatprep.subr.bf16.mxu1 %v5860_v42  ;;  %v5953_v41 = vld [vmem:[%s8311_s1 + $0x8c4] ss:$16 sps:$4 sm:$0xff]   ;;  %v5956_v42 = vld [vmem:[%s8311_s1 + $0x8cc] ss:$16 sps:$4 sm:$0xff]  }
  0xdf   :  { %3882 = vmatpush1.bf16.msra.mxu0 %v5855_v43  ;;  %4359 = vmatpush1.bf16.msra.mxu1 %v5858_v44  ;;  %v5951_v43 = vld [vmem:[%s8311_s1 + $0x8c0] ss:$16 sps:$4 sm:$0xff]   ;;  %v5954_v44 = vld [vmem:[%s8311_s1 + $0x8c8] ss:$16 sps:$4 sm:$0xff]  }
  0xe0   :  { %3883 = vmatprep.subr.bf16.mxu0 %v5863_v45  ;;  %4360 = vmatprep.subr.bf16.mxu1 %v5866_v46  ;;  %v5959_v45 = vld [vmem:[%s8311_s1 + $0x8e4] ss:$16 sps:$4 sm:$0xff]   ;;  %v5962_v46 = vld [vmem:[%s8311_s1 + $0x8ec] ss:$16 sps:$4 sm:$0xff]  }
  0xe3   :  { %3884 = vmatpush1.bf16.msra.mxu0 %v5861_v47  ;;  %4361 = vmatpush1.bf16.msra.mxu1 %v5864_v48  ;;  %v5957_v47 = vld [vmem:[%s8311_s1 + $0x8e0] ss:$16 sps:$4 sm:$0xff]   ;;  %v5960_v48 = vld [vmem:[%s8311_s1 + $0x8e8] ss:$16 sps:$4 sm:$0xff]  }
  0xe4   :  { %3885 = vmatprep.subr.bf16.mxu0 %v5869_v49  ;;  %4362 = vmatprep.subr.bf16.mxu1 %v5872_v50  ;;  %v5965_v49 = vld [vmem:[%s8311_s1 + $0x904] ss:$16 sps:$4 sm:$0xff]   ;;  %v5968_v50 = vld [vmem:[%s8311_s1 + $0x90c] ss:$16 sps:$4 sm:$0xff]  }
  0xe7   :  { %3886 = vmatpush1.bf16.msra.mxu0 %v5867_v51  ;;  %4363 = vmatpush1.bf16.msra.mxu1 %v5870_v52  ;;  %v5963_v51 = vld [vmem:[%s8311_s1 + $0x900] ss:$16 sps:$4 sm:$0xff]   ;;  %v5966_v52 = vld [vmem:[%s8311_s1 + $0x908] ss:$16 sps:$4 sm:$0xff]  }
  0xe8   :  { %3887 = vmatprep.subr.bf16.mxu0 %v5875_v53  ;;  %4364 = vmatprep.subr.bf16.mxu1 %v5878_v54  ;;  %v5971_v53 = vld [vmem:[%s8311_s1 + $0x924] ss:$16 sps:$4 sm:$0xff]   ;;  %v5974_v54 = vld [vmem:[%s8311_s1 + $0x92c] ss:$16 sps:$4 sm:$0xff]  }
  0xeb   :  { %3888 = vmatpush1.bf16.msra.mxu0 %v5873_v55  ;;  %4365 = vmatpush1.bf16.msra.mxu1 %v5876_v56  ;;  %v5969_v55 = vld [vmem:[%s8311_s1 + $0x920] ss:$16 sps:$4 sm:$0xff]   ;;  %v5972_v56 = vld [vmem:[%s8311_s1 + $0x928] ss:$16 sps:$4 sm:$0xff]  }
  0xec   :  { %3889 = vmatprep.subr.bf16.mxu0 %v5881_v57  ;;  %4366 = vmatprep.subr.bf16.mxu1 %v5884_v58  ;;  %v5977_v57 = vld [vmem:[%s8311_s1 + $0x944] ss:$16 sps:$4 sm:$0xff]   ;;  %v5980_v58 = vld [vmem:[%s8311_s1 + $0x94c] ss:$16 sps:$4 sm:$0xff]  }
  0xef   :  { %3890 = vmatpush1.bf16.msra.mxu0 %v5879_v59  ;;  %4367 = vmatpush1.bf16.msra.mxu1 %v5882_v60  ;;  %v5975_v59 = vld [vmem:[%s8311_s1 + $0x940] ss:$16 sps:$4 sm:$0xff]   ;;  %v5978_v60 = vld [vmem:[%s8311_s1 + $0x948] ss:$16 sps:$4 sm:$0xff]  }
  0xf0   :  { %3891 = vmatprep.subr.bf16.mxu0 %v5887_v61  ;;  %4368 = vmatprep.subr.bf16.mxu1 %v5890_v62  ;;  %v5983_v61 = vld [vmem:[%s8311_s1 + $0x964] ss:$16 sps:$4 sm:$0xff]   ;;  %v5986_v62 = vld [vmem:[%s8311_s1 + $0x96c] ss:$16 sps:$4 sm:$0xff]  }
  0xf3   :  { %3892 = vmatpush1.bf16.msra.mxu0 %v5885_v63  ;;  %4369 = vmatpush1.bf16.msra.mxu1 %v5888_v0  ;;  %v5981_v63 = vld [vmem:[%s8311_s1 + $0x960] ss:$16 sps:$4 sm:$0xff]   ;;  %v5984_v0 = vld [vmem:[%s8311_s1 + $0x968] ss:$16 sps:$4 sm:$0xff]  }
  0xf4   :  { %3893 = vmatprep.subr.bf16.mxu0 %v5893_v1  ;;  %4370 = vmatprep.subr.bf16.mxu1 %v5896_v2  ;;  %v5989_v1 = vld [vmem:[%s8311_s1 + $0x984] ss:$16 sps:$4 sm:$0xff]   ;;  %v5992_v2 = vld [vmem:[%s8311_s1 + $0x98c] ss:$16 sps:$4 sm:$0xff]  }
  0xf7   :  { %3894 = vmatpush1.bf16.msra.mxu0 %v5891_v3  ;;  %4371 = vmatpush1.bf16.msra.mxu1 %v5894_v4  ;;  %v5987_v3 = vld [vmem:[%s8311_s1 + $0x980] ss:$16 sps:$4 sm:$0xff]   ;;  %v5990_v4 = vld [vmem:[%s8311_s1 + $0x988] ss:$16 sps:$4 sm:$0xff]  }
  0xf8   :  { %3895 = vmatprep.subr.bf16.mxu0 %v5901_v5  ;;  %4372 = vmatprep.subr.bf16.mxu1 %v5904_v6  ;;  %v5995_v5 = vld [vmem:[%s8311_s1 + $0x9a4] ss:$16 sps:$4 sm:$0xff]   ;;  %v5998_v6 = vld [vmem:[%s8311_s1 + $0x9ac] ss:$16 sps:$4 sm:$0xff]  }
  0xfb   :  { %3896 = vmatpush1.bf16.msra.mxu0 %v5899_v7  ;;  %4373 = vmatpush1.bf16.msra.mxu1 %v5902_v8  ;;  %v5993_v7 = vld [vmem:[%s8311_s1 + $0x9a0] ss:$16 sps:$4 sm:$0xff]   ;;  %v5996_v8 = vld [vmem:[%s8311_s1 + $0x9a8] ss:$16 sps:$4 sm:$0xff]  }
  0xfc   :  { %3897 = vmatprep.subr.bf16.mxu0 %v5908_v9  ;;  %4374 = vmatprep.subr.bf16.mxu1 %v5911_v10  ;;  %v6003_v9 = vld [vmem:[%s8311_s1 + $0x9c4] ss:$16 sps:$4 sm:$0xff]   ;;  %v6006_v10 = vld [vmem:[%s8311_s1 + $0x9cc] ss:$16 sps:$4 sm:$0xff]  }
  0xff   :  { %3898 = vmatpush1.bf16.msra.mxu0 %v5906_v11  ;;  %4375 = vmatpush1.bf16.msra.mxu1 %v5909_v12  ;;  %v6001_v11 = vld [vmem:[%s8311_s1 + $0x9c0] ss:$16 sps:$4 sm:$0xff]   ;;  %v6004_v12 = vld [vmem:[%s8311_s1 + $0x9c8] ss:$16 sps:$4 sm:$0xff]  }
 0x100   :  { %3920 = vmatprep.subr.bf16.mxu0 %v5917_v13  ;;  %4397 = vmatprep.subr.bf16.mxu1 %v5920_v14  ;;  %v6010_v13 = vld [vmem:[%s8311_s1 + $0x9e4] ss:$16 sps:$4 sm:$0xff]   ;;  %v6013_v14 = vld [vmem:[%s8311_s1 + $0x9ec] ss:$16 sps:$4 sm:$0xff]  }
 0x102   :  { %3900 = vmatmul.mubr.bf16.vlgmr.msra.gmra.mrb[0].mxu0 %v5912_v15  ;;  %4377 = vmatmul.mubr.bf16.vlgmr.msra.gmra.mrb[0].mxu1 %v5912_v15  ;;  %v6008_v15 = vld [vmem:[%s8311_s1 + $0x9e0] ss:$16 sps:$4 sm:$0xff]  }
 0x103   :  { %3921 = vmatpush1.bf16.msra.mxu0 %v5915_v16  ;;  %4398 = vmatpush1.bf16.msra.mxu1 %v5918_v17  ;;  %v6011_v16 = vld [vmem:[%s8311_s1 + $0x9e8] ss:$16 sps:$4 sm:$0xff]  }
 0x104   :  { %3922 = vmatprep.subr.bf16.mxu0 %v5923_v18  ;;  %4399 = vmatprep.subr.bf16.mxu1 %v5926_v19  ;;  %v6014_v17 = vld [vmem:[%s8312_s0 + $0x20] ss:$72 sps:$4 sm:$0xff]   ;;  %v6019_v18 = vld [vmem:[%s8311_s1 + $0xa04] ss:$16 sps:$4 sm:$0xff]   ;;  %v6022_v19 = vld [vmem:[%s8311_s1 + $0xa0c] ss:$16 sps:$4 sm:$0xff]  }
 0x105   :  { %3909 = vmatprep.mubr.bf16.mxu0 %v5999_v20  ;;  %4386 = vmatprep.mubr.bf16.mxu1 %v5999_v20  ;;  %v6017_v20 = vld [vmem:[%s8311_s1 + $0xa00] ss:$16 sps:$4 sm:$0xff]  }
 0x107   :  { %3923 = vmatpush1.bf16.msra.mxu0 %v5921_v21  ;;  %4400 = vmatpush1.bf16.msra.mxu1 %v5924_v22  ;;  %v6020_v21 = vld [vmem:[%s8311_s1 + $0xa08] ss:$16 sps:$4 sm:$0xff]   ;;  %v6025_v22 = vld [vmem:[%s8311_s1 + $0xa24] ss:$16 sps:$4 sm:$0xff]  }
 0x108   :  { %3924 = vmatprep.subr.bf16.mxu0 %v5929_v23  ;;  %4401 = vmatprep.subr.bf16.mxu1 %v5932_v24  ;;  %v6028_v23 = vld [vmem:[%s8311_s1 + $0xa2c] ss:$16 sps:$4 sm:$0xff]  }
 0x109   :  { %v6101_v24 = vld [vmem:[%s8312_s0 + $0xb4] ss:$72 sps:$4 sm:$0xff]  }
 0x10a   :  { %3910 = vmatmul.mubr.bf16.gmra.mrb[4].mxu0 %v6007_v26  ;;  %4387 = vmatmul.mubr.bf16.gmra.mrb[4].mxu1 %v6007_v26  ;;  %v6026_v26 = vld [vmem:[%s8311_s1 + $0xa28] ss:$16 sps:$4 sm:$0xff]  }
 0x10b   :  { %3925 = vmatpush1.bf16.msra.mxu0 %v5927_v25  ;;  %4402 = vmatpush1.bf16.msra.mxu1 %v5930_v27  ;;  %v6023_v25 = vld [vmem:[%s8311_s1 + $0xa20] ss:$16 sps:$4 sm:$0xff]   ;;  %v6031_v27 = vld [vmem:[%s8311_s1 + $0xa44] ss:$16 sps:$4 sm:$0xff]  }
 0x10c   :  { %3926 = vmatprep.subr.bf16.mxu0 %v5935_v28  ;;  %4403 = vmatprep.subr.bf16.mxu1 %v5938_v29  ;;  %v6034_v28 = vld [vmem:[%s8311_s1 + $0xa4c] ss:$16 sps:$4 sm:$0xff]   ;;  %v6109_v29 = vld [vmem:[%s8312_s0 + $0xb0] ss:$72 sps:$4 sm:$0xff]  }
 0x10d   :  { %3952 = vmatprep.mubr.bf16.mxu0 %v6016_v30  ;;  %4429 = vmatprep.mubr.bf16.mxu1 %v6016_v30  ;;  %v6029_v30 = vld [vmem:[%s8311_s1 + $0xa40] ss:$16 sps:$4 sm:$0xff]  }
 0x10f   :  { %3927 = vmatpush1.bf16.msra.mxu0 %v5933_v31  ;;  %4404 = vmatpush1.bf16.msra.mxu1 %v5936_v32  ;;  %v6032_v31 = vld [vmem:[%s8311_s1 + $0xa48] ss:$16 sps:$4 sm:$0xff]   ;;  %v6037_v32 = vld [vmem:[%s8311_s1 + $0xa64] ss:$16 sps:$4 sm:$0xff]  }
 0x110   :  { %3928 = vmatprep.subr.bf16.mxu0 %v5941_v33  ;;  %4405 = vmatprep.subr.bf16.mxu1 %v5944_v34  ;;  %v6040_v33 = vld [vmem:[%s8311_s1 + $0xa6c] ss:$16 sps:$4 sm:$0xff]  }
 0x111   :  { %v6118_v34 = vld [vmem:[%s8312_s0 + $0x2c] ss:$72 sps:$4 sm:$0xff]  }
 0x113   :  { %3929 = vmatpush1.bf16.msra.mxu0 %v5939_v35  ;;  %4406 = vmatpush1.bf16.msra.mxu1 %v5942_v36  ;;  %v6035_v35 = vld [vmem:[%s8311_s1 + $0xa60] ss:$16 sps:$4 sm:$0xff]   ;;  %v6038_v36 = vld [vmem:[%s8311_s1 + $0xa68] ss:$16 sps:$4 sm:$0xff]  }
 0x114   :  { %3930 = vmatprep.subr.bf16.mxu0 %v5947_v37  ;;  %4407 = vmatprep.subr.bf16.mxu1 %v5950_v38  ;;  %v6043_v37 = vld [vmem:[%s8311_s1 + $0xa84] ss:$16 sps:$4 sm:$0xff]   ;;  %v6046_v38 = vld [vmem:[%s8311_s1 + $0xa8c] ss:$16 sps:$4 sm:$0xff]  }
 0x117   :  { %3931 = vmatpush1.bf16.msra.mxu0 %v5945_v39  ;;  %4408 = vmatpush1.bf16.msra.mxu1 %v5948_v40  ;;  %v6041_v39 = vld [vmem:[%s8311_s1 + $0xa80] ss:$16 sps:$4 sm:$0xff]   ;;  %v6044_v40 = vld [vmem:[%s8311_s1 + $0xa88] ss:$16 sps:$4 sm:$0xff]  }
 0x118   :  { %3932 = vmatprep.subr.bf16.mxu0 %v5953_v41  ;;  %4409 = vmatprep.subr.bf16.mxu1 %v5956_v42  ;;  %v6049_v41 = vld [vmem:[%s8311_s1 + $0xaa4] ss:$16 sps:$4 sm:$0xff]   ;;  %v6052_v42 = vld [vmem:[%s8311_s1 + $0xaac] ss:$16 sps:$4 sm:$0xff]  }
 0x11b   :  { %3933 = vmatpush1.bf16.msra.mxu0 %v5951_v43  ;;  %4410 = vmatpush1.bf16.msra.mxu1 %v5954_v44  ;;  %v6047_v43 = vld [vmem:[%s8311_s1 + $0xaa0] ss:$16 sps:$4 sm:$0xff]   ;;  %v6050_v44 = vld [vmem:[%s8311_s1 + $0xaa8] ss:$16 sps:$4 sm:$0xff]  }
 0x11c   :  { %3934 = vmatprep.subr.bf16.mxu0 %v5959_v45  ;;  %4411 = vmatprep.subr.bf16.mxu1 %v5962_v46  ;;  %v6055_v45 = vld [vmem:[%s8311_s1 + $0xac4] ss:$16 sps:$4 sm:$0xff]   ;;  %v6058_v46 = vld [vmem:[%s8311_s1 + $0xacc] ss:$16 sps:$4 sm:$0xff]  }
 0x11f   :  { %3935 = vmatpush1.bf16.msra.mxu0 %v5957_v47  ;;  %4412 = vmatpush1.bf16.msra.mxu1 %v5960_v48  ;;  %v6053_v47 = vld [vmem:[%s8311_s1 + $0xac0] ss:$16 sps:$4 sm:$0xff]   ;;  %v6056_v48 = vld [vmem:[%s8311_s1 + $0xac8] ss:$16 sps:$4 sm:$0xff]  }
 0x120   :  { %3936 = vmatprep.subr.bf16.mxu0 %v5965_v49  ;;  %4413 = vmatprep.subr.bf16.mxu1 %v5968_v50  ;;  %v6061_v49 = vld [vmem:[%s8311_s1 + $0xae4] ss:$16 sps:$4 sm:$0xff]   ;;  %v6064_v50 = vld [vmem:[%s8311_s1 + $0xaec] ss:$16 sps:$4 sm:$0xff]  }
 0x123   :  { %3937 = vmatpush1.bf16.msra.mxu0 %v5963_v51  ;;  %4414 = vmatpush1.bf16.msra.mxu1 %v5966_v52  ;;  %v6059_v51 = vld [vmem:[%s8311_s1 + $0xae0] ss:$16 sps:$4 sm:$0xff]   ;;  %v6062_v52 = vld [vmem:[%s8311_s1 + $0xae8] ss:$16 sps:$4 sm:$0xff]  }
 0x124   :  { %3938 = vmatprep.subr.bf16.mxu0 %v5971_v53  ;;  %4415 = vmatprep.subr.bf16.mxu1 %v5974_v54  ;;  %v6067_v53 = vld [vmem:[%s8311_s1 + $0xb04] ss:$16 sps:$4 sm:$0xff]   ;;  %v6070_v54 = vld [vmem:[%s8311_s1 + $0xb0c] ss:$16 sps:$4 sm:$0xff]  }
 0x127   :  { %3939 = vmatpush1.bf16.msra.mxu0 %v5969_v55  ;;  %4416 = vmatpush1.bf16.msra.mxu1 %v5972_v56  ;;  %v6065_v55 = vld [vmem:[%s8311_s1 + $0xb00] ss:$16 sps:$4 sm:$0xff]   ;;  %v6068_v56 = vld [vmem:[%s8311_s1 + $0xb08] ss:$16 sps:$4 sm:$0xff]  }
 0x128   :  { %3940 = vmatprep.subr.bf16.mxu0 %v5977_v57  ;;  %4417 = vmatprep.subr.bf16.mxu1 %v5980_v58  ;;  %v6073_v57 = vld [vmem:[%s8311_s1 + $0xb24] ss:$16 sps:$4 sm:$0xff]   ;;  %v6076_v58 = vld [vmem:[%s8311_s1 + $0xb2c] ss:$16 sps:$4 sm:$0xff]  }
 0x12b   :  { %3941 = vmatpush1.bf16.msra.mxu0 %v5975_v59  ;;  %4418 = vmatpush1.bf16.msra.mxu1 %v5978_v60  ;;  %v6071_v59 = vld [vmem:[%s8311_s1 + $0xb20] ss:$16 sps:$4 sm:$0xff]   ;;  %v6074_v60 = vld [vmem:[%s8311_s1 + $0xb28] ss:$16 sps:$4 sm:$0xff]  }
 0x12c   :  { %3942 = vmatprep.subr.bf16.mxu0 %v5983_v61  ;;  %4419 = vmatprep.subr.bf16.mxu1 %v5986_v62  ;;  %v6079_v61 = vld [vmem:[%s8311_s1 + $0xb44] ss:$16 sps:$4 sm:$0xff]   ;;  %v6082_v62 = vld [vmem:[%s8311_s1 + $0xb4c] ss:$16 sps:$4 sm:$0xff]  }
 0x12f   :  { %3943 = vmatpush1.bf16.msra.mxu0 %v5981_v63  ;;  %4420 = vmatpush1.bf16.msra.mxu1 %v5984_v0  ;;  %v6077_v63 = vld [vmem:[%s8311_s1 + $0xb40] ss:$16 sps:$4 sm:$0xff]   ;;  %v6080_v0 = vld [vmem:[%s8311_s1 + $0xb48] ss:$16 sps:$4 sm:$0xff]  }
 0x130   :  { %3944 = vmatprep.subr.bf16.mxu0 %v5989_v1  ;;  %4421 = vmatprep.subr.bf16.mxu1 %v5992_v2  ;;  %v6085_v1 = vld [vmem:[%s8311_s1 + $0xb64] ss:$16 sps:$4 sm:$0xff]   ;;  %v6088_v2 = vld [vmem:[%s8311_s1 + $0xb6c] ss:$16 sps:$4 sm:$0xff]  }
 0x133   :  { %3945 = vmatpush1.bf16.msra.mxu0 %v5987_v3  ;;  %4422 = vmatpush1.bf16.msra.mxu1 %v5990_v4  ;;  %v6083_v3 = vld [vmem:[%s8311_s1 + $0xb60] ss:$16 sps:$4 sm:$0xff]   ;;  %v6086_v4 = vld [vmem:[%s8311_s1 + $0xb68] ss:$16 sps:$4 sm:$0xff]  }
 0x134   :  { %3946 = vmatprep.subr.bf16.mxu0 %v5995_v5  ;;  %4423 = vmatprep.subr.bf16.mxu1 %v5998_v6  ;;  %v6091_v5 = vld [vmem:[%s8311_s1 + $0xb84] ss:$16 sps:$4 sm:$0xff]   ;;  %v6094_v6 = vld [vmem:[%s8311_s1 + $0xb8c] ss:$16 sps:$4 sm:$0xff]  }
 0x137   :  { %3947 = vmatpush1.bf16.msra.mxu0 %v5993_v7  ;;  %4424 = vmatpush1.bf16.msra.mxu1 %v5996_v8  ;;  %v6089_v7 = vld [vmem:[%s8311_s1 + $0xb80] ss:$16 sps:$4 sm:$0xff]   ;;  %v6092_v8 = vld [vmem:[%s8311_s1 + $0xb88] ss:$16 sps:$4 sm:$0xff]  }
 0x138   :  { %3948 = vmatprep.subr.bf16.mxu0 %v6003_v9  ;;  %4425 = vmatprep.subr.bf16.mxu1 %v6006_v10  ;;  %v6097_v9 = vld [vmem:[%s8311_s1 + $0xba4] ss:$16 sps:$4 sm:$0xff]   ;;  %v6100_v10 = vld [vmem:[%s8311_s1 + $0xbac] ss:$16 sps:$4 sm:$0xff]  }
 0x13b   :  { %3949 = vmatpush1.bf16.msra.mxu0 %v6001_v11  ;;  %4426 = vmatpush1.bf16.msra.mxu1 %v6004_v12  ;;  %v6095_v11 = vld [vmem:[%s8311_s1 + $0xba0] ss:$16 sps:$4 sm:$0xff]   ;;  %v6098_v12 = vld [vmem:[%s8311_s1 + $0xba8] ss:$16 sps:$4 sm:$0xff]  }
 0x13c   :  { %3950 = vmatprep.subr.bf16.mxu0 %v6010_v13  ;;  %4427 = vmatprep.subr.bf16.mxu1 %v6013_v14  ;;  %v6105_v13 = vld [vmem:[%s8311_s1 + $0xbc4] ss:$16 sps:$4 sm:$0xff]   ;;  %v6108_v14 = vld [vmem:[%s8311_s1 + $0xbcc] ss:$16 sps:$4 sm:$0xff]  }
 0x13f   :  { %3951 = vmatpush1.bf16.msra.mxu0 %v6008_v15  ;;  %4428 = vmatpush1.bf16.msra.mxu1 %v6011_v16  ;;  %v6103_v15 = vld [vmem:[%s8311_s1 + $0xbc0] ss:$16 sps:$4 sm:$0xff]   ;;  %v6106_v16 = vld [vmem:[%s8311_s1 + $0xbc8] ss:$16 sps:$4 sm:$0xff]  }
 0x140   :  { %3973 = vmatprep.subr.bf16.mxu0 %v6019_v18  ;;  %4450 = vmatprep.subr.bf16.mxu1 %v6022_v19  ;;  %v6115_v18 = vld [vmem:[%s8311_s1 + $0xbec] ss:$16 sps:$4 sm:$0xff]   ;;  %v6110_v19 = vld [vmem:[%s8311_s1 + $0xbe0] ss:$16 sps:$4 sm:$0xff]  }
 0x142   :  { %3953 = vmatmul.mubr.bf16.vlgmr.msra.gmra.mrb[0].mxu0 %v6014_v17  ;;  %4430 = vmatmul.mubr.bf16.vlgmr.msra.gmra.mrb[0].mxu1 %v6014_v17  ;;  %v6112_v17 = vld [vmem:[%s8311_s1 + $0xbe4] ss:$16 sps:$4 sm:$0xff]  }
 0x143   :  { %3974 = vmatpush1.bf16.msra.mxu0 %v6017_v20  ;;  %4451 = vmatpush1.bf16.msra.mxu1 %v6020_v21  ;;  %v6113_v20 = vld [vmem:[%s8311_s1 + $0xbe8] ss:$16 sps:$4 sm:$0xff]  }
 0x144   :  { %3975 = vmatprep.subr.bf16.mxu0 %v6025_v22  ;;  %4452 = vmatprep.subr.bf16.mxu1 %v6028_v23  ;;  %v6116_v21 = vld [vmem:[%s8312_s0 + $0x28] ss:$72 sps:$4 sm:$0xff]   ;;  %v6121_v22 = vld [vmem:[%s8311_s1 + $0xc04] ss:$16 sps:$4 sm:$0xff]   ;;  %v6124_v23 = vld [vmem:[%s8311_s1 + $0xc0c] ss:$16 sps:$4 sm:$0xff]  }
 0x145   :  { %3962 = vmatprep.mubr.bf16.mxu0 %v6101_v24  ;;  %4439 = vmatprep.mubr.bf16.mxu1 %v6101_v24  ;;  %v6119_v24 = vld [vmem:[%s8311_s1 + $0xc00] ss:$16 sps:$4 sm:$0xff]  }
 0x147   :  { %3976 = vmatpush1.bf16.msra.mxu0 %v6023_v25  ;;  %4453 = vmatpush1.bf16.msra.mxu1 %v6026_v26  ;;  %v6122_v25 = vld [vmem:[%s8311_s1 + $0xc08] ss:$16 sps:$4 sm:$0xff]   ;;  %v6127_v26 = vld [vmem:[%s8311_s1 + $0xc24] ss:$16 sps:$4 sm:$0xff]  }
 0x148   :  { %3977 = vmatprep.subr.bf16.mxu0 %v6031_v27  ;;  %4454 = vmatprep.subr.bf16.mxu1 %v6034_v28  ;;  %v6130_v27 = vld [vmem:[%s8311_s1 + $0xc2c] ss:$16 sps:$4 sm:$0xff]  }
 0x149   :  { %v6203_v28 = vld [vmem:[%s8312_s0 + $0xbc] ss:$72 sps:$4 sm:$0xff]  }
 0x14a   :  { %3963 = vmatmul.mubr.bf16.gmra.mrb[4].mxu0 %v6109_v29  ;;  %4440 = vmatmul.mubr.bf16.gmra.mrb[4].mxu1 %v6109_v29  ;;  %v6125_v29 = vld [vmem:[%s8311_s1 + $0xc20] ss:$16 sps:$4 sm:$0xff]  }
 0x14b   :  { %3978 = vmatpush1.bf16.msra.mxu0 %v6029_v30  ;;  %4455 = vmatpush1.bf16.msra.mxu1 %v6032_v31  ;;  %v6128_v30 = vld [vmem:[%s8311_s1 + $0xc28] ss:$16 sps:$4 sm:$0xff]   ;;  %v6133_v31 = vld [vmem:[%s8311_s1 + $0xc44] ss:$16 sps:$4 sm:$0xff]  }
 0x14c   :  { %3979 = vmatprep.subr.bf16.mxu0 %v6037_v32  ;;  %4456 = vmatprep.subr.bf16.mxu1 %v6040_v33  ;;  %v6136_v32 = vld [vmem:[%s8311_s1 + $0xc4c] ss:$16 sps:$4 sm:$0xff]   ;;  %v6211_v33 = vld [vmem:[%s8312_s0 + $0xb8] ss:$72 sps:$4 sm:$0xff]  }
 0x14d   :  { %4005 = vmatprep.mubr.bf16.mxu0 %v6118_v34  ;;  %4482 = vmatprep.mubr.bf16.mxu1 %v6118_v34  ;;  %v6131_v34 = vld [vmem:[%s8311_s1 + $0xc40] ss:$16 sps:$4 sm:$0xff]  }
 0x14f   :  { %3980 = vmatpush1.bf16.msra.mxu0 %v6035_v35  ;;  %4457 = vmatpush1.bf16.msra.mxu1 %v6038_v36  ;;  %v6134_v35 = vld [vmem:[%s8311_s1 + $0xc48] ss:$16 sps:$4 sm:$0xff]   ;;  %v6139_v36 = vld [vmem:[%s8311_s1 + $0xc64] ss:$16 sps:$4 sm:$0xff]  }
 0x150   :  { %3981 = vmatprep.subr.bf16.mxu0 %v6043_v37  ;;  %4458 = vmatprep.subr.bf16.mxu1 %v6046_v38  ;;  %v6142_v37 = vld [vmem:[%s8311_s1 + $0xc6c] ss:$16 sps:$4 sm:$0xff]  }
 0x151   :  { %v6220_v38 = vld [vmem:[%s8312_s0 + $0x34] ss:$72 sps:$4 sm:$0xff]  }
 0x153   :  { %3982 = vmatpush1.bf16.msra.mxu0 %v6041_v39  ;;  %4459 = vmatpush1.bf16.msra.mxu1 %v6044_v40  ;;  %v6137_v39 = vld [vmem:[%s8311_s1 + $0xc60] ss:$16 sps:$4 sm:$0xff]   ;;  %v6140_v40 = vld [vmem:[%s8311_s1 + $0xc68] ss:$16 sps:$4 sm:$0xff]  }
 0x154   :  { %3983 = vmatprep.subr.bf16.mxu0 %v6049_v41  ;;  %4460 = vmatprep.subr.bf16.mxu1 %v6052_v42  ;;  %v6145_v41 = vld [vmem:[%s8311_s1 + $0xc84] ss:$16 sps:$4 sm:$0xff]   ;;  %v6148_v42 = vld [vmem:[%s8311_s1 + $0xc8c] ss:$16 sps:$4 sm:$0xff]  }
 0x157   :  { %3984 = vmatpush1.bf16.msra.mxu0 %v6047_v43  ;;  %4461 = vmatpush1.bf16.msra.mxu1 %v6050_v44  ;;  %v6143_v43 = vld [vmem:[%s8311_s1 + $0xc80] ss:$16 sps:$4 sm:$0xff]   ;;  %v6146_v44 = vld [vmem:[%s8311_s1 + $0xc88] ss:$16 sps:$4 sm:$0xff]  }
 0x158   :  { %3985 = vmatprep.subr.bf16.mxu0 %v6055_v45  ;;  %4462 = vmatprep.subr.bf16.mxu1 %v6058_v46  ;;  %v6151_v45 = vld [vmem:[%s8311_s1 + $0xca4] ss:$16 sps:$4 sm:$0xff]   ;;  %v6154_v46 = vld [vmem:[%s8311_s1 + $0xcac] ss:$16 sps:$4 sm:$0xff]  }
 0x15b   :  { %3986 = vmatpush1.bf16.msra.mxu0 %v6053_v47  ;;  %4463 = vmatpush1.bf16.msra.mxu1 %v6056_v48  ;;  %v6149_v47 = vld [vmem:[%s8311_s1 + $0xca0] ss:$16 sps:$4 sm:$0xff]   ;;  %v6152_v48 = vld [vmem:[%s8311_s1 + $0xca8] ss:$16 sps:$4 sm:$0xff]  }
 0x15c   :  { %3987 = vmatprep.subr.bf16.mxu0 %v6061_v49  ;;  %4464 = vmatprep.subr.bf16.mxu1 %v6064_v50  ;;  %v6157_v49 = vld [vmem:[%s8311_s1 + $0xcc4] ss:$16 sps:$4 sm:$0xff]   ;;  %v6160_v50 = vld [vmem:[%s8311_s1 + $0xccc] ss:$16 sps:$4 sm:$0xff]  }
 0x15f   :  { %3988 = vmatpush1.bf16.msra.mxu0 %v6059_v51  ;;  %4465 = vmatpush1.bf16.msra.mxu1 %v6062_v52  ;;  %v6155_v51 = vld [vmem:[%s8311_s1 + $0xcc0] ss:$16 sps:$4 sm:$0xff]   ;;  %v6158_v52 = vld [vmem:[%s8311_s1 + $0xcc8] ss:$16 sps:$4 sm:$0xff]  }
 0x160   :  { %3989 = vmatprep.subr.bf16.mxu0 %v6067_v53  ;;  %4466 = vmatprep.subr.bf16.mxu1 %v6070_v54  ;;  %v6163_v53 = vld [vmem:[%s8311_s1 + $0xce4] ss:$16 sps:$4 sm:$0xff]   ;;  %v6166_v54 = vld [vmem:[%s8311_s1 + $0xcec] ss:$16 sps:$4 sm:$0xff]  }
 0x163   :  { %3990 = vmatpush1.bf16.msra.mxu0 %v6065_v55  ;;  %4467 = vmatpush1.bf16.msra.mxu1 %v6068_v56  ;;  %v6161_v55 = vld [vmem:[%s8311_s1 + $0xce0] ss:$16 sps:$4 sm:$0xff]   ;;  %v6164_v56 = vld [vmem:[%s8311_s1 + $0xce8] ss:$16 sps:$4 sm:$0xff]  }
 0x164   :  { %3991 = vmatprep.subr.bf16.mxu0 %v6073_v57  ;;  %4468 = vmatprep.subr.bf16.mxu1 %v6076_v58  ;;  %v6169_v57 = vld [vmem:[%s8311_s1 + $0xd04] ss:$16 sps:$4 sm:$0xff]   ;;  %v6172_v58 = vld [vmem:[%s8311_s1 + $0xd0c] ss:$16 sps:$4 sm:$0xff]  }
 0x167   :  { %3992 = vmatpush1.bf16.msra.mxu0 %v6071_v59  ;;  %4469 = vmatpush1.bf16.msra.mxu1 %v6074_v60  ;;  %v6167_v59 = vld [vmem:[%s8311_s1 + $0xd00] ss:$16 sps:$4 sm:$0xff]   ;;  %v6170_v60 = vld [vmem:[%s8311_s1 + $0xd08] ss:$16 sps:$4 sm:$0xff]  }
 0x168   :  { %3993 = vmatprep.subr.bf16.mxu0 %v6079_v61  ;;  %4470 = vmatprep.subr.bf16.mxu1 %v6082_v62  ;;  %v6175_v61 = vld [vmem:[%s8311_s1 + $0xd24] ss:$16 sps:$4 sm:$0xff]   ;;  %v6178_v62 = vld [vmem:[%s8311_s1 + $0xd2c] ss:$16 sps:$4 sm:$0xff]  }
 0x16b   :  { %3994 = vmatpush1.bf16.msra.mxu0 %v6077_v63  ;;  %4471 = vmatpush1.bf16.msra.mxu1 %v6080_v0  ;;  %v6173_v63 = vld [vmem:[%s8311_s1 + $0xd20] ss:$16 sps:$4 sm:$0xff]   ;;  %v6176_v0 = vld [vmem:[%s8311_s1 + $0xd28] ss:$16 sps:$4 sm:$0xff]  }
 0x16c   :  { %3995 = vmatprep.subr.bf16.mxu0 %v6085_v1  ;;  %4472 = vmatprep.subr.bf16.mxu1 %v6088_v2  ;;  %v6181_v1 = vld [vmem:[%s8311_s1 + $0xd44] ss:$16 sps:$4 sm:$0xff]   ;;  %v6184_v2 = vld [vmem:[%s8311_s1 + $0xd4c] ss:$16 sps:$4 sm:$0xff]  }
 0x16f   :  { %3996 = vmatpush1.bf16.msra.mxu0 %v6083_v3  ;;  %4473 = vmatpush1.bf16.msra.mxu1 %v6086_v4  ;;  %v6179_v3 = vld [vmem:[%s8311_s1 + $0xd40] ss:$16 sps:$4 sm:$0xff]   ;;  %v6182_v4 = vld [vmem:[%s8311_s1 + $0xd48] ss:$16 sps:$4 sm:$0xff]  }
 0x170   :  { %3997 = vmatprep.subr.bf16.mxu0 %v6091_v5  ;;  %4474 = vmatprep.subr.bf16.mxu1 %v6094_v6  ;;  %v6187_v5 = vld [vmem:[%s8311_s1 + $0xd64] ss:$16 sps:$4 sm:$0xff]   ;;  %v6190_v6 = vld [vmem:[%s8311_s1 + $0xd6c] ss:$16 sps:$4 sm:$0xff]  }
 0x173   :  { %3998 = vmatpush1.bf16.msra.mxu0 %v6089_v7  ;;  %4475 = vmatpush1.bf16.msra.mxu1 %v6092_v8  ;;  %v6185_v7 = vld [vmem:[%s8311_s1 + $0xd60] ss:$16 sps:$4 sm:$0xff]   ;;  %v6188_v8 = vld [vmem:[%s8311_s1 + $0xd68] ss:$16 sps:$4 sm:$0xff]  }
 0x174   :  { %3999 = vmatprep.subr.bf16.mxu0 %v6097_v9  ;;  %4476 = vmatprep.subr.bf16.mxu1 %v6100_v10  ;;  %v6193_v9 = vld [vmem:[%s8311_s1 + $0xd84] ss:$16 sps:$4 sm:$0xff]   ;;  %v6196_v10 = vld [vmem:[%s8311_s1 + $0xd8c] ss:$16 sps:$4 sm:$0xff]  }
 0x177   :  { %4000 = vmatpush1.bf16.msra.mxu0 %v6095_v11  ;;  %4477 = vmatpush1.bf16.msra.mxu1 %v6098_v12  ;;  %v6191_v11 = vld [vmem:[%s8311_s1 + $0xd80] ss:$16 sps:$4 sm:$0xff]   ;;  %v6194_v12 = vld [vmem:[%s8311_s1 + $0xd88] ss:$16 sps:$4 sm:$0xff]  }
 0x178   :  { %4001 = vmatprep.subr.bf16.mxu0 %v6105_v13  ;;  %4478 = vmatprep.subr.bf16.mxu1 %v6108_v14  ;;  %v6199_v13 = vld [vmem:[%s8311_s1 + $0xda4] ss:$16 sps:$4 sm:$0xff]   ;;  %v6202_v14 = vld [vmem:[%s8311_s1 + $0xdac] ss:$16 sps:$4 sm:$0xff]  }
 0x17b   :  { %4002 = vmatpush1.bf16.msra.mxu0 %v6103_v15  ;;  %4479 = vmatpush1.bf16.msra.mxu1 %v6106_v16  ;;  %v6197_v15 = vld [vmem:[%s8311_s1 + $0xda0] ss:$16 sps:$4 sm:$0xff]   ;;  %v6200_v16 = vld [vmem:[%s8311_s1 + $0xda8] ss:$16 sps:$4 sm:$0xff]  }
 0x17c   :  { %4003 = vmatprep.subr.bf16.mxu0 %v6112_v17  ;;  %4480 = vmatprep.subr.bf16.mxu1 %v6115_v18  ;;  %v6207_v17 = vld [vmem:[%s8311_s1 + $0xdc4] ss:$16 sps:$4 sm:$0xff]   ;;  %v6210_v18 = vld [vmem:[%s8311_s1 + $0xdcc] ss:$16 sps:$4 sm:$0xff]  }
 0x17f   :  { %4004 = vmatpush1.bf16.msra.mxu0 %v6110_v19  ;;  %4481 = vmatpush1.bf16.msra.mxu1 %v6113_v20  ;;  %v6205_v19 = vld [vmem:[%s8311_s1 + $0xdc0] ss:$16 sps:$4 sm:$0xff]   ;;  %v6208_v20 = vld [vmem:[%s8311_s1 + $0xdc8] ss:$16 sps:$4 sm:$0xff]  }
 0x180   :  { %4026 = vmatprep.subr.bf16.mxu0 %v6121_v22  ;;  %4503 = vmatprep.subr.bf16.mxu1 %v6124_v23  ;;  %v6217_v22 = vld [vmem:[%s8311_s1 + $0xdec] ss:$16 sps:$4 sm:$0xff]   ;;  %v6212_v23 = vld [vmem:[%s8311_s1 + $0xde0] ss:$16 sps:$4 sm:$0xff]  }
 0x182   :  { %4006 = vmatmul.mubr.bf16.vlgmr.msra.gmra.mrb[0].mxu0 %v6116_v21  ;;  %4483 = vmatmul.mubr.bf16.vlgmr.msra.gmra.mrb[0].mxu1 %v6116_v21  ;;  %v6214_v21 = vld [vmem:[%s8311_s1 + $0xde4] ss:$16 sps:$4 sm:$0xff]  }
 0x183   :  { %4027 = vmatpush1.bf16.msra.mxu0 %v6119_v24  ;;  %4504 = vmatpush1.bf16.msra.mxu1 %v6122_v25  ;;  %v6215_v24 = vld [vmem:[%s8311_s1 + $0xde8] ss:$16 sps:$4 sm:$0xff]   ;;  %v6223_v25 = vld [vmem:[%s8311_s1 + $0xe04] ss:$16 sps:$4 sm:$0xff]  }
 0x184   :  { %4028 = vmatprep.subr.bf16.mxu0 %v6127_v26  ;;  %4505 = vmatprep.subr.bf16.mxu1 %v6130_v27  ;;  %v6226_v26 = vld [vmem:[%s8311_s1 + $0xe0c] ss:$16 sps:$4 sm:$0xff]   ;;  %v6218_v27 = vld [vmem:[%s8312_s0 + $0x30] ss:$72 sps:$4 sm:$0xff]  }
 0x185   :  { %4015 = vmatprep.mubr.bf16.mxu0 %v6203_v28  ;;  %4492 = vmatprep.mubr.bf16.mxu1 %v6203_v28  ;;  %v6221_v28 = vld [vmem:[%s8311_s1 + $0xe00] ss:$16 sps:$4 sm:$0xff]  }
 0x187   :  { %4029 = vmatpush1.bf16.msra.mxu0 %v6125_v29  ;;  %4506 = vmatpush1.bf16.msra.mxu1 %v6128_v30  ;;  %v6224_v29 = vld [vmem:[%s8311_s1 + $0xe08] ss:$16 sps:$4 sm:$0xff]   ;;  %v6229_v30 = vld [vmem:[%s8311_s1 + $0xe24] ss:$16 sps:$4 sm:$0xff]  }
 0x188   :  { %4030 = vmatprep.subr.bf16.mxu0 %v6133_v31  ;;  %4507 = vmatprep.subr.bf16.mxu1 %v6136_v32  ;;  %v6232_v31 = vld [vmem:[%s8311_s1 + $0xe2c] ss:$16 sps:$4 sm:$0xff]  }
 0x189   :  { %v6305_v32 = vld [vmem:[%s8312_s0 + $0xc4] ss:$72 sps:$4 sm:$0xff]  }
 0x18a   :  { %4016 = vmatmul.mubr.bf16.gmra.mrb[4].mxu0 %v6211_v33  ;;  %4493 = vmatmul.mubr.bf16.gmra.mrb[4].mxu1 %v6211_v33  ;;  %v6227_v33 = vld [vmem:[%s8311_s1 + $0xe20] ss:$16 sps:$4 sm:$0xff]  }
 0x18b   :  { %4031 = vmatpush1.bf16.msra.mxu0 %v6131_v34  ;;  %4508 = vmatpush1.bf16.msra.mxu1 %v6134_v35  ;;  %v6230_v34 = vld [vmem:[%s8311_s1 + $0xe28] ss:$16 sps:$4 sm:$0xff]   ;;  %v6235_v35 = vld [vmem:[%s8311_s1 + $0xe44] ss:$16 sps:$4 sm:$0xff]  }
 0x18c   :  { %4032 = vmatprep.subr.bf16.mxu0 %v6139_v36  ;;  %4509 = vmatprep.subr.bf16.mxu1 %v6142_v37  ;;  %v6238_v36 = vld [vmem:[%s8311_s1 + $0xe4c] ss:$16 sps:$4 sm:$0xff]   ;;  %v6313_v37 = vld [vmem:[%s8312_s0 + $0xc0] ss:$72 sps:$4 sm:$0xff]  }
 0x18d   :  { %4058 = vmatprep.mubr.bf16.mxu0 %v6220_v38  ;;  %4535 = vmatprep.mubr.bf16.mxu1 %v6220_v38  ;;  %v6233_v38 = vld [vmem:[%s8311_s1 + $0xe40] ss:$16 sps:$4 sm:$0xff]  }
 0x18f   :  { %4033 = vmatpush1.bf16.msra.mxu0 %v6137_v39  ;;  %4510 = vmatpush1.bf16.msra.mxu1 %v6140_v40  ;;  %v6236_v39 = vld [vmem:[%s8311_s1 + $0xe48] ss:$16 sps:$4 sm:$0xff]   ;;  %v6241_v40 = vld [vmem:[%s8311_s1 + $0xe64] ss:$16 sps:$4 sm:$0xff]  }
 0x190   :  { %4034 = vmatprep.subr.bf16.mxu0 %v6145_v41  ;;  %4511 = vmatprep.subr.bf16.mxu1 %v6148_v42  ;;  %v6244_v41 = vld [vmem:[%s8311_s1 + $0xe6c] ss:$16 sps:$4 sm:$0xff]  }
 0x191   :  { %v6322_v42 = vld [vmem:[%s8312_s0 + $0x3c] ss:$72 sps:$4 sm:$0xff]  }
 0x193   :  { %4035 = vmatpush1.bf16.msra.mxu0 %v6143_v43  ;;  %4512 = vmatpush1.bf16.msra.mxu1 %v6146_v44  ;;  %v6239_v43 = vld [vmem:[%s8311_s1 + $0xe60] ss:$16 sps:$4 sm:$0xff]   ;;  %v6242_v44 = vld [vmem:[%s8311_s1 + $0xe68] ss:$16 sps:$4 sm:$0xff]  }
 0x194   :  { %4036 = vmatprep.subr.bf16.mxu0 %v6151_v45  ;;  %4513 = vmatprep.subr.bf16.mxu1 %v6154_v46  ;;  %v6247_v45 = vld [vmem:[%s8311_s1 + $0xe84] ss:$16 sps:$4 sm:$0xff]   ;;  %v6250_v46 = vld [vmem:[%s8311_s1 + $0xe8c] ss:$16 sps:$4 sm:$0xff]  }
 0x197   :  { %4037 = vmatpush1.bf16.msra.mxu0 %v6149_v47  ;;  %4514 = vmatpush1.bf16.msra.mxu1 %v6152_v48  ;;  %v6245_v47 = vld [vmem:[%s8311_s1 + $0xe80] ss:$16 sps:$4 sm:$0xff]   ;;  %v6248_v48 = vld [vmem:[%s8311_s1 + $0xe88] ss:$16 sps:$4 sm:$0xff]  }
 0x198   :  { %4038 = vmatprep.subr.bf16.mxu0 %v6157_v49  ;;  %4515 = vmatprep.subr.bf16.mxu1 %v6160_v50  ;;  %v6253_v49 = vld [vmem:[%s8311_s1 + $0xea4] ss:$16 sps:$4 sm:$0xff]   ;;  %v6256_v50 = vld [vmem:[%s8311_s1 + $0xeac] ss:$16 sps:$4 sm:$0xff]  }
 0x19b   :  { %4039 = vmatpush1.bf16.msra.mxu0 %v6155_v51  ;;  %4516 = vmatpush1.bf16.msra.mxu1 %v6158_v52  ;;  %v6251_v51 = vld [vmem:[%s8311_s1 + $0xea0] ss:$16 sps:$4 sm:$0xff]   ;;  %v6254_v52 = vld [vmem:[%s8311_s1 + $0xea8] ss:$16 sps:$4 sm:$0xff]  }
 0x19c   :  { %4040 = vmatprep.subr.bf16.mxu0 %v6163_v53  ;;  %4517 = vmatprep.subr.bf16.mxu1 %v6166_v54  ;;  %v6259_v53 = vld [vmem:[%s8311_s1 + $0xec4] ss:$16 sps:$4 sm:$0xff]   ;;  %v6262_v54 = vld [vmem:[%s8311_s1 + $0xecc] ss:$16 sps:$4 sm:$0xff]  }
 0x19f   :  { %4041 = vmatpush1.bf16.msra.mxu0 %v6161_v55  ;;  %4518 = vmatpush1.bf16.msra.mxu1 %v6164_v56  ;;  %v6257_v55 = vld [vmem:[%s8311_s1 + $0xec0] ss:$16 sps:$4 sm:$0xff]   ;;  %v6260_v56 = vld [vmem:[%s8311_s1 + $0xec8] ss:$16 sps:$4 sm:$0xff]  }
 0x1a0   :  { %4042 = vmatprep.subr.bf16.mxu0 %v6169_v57  ;;  %4519 = vmatprep.subr.bf16.mxu1 %v6172_v58  ;;  %v6265_v57 = vld [vmem:[%s8311_s1 + $0xee4] ss:$16 sps:$4 sm:$0xff]   ;;  %v6268_v58 = vld [vmem:[%s8311_s1 + $0xeec] ss:$16 sps:$4 sm:$0xff]  }
 0x1a3   :  { %4043 = vmatpush1.bf16.msra.mxu0 %v6167_v59  ;;  %4520 = vmatpush1.bf16.msra.mxu1 %v6170_v60  ;;  %v6263_v59 = vld [vmem:[%s8311_s1 + $0xee0] ss:$16 sps:$4 sm:$0xff]   ;;  %v6266_v60 = vld [vmem:[%s8311_s1 + $0xee8] ss:$16 sps:$4 sm:$0xff]  }
 0x1a4   :  { %4044 = vmatprep.subr.bf16.mxu0 %v6175_v61  ;;  %4521 = vmatprep.subr.bf16.mxu1 %v6178_v62  ;;  %v6271_v61 = vld [vmem:[%s8311_s1 + $0xf04] ss:$16 sps:$4 sm:$0xff]   ;;  %v6274_v62 = vld [vmem:[%s8311_s1 + $0xf0c] ss:$16 sps:$4 sm:$0xff]  }
 0x1a7   :  { %4045 = vmatpush1.bf16.msra.mxu0 %v6173_v63  ;;  %4522 = vmatpush1.bf16.msra.mxu1 %v6176_v0  ;;  %v6269_v63 = vld [vmem:[%s8311_s1 + $0xf00] ss:$16 sps:$4 sm:$0xff]   ;;  %v6272_v0 = vld [vmem:[%s8311_s1 + $0xf08] ss:$16 sps:$4 sm:$0xff]  }
 0x1a8   :  { %4046 = vmatprep.subr.bf16.mxu0 %v6181_v1  ;;  %4523 = vmatprep.subr.bf16.mxu1 %v6184_v2  ;;  %v6277_v1 = vld [vmem:[%s8311_s1 + $0xf24] ss:$16 sps:$4 sm:$0xff]   ;;  %v6280_v2 = vld [vmem:[%s8311_s1 + $0xf2c] ss:$16 sps:$4 sm:$0xff]  }
 0x1ab   :  { %4047 = vmatpush1.bf16.msra.mxu0 %v6179_v3  ;;  %4524 = vmatpush1.bf16.msra.mxu1 %v6182_v4  ;;  %v6275_v3 = vld [vmem:[%s8311_s1 + $0xf20] ss:$16 sps:$4 sm:$0xff]   ;;  %v6278_v4 = vld [vmem:[%s8311_s1 + $0xf28] ss:$16 sps:$4 sm:$0xff]  }
 0x1ac   :  { %4048 = vmatprep.subr.bf16.mxu0 %v6187_v5  ;;  %4525 = vmatprep.subr.bf16.mxu1 %v6190_v6  ;;  %v6283_v5 = vld [vmem:[%s8311_s1 + $0xf44] ss:$16 sps:$4 sm:$0xff]   ;;  %v6286_v6 = vld [vmem:[%s8311_s1 + $0xf4c] ss:$16 sps:$4 sm:$0xff]  }
 0x1af   :  { %4049 = vmatpush1.bf16.msra.mxu0 %v6185_v7  ;;  %4526 = vmatpush1.bf16.msra.mxu1 %v6188_v8  ;;  %v6281_v7 = vld [vmem:[%s8311_s1 + $0xf40] ss:$16 sps:$4 sm:$0xff]   ;;  %v6284_v8 = vld [vmem:[%s8311_s1 + $0xf48] ss:$16 sps:$4 sm:$0xff]  }
 0x1b0   :  { %4050 = vmatprep.subr.bf16.mxu0 %v6193_v9  ;;  %4527 = vmatprep.subr.bf16.mxu1 %v6196_v10  ;;  %v6289_v9 = vld [vmem:[%s8311_s1 + $0xf64] ss:$16 sps:$4 sm:$0xff]   ;;  %v6292_v10 = vld [vmem:[%s8311_s1 + $0xf6c] ss:$16 sps:$4 sm:$0xff]  }
 0x1b3   :  { %4051 = vmatpush1.bf16.msra.mxu0 %v6191_v11  ;;  %4528 = vmatpush1.bf16.msra.mxu1 %v6194_v12  ;;  %v6287_v11 = vld [vmem:[%s8311_s1 + $0xf60] ss:$16 sps:$4 sm:$0xff]   ;;  %v6290_v12 = vld [vmem:[%s8311_s1 + $0xf68] ss:$16 sps:$4 sm:$0xff]  }
 0x1b4   :  { %4052 = vmatprep.subr.bf16.mxu0 %v6199_v13  ;;  %4529 = vmatprep.subr.bf16.mxu1 %v6202_v14  ;;  %v6295_v13 = vld [vmem:[%s8311_s1 + $0xf84] ss:$16 sps:$4 sm:$0xff]   ;;  %v6298_v14 = vld [vmem:[%s8311_s1 + $0xf8c] ss:$16 sps:$4 sm:$0xff]  }
 0x1b7   :  { %4053 = vmatpush1.bf16.msra.mxu0 %v6197_v15  ;;  %4530 = vmatpush1.bf16.msra.mxu1 %v6200_v16  ;;  %v6293_v15 = vld [vmem:[%s8311_s1 + $0xf80] ss:$16 sps:$4 sm:$0xff]   ;;  %v6296_v16 = vld [vmem:[%s8311_s1 + $0xf88] ss:$16 sps:$4 sm:$0xff]  }
 0x1b8   :  { %4054 = vmatprep.subr.bf16.mxu0 %v6207_v17  ;;  %4531 = vmatprep.subr.bf16.mxu1 %v6210_v18  ;;  %v6301_v17 = vld [vmem:[%s8311_s1 + $0xfa4] ss:$16 sps:$4 sm:$0xff]   ;;  %v6304_v18 = vld [vmem:[%s8311_s1 + $0xfac] ss:$16 sps:$4 sm:$0xff]  }
 0x1bb   :  { %4055 = vmatpush1.bf16.msra.mxu0 %v6205_v19  ;;  %4532 = vmatpush1.bf16.msra.mxu1 %v6208_v20  ;;  %v6299_v19 = vld [vmem:[%s8311_s1 + $0xfa0] ss:$16 sps:$4 sm:$0xff]   ;;  %v6302_v20 = vld [vmem:[%s8311_s1 + $0xfa8] ss:$16 sps:$4 sm:$0xff]  }
 0x1bc   :  { %4056 = vmatprep.subr.bf16.mxu0 %v6214_v21  ;;  %4533 = vmatprep.subr.bf16.mxu1 %v6217_v22  ;;  %v6309_v21 = vld [vmem:[%s8311_s1 + $0xfc4] ss:$16 sps:$4 sm:$0xff]   ;;  %v6312_v22 = vld [vmem:[%s8311_s1 + $0xfcc] ss:$16 sps:$4 sm:$0xff]  }
 0x1bf   :  { %4057 = vmatpush1.bf16.msra.mxu0 %v6212_v23  ;;  %4534 = vmatpush1.bf16.msra.mxu1 %v6215_v24  ;;  %v6307_v23 = vld [vmem:[%s8311_s1 + $0xfc0] ss:$16 sps:$4 sm:$0xff]   ;;  %v6310_v24 = vld [vmem:[%s8311_s1 + $0xfc8] ss:$16 sps:$4 sm:$0xff]  }
 0x1c0   :  { %4079 = vmatprep.subr.bf16.mxu0 %v6223_v25  ;;  %4556 = vmatprep.subr.bf16.mxu1 %v6226_v26  ;;  %v6316_v25 = vld [vmem:[%s8311_s1 + $0xfe4] ss:$16 sps:$4 sm:$0xff]   ;;  %v6319_v26 = vld [vmem:[%s8311_s1 + $0xfec] ss:$16 sps:$4 sm:$0xff]  }
 0x1c2   :  { %4059 = vmatmul.mubr.bf16.vlgmr.msra.gmra.mrb[0].mxu0 %v6218_v27  ;;  %4536 = vmatmul.mubr.bf16.vlgmr.msra.gmra.mrb[0].mxu1 %v6218_v27  ;;  %v6314_v27 = vld [vmem:[%s8311_s1 + $0xfe0] ss:$16 sps:$4 sm:$0xff]  }
 0x1c3   :  { %4080 = vmatpush1.bf16.msra.mxu0 %v6221_v28  ;;  %4557 = vmatpush1.bf16.msra.mxu1 %v6224_v29  ;;  %v6317_v28 = vld [vmem:[%s8311_s1 + $0xfe8] ss:$16 sps:$4 sm:$0xff]   ;;  %v6325_v29 = vld [vmem:[%s8311_s1 + $0x1004] ss:$16 sps:$4 sm:$0xff]  }
 0x1c4   :  { %4081 = vmatprep.subr.bf16.mxu0 %v6229_v30  ;;  %4558 = vmatprep.subr.bf16.mxu1 %v6232_v31  ;;  %v6328_v30 = vld [vmem:[%s8311_s1 + $0x100c] ss:$16 sps:$4 sm:$0xff]   ;;  %v6320_v31 = vld [vmem:[%s8312_s0 + $0x38] ss:$72 sps:$4 sm:$0xff]  }
 0x1c5   :  { %4068 = vmatprep.mubr.bf16.mxu0 %v6305_v32  ;;  %4545 = vmatprep.mubr.bf16.mxu1 %v6305_v32  ;;  %v6323_v32 = vld [vmem:[%s8311_s1 + $0x1000] ss:$16 sps:$4 sm:$0xff]  }
 0x1c7   :  { %4082 = vmatpush1.bf16.msra.mxu0 %v6227_v33  ;;  %4559 = vmatpush1.bf16.msra.mxu1 %v6230_v34  ;;  %v6326_v33 = vld [vmem:[%s8311_s1 + $0x1008] ss:$16 sps:$4 sm:$0xff]   ;;  %v6331_v34 = vld [vmem:[%s8311_s1 + $0x1024] ss:$16 sps:$4 sm:$0xff]  }
 0x1c8   :  { %4083 = vmatprep.subr.bf16.mxu0 %v6235_v35  ;;  %4560 = vmatprep.subr.bf16.mxu1 %v6238_v36  ;;  %v6334_v35 = vld [vmem:[%s8311_s1 + $0x102c] ss:$16 sps:$4 sm:$0xff]  }
 0x1c9   :  { %v6407_v36 = vld [vmem:[%s8312_s0 + $0xcc] ss:$72 sps:$4 sm:$0xff]  }
 0x1ca   :  { %4069 = vmatmul.mubr.bf16.gmra.mrb[4].mxu0 %v6313_v37  ;;  %4546 = vmatmul.mubr.bf16.gmra.mrb[4].mxu1 %v6313_v37  ;;  %v6329_v37 = vld [vmem:[%s8311_s1 + $0x1020] ss:$16 sps:$4 sm:$0xff]  }
 0x1cb   :  { %4084 = vmatpush1.bf16.msra.mxu0 %v6233_v38  ;;  %4561 = vmatpush1.bf16.msra.mxu1 %v6236_v39  ;;  %v6332_v38 = vld [vmem:[%s8311_s1 + $0x1028] ss:$16 sps:$4 sm:$0xff]   ;;  %v6337_v39 = vld [vmem:[%s8311_s1 + $0x1044] ss:$16 sps:$4 sm:$0xff]  }
 0x1cc   :  { %4085 = vmatprep.subr.bf16.mxu0 %v6241_v40  ;;  %4562 = vmatprep.subr.bf16.mxu1 %v6244_v41  ;;  %v6340_v40 = vld [vmem:[%s8311_s1 + $0x104c] ss:$16 sps:$4 sm:$0xff]   ;;  %v6409_v41 = vld [vmem:[%s8312_s0 + $0xc8] ss:$72 sps:$4 sm:$0xff]  }
 0x1cd   :  { %4111 = vmatprep.mubr.bf16.mxu0 %v6322_v42  ;;  %4588 = vmatprep.mubr.bf16.mxu1 %v6322_v42  ;;  %v6335_v42 = vld [vmem:[%s8311_s1 + $0x1040] ss:$16 sps:$4 sm:$0xff]  }
 0x1cf   :  { %4086 = vmatpush1.bf16.msra.mxu0 %v6239_v43  ;;  %4563 = vmatpush1.bf16.msra.mxu1 %v6242_v44  ;;  %v6338_v43 = vld [vmem:[%s8311_s1 + $0x1048] ss:$16 sps:$4 sm:$0xff]   ;;  %v6343_v44 = vld [vmem:[%s8311_s1 + $0x1064] ss:$16 sps:$4 sm:$0xff]  }
 0x1d0   :  { %4087 = vmatprep.subr.bf16.mxu0 %v6247_v45  ;;  %4564 = vmatprep.subr.bf16.mxu1 %v6250_v46  ;;  %v6346_v45 = vld [vmem:[%s8311_s1 + $0x106c] ss:$16 sps:$4 sm:$0xff]  }
 0x1d1   :  { %v6424_v46 = vld [vmem:[%s8312_s0 + $0x44] ss:$72 sps:$4 sm:$0xff]  }
 0x1d3   :  { %4088 = vmatpush1.bf16.msra.mxu0 %v6245_v47  ;;  %4565 = vmatpush1.bf16.msra.mxu1 %v6248_v48  ;;  %v6341_v47 = vld [vmem:[%s8311_s1 + $0x1060] ss:$16 sps:$4 sm:$0xff]   ;;  %v6344_v48 = vld [vmem:[%s8311_s1 + $0x1068] ss:$16 sps:$4 sm:$0xff]  }
 0x1d4   :  { %4089 = vmatprep.subr.bf16.mxu0 %v6253_v49  ;;  %4566 = vmatprep.subr.bf16.mxu1 %v6256_v50  ;;  %v6349_v49 = vld [vmem:[%s8311_s1 + $0x1084] ss:$16 sps:$4 sm:$0xff]   ;;  %v6352_v50 = vld [vmem:[%s8311_s1 + $0x108c] ss:$16 sps:$4 sm:$0xff]  }
 0x1d7   :  { %4090 = vmatpush1.bf16.msra.mxu0 %v6251_v51  ;;  %4567 = vmatpush1.bf16.msra.mxu1 %v6254_v52  ;;  %v6347_v51 = vld [vmem:[%s8311_s1 + $0x1080] ss:$16 sps:$4 sm:$0xff]   ;;  %v6350_v52 = vld [vmem:[%s8311_s1 + $0x1088] ss:$16 sps:$4 sm:$0xff]  }
 0x1d8   :  { %4091 = vmatprep.subr.bf16.mxu0 %v6259_v53  ;;  %4568 = vmatprep.subr.bf16.mxu1 %v6262_v54  ;;  %v6355_v53 = vld [vmem:[%s8311_s1 + $0x10a4] ss:$16 sps:$4 sm:$0xff]   ;;  %v6358_v54 = vld [vmem:[%s8311_s1 + $0x10ac] ss:$16 sps:$4 sm:$0xff]  }
 0x1db   :  { %4092 = vmatpush1.bf16.msra.mxu0 %v6257_v55  ;;  %4569 = vmatpush1.bf16.msra.mxu1 %v6260_v56  ;;  %v6353_v55 = vld [vmem:[%s8311_s1 + $0x10a0] ss:$16 sps:$4 sm:$0xff]   ;;  %v6356_v56 = vld [vmem:[%s8311_s1 + $0x10a8] ss:$16 sps:$4 sm:$0xff]  }
 0x1dc   :  { %4093 = vmatprep.subr.bf16.mxu0 %v6265_v57  ;;  %4570 = vmatprep.subr.bf16.mxu1 %v6268_v58  ;;  %v6361_v57 = vld [vmem:[%s8311_s1 + $0x10c4] ss:$16 sps:$4 sm:$0xff]   ;;  %v6364_v58 = vld [vmem:[%s8311_s1 + $0x10cc] ss:$16 sps:$4 sm:$0xff]  }
 0x1df   :  { %4094 = vmatpush1.bf16.msra.mxu0 %v6263_v59  ;;  %4571 = vmatpush1.bf16.msra.mxu1 %v6266_v60  ;;  %v6359_v59 = vld [vmem:[%s8311_s1 + $0x10c0] ss:$16 sps:$4 sm:$0xff]   ;;  %v6362_v60 = vld [vmem:[%s8311_s1 + $0x10c8] ss:$16 sps:$4 sm:$0xff]  }
 0x1e0   :  { %4095 = vmatprep.subr.bf16.mxu0 %v6271_v61  ;;  %4572 = vmatprep.subr.bf16.mxu1 %v6274_v62  ;;  %v6367_v61 = vld [vmem:[%s8311_s1 + $0x10e4] ss:$16 sps:$4 sm:$0xff]   ;;  %v6370_v62 = vld [vmem:[%s8311_s1 + $0x10ec] ss:$16 sps:$4 sm:$0xff]  }
 0x1e3   :  { %4096 = vmatpush1.bf16.msra.mxu0 %v6269_v63  ;;  %4573 = vmatpush1.bf16.msra.mxu1 %v6272_v0  ;;  %v6365_v63 = vld [vmem:[%s8311_s1 + $0x10e0] ss:$16 sps:$4 sm:$0xff]   ;;  %v6368_v0 = vld [vmem:[%s8311_s1 + $0x10e8] ss:$16 sps:$4 sm:$0xff]  }
 0x1e4   :  { %4097 = vmatprep.subr.bf16.mxu0 %v6277_v1  ;;  %4574 = vmatprep.subr.bf16.mxu1 %v6280_v2  ;;  %v6373_v1 = vld [vmem:[%s8311_s1 + $0x1104] ss:$16 sps:$4 sm:$0xff]   ;;  %v6376_v2 = vld [vmem:[%s8311_s1 + $0x110c] ss:$16 sps:$4 sm:$0xff]  }
 0x1e7   :  { %4098 = vmatpush1.bf16.msra.mxu0 %v6275_v3  ;;  %4575 = vmatpush1.bf16.msra.mxu1 %v6278_v4  ;;  %v6371_v3 = vld [vmem:[%s8311_s1 + $0x1100] ss:$16 sps:$4 sm:$0xff]   ;;  %v6374_v4 = vld [vmem:[%s8311_s1 + $0x1108] ss:$16 sps:$4 sm:$0xff]  }
 0x1e8   :  { %4099 = vmatprep.subr.bf16.mxu0 %v6283_v5  ;;  %4576 = vmatprep.subr.bf16.mxu1 %v6286_v6  ;;  %v6379_v5 = vld [vmem:[%s8311_s1 + $0x1124] ss:$16 sps:$4 sm:$0xff]   ;;  %v6382_v6 = vld [vmem:[%s8311_s1 + $0x112c] ss:$16 sps:$4 sm:$0xff]  }
 0x1eb   :  { %4100 = vmatpush1.bf16.msra.mxu0 %v6281_v7  ;;  %4577 = vmatpush1.bf16.msra.mxu1 %v6284_v8  ;;  %v6377_v7 = vld [vmem:[%s8311_s1 + $0x1120] ss:$16 sps:$4 sm:$0xff]   ;;  %v6380_v8 = vld [vmem:[%s8311_s1 + $0x1128] ss:$16 sps:$4 sm:$0xff]  }
 0x1ec   :  { %4101 = vmatprep.subr.bf16.mxu0 %v6289_v9  ;;  %4578 = vmatprep.subr.bf16.mxu1 %v6292_v10  ;;  %v6385_v9 = vld [vmem:[%s8311_s1 + $0x1144] ss:$16 sps:$4 sm:$0xff]   ;;  %v6388_v10 = vld [vmem:[%s8311_s1 + $0x114c] ss:$16 sps:$4 sm:$0xff]  }
 0x1ef   :  { %4102 = vmatpush1.bf16.msra.mxu0 %v6287_v11  ;;  %4579 = vmatpush1.bf16.msra.mxu1 %v6290_v12  ;;  %v6383_v11 = vld [vmem:[%s8311_s1 + $0x1140] ss:$16 sps:$4 sm:$0xff]   ;;  %v6386_v12 = vld [vmem:[%s8311_s1 + $0x1148] ss:$16 sps:$4 sm:$0xff]  }
 0x1f0   :  { %4103 = vmatprep.subr.bf16.mxu0 %v6295_v13  ;;  %4580 = vmatprep.subr.bf16.mxu1 %v6298_v14  ;;  %v6391_v13 = vld [vmem:[%s8311_s1 + $0x1164] ss:$16 sps:$4 sm:$0xff]   ;;  %v6394_v14 = vld [vmem:[%s8311_s1 + $0x116c] ss:$16 sps:$4 sm:$0xff]  }
 0x1f3   :  { %4104 = vmatpush1.bf16.msra.mxu0 %v6293_v15  ;;  %4581 = vmatpush1.bf16.msra.mxu1 %v6296_v16  ;;  %v6389_v15 = vld [vmem:[%s8311_s1 + $0x1160] ss:$16 sps:$4 sm:$0xff]   ;;  %v6392_v16 = vld [vmem:[%s8311_s1 + $0x1168] ss:$16 sps:$4 sm:$0xff]  }
 0x1f4   :  { %4105 = vmatprep.subr.bf16.mxu0 %v6301_v17  ;;  %4582 = vmatprep.subr.bf16.mxu1 %v6304_v18  ;;  %v6397_v17 = vld [vmem:[%s8311_s1 + $0x1184] ss:$16 sps:$4 sm:$0xff]   ;;  %v6400_v18 = vld [vmem:[%s8311_s1 + $0x118c] ss:$16 sps:$4 sm:$0xff]  }
 0x1f7   :  { %4106 = vmatpush1.bf16.msra.mxu0 %v6299_v19  ;;  %4583 = vmatpush1.bf16.msra.mxu1 %v6302_v20  ;;  %v6395_v19 = vld [vmem:[%s8311_s1 + $0x1180] ss:$16 sps:$4 sm:$0xff]   ;;  %v6398_v20 = vld [vmem:[%s8311_s1 + $0x1188] ss:$16 sps:$4 sm:$0xff]  }
 0x1f8   :  { %4107 = vmatprep.subr.bf16.mxu0 %v6309_v21  ;;  %4584 = vmatprep.subr.bf16.mxu1 %v6312_v22  ;;  %v6403_v21 = vld [vmem:[%s8311_s1 + $0x11a4] ss:$16 sps:$4 sm:$0xff]   ;;  %v6406_v22 = vld [vmem:[%s8311_s1 + $0x11ac] ss:$16 sps:$4 sm:$0xff]  }
 0x1fb   :  { %4108 = vmatpush1.bf16.msra.mxu0 %v6307_v23  ;;  %4585 = vmatpush1.bf16.msra.mxu1 %v6310_v24  ;;  %v6401_v23 = vld [vmem:[%s8311_s1 + $0x11a0] ss:$16 sps:$4 sm:$0xff]   ;;  %v6404_v24 = vld [vmem:[%s8311_s1 + $0x11a8] ss:$16 sps:$4 sm:$0xff]  }
 0x1fc   :  { %4109 = vmatprep.subr.bf16.mxu0 %v6316_v25  ;;  %4586 = vmatprep.subr.bf16.mxu1 %v6319_v26  ;;  %v6412_v25 = vld [vmem:[%s8311_s1 + $0x11c4] ss:$16 sps:$4 sm:$0xff]   ;;  %v6415_v26 = vld [vmem:[%s8311_s1 + $0x11cc] ss:$16 sps:$4 sm:$0xff]  }
 0x1ff   :  { %4110 = vmatpush1.bf16.msra.mxu0 %v6314_v27  ;;  %4587 = vmatpush1.bf16.msra.mxu1 %v6317_v28  ;;  %v6410_v27 = vld [vmem:[%s8311_s1 + $0x11c0] ss:$16 sps:$4 sm:$0xff]   ;;  %v6413_v28 = vld [vmem:[%s8311_s1 + $0x11c8] ss:$16 sps:$4 sm:$0xff]  }
 0x200   :  { %4132 = vmatprep.subr.bf16.mxu0 %v6325_v29  ;;  %4609 = vmatprep.subr.bf16.mxu1 %v6328_v30  ;;  %v6418_v29 = vld [vmem:[%s8311_s1 + $0x11e4] ss:$16 sps:$4 sm:$0xff]   ;;  %v6421_v30 = vld [vmem:[%s8311_s1 + $0x11ec] ss:$16 sps:$4 sm:$0xff]  }
 0x202   :  { %4112 = vmatmul.mubr.bf16.vlgmr.msra.gmra.mrb[0].mxu0 %v6320_v31  ;;  %4589 = vmatmul.mubr.bf16.vlgmr.msra.gmra.mrb[0].mxu1 %v6320_v31  ;;  %v6416_v31 = vld [vmem:[%s8311_s1 + $0x11e0] ss:$16 sps:$4 sm:$0xff]  }
 0x203   :  { %4133 = vmatpush1.bf16.msra.mxu0 %v6323_v32  ;;  %4610 = vmatpush1.bf16.msra.mxu1 %v6326_v33  ;;  %v6419_v32 = vld [vmem:[%s8311_s1 + $0x11e8] ss:$16 sps:$4 sm:$0xff]  }
 0x204   :  { %4134 = vmatprep.subr.bf16.mxu0 %v6331_v34  ;;  %4611 = vmatprep.subr.bf16.mxu1 %v6334_v35  ;;  %v6422_v33 = vld [vmem:[%s8312_s0 + $0x40] ss:$72 sps:$4 sm:$0xff]   ;;  %v6425_v34 = vld [vmem:[%s8312_s0 + $0xd4] ss:$72 sps:$4 sm:$0xff]   ;;  %v6427_v35 = vld [vmem:[%s8312_s0 + $0xd0] ss:$72 sps:$4 sm:$0xff]  }
 0x205   :  { %4121 = vmatprep.mubr.bf16.mxu0 %v6407_v36  ;;  %4598 = vmatprep.mubr.bf16.mxu1 %v6407_v36  ;;  %v628_v36 = vlaneseq }
 0x207   :  { %4135 = vmatpush1.bf16.msra.mxu0 %v6329_v37  ;;  %4612 = vmatpush1.bf16.msra.mxu1 %v6332_v38  ;;  %v629_v37 = vshrl.u32 %v628_v36, 7 }
 0x208   :  { %4136 = vmatprep.subr.bf16.mxu0 %v6337_v39  ;;  %4613 = vmatprep.subr.bf16.mxu1 %v6340_v40  ;;  %v626_v40 = vld [vmem:[%s8313_s2] sm:$0xf] }
 0x209   :  { %v630_v38 = vsub.s32 0, %v629_v37  ;;  %v638_v39 = vsub.s32 2, %v629_v37 }
 0x20a   :  { %4122 = vmatmul.mubr.bf16.gmra.mrb[4].mxu0 %v6409_v41  ;;  %4599 = vmatmul.mubr.bf16.gmra.mrb[4].mxu1 %v6409_v41  ;;  %v634_v41 = vsub.s32 1, %v629_v37 }
 0x20b   :  { %4137 = vmatpush1.bf16.msra.mxu0 %v6335_v42  ;;  %4614 = vmatpush1.bf16.msra.mxu1 %v6338_v43  ;;  %v642_v42 = vsub.s32 3, %v629_v37  ;;  %v631_v43 = vrot.slane %v626_v40, %v630_v38 }
 0x20c   :  { %4138 = vmatprep.subr.bf16.mxu0 %v6343_v44  ;;  %4615 = vmatprep.subr.bf16.mxu1 %v6346_v45  ;;  %v639_v44 = vrot.slane %v626_v40, %v638_v39  ;;  %v635_v45 = vrot.slane %v626_v40, %v634_v41 }
 0x20d   :  { %4164 = vmatprep.mubr.bf16.mxu0 %v6424_v46  ;;  %4641 = vmatprep.mubr.bf16.mxu1 %v6424_v46  ;;  %v643_v46 = vrot.slane %v626_v40, %v642_v42 }
 0x20f   :  { %4139 = vmatpush1.bf16.msra.mxu0 %v6341_v47  ;;  %4616 = vmatpush1.bf16.msra.mxu1 %v6344_v48 }
 0x210   :  { %4140 = vmatprep.subr.bf16.mxu0 %v6349_v49  ;;  %4617 = vmatprep.subr.bf16.mxu1 %v6352_v50 }
 0x213   :  { %4141 = vmatpush1.bf16.msra.mxu0 %v6347_v51  ;;  %4618 = vmatpush1.bf16.msra.mxu1 %v6350_v52 }
 0x214   :  { %4142 = vmatprep.subr.bf16.mxu0 %v6355_v53  ;;  %4619 = vmatprep.subr.bf16.mxu1 %v6358_v54 }
 0x217   :  { %4143 = vmatpush1.bf16.msra.mxu0 %v6353_v55  ;;  %4620 = vmatpush1.bf16.msra.mxu1 %v6356_v56 }
 0x218   :  { %4144 = vmatprep.subr.bf16.mxu0 %v6361_v57  ;;  %4621 = vmatprep.subr.bf16.mxu1 %v6364_v58 }
 0x21b   :  { %4145 = vmatpush1.bf16.msra.mxu0 %v6359_v59  ;;  %4622 = vmatpush1.bf16.msra.mxu1 %v6362_v60 }
 0x21c   :  { %4146 = vmatprep.subr.bf16.mxu0 %v6367_v61  ;;  %4623 = vmatprep.subr.bf16.mxu1 %v6370_v62 }
 0x21f   :  { %4147 = vmatpush1.bf16.msra.mxu0 %v6365_v63  ;;  %4624 = vmatpush1.bf16.msra.mxu1 %v6368_v0 }
 0x220   :  { %4148 = vmatprep.subr.bf16.mxu0 %v6373_v1  ;;  %4625 = vmatprep.subr.bf16.mxu1 %v6376_v2 }
 0x223   :  { %4149 = vmatpush1.bf16.msra.mxu0 %v6371_v3  ;;  %4626 = vmatpush1.bf16.msra.mxu1 %v6374_v4 }
 0x224   :  { %4150 = vmatprep.subr.bf16.mxu0 %v6379_v5  ;;  %4627 = vmatprep.subr.bf16.mxu1 %v6382_v6 }
 0x227   :  { %4151 = vmatpush1.bf16.msra.mxu0 %v6377_v7  ;;  %4628 = vmatpush1.bf16.msra.mxu1 %v6380_v8 }
 0x228   :  { %4152 = vmatprep.subr.bf16.mxu0 %v6385_v9  ;;  %4629 = vmatprep.subr.bf16.mxu1 %v6388_v10 }
 0x22b   :  { %4153 = vmatpush1.bf16.msra.mxu0 %v6383_v11  ;;  %4630 = vmatpush1.bf16.msra.mxu1 %v6386_v12 }
 0x22c   :  { %4154 = vmatprep.subr.bf16.mxu0 %v6391_v13  ;;  %4631 = vmatprep.subr.bf16.mxu1 %v6394_v14 }
 0x22f   :  { %4155 = vmatpush1.bf16.msra.mxu0 %v6389_v15  ;;  %4632 = vmatpush1.bf16.msra.mxu1 %v6392_v16 }
 0x230   :  { %4156 = vmatprep.subr.bf16.mxu0 %v6397_v17  ;;  %4633 = vmatprep.subr.bf16.mxu1 %v6400_v18 }
 0x233   :  { %4157 = vmatpush1.bf16.msra.mxu0 %v6395_v19  ;;  %4634 = vmatpush1.bf16.msra.mxu1 %v6398_v20 }
 0x234   :  { %4158 = vmatprep.subr.bf16.mxu0 %v6403_v21  ;;  %4635 = vmatprep.subr.bf16.mxu1 %v6406_v22 }
 0x237   :  { %4159 = vmatpush1.bf16.msra.mxu0 %v6401_v23  ;;  %4636 = vmatpush1.bf16.msra.mxu1 %v6404_v24 }
 0x238   :  { %4160 = vmatprep.subr.bf16.mxu0 %v6412_v25  ;;  %4637 = vmatprep.subr.bf16.mxu1 %v6415_v26 }
 0x23b   :  { %4161 = vmatpush1.bf16.msra.mxu0 %v6410_v27  ;;  %4638 = vmatpush1.bf16.msra.mxu1 %v6413_v28 }
 0x23c   :  { %4162 = vmatprep.subr.bf16.mxu0 %v6418_v29  ;;  %4639 = vmatprep.subr.bf16.mxu1 %v6421_v30 }
 0x23f   :  { %4163 = vmatpush1.bf16.msra.mxu0 %v6416_v31  ;;  %4640 = vmatpush1.bf16.msra.mxu1 %v6419_v32 }
 0x242   :  { %4165 = vmatmul.mubr.bf16.vlgmr.msra.gmra.mrb[0].mxu0 %v6422_v33  ;;  %4642 = vmatmul.mubr.bf16.vlgmr.msra.gmra.mrb[0].mxu1 %v6422_v33 }
 0x243   :  { %4174 = vmatprep.mubr.bf16.mxu0 %v6425_v34  ;;  %4651 = vmatprep.mubr.bf16.mxu1 %v6425_v34 }
 0x24a   :  { %4175 = vmatmul.mubr.bf16.gmra.mrb[4].mxu0 %v6427_v35  ;;  %4652 = vmatmul.mubr.bf16.gmra.mrb[4].mxu1 %v6427_v35 }
 0x315   :  { %v4166_v47 = vpop.f32.mrb[0].mxu0  ;;  %v4643_v48 = vpop.f32.mrb[0].mxu1 }
 0x316   :  { %v5366_v49 = vadd.f32 %v4166_v47, %v631_v43  ;;  %v5374_v50 = vadd.f32 %v4643_v48, %v639_v44  ;;  %v4168_v51 = vpop.f32.mrb[1].mxu0  ;;  %v4645_v52 = vpop.f32.mrb[1].mxu1 }
 0x317   :  { %v5367_v53 = vadd.f32 %v4168_v51, %v635_v45  ;;  %v5375_v54 = vadd.f32 %v4645_v52, %v643_v46  ;;  %v4170_v55 = vpop.f32.mrb[2].mxu0  ;;  %v4647_v56 = vpop.f32.mrb[2].mxu1 }
 0x318   :  { %v4662_v57 = vmax.f32 %v5366_v49, 0.0  ;;  %v4664_v58 = vmax.f32 %v5374_v50, 0.0  ;;  %v5368_v59 = vadd.f32 %v4170_v55, %v631_v43  ;;  %v5376_v60 = vadd.f32 %v4647_v56, %v639_v44  ;;  %v4172_v61 = vpop.f32.mrb[3].mxu0  ;;  %v4649_v62 = vpop.f32.mrb[3].mxu1 }
 0x319   :  { %v4663_v63 = vmax.f32 %v5367_v53, 0.0  ;;  %v4665_v0 = vmax.f32 %v5375_v54, 0.0  ;;  %v5369_v1 = vadd.f32 %v4172_v61, %v635_v45  ;;  %v5377_v2 = vadd.f32 %v4649_v62, %v643_v46 }
 0x31a   :  { %v4666_v3 = vmax.f32 %v5368_v59, 0.0  ;;  %v4668_v4 = vmax.f32 %v5376_v60, 0.0 }
 0x31b   :  { %v5358_v5 = vpack.c.bf16 %v4663_v63, %v4662_v57  ;;  %v5359_v6 = vpack.c.bf16 %v4665_v0, %v4664_v58  ;;  %v4667_v7 = vmax.f32 %v5369_v1, 0.0  ;;  %v4669_v8 = vmax.f32 %v5377_v2, 0.0 }
 0x31d   :  { %4726 = vst [vmem:[%s8314_s3] sm:$0xff] %v5358_v5  ;;  %4727 = vst [vmem:[%s8314_s3 + $0x8] sm:$0xff] %v5359_v6  ;;  %v5360_v9 = vpack.c.bf16 %v4667_v7, %v4666_v3  ;;  %v5361_v10 = vpack.c.bf16 %v4669_v8, %v4668_v4  ;;  %v4176_v11 = vpop.f32.mrb[4].mxu0  ;;  %v4653_v12 = vpop.f32.mrb[4].mxu1 }
 0x31e   :  { %v5370_v13 = vadd.f32 %v4176_v11, %v631_v43  ;;  %v5378_v14 = vadd.f32 %v4653_v12, %v639_v44  ;;  %v4178_v15 = vpop.f32.mrb[5].mxu0  ;;  %v4655_v16 = vpop.f32.mrb[5].mxu1 }
 0x31f   :  { %4728 = vst [vmem:[%s8314_s3 + $0x10] sm:$0xff] %v5360_v9  ;;  %4729 = vst [vmem:[%s8314_s3 + $0x18] sm:$0xff] %v5361_v10  ;;  %v5371_v17 = vadd.f32 %v4178_v15, %v635_v45  ;;  %v5379_v18 = vadd.f32 %v4655_v16, %v643_v46  ;;  %v4180_v19 = vpop.f32.mrb[6].mxu0  ;;  %v4657_v20 = vpop.f32.mrb[6].mxu1 }
 0x320   :  { %v4670_v21 = vmax.f32 %v5370_v13, 0.0  ;;  %v4672_v22 = vmax.f32 %v5378_v14, 0.0  ;;  %v5372_v23 = vadd.f32 %v4180_v19, %v631_v43  ;;  %v5380_v24 = vadd.f32 %v4657_v20, %v639_v44  ;;  %v4182_v25 = vpop.f32.mrb[7].mxu0  ;;  %v4659_v26 = vpop.f32.mrb[7].mxu1 }
 0x321   :  { %v4671_v27 = vmax.f32 %v5371_v17, 0.0  ;;  %v4673_v28 = vmax.f32 %v5379_v18, 0.0  ;;  %v5373_v29 = vadd.f32 %v4182_v25, %v635_v45  ;;  %v5381_v30 = vadd.f32 %v4659_v26, %v643_v46 }
 0x322   :  { %v4674_v31 = vmax.f32 %v5372_v23, 0.0  ;;  %v4676_v32 = vmax.f32 %v5380_v24, 0.0 }
 0x323   :  { %v5362_v33 = vpack.c.bf16 %v4671_v27, %v4670_v21  ;;  %v5363_v34 = vpack.c.bf16 %v4673_v28, %v4672_v22  ;;  %v4675_v35 = vmax.f32 %v5373_v29, 0.0  ;;  %v4677_v36 = vmax.f32 %v5381_v30, 0.0 }
 0x325   :  { %4730 = vst [vmem:[%s8314_s3 + $0x20] sm:$0xff] %v5362_v33  ;;  %4731 = vst [vmem:[%s8314_s3 + $0x28] sm:$0xff] %v5363_v34  ;;  %v5364_v37 = vpack.c.bf16 %v4675_v35, %v4674_v31  ;;  %v5365_v38 = vpack.c.bf16 %v4677_v36, %v4676_v32 }
 0x327   :  { %4732 = vst [vmem:[%s8314_s3 + $0x30] sm:$0xff] %v5364_v37  ;;  %4733 = vst [vmem:[%s8314_s3 + $0x38] sm:$0xff] %v5365_v38 }

</bundles_post_ra>
